<compile_context>
chip_gen: v7x
topology: tpu7x:2x2x1
jax: 0.10.0
libtpu: 0.0.40
codegen_flags: <defaults>
</compile_context>

<pallas_src>
import functools

import jax
import jax.numpy as jnp
from jax import lax
from jax.experimental import pallas as pl
from jax.experimental.pallas import tpu as pltpu

BN_EPS = 1e-5   # nn.BatchNorm2d default eps


def _round_up(a, b):
    return (a + b - 1) // b * b


@functools.lru_cache(maxsize=None)
def _tpu_budget():
    """(vmem_limit_bytes, max_tile_m) derived per TPU generation.
    64 MiB-VMEM parts (v7x-class): 48 MiB cap / 512-row tiles.
    128 MiB parts (v5e/v6e): 96 MiB cap / 1024-row tiles."""
    vmem = 128 * 1024 * 1024
    try:
        vmem = int(getattr(pltpu.get_tpu_info(), "vmem_capacity_bytes", vmem))
    except Exception:
        pass
    if vmem <= 64 * 1024 * 1024:
        return 48 * 1024 * 1024, 512
    return 96 * 1024 * 1024, 1024


# --------------------------- Pallas kernels ---------------------------------

def _conv_stats_kernel(p_ref, w_ref, b_ref, y_ref, stat_ref, *, tile_m, m_valid):
    """bf16 im2col-matmul conv, f32 accumulation.  Writes the bf16 pre-BN activation
    tile (bias added) plus this tile's per-channel partial [sum(z), sum(z^2)] of the
    bias-free matmul output z (var(y) == var(z), mean(y) == mean(z) + b, so dropping
    the bias from the stats avoids E[y^2]-E[y]^2 cancellation).  Row masking is
    gated to the final, partially-valid tile only."""
    i = pl.program_id(0)
    z = jnp.dot(p_ref[...], w_ref[...], preferred_element_type=jnp.float32)
    y_ref[...] = (z + b_ref[...]).astype(y_ref.dtype)

    def write_stats(zv):
        s = jnp.sum(zv, axis=0, keepdims=True)          # (1, Cout_pad)
        ss = jnp.sum(zv * zv, axis=0, keepdims=True)    # (1, Cout_pad)
        stat_ref[...] = jnp.concatenate([s, ss], axis=0)[None]   # (1, 2, Cout_pad)

    if m_valid % tile_m == 0:                            # static: all tiles full
        write_stats(z)
    else:
        last = pl.num_programs(0) - 1

        @pl.when(i != last)
        def _():
            write_stats(z)

        @pl.when(i == last)
        def _():
            rows = lax.broadcasted_iota(jnp.int32, z.shape, 0) + i * tile_m
            write_stats(jnp.where(rows < m_valid, z, 0.0))


def _head_kernel(x_ref, w_ref, b_ref, o_ref):
    """AdaptiveAvgPool2d((1,1)) + flatten + pre-folded fc1∘fc2∘fc3 affine map
    (output padded to 128 lanes for lane-dense stores)."""
    x = jnp.mean(x_ref[...].astype(jnp.float32), axis=1)          # (N, C)
    o_ref[...] = jnp.dot(x, w_ref[...], preferred_element_type=jnp.float32) + b_ref[...]


# --------------------------- wrappers ----------------------------------------

def conv_bn_relu(x_nhwc, w, b, gamma, beta, *, stride, padding):
    """Conv2d + training-mode BatchNorm2d (batch stats) + ReLU.
    Conv = Pallas bf16 im2col matmul tiled over M; BN batch stats reduced from the
    kernel's per-tile partials; BN affine + ReLU + channel-slice stay in jnp so XLA
    fuses them with the following maxpool / next layer's im2col."""
    vmem_limit, max_tile_m = _tpu_budget()

    N, H, W, Cin = x_nhwc.shape
    Cout, _, K, _ = w.shape
    Cout_pad = _round_up(Cout, 128)                 # lane-dense kernel output
    if padding:
        x_nhwc = jnp.pad(x_nhwc, ((0, 0), (padding, padding), (padding, padding), (0, 0)))
        H += 2 * padding
        W += 2 * padding
    Ho = (H - K) // stride + 1
    Wo = (W - K) // stride + 1
    M = N * Ho * Wo
    Kd = K * K * Cin
    Kd_pad = _round_up(Kd, 128)

    # im2col patch matrix in bf16.  Patch ordering ((ki*K + kj)*Cin + ci) matches
    # the weight reshape below.
    # TODO(synk): implicit im2col would eliminate this materialized HBM stream.
    xb = x_nhwc.astype(jnp.bfloat16)
    taps = []
    for ki in range(K):
        for kj in range(K):
            taps.append(xb[:, ki:ki + stride * (Ho - 1) + 1:stride,
                            kj:kj + stride * (Wo - 1) + 1:stride, :])
    patches = jnp.concatenate(taps, axis=-1).reshape(M, Kd)
    if Kd_pad != Kd:
        patches = jnp.pad(patches, ((0, 0), (0, Kd_pad - Kd)))

    # Tile over M; keep the grid >= 2 steps when possible (v7x megacore sharding).
    tile_m = min(max_tile_m, max(8, _round_up((M + 1) // 2, 8)))
    M_pad = _round_up(M, tile_m)
    nt = M_pad // tile_m
    if M_pad != M:
        patches = jnp.pad(patches, ((0, M_pad - M), (0, 0)))

    wmat = jnp.transpose(w, (2, 3, 1, 0)).reshape(Kd, Cout).astype(jnp.bfloat16)
    wmat = jnp.pad(wmat, ((0, Kd_pad - Kd), (0, Cout_pad - Cout)))
    b2 = jnp.pad(b, ((0, Cout_pad - Cout),)).reshape(1, Cout_pad).astype(jnp.float32)

    kern = functools.partial(_conv_stats_kernel, tile_m=tile_m, m_valid=M)
    y, stats = pl.pallas_call(
        kern,
        out_shape=(jax.ShapeDtypeStruct((M_pad, Cout_pad), jnp.bfloat16),
                   jax.ShapeDtypeStruct((nt, 2, Cout_pad), jnp.float32)),
        grid=(nt,),
        in_specs=[
            pl.BlockSpec((tile_m, Kd_pad), lambda i: (i, 0)),
            pl.BlockSpec((Kd_pad, Cout_pad), lambda i: (0, 0)),
            pl.BlockSpec((1, Cout_pad), lambda i: (0, 0)),
        ],
        out_specs=(pl.BlockSpec((tile_m, Cout_pad), lambda i: (i, 0)),
                   pl.BlockSpec((1, 2, Cout_pad), lambda i: (i, 0, 0))),
        compiler_params=pltpu.CompilerParams(
            dimension_semantics=("parallel",),
            vmem_limit_bytes=vmem_limit),
    )(patches, wmat, b2)

    # Tiny per-channel glue: reduce bias-free partial stats, build the BN affine.
    # (Training-mode BatchNorm: biased batch variance; running stats not updated.)
    sum_z = jnp.sum(stats[:, 0, :Cout], axis=0)
    sum_zz = jnp.sum(stats[:, 1, :Cout], axis=0)
    mean_z = sum_z / M
    var = jnp.maximum(sum_zz / M - mean_z * mean_z, 0.0)
    scale = gamma * lax.rsqrt(var + BN_EPS)
    shift = beta - (mean_z + b) * scale                  # y = z + b

    # BN affine + ReLU + channel slice in plain jnp (bf16 in/out) so XLA fuses it
    # with the following maxpool / next layer's im2col instead of a second pass.
    yk = y[:M, :Cout].reshape(N, Ho, Wo, Cout)
    out = jnp.maximum(yk.astype(jnp.float32) * scale + shift, 0.0)
    return out.astype(jnp.bfloat16)


def maxpool_3x3_s2(x_nhwc):
    """MaxPool2d(3, 2), ceil_mode=False: pairwise maximum tree over the 9 strided
    views (XLA fuses this with the preceding BN/ReLU; no stacked 9x tensor)."""
    N, H, W, C = x_nhwc.shape
    Ho = (H - 3) // 2 + 1
    Wo = (W - 3) // 2 + 1
    out = None
    for di in range(3):
        for dj in range(3):
            v = x_nhwc[:, di:di + 2 * (Ho - 1) + 1:2,
                       dj:dj + 2 * (Wo - 1) + 1:2, :]
            out = v if out is None else jnp.maximum(out, v)
    return out


def fold_head_params(fc1_w, fc1_b, fc2_w, fc2_b, fc3_w, fc3_b):
    """fc1->fc2->fc3 has no nonlinearity: fold into one affine map (done ONCE,
    outside the jitted forward), padded to 128 output lanes."""
    nc = fc3_w.shape[0]
    w123 = fc1_w.T @ fc2_w.T @ fc3_w.T                              # (128, nc)
    b123 = fc1_b @ fc2_w.T @ fc3_w.T + fc2_b @ fc3_w.T + fc3_b      # (nc,)
    nc_pad = max(128, _round_up(nc, 128))
    w123 = jnp.pad(w123, ((0, 0), (0, nc_pad - nc)))
    b123 = jnp.pad(b123, ((0, nc_pad - nc),)).reshape(1, nc_pad)
    return w123.astype(jnp.float32), b123.astype(jnp.float32)


def head(x_nhwc, head_w, head_b, num_classes):
    """AdaptiveAvgPool2d((1,1)) + flatten + folded fc chain in one tiny kernel."""
    vmem_limit, _ = _tpu_budget()
    N, Ho, Wo, C = x_nhwc.shape
    nc_pad = head_w.shape[1]
    x3 = x_nhwc.reshape(N, Ho * Wo, C)
    out = pl.pallas_call(
        _head_kernel,
        out_shape=jax.ShapeDtypeStruct((N, nc_pad), jnp.float32),
        grid=(1,),
        in_specs=[
            pl.BlockSpec((N, Ho * Wo, C), lambda i: (0, 0, 0)),
            pl.BlockSpec((C, nc_pad), lambda i: (0, 0)),
            pl.BlockSpec((1, nc_pad), lambda i: (0, 0)),
        ],
        out_specs=pl.BlockSpec((N, nc_pad), lambda i: (0, 0)),
        compiler_params=pltpu.CompilerParams(vmem_limit_bytes=vmem_limit),
    )(x3, head_w, head_b)
    return out[:, :num_classes]


# --------------------------- model --------------------------------------------

def init_params(key, num_classes):
    keys = iter(jax.random.split(key, 40))

    def nrm(shape, scale=0.05):
        return jax.random.normal(next(keys), shape, jnp.float32) * scale

    p = {}
    conv_cfg = [("conv1", 3, 64, 11), ("conv2", 64, 128, 5), ("conv3", 128, 256, 3),
                ("conv4", 256, 256, 3), ("conv5", 256, 128, 3)]
    for name, cin, cout, k in conv_cfg:
        p[f"{name}_w"] = nrm((cout, cin, k, k))
        p[f"{name}_b"] = nrm((cout,))
        p[f"{name}_gamma"] = 1.0 + nrm((cout,))
        p[f"{name}_beta"] = nrm((cout,))
    p["fc1_w"] = nrm((1024, 128))
    p["fc1_b"] = nrm((1024,))
    p["fc2_w"] = nrm((1024, 1024))
    p["fc2_b"] = nrm((1024,))
    p["fc3_w"] = nrm((num_classes, 1024))
    p["fc3_b"] = nrm((num_classes,))
    return p


def prepare_params(p):
    """One-time parameter prep (outside jit): fold fc1/fc2/fc3 into a single
    padded affine map so the per-call head is essentially free."""
    q = dict(p)
    q["head_w"], q["head_b"] = fold_head_params(
        p["fc1_w"], p["fc1_b"], p["fc2_w"], p["fc2_b"], p["fc3_w"], p["fc3_b"])
    for k in ("fc1_w", "fc1_b", "fc2_w", "fc2_b", "fc3_w", "fc3_b"):
        q.pop(k)
    return q


@functools.partial(jax.jit, static_argnames=("num_classes",))
def custom_cnn_forward(params, x_nchw, *, num_classes):
    x = jnp.transpose(x_nchw, (0, 2, 3, 1))   # NCHW -> NHWC (internal layout)
    x = conv_bn_relu(x, params["conv1_w"], params["conv1_b"],
                     params["conv1_gamma"], params["conv1_beta"], stride=4, padding=0)
    x = maxpool_3x3_s2(x)
    x = conv_bn_relu(x, params["conv2_w"], params["conv2_b"],
                     params["conv2_gamma"], params["conv2_beta"], stride=1, padding=2)
    x = maxpool_3x3_s2(x)
    x = conv_bn_relu(x, params["conv3_w"], params["conv3_b"],
                     params["conv3_gamma"], params["conv3_beta"], stride=1, padding=1)
    x = conv_bn_relu(x, params["conv4_w"], params["conv4_b"],
                     params["conv4_gamma"], params["conv4_beta"], stride=1, padding=1)
    x = conv_bn_relu(x, params["conv5_w"], params["conv5_b"],
                     params["conv5_gamma"], params["conv5_beta"], stride=1, padding=1)
    x = maxpool_3x3_s2(x)
    return head(x, params["head_w"], params["head_b"], num_classes)


if __name__ == "__main__":
    num_classes = 10
    key = jax.random.PRNGKey(0)
    k_params, k_x = jax.random.split(key)
    params = prepare_params(init_params(k_params, num_classes))
    # 67 is the smallest spatial size that survives conv1(k=11,s=4) + 3 maxpools.
    x = jax.random.normal(k_x, (2, 3, 67, 67), jnp.float32)

    out = custom_cnn_forward(params, x, num_classes=num_classes)
    out = jax.block_until_ready(out)
    assert out.shape == (2, num_classes), out.shape
    assert bool(jnp.all(jnp.isfinite(out)))
    print("KERNEL_OK")
</pallas_src>

<mosaic_0001>
module attributes {stable_mosaic.version = 11 : i64} {
  func.func @_conv_stats_kernel(%arg0: i32, %arg1: memref<232x384xbf16, #tpu.memory_space<vmem>>, %arg2: memref<384x128xbf16, #tpu.memory_space<vmem>>, %arg3: memref<1x128xf32, #tpu.memory_space<vmem>>, %arg4: memref<232x128xbf16, #tpu.memory_space<vmem>>, %arg5: memref<1x2x128xf32, #tpu.memory_space<vmem>>) attributes {dimension_semantics = [#tpu.dimension_semantics<parallel>], iteration_bounds = array<i64: 2>, scalar_prefetch = 0 : i64, scratch_operands = 0 : i64, tpu.core_type = #tpu.core_type<tc>, window_params = [{transform_indices = @transform_0, window_bounds = array<i64: 232, 384>}, {pipeline_mode = #tpu.pipeline_mode<synchronous>, transform_indices = @transform_1, window_bounds = array<i64: 384, 128>}, {pipeline_mode = #tpu.pipeline_mode<synchronous>, transform_indices = @transform_2, window_bounds = array<i64: 1, 128>}, {transform_indices = @transform_3, window_bounds = array<i64: 232, 128>}, {transform_indices = @transform_4, window_bounds = array<i64: 1, 2, 128>}]} {
    %c0 = arith.constant 0 : index
    %c0_0 = arith.constant 0 : index
    %0 = vector.load %arg1[%c0, %c0_0] : memref<232x384xbf16, #tpu.memory_space<vmem>>, vector<232x384xbf16>
    %c0_1 = arith.constant 0 : index
    %c0_2 = arith.constant 0 : index
    %1 = vector.load %arg2[%c0_1, %c0_2] : memref<384x128xbf16, #tpu.memory_space<vmem>>, vector<384x128xbf16>
    %cst = arith.constant dense<0.000000e+00> : vector<232x128xf32>
    %2 = tpu.matmul %0, %1, %cst {dimension_numbers = #tpu.dot_dimension_numbers<[1], [0], [0], [1], [0, 0, 1, 1], [], []>} : vector<232x384xbf16>, vector<384x128xbf16>, vector<232x128xf32> -> vector<232x128xf32>
    %c0_3 = arith.constant 0 : index
    %c0_4 = arith.constant 0 : index
    %3 = vector.load %arg3[%c0_3, %c0_4] : memref<1x128xf32, #tpu.memory_space<vmem>>, vector<1x128xf32>
    %4 = vector.broadcast %3 : vector<1x128xf32> to vector<232x128xf32>
    %5 = arith.addf %2, %4 : vector<232x128xf32>
    %6 = arith.truncf %5 : vector<232x128xf32> to vector<232x128xbf16>
    %c0_5 = arith.constant 0 : index
    %c0_6 = arith.constant 0 : index
    %7 = vector.load %arg4[%c0_5, %c0_6] : memref<232x128xbf16, #tpu.memory_space<vmem>>, vector<232x128xbf16>
    tpu.vector_store %arg4[%c0_5, %c0_6], %6 {strides = array<i32>} : memref<232x128xbf16, #tpu.memory_space<vmem>>, vector<232x128xbf16>,
    %c1_i32 = arith.constant 1 : i32
    %8 = arith.cmpi ne, %arg0, %c1_i32 : i32
    %9 = arith.extui %8 : i1 to i32
    %c0_i32 = arith.constant 0 : i32
    %10 = arith.cmpi ne, %9, %c0_i32 : i32
    scf.if %10 {
      %cst_9 = arith.constant dense<0.000000e+00> : vector<128xf32>
      %14 = vector.multi_reduction <add>, %2, %cst_9 [0] : vector<232x128xf32> to vector<128xf32>
      %15 = vector.shape_cast %14 : vector<128xf32> to vector<1x128xf32>
      %16 = arith.mulf %2, %2 : vector<232x128xf32>
      %cst_10 = arith.constant dense<0.000000e+00> : vector<128xf32>
      %17 = vector.multi_reduction <add>, %16, %cst_10 [0] : vector<232x128xf32> to vector<128xf32>
      %18 = vector.shape_cast %17 : vector<128xf32> to vector<1x128xf32>
      %19 = tpu.concatenate %15, %18 in 0 : vector<1x128xf32>, vector<1x128xf32> -> vector<2x128xf32>
      %20 = vector.shape_cast %19 : vector<2x128xf32> to vector<1x2x128xf32>
      %c0_11 = arith.constant 0 : index
      %c0_12 = arith.constant 0 : index
      %c0_13 = arith.constant 0 : index
      %21 = vector.load %arg5[%c0_11, %c0_12, %c0_13] : memref<1x2x128xf32, #tpu.memory_space<vmem>>, vector<1x2x128xf32>
      tpu.vector_store %arg5[%c0_11, %c0_12, %c0_13], %20 {strides = array<i32>} : memref<1x2x128xf32, #tpu.memory_space<vmem>>, vector<1x2x128xf32>,
    } else {
    }
    %c1_i32_7 = arith.constant 1 : i32
    %11 = arith.cmpi eq, %arg0, %c1_i32_7 : i32
    %12 = arith.extui %11 : i1 to i32
    %c0_i32_8 = arith.constant 0 : i32
    %13 = arith.cmpi ne, %12, %c0_i32_8 : i32
    scf.if %13 {
      %14 = tpu.iota {dimensions = array<i32: 0>} : vector<232x128xi32>
      %c232_i32 = arith.constant 232 : i32
      %15 = arith.muli %arg0, %c232_i32 : i32
      %16 = vector.broadcast %15 : i32 to vector<232x128xi32>
      %17 = arith.addi %14, %16 : vector<232x128xi32>
      %c450_i32 = arith.constant 450 : i32
      %18 = vector.broadcast %c450_i32 : i32 to vector<232x128xi32>
      %19 = arith.cmpi slt, %17, %18 : vector<232x128xi32>
      %cst_9 = arith.constant 0.000000e+00 : f32
      %20 = vector.broadcast %cst_9 : f32 to vector<232x128xf32>
      %21 = arith.select %19, %2, %20 : vector<232x128xi1>, vector<232x128xf32>
      %cst_10 = arith.constant dense<0.000000e+00> : vector<128xf32>
      %22 = vector.multi_reduction <add>, %21, %cst_10 [0] : vector<232x128xf32> to vector<128xf32>
      %23 = vector.shape_cast %22 : vector<128xf32> to vector<1x128xf32>
      %24 = arith.mulf %21, %21 : vector<232x128xf32>
      %cst_11 = arith.constant dense<0.000000e+00> : vector<128xf32>
      %25 = vector.multi_reduction <add>, %24, %cst_11 [0] : vector<232x128xf32> to vector<128xf32>
      %26 = vector.shape_cast %25 : vector<128xf32> to vector<1x128xf32>
      %27 = tpu.concatenate %23, %26 in 0 : vector<1x128xf32>, vector<1x128xf32> -> vector<2x128xf32>
      %28 = vector.shape_cast %27 : vector<2x128xf32> to vector<1x2x128xf32>
      %c0_12 = arith.constant 0 : index
      %c0_13 = arith.constant 0 : index
      %c0_14 = arith.constant 0 : index
      %29 = vector.load %arg5[%c0_12, %c0_13, %c0_14] : memref<1x2x128xf32, #tpu.memory_space<vmem>>, vector<1x2x128xf32>
      tpu.vector_store %arg5[%c0_12, %c0_13, %c0_14], %28 {strides = array<i32>} : memref<1x2x128xf32, #tpu.memory_space<vmem>>, vector<1x2x128xf32>,
    } else {
    }
    return
  }
  func.func @transform_0(%arg0: i32) -> (i32, i32) {
    %c0_i32 = arith.constant 0 : i32
    %c0_i32_0 = arith.constant 0 : i32
    return %arg0, %c0_i32 : i32, i32
  }
  func.func @transform_1(%arg0: i32) -> (i32, i32) {
    %c0_i32 = arith.constant 0 : i32
    %c0_i32_0 = arith.constant 0 : i32
    %c0_i32_1 = arith.constant 0 : i32
    return %c0_i32, %c0_i32_0 : i32, i32
  }
  func.func @transform_2(%arg0: i32) -> (i32, i32) {
    %c0_i32 = arith.constant 0 : i32
    %c0_i32_0 = arith.constant 0 : i32
    %c0_i32_1 = arith.constant 0 : i32
    return %c0_i32, %c0_i32_0 : i32, i32
  }
  func.func @transform_3(%arg0: i32) -> (i32, i32) {
    %c0_i32 = arith.constant 0 : i32
    %c0_i32_0 = arith.constant 0 : i32
    return %arg0, %c0_i32 : i32, i32
  }
  func.func @transform_4(%arg0: i32) -> (i32, i32, i32) {
    %c0_i32 = arith.constant 0 : i32
    %c0_i32_0 = arith.constant 0 : i32
    %c0_i32_1 = arith.constant 0 : i32
    return %arg0, %c0_i32, %c0_i32_0 : i32, i32, i32
  }
}

module attributes {stable_mosaic.version = 11 : i64} {
  func.func @_conv_stats_kernel(%arg0: i32, %arg1: memref<56x1664xbf16, #tpu.memory_space<vmem>>, %arg2: memref<1664x128xbf16, #tpu.memory_space<vmem>>, %arg3: memref<1x128xf32, #tpu.memory_space<vmem>>, %arg4: memref<56x128xbf16, #tpu.memory_space<vmem>>, %arg5: memref<1x2x128xf32, #tpu.memory_space<vmem>>) attributes {dimension_semantics = [#tpu.dimension_semantics<parallel>], iteration_bounds = array<i64: 2>, scalar_prefetch = 0 : i64, scratch_operands = 0 : i64, tpu.core_type = #tpu.core_type<tc>, window_params = [{transform_indices = @transform_0, window_bounds = array<i64: 56, 1664>}, {pipeline_mode = #tpu.pipeline_mode<synchronous>, transform_indices = @transform_1, window_bounds = array<i64: 1664, 128>}, {pipeline_mode = #tpu.pipeline_mode<synchronous>, transform_indices = @transform_2, window_bounds = array<i64: 1, 128>}, {transform_indices = @transform_3, window_bounds = array<i64: 56, 128>}, {transform_indices = @transform_4, window_bounds = array<i64: 1, 2, 128>}]} {
    %c0 = arith.constant 0 : index
    %c0_0 = arith.constant 0 : index
    %0 = vector.load %arg1[%c0, %c0_0] : memref<56x1664xbf16, #tpu.memory_space<vmem>>, vector<56x1664xbf16>
    %c0_1 = arith.constant 0 : index
    %c0_2 = arith.constant 0 : index
    %1 = vector.load %arg2[%c0_1, %c0_2] : memref<1664x128xbf16, #tpu.memory_space<vmem>>, vector<1664x128xbf16>
    %cst = arith.constant dense<0.000000e+00> : vector<56x128xf32>
    %2 = tpu.matmul %0, %1, %cst {dimension_numbers = #tpu.dot_dimension_numbers<[1], [0], [0], [1], [0, 0, 1, 1], [], []>} : vector<56x1664xbf16>, vector<1664x128xbf16>, vector<56x128xf32> -> vector<56x128xf32>
    %c0_3 = arith.constant 0 : index
    %c0_4 = arith.constant 0 : index
    %3 = vector.load %arg3[%c0_3, %c0_4] : memref<1x128xf32, #tpu.memory_space<vmem>>, vector<1x128xf32>
    %4 = vector.broadcast %3 : vector<1x128xf32> to vector<56x128xf32>
    %5 = arith.addf %2, %4 : vector<56x128xf32>
    %6 = arith.truncf %5 : vector<56x128xf32> to vector<56x128xbf16>
    %c0_5 = arith.constant 0 : index
    %c0_6 = arith.constant 0 : index
    %7 = vector.load %arg4[%c0_5, %c0_6] : memref<56x128xbf16, #tpu.memory_space<vmem>>, vector<56x128xbf16>
    tpu.vector_store %arg4[%c0_5, %c0_6], %6 {strides = array<i32>} : memref<56x128xbf16, #tpu.memory_space<vmem>>, vector<56x128xbf16>,
    %c1_i32 = arith.constant 1 : i32
    %8 = arith.cmpi ne, %arg0, %c1_i32 : i32
    %9 = arith.extui %8 : i1 to i32
    %c0_i32 = arith.constant 0 : i32
    %10 = arith.cmpi ne, %9, %c0_i32 : i32
    scf.if %10 {
      %cst_9 = arith.constant dense<0.000000e+00> : vector<128xf32>
      %14 = vector.multi_reduction <add>, %2, %cst_9 [0] : vector<56x128xf32> to vector<128xf32>
      %15 = vector.shape_cast %14 : vector<128xf32> to vector<1x128xf32>
      %16 = arith.mulf %2, %2 : vector<56x128xf32>
      %cst_10 = arith.constant dense<0.000000e+00> : vector<128xf32>
      %17 = vector.multi_reduction <add>, %16, %cst_10 [0] : vector<56x128xf32> to vector<128xf32>
      %18 = vector.shape_cast %17 : vector<128xf32> to vector<1x128xf32>
      %19 = tpu.concatenate %15, %18 in 0 : vector<1x128xf32>, vector<1x128xf32> -> vector<2x128xf32>
      %20 = vector.shape_cast %19 : vector<2x128xf32> to vector<1x2x128xf32>
      %c0_11 = arith.constant 0 : index
      %c0_12 = arith.constant 0 : index
      %c0_13 = arith.constant 0 : index
      %21 = vector.load %arg5[%c0_11, %c0_12, %c0_13] : memref<1x2x128xf32, #tpu.memory_space<vmem>>, vector<1x2x128xf32>
      tpu.vector_store %arg5[%c0_11, %c0_12, %c0_13], %20 {strides = array<i32>} : memref<1x2x128xf32, #tpu.memory_space<vmem>>, vector<1x2x128xf32>,
    } else {
    }
    %c1_i32_7 = arith.constant 1 : i32
    %11 = arith.cmpi eq, %arg0, %c1_i32_7 : i32
    %12 = arith.extui %11 : i1 to i32
    %c0_i32_8 = arith.constant 0 : i32
    %13 = arith.cmpi ne, %12, %c0_i32_8 : i32
    scf.if %13 {
      %14 = tpu.iota {dimensions = array<i32: 0>} : vector<56x128xi32>
      %c56_i32 = arith.constant 56 : i32
      %15 = arith.muli %arg0, %c56_i32 : i32
      %16 = vector.broadcast %15 : i32 to vector<56x128xi32>
      %17 = arith.addi %14, %16 : vector<56x128xi32>
      %c98_i32 = arith.constant 98 : i32
      %18 = vector.broadcast %c98_i32 : i32 to vector<56x128xi32>
      %19 = arith.cmpi slt, %17, %18 : vector<56x128xi32>
      %cst_9 = arith.constant 0.000000e+00 : f32
      %20 = vector.broadcast %cst_9 : f32 to vector<56x128xf32>
      %21 = arith.select %19, %2, %20 : vector<56x128xi1>, vector<56x128xf32>
      %cst_10 = arith.constant dense<0.000000e+00> : vector<128xf32>
      %22 = vector.multi_reduction <add>, %21, %cst_10 [0] : vector<56x128xf32> to vector<128xf32>
      %23 = vector.shape_cast %22 : vector<128xf32> to vector<1x128xf32>
      %24 = arith.mulf %21, %21 : vector<56x128xf32>
      %cst_11 = arith.constant dense<0.000000e+00> : vector<128xf32>
      %25 = vector.multi_reduction <add>, %24, %cst_11 [0] : vector<56x128xf32> to vector<128xf32>
      %26 = vector.shape_cast %25 : vector<128xf32> to vector<1x128xf32>
      %27 = tpu.concatenate %23, %26 in 0 : vector<1x128xf32>, vector<1x128xf32> -> vector<2x128xf32>
      %28 = vector.shape_cast %27 : vector<2x128xf32> to vector<1x2x128xf32>
      %c0_12 = arith.constant 0 : index
      %c0_13 = arith.constant 0 : index
      %c0_14 = arith.constant 0 : index
      %29 = vector.load %arg5[%c0_12, %c0_13, %c0_14] : memref<1x2x128xf32, #tpu.memory_space<vmem>>, vector<1x2x128xf32>
      tpu.vector_store %arg5[%c0_12, %c0_13, %c0_14], %28 {strides = array<i32>} : memref<1x2x128xf32, #tpu.memory_space<vmem>>, vector<1x2x128xf32>,
    } else {
    }
    return
  }
  func.func @transform_0(%arg0: i32) -> (i32, i32) {
    %c0_i32 = arith.constant 0 : i32
    %c0_i32_0 = arith.constant 0 : i32
    return %arg0, %c0_i32 : i32, i32
  }
  func.func @transform_1(%arg0: i32) -> (i32, i32) {
    %c0_i32 = arith.constant 0 : i32
    %c0_i32_0 = arith.constant 0 : i32
    %c0_i32_1 = arith.constant 0 : i32
    return %c0_i32, %c0_i32_0 : i32, i32
  }
  func.func @transform_2(%arg0: i32) -> (i32, i32) {
    %c0_i32 = arith.constant 0 : i32
    %c0_i32_0 = arith.constant 0 : i32
    %c0_i32_1 = arith.constant 0 : i32
    return %c0_i32, %c0_i32_0 : i32, i32
  }
  func.func @transform_3(%arg0: i32) -> (i32, i32) {
    %c0_i32 = arith.constant 0 : i32
    %c0_i32_0 = arith.constant 0 : i32
    return %arg0, %c0_i32 : i32, i32
  }
  func.func @transform_4(%arg0: i32) -> (i32, i32, i32) {
    %c0_i32 = arith.constant 0 : i32
    %c0_i32_0 = arith.constant 0 : i32
    %c0_i32_1 = arith.constant 0 : i32
    return %arg0, %c0_i32, %c0_i32_0 : i32, i32, i32
  }
}

module attributes {stable_mosaic.version = 11 : i64} {
  func.func @_conv_stats_kernel(%arg0: i32, %arg1: memref<16x1152xbf16, #tpu.memory_space<vmem>>, %arg2: memref<1152x256xbf16, #tpu.memory_space<vmem>>, %arg3: memref<1x256xf32, #tpu.memory_space<vmem>>, %arg4: memref<16x256xbf16, #tpu.memory_space<vmem>>, %arg5: memref<1x2x256xf32, #tpu.memory_space<vmem>>) attributes {dimension_semantics = [#tpu.dimension_semantics<parallel>], iteration_bounds = array<i64: 2>, scalar_prefetch = 0 : i64, scratch_operands = 0 : i64, tpu.core_type = #tpu.core_type<tc>, window_params = [{transform_indices = @transform_0, window_bounds = array<i64: 16, 1152>}, {pipeline_mode = #tpu.pipeline_mode<synchronous>, transform_indices = @transform_1, window_bounds = array<i64: 1152, 256>}, {pipeline_mode = #tpu.pipeline_mode<synchronous>, transform_indices = @transform_2, window_bounds = array<i64: 1, 256>}, {transform_indices = @transform_3, window_bounds = array<i64: 16, 256>}, {transform_indices = @transform_4, window_bounds = array<i64: 1, 2, 256>}]} {
    %c0 = arith.constant 0 : index
    %c0_0 = arith.constant 0 : index
    %0 = vector.load %arg1[%c0, %c0_0] : memref<16x1152xbf16, #tpu.memory_space<vmem>>, vector<16x1152xbf16>
    %c0_1 = arith.constant 0 : index
    %c0_2 = arith.constant 0 : index
    %1 = vector.load %arg2[%c0_1, %c0_2] : memref<1152x256xbf16, #tpu.memory_space<vmem>>, vector<1152x256xbf16>
    %cst = arith.constant dense<0.000000e+00> : vector<16x256xf32>
    %2 = tpu.matmul %0, %1, %cst {dimension_numbers = #tpu.dot_dimension_numbers<[1], [0], [0], [1], [0, 0, 1, 1], [], []>} : vector<16x1152xbf16>, vector<1152x256xbf16>, vector<16x256xf32> -> vector<16x256xf32>
    %c0_3 = arith.constant 0 : index
    %c0_4 = arith.constant 0 : index
    %3 = vector.load %arg3[%c0_3, %c0_4] : memref<1x256xf32, #tpu.memory_space<vmem>>, vector<1x256xf32>
    %4 = vector.broadcast %3 : vector<1x256xf32> to vector<16x256xf32>
    %5 = arith.addf %2, %4 : vector<16x256xf32>
    %6 = arith.truncf %5 : vector<16x256xf32> to vector<16x256xbf16>
    %c0_5 = arith.constant 0 : index
    %c0_6 = arith.constant 0 : index
    %7 = vector.load %arg4[%c0_5, %c0_6] : memref<16x256xbf16, #tpu.memory_space<vmem>>, vector<16x256xbf16>
    tpu.vector_store %arg4[%c0_5, %c0_6], %6 {strides = array<i32>} : memref<16x256xbf16, #tpu.memory_space<vmem>>, vector<16x256xbf16>,
    %c1_i32 = arith.constant 1 : i32
    %8 = arith.cmpi ne, %arg0, %c1_i32 : i32
    %9 = arith.extui %8 : i1 to i32
    %c0_i32 = arith.constant 0 : i32
    %10 = arith.cmpi ne, %9, %c0_i32 : i32
    scf.if %10 {
      %cst_9 = arith.constant dense<0.000000e+00> : vector<256xf32>
      %14 = vector.multi_reduction <add>, %2, %cst_9 [0] : vector<16x256xf32> to vector<256xf32>
      %15 = vector.shape_cast %14 : vector<256xf32> to vector<1x256xf32>
      %16 = arith.mulf %2, %2 : vector<16x256xf32>
      %cst_10 = arith.constant dense<0.000000e+00> : vector<256xf32>
      %17 = vector.multi_reduction <add>, %16, %cst_10 [0] : vector<16x256xf32> to vector<256xf32>
      %18 = vector.shape_cast %17 : vector<256xf32> to vector<1x256xf32>
      %19 = tpu.concatenate %15, %18 in 0 : vector<1x256xf32>, vector<1x256xf32> -> vector<2x256xf32>
      %20 = vector.shape_cast %19 : vector<2x256xf32> to vector<1x2x256xf32>
      %c0_11 = arith.constant 0 : index
      %c0_12 = arith.constant 0 : index
      %c0_13 = arith.constant 0 : index
      %21 = vector.load %arg5[%c0_11, %c0_12, %c0_13] : memref<1x2x256xf32, #tpu.memory_space<vmem>>, vector<1x2x256xf32>
      tpu.vector_store %arg5[%c0_11, %c0_12, %c0_13], %20 {strides = array<i32>} : memref<1x2x256xf32, #tpu.memory_space<vmem>>, vector<1x2x256xf32>,
    } else {
    }
    %c1_i32_7 = arith.constant 1 : i32
    %11 = arith.cmpi eq, %arg0, %c1_i32_7 : i32
    %12 = arith.extui %11 : i1 to i32
    %c0_i32_8 = arith.constant 0 : i32
    %13 = arith.cmpi ne, %12, %c0_i32_8 : i32
    scf.if %13 {
      %14 = tpu.iota {dimensions = array<i32: 0>} : vector<16x256xi32>
      %c16_i32 = arith.constant 16 : i32
      %15 = arith.muli %arg0, %c16_i32 : i32
      %16 = vector.broadcast %15 : i32 to vector<16x256xi32>
      %17 = arith.addi %14, %16 : vector<16x256xi32>
      %c18_i32 = arith.constant 18 : i32
      %18 = vector.broadcast %c18_i32 : i32 to vector<16x256xi32>
      %19 = arith.cmpi slt, %17, %18 : vector<16x256xi32>
      %cst_9 = arith.constant 0.000000e+00 : f32
      %20 = vector.broadcast %cst_9 : f32 to vector<16x256xf32>
      %21 = arith.select %19, %2, %20 : vector<16x256xi1>, vector<16x256xf32>
      %cst_10 = arith.constant dense<0.000000e+00> : vector<256xf32>
      %22 = vector.multi_reduction <add>, %21, %cst_10 [0] : vector<16x256xf32> to vector<256xf32>
      %23 = vector.shape_cast %22 : vector<256xf32> to vector<1x256xf32>
      %24 = arith.mulf %21, %21 : vector<16x256xf32>
      %cst_11 = arith.constant dense<0.000000e+00> : vector<256xf32>
      %25 = vector.multi_reduction <add>, %24, %cst_11 [0] : vector<16x256xf32> to vector<256xf32>
      %26 = vector.shape_cast %25 : vector<256xf32> to vector<1x256xf32>
      %27 = tpu.concatenate %23, %26 in 0 : vector<1x256xf32>, vector<1x256xf32> -> vector<2x256xf32>
      %28 = vector.shape_cast %27 : vector<2x256xf32> to vector<1x2x256xf32>
      %c0_12 = arith.constant 0 : index
      %c0_13 = arith.constant 0 : index
      %c0_14 = arith.constant 0 : index
      %29 = vector.load %arg5[%c0_12, %c0_13, %c0_14] : memref<1x2x256xf32, #tpu.memory_space<vmem>>, vector<1x2x256xf32>
      tpu.vector_store %arg5[%c0_12, %c0_13, %c0_14], %28 {strides = array<i32>} : memref<1x2x256xf32, #tpu.memory_space<vmem>>, vector<1x2x256xf32>,
    } else {
    }
    return
  }
  func.func @transform_0(%arg0: i32) -> (i32, i32) {
    %c0_i32 = arith.constant 0 : i32
    %c0_i32_0 = arith.constant 0 : i32
    return %arg0, %c0_i32 : i32, i32
  }
  func.func @transform_1(%arg0: i32) -> (i32, i32) {
    %c0_i32 = arith.constant 0 : i32
    %c0_i32_0 = arith.constant 0 : i32
    %c0_i32_1 = arith.constant 0 : i32
    return %c0_i32, %c0_i32_0 : i32, i32
  }
  func.func @transform_2(%arg0: i32) -> (i32, i32) {
    %c0_i32 = arith.constant 0 : i32
    %c0_i32_0 = arith.constant 0 : i32
    %c0_i32_1 = arith.constant 0 : i32
    return %c0_i32, %c0_i32_0 : i32, i32
  }
  func.func @transform_3(%arg0: i32) -> (i32, i32) {
    %c0_i32 = arith.constant 0 : i32
    %c0_i32_0 = arith.constant 0 : i32
    return %arg0, %c0_i32 : i32, i32
  }
  func.func @transform_4(%arg0: i32) -> (i32, i32, i32) {
    %c0_i32 = arith.constant 0 : i32
    %c0_i32_0 = arith.constant 0 : i32
    %c0_i32_1 = arith.constant 0 : i32
    return %arg0, %c0_i32, %c0_i32_0 : i32, i32, i32
  }
}

module attributes {stable_mosaic.version = 11 : i64} {
  func.func @_conv_stats_kernel(%arg0: i32, %arg1: memref<16x2304xbf16, #tpu.memory_space<vmem>>, %arg2: memref<2304x256xbf16, #tpu.memory_space<vmem>>, %arg3: memref<1x256xf32, #tpu.memory_space<vmem>>, %arg4: memref<16x256xbf16, #tpu.memory_space<vmem>>, %arg5: memref<1x2x256xf32, #tpu.memory_space<vmem>>) attributes {dimension_semantics = [#tpu.dimension_semantics<parallel>], iteration_bounds = array<i64: 2>, scalar_prefetch = 0 : i64, scratch_operands = 0 : i64, tpu.core_type = #tpu.core_type<tc>, window_params = [{transform_indices = @transform_0, window_bounds = array<i64: 16, 2304>}, {pipeline_mode = #tpu.pipeline_mode<synchronous>, transform_indices = @transform_1, window_bounds = array<i64: 2304, 256>}, {pipeline_mode = #tpu.pipeline_mode<synchronous>, transform_indices = @transform_2, window_bounds = array<i64: 1, 256>}, {transform_indices = @transform_3, window_bounds = array<i64: 16, 256>}, {transform_indices = @transform_4, window_bounds = array<i64: 1, 2, 256>}]} {
    %c0 = arith.constant 0 : index
    %c0_0 = arith.constant 0 : index
    %0 = vector.load %arg1[%c0, %c0_0] : memref<16x2304xbf16, #tpu.memory_space<vmem>>, vector<16x2304xbf16>
    %c0_1 = arith.constant 0 : index
    %c0_2 = arith.constant 0 : index
    %1 = vector.load %arg2[%c0_1, %c0_2] : memref<2304x256xbf16, #tpu.memory_space<vmem>>, vector<2304x256xbf16>
    %cst = arith.constant dense<0.000000e+00> : vector<16x256xf32>
    %2 = tpu.matmul %0, %1, %cst {dimension_numbers = #tpu.dot_dimension_numbers<[1], [0], [0], [1], [0, 0, 1, 1], [], []>} : vector<16x2304xbf16>, vector<2304x256xbf16>, vector<16x256xf32> -> vector<16x256xf32>
    %c0_3 = arith.constant 0 : index
    %c0_4 = arith.constant 0 : index
    %3 = vector.load %arg3[%c0_3, %c0_4] : memref<1x256xf32, #tpu.memory_space<vmem>>, vector<1x256xf32>
    %4 = vector.broadcast %3 : vector<1x256xf32> to vector<16x256xf32>
    %5 = arith.addf %2, %4 : vector<16x256xf32>
    %6 = arith.truncf %5 : vector<16x256xf32> to vector<16x256xbf16>
    %c0_5 = arith.constant 0 : index
    %c0_6 = arith.constant 0 : index
    %7 = vector.load %arg4[%c0_5, %c0_6] : memref<16x256xbf16, #tpu.memory_space<vmem>>, vector<16x256xbf16>
    tpu.vector_store %arg4[%c0_5, %c0_6], %6 {strides = array<i32>} : memref<16x256xbf16, #tpu.memory_space<vmem>>, vector<16x256xbf16>,
    %c1_i32 = arith.constant 1 : i32
    %8 = arith.cmpi ne, %arg0, %c1_i32 : i32
    %9 = arith.extui %8 : i1 to i32
    %c0_i32 = arith.constant 0 : i32
    %10 = arith.cmpi ne, %9, %c0_i32 : i32
    scf.if %10 {
      %cst_9 = arith.constant dense<0.000000e+00> : vector<256xf32>
      %14 = vector.multi_reduction <add>, %2, %cst_9 [0] : vector<16x256xf32> to vector<256xf32>
      %15 = vector.shape_cast %14 : vector<256xf32> to vector<1x256xf32>
      %16 = arith.mulf %2, %2 : vector<16x256xf32>
      %cst_10 = arith.constant dense<0.000000e+00> : vector<256xf32>
      %17 = vector.multi_reduction <add>, %16, %cst_10 [0] : vector<16x256xf32> to vector<256xf32>
      %18 = vector.shape_cast %17 : vector<256xf32> to vector<1x256xf32>
      %19 = tpu.concatenate %15, %18 in 0 : vector<1x256xf32>, vector<1x256xf32> -> vector<2x256xf32>
      %20 = vector.shape_cast %19 : vector<2x256xf32> to vector<1x2x256xf32>
      %c0_11 = arith.constant 0 : index
      %c0_12 = arith.constant 0 : index
      %c0_13 = arith.constant 0 : index
      %21 = vector.load %arg5[%c0_11, %c0_12, %c0_13] : memref<1x2x256xf32, #tpu.memory_space<vmem>>, vector<1x2x256xf32>
      tpu.vector_store %arg5[%c0_11, %c0_12, %c0_13], %20 {strides = array<i32>} : memref<1x2x256xf32, #tpu.memory_space<vmem>>, vector<1x2x256xf32>,
    } else {
    }
    %c1_i32_7 = arith.constant 1 : i32
    %11 = arith.cmpi eq, %arg0, %c1_i32_7 : i32
    %12 = arith.extui %11 : i1 to i32
    %c0_i32_8 = arith.constant 0 : i32
    %13 = arith.cmpi ne, %12, %c0_i32_8 : i32
    scf.if %13 {
      %14 = tpu.iota {dimensions = array<i32: 0>} : vector<16x256xi32>
      %c16_i32 = arith.constant 16 : i32
      %15 = arith.muli %arg0, %c16_i32 : i32
      %16 = vector.broadcast %15 : i32 to vector<16x256xi32>
      %17 = arith.addi %14, %16 : vector<16x256xi32>
      %c18_i32 = arith.constant 18 : i32
      %18 = vector.broadcast %c18_i32 : i32 to vector<16x256xi32>
      %19 = arith.cmpi slt, %17, %18 : vector<16x256xi32>
      %cst_9 = arith.constant 0.000000e+00 : f32
      %20 = vector.broadcast %cst_9 : f32 to vector<16x256xf32>
      %21 = arith.select %19, %2, %20 : vector<16x256xi1>, vector<16x256xf32>
      %cst_10 = arith.constant dense<0.000000e+00> : vector<256xf32>
      %22 = vector.multi_reduction <add>, %21, %cst_10 [0] : vector<16x256xf32> to vector<256xf32>
      %23 = vector.shape_cast %22 : vector<256xf32> to vector<1x256xf32>
      %24 = arith.mulf %21, %21 : vector<16x256xf32>
      %cst_11 = arith.constant dense<0.000000e+00> : vector<256xf32>
      %25 = vector.multi_reduction <add>, %24, %cst_11 [0] : vector<16x256xf32> to vector<256xf32>
      %26 = vector.shape_cast %25 : vector<256xf32> to vector<1x256xf32>
      %27 = tpu.concatenate %23, %26 in 0 : vector<1x256xf32>, vector<1x256xf32> -> vector<2x256xf32>
      %28 = vector.shape_cast %27 : vector<2x256xf32> to vector<1x2x256xf32>
      %c0_12 = arith.constant 0 : index
      %c0_13 = arith.constant 0 : index
      %c0_14 = arith.constant 0 : index
      %29 = vector.load %arg5[%c0_12, %c0_13, %c0_14] : memref<1x2x256xf32, #tpu.memory_space<vmem>>, vector<1x2x256xf32>
      tpu.vector_store %arg5[%c0_12, %c0_13, %c0_14], %28 {strides = array<i32>} : memref<1x2x256xf32, #tpu.memory_space<vmem>>, vector<1x2x256xf32>,
    } else {
    }
    return
  }
  func.func @transform_0(%arg0: i32) -> (i32, i32) {
    %c0_i32 = arith.constant 0 : i32
    %c0_i32_0 = arith.constant 0 : i32
    return %arg0, %c0_i32 : i32, i32
  }
  func.func @transform_1(%arg0: i32) -> (i32, i32) {
    %c0_i32 = arith.constant 0 : i32
    %c0_i32_0 = arith.constant 0 : i32
    %c0_i32_1 = arith.constant 0 : i32
    return %c0_i32, %c0_i32_0 : i32, i32
  }
  func.func @transform_2(%arg0: i32) -> (i32, i32) {
    %c0_i32 = arith.constant 0 : i32
    %c0_i32_0 = arith.constant 0 : i32
    %c0_i32_1 = arith.constant 0 : i32
    return %c0_i32, %c0_i32_0 : i32, i32
  }
  func.func @transform_3(%arg0: i32) -> (i32, i32) {
    %c0_i32 = arith.constant 0 : i32
    %c0_i32_0 = arith.constant 0 : i32
    return %arg0, %c0_i32 : i32, i32
  }
  func.func @transform_4(%arg0: i32) -> (i32, i32, i32) {
    %c0_i32 = arith.constant 0 : i32
    %c0_i32_0 = arith.constant 0 : i32
    %c0_i32_1 = arith.constant 0 : i32
    return %arg0, %c0_i32, %c0_i32_0 : i32, i32, i32
  }
}

module attributes {stable_mosaic.version = 11 : i64} {
  func.func @_conv_stats_kernel(%arg0: i32, %arg1: memref<16x2304xbf16, #tpu.memory_space<vmem>>, %arg2: memref<2304x128xbf16, #tpu.memory_space<vmem>>, %arg3: memref<1x128xf32, #tpu.memory_space<vmem>>, %arg4: memref<16x128xbf16, #tpu.memory_space<vmem>>, %arg5: memref<1x2x128xf32, #tpu.memory_space<vmem>>) attributes {dimension_semantics = [#tpu.dimension_semantics<parallel>], iteration_bounds = array<i64: 2>, scalar_prefetch = 0 : i64, scratch_operands = 0 : i64, tpu.core_type = #tpu.core_type<tc>, window_params = [{transform_indices = @transform_0, window_bounds = array<i64: 16, 2304>}, {pipeline_mode = #tpu.pipeline_mode<synchronous>, transform_indices = @transform_1, window_bounds = array<i64: 2304, 128>}, {pipeline_mode = #tpu.pipeline_mode<synchronous>, transform_indices = @transform_2, window_bounds = array<i64: 1, 128>}, {transform_indices = @transform_3, window_bounds = array<i64: 16, 128>}, {transform_indices = @transform_4, window_bounds = array<i64: 1, 2, 128>}]} {
    %c0 = arith.constant 0 : index
    %c0_0 = arith.constant 0 : index
    %0 = vector.load %arg1[%c0, %c0_0] : memref<16x2304xbf16, #tpu.memory_space<vmem>>, vector<16x2304xbf16>
    %c0_1 = arith.constant 0 : index
    %c0_2 = arith.constant 0 : index
    %1 = vector.load %arg2[%c0_1, %c0_2] : memref<2304x128xbf16, #tpu.memory_space<vmem>>, vector<2304x128xbf16>
    %cst = arith.constant dense<0.000000e+00> : vector<16x128xf32>
    %2 = tpu.matmul %0, %1, %cst {dimension_numbers = #tpu.dot_dimension_numbers<[1], [0], [0], [1], [0, 0, 1, 1], [], []>} : vector<16x2304xbf16>, vector<2304x128xbf16>, vector<16x128xf32> -> vector<16x128xf32>
    %c0_3 = arith.constant 0 : index
    %c0_4 = arith.constant 0 : index
    %3 = vector.load %arg3[%c0_3, %c0_4] : memref<1x128xf32, #tpu.memory_space<vmem>>, vector<1x128xf32>
    %4 = vector.broadcast %3 : vector<1x128xf32> to vector<16x128xf32>
    %5 = arith.addf %2, %4 : vector<16x128xf32>
    %6 = arith.truncf %5 : vector<16x128xf32> to vector<16x128xbf16>
    %c0_5 = arith.constant 0 : index
    %c0_6 = arith.constant 0 : index
    %7 = vector.load %arg4[%c0_5, %c0_6] : memref<16x128xbf16, #tpu.memory_space<vmem>>, vector<16x128xbf16>
    tpu.vector_store %arg4[%c0_5, %c0_6], %6 {strides = array<i32>} : memref<16x128xbf16, #tpu.memory_space<vmem>>, vector<16x128xbf16>,
    %c1_i32 = arith.constant 1 : i32
    %8 = arith.cmpi ne, %arg0, %c1_i32 : i32
    %9 = arith.extui %8 : i1 to i32
    %c0_i32 = arith.constant 0 : i32
    %10 = arith.cmpi ne, %9, %c0_i32 : i32
    scf.if %10 {
      %cst_9 = arith.constant dense<0.000000e+00> : vector<128xf32>
      %14 = vector.multi_reduction <add>, %2, %cst_9 [0] : vector<16x128xf32> to vector<128xf32>
      %15 = vector.shape_cast %14 : vector<128xf32> to vector<1x128xf32>
      %16 = arith.mulf %2, %2 : vector<16x128xf32>
      %cst_10 = arith.constant dense<0.000000e+00> : vector<128xf32>
      %17 = vector.multi_reduction <add>, %16, %cst_10 [0] : vector<16x128xf32> to vector<128xf32>
      %18 = vector.shape_cast %17 : vector<128xf32> to vector<1x128xf32>
      %19 = tpu.concatenate %15, %18 in 0 : vector<1x128xf32>, vector<1x128xf32> -> vector<2x128xf32>
      %20 = vector.shape_cast %19 : vector<2x128xf32> to vector<1x2x128xf32>
      %c0_11 = arith.constant 0 : index
      %c0_12 = arith.constant 0 : index
      %c0_13 = arith.constant 0 : index
      %21 = vector.load %arg5[%c0_11, %c0_12, %c0_13] : memref<1x2x128xf32, #tpu.memory_space<vmem>>, vector<1x2x128xf32>
      tpu.vector_store %arg5[%c0_11, %c0_12, %c0_13], %20 {strides = array<i32>} : memref<1x2x128xf32, #tpu.memory_space<vmem>>, vector<1x2x128xf32>,
    } else {
    }
    %c1_i32_7 = arith.constant 1 : i32
    %11 = arith.cmpi eq, %arg0, %c1_i32_7 : i32
    %12 = arith.extui %11 : i1 to i32
    %c0_i32_8 = arith.constant 0 : i32
    %13 = arith.cmpi ne, %12, %c0_i32_8 : i32
    scf.if %13 {
      %14 = tpu.iota {dimensions = array<i32: 0>} : vector<16x128xi32>
      %c16_i32 = arith.constant 16 : i32
      %15 = arith.muli %arg0, %c16_i32 : i32
      %16 = vector.broadcast %15 : i32 to vector<16x128xi32>
      %17 = arith.addi %14, %16 : vector<16x128xi32>
      %c18_i32 = arith.constant 18 : i32
      %18 = vector.broadcast %c18_i32 : i32 to vector<16x128xi32>
      %19 = arith.cmpi slt, %17, %18 : vector<16x128xi32>
      %cst_9 = arith.constant 0.000000e+00 : f32
      %20 = vector.broadcast %cst_9 : f32 to vector<16x128xf32>
      %21 = arith.select %19, %2, %20 : vector<16x128xi1>, vector<16x128xf32>
      %cst_10 = arith.constant dense<0.000000e+00> : vector<128xf32>
      %22 = vector.multi_reduction <add>, %21, %cst_10 [0] : vector<16x128xf32> to vector<128xf32>
      %23 = vector.shape_cast %22 : vector<128xf32> to vector<1x128xf32>
      %24 = arith.mulf %21, %21 : vector<16x128xf32>
      %cst_11 = arith.constant dense<0.000000e+00> : vector<128xf32>
      %25 = vector.multi_reduction <add>, %24, %cst_11 [0] : vector<16x128xf32> to vector<128xf32>
      %26 = vector.shape_cast %25 : vector<128xf32> to vector<1x128xf32>
      %27 = tpu.concatenate %23, %26 in 0 : vector<1x128xf32>, vector<1x128xf32> -> vector<2x128xf32>
      %28 = vector.shape_cast %27 : vector<2x128xf32> to vector<1x2x128xf32>
      %c0_12 = arith.constant 0 : index
      %c0_13 = arith.constant 0 : index
      %c0_14 = arith.constant 0 : index
      %29 = vector.load %arg5[%c0_12, %c0_13, %c0_14] : memref<1x2x128xf32, #tpu.memory_space<vmem>>, vector<1x2x128xf32>
      tpu.vector_store %arg5[%c0_12, %c0_13, %c0_14], %28 {strides = array<i32>} : memref<1x2x128xf32, #tpu.memory_space<vmem>>, vector<1x2x128xf32>,
    } else {
    }
    return
  }
  func.func @transform_0(%arg0: i32) -> (i32, i32) {
    %c0_i32 = arith.constant 0 : i32
    %c0_i32_0 = arith.constant 0 : i32
    return %arg0, %c0_i32 : i32, i32
  }
  func.func @transform_1(%arg0: i32) -> (i32, i32) {
    %c0_i32 = arith.constant 0 : i32
    %c0_i32_0 = arith.constant 0 : i32
    %c0_i32_1 = arith.constant 0 : i32
    return %c0_i32, %c0_i32_0 : i32, i32
  }
  func.func @transform_2(%arg0: i32) -> (i32, i32) {
    %c0_i32 = arith.constant 0 : i32
    %c0_i32_0 = arith.constant 0 : i32
    %c0_i32_1 = arith.constant 0 : i32
    return %c0_i32, %c0_i32_0 : i32, i32
  }
  func.func @transform_3(%arg0: i32) -> (i32, i32) {
    %c0_i32 = arith.constant 0 : i32
    %c0_i32_0 = arith.constant 0 : i32
    return %arg0, %c0_i32 : i32, i32
  }
  func.func @transform_4(%arg0: i32) -> (i32, i32, i32) {
    %c0_i32 = arith.constant 0 : i32
    %c0_i32_0 = arith.constant 0 : i32
    %c0_i32_1 = arith.constant 0 : i32
    return %arg0, %c0_i32, %c0_i32_0 : i32, i32, i32
  }
}

module attributes {stable_mosaic.version = 11 : i64} {
  func.func @_head_kernel(%arg0: i32, %arg1: memref<2x1x128xbf16, #tpu.memory_space<vmem>>, %arg2: memref<128x128xf32, #tpu.memory_space<vmem>>, %arg3: memref<1x128xf32, #tpu.memory_space<vmem>>, %arg4: memref<2x128xf32, #tpu.memory_space<vmem>>) attributes {dimension_semantics = [#tpu.dimension_semantics<arbitrary>], iteration_bounds = array<i64: 1>, scalar_prefetch = 0 : i64, scratch_operands = 0 : i64, tpu.core_type = #tpu.core_type<tc>, window_params = [{pipeline_mode = #tpu.pipeline_mode<synchronous>, transform_indices = @transform_0, window_bounds = array<i64: 2, 1, 128>}, {pipeline_mode = #tpu.pipeline_mode<synchronous>, transform_indices = @transform_1, window_bounds = array<i64: 128, 128>}, {pipeline_mode = #tpu.pipeline_mode<synchronous>, transform_indices = @transform_2, window_bounds = array<i64: 1, 128>}, {pipeline_mode = #tpu.pipeline_mode<synchronous>, transform_indices = @transform_3, window_bounds = array<i64: 2, 128>}]} {
    %c0 = arith.constant 0 : index
    %c0_0 = arith.constant 0 : index
    %c0_1 = arith.constant 0 : index
    %0 = vector.load %arg1[%c0, %c0_0, %c0_1] : memref<2x1x128xbf16, #tpu.memory_space<vmem>>, vector<2x1x128xbf16>
    %1 = arith.extf %0 : vector<2x1x128xbf16> to vector<2x1x128xf32>
    %cst = arith.constant dense<0.000000e+00> : vector<2x128xf32>
    %2 = vector.multi_reduction <add>, %1, %cst [1] : vector<2x1x128xf32> to vector<2x128xf32>
    %cst_2 = arith.constant 1.000000e+00 : f32
    %3 = vector.broadcast %cst_2 : f32 to vector<2x128xf32>
    %4 = arith.divf %2, %3 : vector<2x128xf32>
    %c0_3 = arith.constant 0 : index
    %c0_4 = arith.constant 0 : index
    %5 = vector.load %arg2[%c0_3, %c0_4] : memref<128x128xf32, #tpu.memory_space<vmem>>, vector<128x128xf32>
    %cst_5 = arith.constant dense<0.000000e+00> : vector<2x128xf32>
    %6 = tpu.matmul %4, %5, %cst_5 {dimension_numbers = #tpu.dot_dimension_numbers<[1], [0], [0], [1], [0, 0, 1, 1], [], []>} : vector<2x128xf32>, vector<128x128xf32>, vector<2x128xf32> -> vector<2x128xf32>
    %c0_6 = arith.constant 0 : index
    %c0_7 = arith.constant 0 : index
    %7 = vector.load %arg3[%c0_6, %c0_7] : memref<1x128xf32, #tpu.memory_space<vmem>>, vector<1x128xf32>
    %8 = vector.broadcast %7 : vector<1x128xf32> to vector<2x128xf32>
    %9 = arith.addf %6, %8 : vector<2x128xf32>
    %c0_8 = arith.constant 0 : index
    %c0_9 = arith.constant 0 : index
    %10 = vector.load %arg4[%c0_8, %c0_9] : memref<2x128xf32, #tpu.memory_space<vmem>>, vector<2x128xf32>
    tpu.vector_store %arg4[%c0_8, %c0_9], %9 {strides = array<i32>} : memref<2x128xf32, #tpu.memory_space<vmem>>, vector<2x128xf32>,
    return
  }
  func.func @transform_0(%arg0: i32) -> (i32, i32, i32) {
    %c0_i32 = arith.constant 0 : i32
    %c0_i32_0 = arith.constant 0 : i32
    %c0_i32_1 = arith.constant 0 : i32
    %c0_i32_2 = arith.constant 0 : i32
    return %c0_i32, %c0_i32_0, %c0_i32_1 : i32, i32, i32
  }
  func.func @transform_1(%arg0: i32) -> (i32, i32) {
    %c0_i32 = arith.constant 0 : i32
    %c0_i32_0 = arith.constant 0 : i32
    %c0_i32_1 = arith.constant 0 : i32
    return %c0_i32, %c0_i32_0 : i32, i32
  }
  func.func @transform_2(%arg0: i32) -> (i32, i32) {
    %c0_i32 = arith.constant 0 : i32
    %c0_i32_0 = arith.constant 0 : i32
    %c0_i32_1 = arith.constant 0 : i32
    return %c0_i32, %c0_i32_0 : i32, i32
  }
  func.func @transform_3(%arg0: i32) -> (i32, i32) {
    %c0_i32 = arith.constant 0 : i32
    %c0_i32_0 = arith.constant 0 : i32
    %c0_i32_1 = arith.constant 0 : i32
    return %c0_i32, %c0_i32_0 : i32, i32
  }
}

</mosaic_0001>

<bundles_post_ra>
// kernel: custom_cnn_forward.6
= control target key start
LH: loop header
LB: loop body
LE: loop exit
PB: predicated region body
PF: predicated region fallthrough
CT: control target
= control target key end

     0   :  { %10 = vsyncpa [#allocation3], 0  ;;  %s3212_s0 = inlined_call_operand.hbm [shape: bf16[464,384], index: 0, kind: input, shape index: {}]   ;;  %s3213_s1 = inlined_call_operand.hbm [shape: bf16[384,128], index: 1, kind: input, shape index: {}]   ;;  %s3214_s2 = inlined_call_operand.hbm [shape: f32[1,128], index: 2, kind: input, shape index: {}]   ;;  %s3215_s3 = inlined_call_operand.hbm [shape: bf16[464,128], index: 3, kind: output, shape index: {0}]   ;;  %s3216_s4 = inlined_call_operand.hbm [shape: f32[2,2,128], index: 4, kind: output, shape index: {1}]  }
   0x1   :  { %12 = vsyncpa [#allocation3 + $0x1], 0 }
   0x2   :  { %13 = vsyncpa [#allocation6], 0 }
   0x3   :  { %14 = vsyncpa [#allocation4], 0 }
   0x4   :  { %16 = vsyncpa [#allocation4 + $0x1], 0 }
   0x5   :  { %17 = vsyncpa [#allocation10], 0 }
   0x6   :  { %19 = vsyncpa [#allocation10 + $0x1], 0  ;;  %s2542_s15 = smov 0   ;;  %s2544_s16 = smov 0  }
   0x7   :  { %s2546_s17 = smov 0   ;;  %s2548_s18 = smov 0  }
   0x8 LB: > { %s2563_s19 = sadd.s32 4294967295, %s2502_s18   ;;  %s1712_s20 = sadd.s32 4294967294, %s2502_s18   ;;  %s2502_s18 = sphi %s2548_s18, %s3237_s18   ;;  %s2498_s17 = sphi %s2546_s17, %s3236_s17   ;;  %s2494_s16 = sphi %s2544_s16, %s3235_s16   ;;  %s2490_s15 = sphi %s2542_s15, %s3234_s15  }
   0x9   : > { %p45_p0 = scmp.ne.s32.totalorder %s2494_s16, %s2490_s15  ;;  %p3217_p1 = scmp.eq.s32.totalorder %s2563_s19, 0 }
   0xa   : > { %p117_p3 = scmp.eq.s32.totalorder %s1712_s20, 1  ;;  %p1713_p5 = scmp.ge.s32.totalorder %s2502_s18, 1 }
   0xb   : > { %p2572_p4 = por %p3217_p1, %p45_p0  ;;  %p150_p7 = scmp.lt.s32.totalorder %s2502_s18, 3 }
   0xc   : > { %p2577_p6 = por %p117_p3, %p45_p0  ;;  %s2504_s24 = smov [#allocation5]  }
   0xd   : > { %s3220_s21 = scalar_select %p2572_p4, 1, 0 }
   0xe   : > { %s3221_s22 = scalar_select %p2577_p6, 1, 0 }
   0xf   : > { %p2582_p8 = pnand %p1713_p5, %p150_p7  ;;  %s162_s25 = sshll.u32 %s2504_s24, 4  ;;  %s2586_s25 = int_to_ptr.vmem [resolvable:$true] %s162_s25 }
  0x10   : > { %s2505_s27 = smov [#allocation7]   ;;  %s2314_s5 = scalar_lea.hbm %s3213_s1, 3072 }
  0x11   : > { %p2164_p9 = pneg %p2582_p8  ;;  %s176_s28 = sshll.u32 %s2505_s27, 4  ;;  %s2597_s28 = int_to_ptr.vmem [resolvable:$true] %s176_s28 }
  0x12   : > { %p2315_p12 = scmp.ne.s32.totalorder %s3213_s1, %s2314_s5  ;;  %p2321_p5 = scmp.lt.u32.totalorder %s2314_s5, %s3213_s1 }
  0x13   : > { %p2593_p11 = pnand %p2164_p9, %p3217_p1 }
  0x15   : > { %p2316_p13 = pneg %p2593_p11 }
  0x17   : > { %p2317_p0 = pnand %p2316_p13, %p2315_p12 }
  0x19   : > { %p2318_p3 = pneg %p2317_p0 }
  0x1b   : > { %p2323_p7 = pnand %p2321_p5, %p2318_p3 }
  0x1d   : > { %2326 = shalt.err (!%p2323_p7)
}
  0x1e   : > { %s2327_s10 = scalar_lea.vmem %s2586_s25, 3072  ;;  %p2335_p2 = scmp.lt.s32.totalorder %s2586_s25, %s2586_s25 }
  0x1f   : > { %p2328_p9 = scmp.ne.s32.totalorder %s2586_s25, %s2327_s10  ;;  %p2336_p12 = scmp.lt.s32.totalorder %s2327_s10, %s2327_s10 }
  0x21   : > { %p2330_p10 = pnand %p2328_p9, %p2316_p13  ;;  %p2337_p0 = por %p2336_p12, %p2335_p2 }
  0x23   : > { %p2331_p1 = pneg %p2330_p10 }
  0x25   : > { %p2338_p6 = pnand %p2337_p0, %p2331_p1 }
  0x27   : > { %2341 = shalt.err (!%p2338_p6)
}
  0x28   : > { %s2506_s11 = smov 64   ;;  %s2507_s12 = smov 4  }
  0x29   : > { %2167 = dma.hbm_to_vmem [thread:$0]  (!%p2593_p11), %s3213_s1, 3072, %s2586_s25, [#allocation6], %s2506_s11, %s2506_s11, %s2507_s12  }
  0x2a   : > { %s2342_s27 = scalar_lea.hbm %s3214_s2, 16 }
  0x2b   : > { %p2343_p2 = scmp.ne.s32.totalorder %s3214_s2, %s2342_s27  ;;  %p2349_p10 = scmp.lt.u32.totalorder %s2342_s27, %s3214_s2 }
  0x2d   : > { %p2345_p1 = pnand %p2343_p2, %p2316_p13 }
  0x2f   : > { %p2346_p6 = pneg %p2345_p1 }
  0x31   : > { %p2351_p3 = pnand %p2349_p10, %p2346_p6 }
  0x33   : > { %2354 = shalt.err (!%p2351_p3)
}
  0x34   : > { %s2355_s25 = scalar_lea.vmem %s2597_s28, 16  ;;  %s2362_s7 = scalar_lea.vmem %s2597_s28, 32 }
  0x35   : > { %p2356_p5 = scmp.ne.s32.totalorder %s2597_s28, %s2355_s25  ;;  %p2363_p12 = scmp.lt.s32.totalorder %s2597_s28, %s2597_s28 }
  0x36   : > { %p2364_p0 = scmp.lt.s32.totalorder %s2362_s7, %s2355_s25 }
  0x37   : > { %p2358_p7 = pnand %p2356_p5, %p2316_p13 }
  0x38   : > { %p2365_p2 = por %p2364_p0, %p2363_p12 }
  0x39   : > { %p2359_p9 = pneg %p2358_p7 }
  0x3b   : > { %p2366_p1 = pnand %p2365_p2, %p2359_p9 }
  0x3d   : > { %2369 = shalt.err (!%p2366_p1)
}
  0x3e   : > { %2170 = dma.hbm_to_vmem [thread:$0]  (!%p2593_p11), %s3214_s2, 16, %s2597_s28, [#allocation6]  }
  0x3f   : > { %s2653_s10 = sadd.s32 1, %s2502_s18   ;;  %s32_s11 = sadd.s32 1, %s2498_s17 }
  0x40   : > { %s29_s26 = ssub.s32 %s2502_s18, %s2653_s10  ;;  %p39_p6 = scmp.ne.s32.totalorder %s2498_s17, %s2494_s16 }
  0x41   : > { %p30_p13 = scmp.eq.s32.totalorder %s29_s26, 0  ;;  %p40_p10 = scmp.eq.s32.totalorder %s2502_s18, 0 }
  0x42   : > { %p2184_p3 = scmp.lt.s32.totalorder %s2502_s18, 2  ;;  %p3224_p7 = scmp.eq.s32.totalorder %s2563_s19, 1 }
  0x43   : > { %s2663_s12 = scalar_select %p30_p13, %s2498_s17, %s32_s11  }
  0x44   : > { %p41_p5 = por %p40_p10, %p39_p6  ;;  %p2667_p9 = por %p3224_p7, %p39_p6 }
  0x45   : > { %s187_s14 = sand.u32 1, %s2498_s17   ;;  %s2185_s20 = smul.u32 5568, %s2502_s18 }
  0x46   : > { %s3225_s13 = scalar_select %p2667_p9, 1, 0 }
  0x47   : > { %s2146_s28 = smul.u32 348, %s187_s14  ;;  %s2676_s29 = scalar_lea.hbm %s3212_s0, %s2185_s20 }
  0x48   : > { %p2678_p11 = pnand %p2184_p3, %p41_p5  ;;  %s2684_s25 = scalar_lea.sflag [#allocation3], %s187_s14 }
  0x49   : > { %s191_s5 = scalar_lea.vmem [#allocation2], %s2146_s28  ;;  %s2370_s7 = scalar_lea.hbm %s2676_s29, 5568 }
  0x4a   : > { %s199_s6 = sshll.u32 %s191_s5, 4  ;;  %p2371_p12 = scmp.ne.s32.totalorder %s2676_s29, %s2370_s7  ;;  %s2682_s6 = int_to_ptr.vmem [resolvable:$true] %s199_s6 }
  0x4b   : > { %p2372_p0 = pneg %p2678_p11  ;;  %s2375_s26 = scalar_lea.hbm %s3212_s0, 11136 }
  0x4c   : > { %p2376_p13 = scmp.lt.u32.totalorder %s2676_s29, %s3212_s0  ;;  %p2377_p6 = scmp.lt.u32.totalorder %s2375_s26, %s2370_s7 }
  0x4d   : > { %p2373_p2 = pnand %p2372_p0, %p2371_p12  ;;  %p2379_p3 = scmp.lt.u32.totalorder %s2370_s7, %s2676_s29 }
  0x4e   : > { %p2378_p10 = por %p2377_p6, %p2376_p13 }
  0x4f   : > { %p2374_p1 = pneg %p2373_p2 }
  0x50   : > { %p2380_p5 = por %p2379_p3, %p2378_p10 }
  0x52   : > { %p2381_p7 = pnand %p2380_p5, %p2374_p1 }
  0x54   : > { %2384 = shalt.err (!%p2381_p7)
}
  0x55   : > { %s2385_s14 = scalar_lea.vmem %s2682_s6, 5568  ;;  %s2508_s28 = smov [#allocation2]  }
  0x56   : > { %p2386_p12 = scmp.ne.s32.totalorder %s2682_s6, %s2385_s14  ;;  %s2390_s24 = sshll.u32 %s2508_s28, 4  ;;  %s2391_s24 = int_to_ptr.vmem [resolvable:$false] %s2390_s24 }
  0x57   : > { %s2392_s27 = scalar_lea.vmem %s2391_s24, 11136  ;;  %p2393_p4 = scmp.lt.s32.totalorder %s2682_s6, %s2391_s24 }
  0x58   : > { %p2388_p2 = pnand %p2386_p12, %p2372_p0  ;;  %p2394_p13 = scmp.lt.s32.totalorder %s2392_s27, %s2385_s14 }
  0x5a   : > { %p2389_p9 = pneg %p2388_p2  ;;  %p2395_p6 = por %p2394_p13, %p2393_p4 }
  0x5c   : > { %p2396_p10 = pnand %p2395_p6, %p2389_p9 }
  0x5e   : > { %2399 = shalt.err (!%p2396_p10)
}
  0x5f   : > { %s2509_s5 = smov 192   ;;  %s2510_s7 = smov 12  }
  0x60   : > { %2174 = dma.hbm_to_vmem [thread:$0]  (!%p2678_p11), %s2676_s29, 5568, %s2682_s6, %s2684_s25, %s2509_s5, %s2509_s5, %s2510_s7  }
  0x61   : > { %211 = sbr.rel (%p2582_p8) target bundleno = 678 (0x2a6), region = 32  ;;  %s2715_s8 = sand.u32 (!%p2582_p8), 1, %s2494_s16  }
  0x62   : > { %s2148_s9 = smul.u32 (!%p2582_p8), 348, %s2715_s8  ;;  %s214_s26 = scalar_lea.sflag (!%p2582_p8), [#allocation3], %s2715_s8 }
  0x63   : > { %p3227_p4 = scmp.ne.s32.totalorder (!%p2582_p8), %s3220_s21, 0 }
  0x64   : > { %s2719_s11 = scalar_lea.vmem (!%p2582_p8), [#allocation2], %s2148_s9 }
  0x68   : > { %2473 = dma.done.wait (%p3227_p4), %s214_s26, 5568  }
  0x69   : > { %2475 = vsyncadd (%p3227_p4), %s214_s26, 4294961728  ;;  %p3228_p9 = scmp.eq.s32.totalorder %s2563_s19, 0 }
  0x6b   : > { %2477 = dma.done.wait (%p3228_p9), [#allocation6], 3088   ;;  %p3229_p8 = pmov %p3228_p9 }
  0x6c   : > { %s1721_s23 = sshll.u32 %s2715_s8, 1  ;;  %v2511_v0 = vmov 0.0   ;;  %vm2512_vm0 = vmmov 0   ;;  %v2231_v1 = vld [vmem:[#allocation5 + $0x40] sm:$0xff]   ;;  %v2234_v4 = vld [vmem:[#allocation5 + $0x48] sm:$0xff]   ;;  %v2237_v7 = vld [vmem:[#allocation5 + $0x50] sm:$0xff]  }
  0x6d   : > { %2479 = vsyncadd (%p3229_p8), [#allocation6], 4294964208  ;;  %2070 = vmatprep.subr.bf16.mxu1 %v2511_v0  ;;  %2086 = vmatprep.mubr.msk.bf16.mxu1 %vm2512_vm0, %v2511_v0  ;;  %v2232_v2 = vld [vmem:[#allocation5] sm:$0xff]   ;;  %v2235_v5 = vld [vmem:[#allocation5 + $0x8] sm:$0xff]   ;;  %s2149_s21 = smul.u32 116, %s2715_s8  ;;  %s2950_s30 = scalar_lea.vmem [#allocation9], %s1721_s23 }
  0x6e   : > { %1941 = vmatprep.subr.bf16.mxu0 %v2231_v1  ;;  %v2233_v3 = vld [vmem:[#allocation5 + $0x80] sm:$0xff]   ;;  %v2236_v6 = vld [vmem:[#allocation5 + $0x88] sm:$0xff]   ;;  %v2238_v8 = vld [vmem:[#allocation5 + $0x10] sm:$0xff]   ;;  %p3230_p11 = scmp.eq.s32.totalorder %s2563_s19, 1 }
  0x6f   : > { %1942 = vmatpush3.bf16.msra.mxu0 %v2232_v2  ;;  %2071 = vmatpush3.bf16.msra.mxu1 %v2233_v3  ;;  %v2239_v9 = vld [vmem:[#allocation5 + $0x90] sm:$0xff]   ;;  %v2240_v10 = vld [vmem:[#allocation5 + $0x58] sm:$0xff]   ;;  %v2243_v13 = vld [vmem:[#allocation5 + $0x60] sm:$0xff]   ;;  %s2823_s29 = scalar_lea.vmem [#allocation8], %s2149_s21  ;;  %vm1330_vm1 = vcmask (!%p3230_p11), 1040384  }
  0x70   : > { %1943 = vmatprep.subr.bf16.mxu0 %v2234_v4  ;;  %2072 = vmatprep.subr.bf16.mxu1 %v2511_v0  ;;  %v2241_v11 = vld [vmem:[#allocation5 + $0x18] sm:$0xff]   ;;  %v2244_v14 = vld [vmem:[#allocation5 + $0x20] sm:$0xff]   ;;  %v2246_v16 = vld [vmem:[#allocation5 + $0x68] sm:$0xff]  }
  0x71   : > { %v2242_v12 = vld [vmem:[#allocation5 + $0x98] sm:$0xff]   ;;  %v2245_v15 = vld [vmem:[#allocation5 + $0xa0] sm:$0xff]   ;;  %v2247_v17 = vld [vmem:[#allocation5 + $0x28] sm:$0xff]  }
  0x72   : > { %v2248_v18 = vld [vmem:[#allocation5 + $0xa8] sm:$0xff]   ;;  %v2249_v19 = vld [vmem:[#allocation5 + $0x70] sm:$0xff]   ;;  %v2252_v22 = vld [vmem:[#allocation5 + $0x78] sm:$0xff]  }
  0x73   : > { %1944 = vmatpush3.bf16.msra.mxu0 %v2235_v5  ;;  %2073 = vmatpush3.bf16.msra.mxu1 %v2236_v6  ;;  %v2250_v20 = vld [vmem:[#allocation5 + $0x30] sm:$0xff]   ;;  %v2253_v24 = vld [vmem:[#allocation5 + $0x38] sm:$0xff]  }
  0x74   : > { %1945 = vmatprep.subr.bf16.mxu0 %v2237_v7  ;;  %2074 = vmatprep.subr.bf16.mxu1 %v2511_v0  ;;  %v2251_v21 = vld [vmem:[#allocation5 + $0xb0] sm:$0xff]   ;;  %v2254_v25 = vld [vmem:[#allocation5 + $0xb8] sm:$0xff]  }
  0x75   : > { %v2257_v23 = vld [vmem:[%s2719_s11 + $0x4] ss:$12 sps:$4 sm:$0xff]   ;;  %v2255_v26 = vld [vmem:[%s2719_s11] ss:$12 sps:$4 sm:$0xff]   ;;  %v2258_v27 = vld [vmem:[%s2719_s11 + $0x8] ss:$12 sps:$4 sm:$0xff]  }
  0x76   : > { %775 = vmatprep.mubr.bf16.mxu0 %v2257_v23  ;;  %v2259_v28 = vld [vmem:[%s2719_s11 + $0x1c] ss:$12 sps:$4 sm:$0xff]   ;;  %v2261_v29 = vld [vmem:[%s2719_s11 + $0x18] ss:$12 sps:$4 sm:$0xff]   ;;  %v2262_v30 = vld [vmem:[%s2719_s11 + $0x20] ss:$12 sps:$4 sm:$0xff]  }
  0x77   : > { %1946 = vmatpush3.bf16.msra.mxu0 %v2238_v8  ;;  %2075 = vmatpush3.bf16.msra.mxu1 %v2239_v9  ;;  %v2263_v31 = vld [vmem:[%s2719_s11 + $0x34] ss:$12 sps:$4 sm:$0xff]   ;;  %v2265_v32 = vld [vmem:[%s2719_s11 + $0x30] ss:$12 sps:$4 sm:$0xff]   ;;  %v2266_v33 = vld [vmem:[%s2719_s11 + $0x38] ss:$12 sps:$4 sm:$0xff]  }
  0x78   : > { %1947 = vmatprep.subr.bf16.mxu0 %v2240_v10  ;;  %2076 = vmatprep.subr.bf16.mxu1 %v2511_v0  ;;  %v2267_v34 = vld [vmem:[%s2719_s11 + $0x4c] ss:$12 sps:$4 sm:$0xff]   ;;  %v2269_v35 = vld [vmem:[%s2719_s11 + $0x48] ss:$12 sps:$4 sm:$0xff]   ;;  %v2270_v36 = vld [vmem:[%s2719_s11 + $0x50] ss:$12 sps:$4 sm:$0xff]  }
  0x79   : > { %v2271_v37 = vld [vmem:[%s2719_s11 + $0x64] ss:$12 sps:$4 sm:$0xff]   ;;  %v2273_v38 = vld [vmem:[%s2719_s11 + $0x60] ss:$12 sps:$4 sm:$0xff]   ;;  %v2274_v39 = vld [vmem:[%s2719_s11 + $0x68] ss:$12 sps:$4 sm:$0xff]  }
  0x7a   : > { %v2275_v40 = vld [vmem:[%s2719_s11 + $0x7c] ss:$12 sps:$4 sm:$0xff]   ;;  %v2277_v41 = vld [vmem:[%s2719_s11 + $0x78] ss:$12 sps:$4 sm:$0xff]   ;;  %v2278_v42 = vld [vmem:[%s2719_s11 + $0x80] ss:$12 sps:$4 sm:$0xff]  }
  0x7b   : > { %1948 = vmatpush3.bf16.msra.mxu0 %v2241_v11  ;;  %2077 = vmatpush3.bf16.msra.mxu1 %v2242_v12  ;;  %v2279_v43 = vld [vmem:[%s2719_s11 + $0x94] ss:$12 sps:$4 sm:$0xff]   ;;  %v2281_v44 = vld [vmem:[%s2719_s11 + $0x90] ss:$12 sps:$4 sm:$0xff]   ;;  %v2282_v45 = vld [vmem:[%s2719_s11 + $0x98] ss:$12 sps:$4 sm:$0xff]  }
  0x7c   : > { %1949 = vmatprep.subr.bf16.mxu0 %v2243_v13  ;;  %2078 = vmatprep.subr.bf16.mxu1 %v2511_v0  ;;  %v2283_v46 = vld [vmem:[%s2719_s11 + $0xac] ss:$12 sps:$4 sm:$0xff]   ;;  %v2285_v47 = vld [vmem:[%s2719_s11 + $0xa8] ss:$12 sps:$4 sm:$0xff]   ;;  %v2286_v48 = vld [vmem:[%s2719_s11 + $0xb0] ss:$12 sps:$4 sm:$0xff]  }
  0x7d   : > { %v2287_v49 = vld [vmem:[%s2719_s11 + $0xc4] ss:$12 sps:$4 sm:$0xff]   ;;  %v2289_v50 = vld [vmem:[%s2719_s11 + $0xc0] ss:$12 sps:$4 sm:$0xff]   ;;  %v2290_v51 = vld [vmem:[%s2719_s11 + $0xc8] ss:$12 sps:$4 sm:$0xff]  }
  0x7e   : > { %v2291_v52 = vld [vmem:[%s2719_s11 + $0xdc] ss:$12 sps:$4 sm:$0xff]   ;;  %v2293_v53 = vld [vmem:[%s2719_s11 + $0xd8] ss:$12 sps:$4 sm:$0xff]   ;;  %v2294_v54 = vld [vmem:[%s2719_s11 + $0xe0] ss:$12 sps:$4 sm:$0xff]  }
  0x7f   : > { %1950 = vmatpush3.bf16.msra.mxu0 %v2244_v14  ;;  %2079 = vmatpush3.bf16.msra.mxu1 %v2245_v15  ;;  %v2295_v55 = vld [vmem:[%s2719_s11 + $0xf4] ss:$12 sps:$4 sm:$0xff]   ;;  %v2297_v56 = vld [vmem:[%s2719_s11 + $0xf0] ss:$12 sps:$4 sm:$0xff]   ;;  %v2298_v57 = vld [vmem:[%s2719_s11 + $0xf8] ss:$12 sps:$4 sm:$0xff]  }
  0x80   : > { %1951 = vmatprep.subr.bf16.mxu0 %v2246_v16  ;;  %2080 = vmatprep.subr.bf16.mxu1 %v2511_v0  ;;  %v2299_v58 = vld [vmem:[%s2719_s11 + $0x10c] ss:$12 sps:$4 sm:$0xff]   ;;  %v2301_v59 = vld [vmem:[%s2719_s11 + $0x108] ss:$12 sps:$4 sm:$0xff]   ;;  %v2302_v60 = vld [vmem:[%s2719_s11 + $0x110] ss:$12 sps:$4 sm:$0xff]  }
  0x81   : > { %v2303_v61 = vld [vmem:[%s2719_s11 + $0x124] ss:$12 sps:$4 sm:$0xff]   ;;  %v2305_v62 = vld [vmem:[%s2719_s11 + $0x120] ss:$12 sps:$4 sm:$0xff]   ;;  %v2306_v63 = vld [vmem:[%s2719_s11 + $0x128] ss:$12 sps:$4 sm:$0xff]  }
  0x82   : > { %v2307_v1 = vld [vmem:[%s2719_s11 + $0x13c] ss:$12 sps:$4 sm:$0xff]   ;;  %v314_v2 = vld [vmem:[%s2719_s11 + $0x150] sm:$0xff]  ;;  %v2309_v3 = vld [vmem:[%s2719_s11 + $0x138] ss:$12 sps:$4 sm:$0xff]  }
  0x83   : > { %1952 = vmatpush3.bf16.msra.mxu0 %v2247_v17  ;;  %2081 = vmatpush3.bf16.msra.mxu1 %v2248_v18  ;;  %v2310_v4 = vld [vmem:[%s2719_s11 + $0x140] ss:$12 sps:$4 sm:$0xff]   ;;  %v1765_v5 = vcombine.high %v314_v2, %v314_v2  ;;  %v1764_v6 = vcombine.low %v314_v2, %v314_v2  ;;  %v2313_v7 = vld [vmem:[%s2719_s11 + $0x158] ss:$0 sps:$4 sm:$0xff]  }
  0x84   : > { %1953 = vmatprep.subr.bf16.mxu0 %v2249_v19  ;;  %2082 = vmatprep.subr.bf16.mxu1 %v2511_v0  ;;  %v2814_v19 = vld [vmem:[#allocation7] ss:$0 sm:$0xff] }
  0x87   : > { %1954 = vmatpush3.bf16.msra.mxu0 %v2250_v20  ;;  %2083 = vmatpush3.bf16.msra.mxu1 %v2251_v21 }
  0x88   : > { %1955 = vmatprep.subr.bf16.mxu0 %v2252_v22  ;;  %2084 = vmatprep.subr.bf16.mxu1 %v2511_v0 }
  0x8b   : > { %1956 = vmatpush3.bf16.msra.mxu0 %v2253_v24  ;;  %2085 = vmatpush3.bf16.msra.mxu1 %v2254_v25 }
  0x8e   : > { %776 = vmatmul.mubr.bf16.vlgmr.msra.gmra.mrb[0].mxu0 %v2255_v26  ;;  %2087 = vmatmul.mubr.bf16.vlgmr.msra.gmra.mrb[0].mxu1 %v2258_v27 }
  0x8f   : > { %783 = vmatprep.mubr.bf16.mxu0 %v2259_v28  ;;  %2090 = vmatprep.mubr.msk.bf16.mxu1 %vm2512_vm0, %v2511_v0 }
  0x96   : > { %784 = vmatmul.mubr.bf16.gmra.mrb[4].mxu0 %v2261_v29  ;;  %2091 = vmatmul.mubr.bf16.gmra.mrb[4].mxu1 %v2262_v30 }
  0x97   : > { %791 = vmatprep.mubr.bf16.mxu0 %v2263_v31  ;;  %2094 = vmatprep.mubr.msk.bf16.mxu1 %vm2512_vm0, %v2511_v0 }
  0x9e   : > { %792 = vmatmul.mubr.bf16.gmra.mrb[8].mxu0 %v2265_v32  ;;  %2095 = vmatmul.mubr.bf16.gmra.mrb[8].mxu1 %v2266_v33 }
  0x9f   : > { %799 = vmatprep.mubr.bf16.mxu0 %v2267_v34  ;;  %2098 = vmatprep.mubr.msk.bf16.mxu1 %vm2512_vm0, %v2511_v0 }
  0xa6   : > { %800 = vmatmul.mubr.bf16.gmra.mrb[12].mxu0 %v2269_v35  ;;  %2099 = vmatmul.mubr.bf16.gmra.mrb[12].mxu1 %v2270_v36 }
  0xa7   : > { %807 = vmatprep.mubr.bf16.mxu0 %v2271_v37  ;;  %2102 = vmatprep.mubr.msk.bf16.mxu1 %vm2512_vm0, %v2511_v0 }
  0xae   : > { %808 = vmatmul.mubr.bf16.gmra.mrb[16].mxu0 %v2273_v38  ;;  %2103 = vmatmul.mubr.bf16.gmra.mrb[16].mxu1 %v2274_v39 }
  0xaf   : > { %815 = vmatprep.mubr.bf16.mxu0 %v2275_v40  ;;  %2106 = vmatprep.mubr.msk.bf16.mxu1 %vm2512_vm0, %v2511_v0 }
  0xb6   : > { %816 = vmatmul.mubr.bf16.gmra.mrb[20].mxu0 %v2277_v41  ;;  %2107 = vmatmul.mubr.bf16.gmra.mrb[20].mxu1 %v2278_v42 }
  0xb7   : > { %823 = vmatprep.mubr.bf16.mxu0 %v2279_v43  ;;  %2110 = vmatprep.mubr.msk.bf16.mxu1 %vm2512_vm0, %v2511_v0 }
  0xbe   : > { %824 = vmatmul.mubr.bf16.gmra.mrb[24].mxu0 %v2281_v44  ;;  %2111 = vmatmul.mubr.bf16.gmra.mrb[24].mxu1 %v2282_v45 }
  0xbf   : > { %831 = vmatprep.mubr.bf16.mxu0 %v2283_v46  ;;  %2114 = vmatprep.mubr.msk.bf16.mxu1 %vm2512_vm0, %v2511_v0 }
  0xc6   : > { %832 = vmatmul.mubr.bf16.gmra.mrb[28].mxu0 %v2285_v47  ;;  %2115 = vmatmul.mubr.bf16.gmra.mrb[28].mxu1 %v2286_v48 }
  0xc7   : > { %839 = vmatprep.mubr.bf16.mxu0 %v2287_v49  ;;  %2118 = vmatprep.mubr.msk.bf16.mxu1 %vm2512_vm0, %v2511_v0 }
  0xce   : > { %840 = vmatmul.mubr.bf16.gmra.mrb[32].mxu0 %v2289_v50  ;;  %2119 = vmatmul.mubr.bf16.gmra.mrb[32].mxu1 %v2290_v51 }
  0xcf   : > { %847 = vmatprep.mubr.bf16.mxu0 %v2291_v52  ;;  %2122 = vmatprep.mubr.msk.bf16.mxu1 %vm2512_vm0, %v2511_v0 }
  0xd6   : > { %848 = vmatmul.mubr.bf16.gmra.mrb[36].mxu0 %v2293_v53  ;;  %2123 = vmatmul.mubr.bf16.gmra.mrb[36].mxu1 %v2294_v54 }
  0xd7   : > { %855 = vmatprep.mubr.bf16.mxu0 %v2295_v55  ;;  %2126 = vmatprep.mubr.msk.bf16.mxu1 %vm2512_vm0, %v2511_v0 }
  0xde   : > { %856 = vmatmul.mubr.bf16.gmra.mrb[40].mxu0 %v2297_v56  ;;  %2127 = vmatmul.mubr.bf16.gmra.mrb[40].mxu1 %v2298_v57 }
  0xdf   : > { %863 = vmatprep.mubr.bf16.mxu0 %v2299_v58  ;;  %2130 = vmatprep.mubr.msk.bf16.mxu1 %vm2512_vm0, %v2511_v0 }
  0xe6   : > { %864 = vmatmul.mubr.bf16.gmra.mrb[44].mxu0 %v2301_v59  ;;  %2131 = vmatmul.mubr.bf16.gmra.mrb[44].mxu1 %v2302_v60 }
  0xe7   : > { %871 = vmatprep.mubr.bf16.mxu0 %v2303_v61  ;;  %2134 = vmatprep.mubr.msk.bf16.mxu1 %vm2512_vm0, %v2511_v0 }
  0xee   : > { %872 = vmatmul.mubr.bf16.gmra.mrb[48].mxu0 %v2305_v62  ;;  %2135 = vmatmul.mubr.bf16.gmra.mrb[48].mxu1 %v2306_v63 }
  0xef   : > { %879 = vmatprep.mubr.bf16.mxu0 %v2307_v1  ;;  %2138 = vmatprep.mubr.msk.bf16.mxu1 %vm2512_vm0, %v2511_v0 }
  0xf6   : > { %880 = vmatmul.mubr.bf16.gmra.mrb[52].mxu0 %v2309_v3  ;;  %2139 = vmatmul.mubr.bf16.gmra.mrb[52].mxu1 %v2310_v4 }
  0xf7   : > { %887 = vmatprep.mubr.bf16.mxu0 %v1765_v5  ;;  %2142 = vmatprep.mubr.msk.bf16.mxu1 %vm2512_vm0, %v2511_v0 }
  0xfe   : > { %888 = vmatmul.mubr.bf16.gmra.mrb[56].mxu0 %v1764_v6  ;;  %2143 = vmatmul.mubr.bf16.gmra.mrb[56].mxu1 %v2313_v7 }
 0x161   : > { %v1957_v8 = vpop.f32.mrb[0].mxu0  ;;  %v929_v9 = vpop.f32.mrb[0].mxu1 }
 0x162   : > { %v1958_v10 = vpop.f32.mrb[1].mxu0  ;;  %v2088_v12 = vpop.f32.mrb[1].mxu1 }
 0x163   : > { %v1959_v11 = vadd.f32 %v1958_v10, %v1957_v8  ;;  %v1960_v13 = vpop.f32.mrb[2].mxu0  ;;  %v932_v14 = vpop.f32.mrb[2].mxu1 }
 0x164   : > { %v1961_v15 = vpop.f32.mrb[3].mxu0  ;;  %v2089_v18 = vpop.f32.mrb[3].mxu1 }
 0x165   : > { %v2812_v16 = vadd.f32 %v1959_v11, %v929_v9  ;;  %v1962_v17 = vadd.f32 %v1961_v15, %v1960_v13 }
 0x167   : > { %v2817_v0 = vadd.f32 %v1962_v17, %v932_v14  ;;  %v1054_v20 = vadd.f32 %v2814_v19, %v2812_v16 }
 0x169   : > { %v1055_v21 = vadd.f32 %v2814_v19, %v2817_v0  ;;  %v1963_v22 = vpop.f32.mrb[4].mxu0  ;;  %v937_v23 = vpop.f32.mrb[4].mxu1 }
 0x16a   : > { %v1964_v24 = vpop.f32.mrb[5].mxu0  ;;  %v2092_v27 = vpop.f32.mrb[5].mxu1 }
 0x16b   : > { %v1861_v25 = vpack.c.bf16 %v1055_v21, %v1054_v20  ;;  %v1965_v26 = vadd.f32 %v1964_v24, %v1963_v22  ;;  %v1966_v28 = vpop.f32.mrb[6].mxu0  ;;  %v940_v29 = vpop.f32.mrb[6].mxu1 }
 0x16c   : > { %v1967_v30 = vpop.f32.mrb[7].mxu0  ;;  %v2093_v33 = vpop.f32.mrb[7].mxu1 }
 0x16d   : > { %1862 = vst [vmem:[%s2823_s29] sm:$0xff] %v1861_v25   ;;  %v2826_v31 = vadd.f32 %v1965_v26, %v937_v23  ;;  %v1968_v32 = vadd.f32 %v1967_v30, %v1966_v28 }
 0x16f   : > { %v2828_v34 = vadd.f32 %v1968_v32, %v940_v29  ;;  %v1056_v35 = vadd.f32 %v2814_v19, %v2826_v31 }
 0x171   : > { %v1057_v36 = vadd.f32 %v2814_v19, %v2828_v34  ;;  %v1969_v37 = vpop.f32.mrb[8].mxu0  ;;  %v945_v38 = vpop.f32.mrb[8].mxu1 }
 0x172   : > { %v1970_v39 = vpop.f32.mrb[9].mxu0  ;;  %v2096_v42 = vpop.f32.mrb[9].mxu1 }
 0x173   : > { %v1866_v40 = vpack.c.bf16 %v1057_v36, %v1056_v35  ;;  %v1971_v41 = vadd.f32 %v1970_v39, %v1969_v37  ;;  %v1972_v43 = vpop.f32.mrb[10].mxu0  ;;  %v948_v44 = vpop.f32.mrb[10].mxu1 }
 0x174   : > { %v1973_v45 = vpop.f32.mrb[11].mxu0  ;;  %v2097_v48 = vpop.f32.mrb[11].mxu1 }
 0x175   : > { %1928 = vst [vmem:[%s2823_s29 + $0x8] sm:$0xff] %v1866_v40   ;;  %v2835_v46 = vadd.f32 %v1971_v41, %v945_v38  ;;  %v1974_v47 = vadd.f32 %v1973_v45, %v1972_v43 }
 0x177   : > { %v2837_v49 = vadd.f32 %v1974_v47, %v948_v44  ;;  %v1058_v50 = vadd.f32 %v2814_v19, %v2835_v46 }
 0x179   : > { %v1059_v51 = vadd.f32 %v2814_v19, %v2837_v49  ;;  %v1975_v52 = vpop.f32.mrb[12].mxu0  ;;  %v953_v53 = vpop.f32.mrb[12].mxu1 }
 0x17a   : > { %v1976_v54 = vpop.f32.mrb[13].mxu0  ;;  %v2100_v57 = vpop.f32.mrb[13].mxu1 }
 0x17b   : > { %v1871_v55 = vpack.c.bf16 %v1059_v51, %v1058_v50  ;;  %v1977_v56 = vadd.f32 %v1976_v54, %v1975_v52  ;;  %v1978_v58 = vpop.f32.mrb[14].mxu0  ;;  %v956_v59 = vpop.f32.mrb[14].mxu1 }
 0x17c   : > { %v1979_v60 = vpop.f32.mrb[15].mxu0  ;;  %v2101_v63 = vpop.f32.mrb[15].mxu1 }
 0x17d   : > { %1929 = vst [vmem:[%s2823_s29 + $0x10] sm:$0xff] %v1871_v55   ;;  %v2844_v61 = vadd.f32 %v1977_v56, %v953_v53  ;;  %v1980_v62 = vadd.f32 %v1979_v60, %v1978_v58 }
 0x17f   : > { %v2846_v1 = vadd.f32 %v1980_v62, %v956_v59  ;;  %v1060_v2 = vadd.f32 %v2814_v19, %v2844_v61 }
 0x181   : > { %v1061_v3 = vadd.f32 %v2814_v19, %v2846_v1  ;;  %v1981_v4 = vpop.f32.mrb[16].mxu0  ;;  %v961_v5 = vpop.f32.mrb[16].mxu1 }
 0x182   : > { %v1982_v6 = vpop.f32.mrb[17].mxu0  ;;  %v2104_v9 = vpop.f32.mrb[17].mxu1 }
 0x183   : > { %v1876_v7 = vpack.c.bf16 %v1061_v3, %v1060_v2  ;;  %v1983_v8 = vadd.f32 %v1982_v6, %v1981_v4  ;;  %v1984_v10 = vpop.f32.mrb[18].mxu0  ;;  %v964_v11 = vpop.f32.mrb[18].mxu1 }
 0x184   : > { %v1985_v12 = vpop.f32.mrb[19].mxu0  ;;  %v2105_v15 = vpop.f32.mrb[19].mxu1 }
 0x185   : > { %1930 = vst [vmem:[%s2823_s29 + $0x18] sm:$0xff] %v1876_v7   ;;  %v2853_v13 = vadd.f32 %v1983_v8, %v961_v5  ;;  %v1986_v14 = vadd.f32 %v1985_v12, %v1984_v10 }
 0x187   : > { %v2855_v17 = vadd.f32 %v1986_v14, %v964_v11  ;;  %v1062_v18 = vadd.f32 %v2814_v19, %v2853_v13 }
 0x189   : > { %v1063_v20 = vadd.f32 %v2814_v19, %v2855_v17  ;;  %v1987_v21 = vpop.f32.mrb[20].mxu0  ;;  %v969_v22 = vpop.f32.mrb[20].mxu1 }
 0x18a   : > { %v1988_v23 = vpop.f32.mrb[21].mxu0  ;;  %v2108_v26 = vpop.f32.mrb[21].mxu1 }
 0x18b   : > { %v1881_v24 = vpack.c.bf16 %v1063_v20, %v1062_v18  ;;  %v1989_v25 = vadd.f32 %v1988_v23, %v1987_v21  ;;  %v1990_v27 = vpop.f32.mrb[22].mxu0  ;;  %v972_v28 = vpop.f32.mrb[22].mxu1 }
 0x18c   : > { %v1991_v29 = vpop.f32.mrb[23].mxu0  ;;  %v2109_v33 = vpop.f32.mrb[23].mxu1 }
 0x18d   : > { %1931 = vst [vmem:[%s2823_s29 + $0x20] sm:$0xff] %v1881_v24   ;;  %v2862_v30 = vadd.f32 %v1989_v25, %v969_v22  ;;  %v1992_v32 = vadd.f32 %v1991_v29, %v1990_v27 }
 0x18f   : > { %v2864_v35 = vadd.f32 %v1992_v32, %v972_v28  ;;  %v1064_v36 = vadd.f32 %v2814_v19, %v2862_v30 }
 0x191   : > { %v1065_v37 = vadd.f32 %v2814_v19, %v2864_v35  ;;  %v1993_v38 = vpop.f32.mrb[24].mxu0  ;;  %v977_v39 = vpop.f32.mrb[24].mxu1 }
 0x192   : > { %v1994_v40 = vpop.f32.mrb[25].mxu0  ;;  %v2112_v43 = vpop.f32.mrb[25].mxu1 }
 0x193   : > { %v1886_v41 = vpack.c.bf16 %v1065_v37, %v1064_v36  ;;  %v1995_v42 = vadd.f32 %v1994_v40, %v1993_v38  ;;  %v1996_v44 = vpop.f32.mrb[26].mxu0  ;;  %v980_v45 = vpop.f32.mrb[26].mxu1 }
 0x194   : > { %v1997_v47 = vpop.f32.mrb[27].mxu0  ;;  %v2113_v51 = vpop.f32.mrb[27].mxu1 }
 0x195   : > { %1932 = vst [vmem:[%s2823_s29 + $0x28] sm:$0xff] %v1886_v41   ;;  %v2871_v48 = vadd.f32 %v1995_v42, %v977_v39  ;;  %v1998_v50 = vadd.f32 %v1997_v47, %v1996_v44 }
 0x197   : > { %v2873_v52 = vadd.f32 %v1998_v50, %v980_v45  ;;  %v1066_v53 = vadd.f32 %v2814_v19, %v2871_v48 }
 0x199   : > { %v1067_v54 = vadd.f32 %v2814_v19, %v2873_v52  ;;  %v1999_v55 = vpop.f32.mrb[28].mxu0  ;;  %v985_v56 = vpop.f32.mrb[28].mxu1 }
 0x19a   : > { %v2000_v57 = vpop.f32.mrb[29].mxu0  ;;  %v2116_v60 = vpop.f32.mrb[29].mxu1 }
 0x19b   : > { %v1891_v58 = vpack.c.bf16 %v1067_v54, %v1066_v53  ;;  %v2001_v59 = vadd.f32 %v2000_v57, %v1999_v55  ;;  %v2002_v62 = vpop.f32.mrb[30].mxu0  ;;  %v988_v63 = vpop.f32.mrb[30].mxu1 }
 0x19c   : > { %v2003_v2 = vpop.f32.mrb[31].mxu0  ;;  %v2117_v5 = vpop.f32.mrb[31].mxu1 }
 0x19d   : > { %1933 = vst [vmem:[%s2823_s29 + $0x30] sm:$0xff] %v1891_v58   ;;  %v2880_v3 = vadd.f32 %v2001_v59, %v985_v56  ;;  %v2004_v4 = vadd.f32 %v2003_v2, %v2002_v62 }
 0x19f   : > { %v2882_v6 = vadd.f32 %v2004_v4, %v988_v63  ;;  %v1068_v7 = vadd.f32 %v2814_v19, %v2880_v3 }
 0x1a1   : > { %v1069_v8 = vadd.f32 %v2814_v19, %v2882_v6  ;;  %v2005_v9 = vpop.f32.mrb[32].mxu0  ;;  %v993_v10 = vpop.f32.mrb[32].mxu1 }
 0x1a2   : > { %v2006_v11 = vpop.f32.mrb[33].mxu0  ;;  %v2120_v15 = vpop.f32.mrb[33].mxu1 }
 0x1a3   : > { %v1896_v12 = vpack.c.bf16 %v1069_v8, %v1068_v7  ;;  %v2007_v14 = vadd.f32 %v2006_v11, %v2005_v9  ;;  %v2008_v18 = vpop.f32.mrb[34].mxu0  ;;  %v996_v20 = vpop.f32.mrb[34].mxu1 }
 0x1a4   : > { %v2009_v21 = vpop.f32.mrb[35].mxu0  ;;  %v2121_v24 = vpop.f32.mrb[35].mxu1 }
 0x1a5   : > { %1934 = vst [vmem:[%s2823_s29 + $0x38] sm:$0xff] %v1896_v12   ;;  %v2889_v22 = vadd.f32 %v2007_v14, %v993_v10  ;;  %v2010_v23 = vadd.f32 %v2009_v21, %v2008_v18 }
 0x1a7   : > { %v2891_v25 = vadd.f32 %v2010_v23, %v996_v20  ;;  %v1070_v26 = vadd.f32 %v2814_v19, %v2889_v22 }
 0x1a9   : > { %v1071_v27 = vadd.f32 %v2814_v19, %v2891_v25  ;;  %v2011_v28 = vpop.f32.mrb[36].mxu0  ;;  %v1001_v29 = vpop.f32.mrb[36].mxu1 }
 0x1aa   : > { %v2012_v32 = vpop.f32.mrb[37].mxu0  ;;  %v2124_v37 = vpop.f32.mrb[37].mxu1 }
 0x1ab   : > { %v1901_v33 = vpack.c.bf16 %v1071_v27, %v1070_v26  ;;  %v2013_v36 = vadd.f32 %v2012_v32, %v2011_v28  ;;  %v2014_v38 = vpop.f32.mrb[38].mxu0  ;;  %v1004_v39 = vpop.f32.mrb[38].mxu1 }
 0x1ac   : > { %v2015_v40 = vpop.f32.mrb[39].mxu0  ;;  %v2125_v43 = vpop.f32.mrb[39].mxu1 }
 0x1ad   : > { %1935 = vst [vmem:[%s2823_s29 + $0x40] sm:$0xff] %v1901_v33   ;;  %v2898_v41 = vadd.f32 %v2013_v36, %v1001_v29  ;;  %v2016_v42 = vadd.f32 %v2015_v40, %v2014_v38 }
 0x1af   : > { %v2900_v44 = vadd.f32 %v2016_v42, %v1004_v39  ;;  %v1072_v45 = vadd.f32 %v2814_v19, %v2898_v41 }
 0x1b1   : > { %v1073_v47 = vadd.f32 %v2814_v19, %v2900_v44  ;;  %v2017_v50 = vpop.f32.mrb[40].mxu0  ;;  %v1009_v51 = vpop.f32.mrb[40].mxu1 }
 0x1b2   : > { %v2018_v53 = vpop.f32.mrb[41].mxu0  ;;  %v2128_v56 = vpop.f32.mrb[41].mxu1 }
 0x1b3   : > { %v1906_v54 = vpack.c.bf16 %v1073_v47, %v1072_v45  ;;  %v2019_v55 = vadd.f32 %v2018_v53, %v2017_v50  ;;  %v2020_v57 = vpop.f32.mrb[42].mxu0  ;;  %v1012_v58 = vpop.f32.mrb[42].mxu1 }
 0x1b4   : > { %v2021_v59 = vpop.f32.mrb[43].mxu0  ;;  %v2129_v63 = vpop.f32.mrb[43].mxu1 }
 0x1b5   : > { %1936 = vst [vmem:[%s2823_s29 + $0x48] sm:$0xff] %v1906_v54   ;;  %v2907_v60 = vadd.f32 %v2019_v55, %v1009_v51  ;;  %v2022_v62 = vadd.f32 %v2021_v59, %v2020_v57 }
 0x1b7   : > { %v2909_v2 = vadd.f32 %v2022_v62, %v1012_v58  ;;  %v1074_v4 = vadd.f32 %v2814_v19, %v2907_v60 }
 0x1b9   : > { %v1075_v5 = vadd.f32 %v2814_v19, %v2909_v2  ;;  %v2023_v7 = vpop.f32.mrb[44].mxu0  ;;  %v1017_v8 = vpop.f32.mrb[44].mxu1 }
 0x1ba   : > { %v2024_v9 = vpop.f32.mrb[45].mxu0  ;;  %v2132_v12 = vpop.f32.mrb[45].mxu1 }
 0x1bb   : > { %v1911_v10 = vpack.c.bf16 %v1075_v5, %v1074_v4  ;;  %v2025_v11 = vadd.f32 %v2024_v9, %v2023_v7  ;;  %v2026_v14 = vpop.f32.mrb[46].mxu0  ;;  %v1020_v15 = vpop.f32.mrb[46].mxu1 }
 0x1bc   : > { %v2027_v18 = vpop.f32.mrb[47].mxu0  ;;  %v2133_v23 = vpop.f32.mrb[47].mxu1 }
 0x1bd   : > { %1937 = vst [vmem:[%s2823_s29 + $0x50] sm:$0xff] %v1911_v10   ;;  %v2916_v20 = vadd.f32 %v2025_v11, %v1017_v8  ;;  %v2028_v21 = vadd.f32 %v2027_v18, %v2026_v14 }
 0x1bf   : > { %v2918_v24 = vadd.f32 %v2028_v21, %v1020_v15  ;;  %v1076_v26 = vadd.f32 %v2814_v19, %v2916_v20 }
 0x1c1   : > { %v1077_v27 = vadd.f32 %v2814_v19, %v2918_v24  ;;  %v2029_v28 = vpop.f32.mrb[48].mxu0  ;;  %v1025_v29 = vpop.f32.mrb[48].mxu1 }
 0x1c2   : > { %v2030_v32 = vpop.f32.mrb[49].mxu0  ;;  %v2136_v37 = vpop.f32.mrb[49].mxu1 }
 0x1c3   : > { %v1916_v33 = vpack.c.bf16 %v1077_v27, %v1076_v26  ;;  %v2031_v36 = vadd.f32 %v2030_v32, %v2029_v28  ;;  %v2032_v38 = vpop.f32.mrb[50].mxu0  ;;  %v1028_v39 = vpop.f32.mrb[50].mxu1 }
 0x1c4   : > { %v2033_v40 = vpop.f32.mrb[51].mxu0  ;;  %v2137_v45 = vpop.f32.mrb[51].mxu1 }
 0x1c5   : > { %1938 = vst [vmem:[%s2823_s29 + $0x58] sm:$0xff] %v1916_v33   ;;  %v2925_v42 = vadd.f32 %v2031_v36, %v1025_v29  ;;  %v2034_v43 = vadd.f32 %v2033_v40, %v2032_v38  ;;  %v1233_v36 = vadd.f32 (!%p3230_p11), %v2817_v0, %v2812_v16 }
 0x1c7   : > { %v2927_v47 = vadd.f32 %v2034_v43, %v1028_v39  ;;  %v1078_v50 = vadd.f32 %v2814_v19, %v2925_v42  ;;  %v1234_v37 = vadd.f32 (!%p3230_p11), %v1233_v36, %v2826_v31  ;;  %v1267_v39 = vmul.f32 (!%p3230_p11), %v2812_v16, %v2812_v16 }
 0x1c8   : > { %v1269_v43 = vmul.f32 (!%p3230_p11), %v2826_v31, %v2826_v31  ;;  %v1279_v36 = vmul.f32 (!%p3230_p11), %v2871_v48, %v2871_v48 }
 0x1c9   : > { %v1079_v51 = vadd.f32 %v2814_v19, %v2927_v47  ;;  %v2035_v53 = vpop.f32.mrb[52].mxu0  ;;  %v1033_v54 = vpop.f32.mrb[52].mxu1  ;;  %v1235_v38 = vadd.f32 (!%p3230_p11), %v1234_v37, %v2828_v34 }
 0x1ca   : > { %v2036_v55 = vpop.f32.mrb[53].mxu0  ;;  %v2140_v58 = vpop.f32.mrb[53].mxu1 }
 0x1cb   : > { %v1921_v56 = vpack.c.bf16 %v1079_v51, %v1078_v50  ;;  %v2037_v57 = vadd.f32 %v2036_v55, %v2035_v53  ;;  %v2038_v59 = vpop.f32.mrb[54].mxu0  ;;  %v1036_v62 = vpop.f32.mrb[54].mxu1  ;;  %v1236_v40 = vadd.f32 (!%p3230_p11), %v1235_v38, %v2835_v46  ;;  %v1270_v50 = vmul.f32 (!%p3230_p11), %v2828_v34, %v2828_v34 }
 0x1cc   : > { %v2039_v63 = vpop.f32.mrb[55].mxu0  ;;  %v2141_v7 = vpop.f32.mrb[55].mxu1 }
 0x1cd   : > { %1939 = vst [vmem:[%s2823_s29 + $0x60] sm:$0xff] %v1921_v56   ;;  %v2934_v4 = vadd.f32 %v2037_v57, %v1033_v54  ;;  %v2040_v5 = vadd.f32 %v2039_v63, %v2038_v59  ;;  %v1237_v45 = vadd.f32 (!%p3230_p11), %v1236_v40, %v2837_v49  ;;  %v1271_v54 = vmul.f32 (!%p3230_p11), %v2835_v46, %v2835_v46 }
 0x1ce   : > { %v1272_v57 = vmul.f32 (!%p3230_p11), %v2837_v49, %v2837_v49  ;;  %v1274_v7 = vmul.f32 (!%p3230_p11), %v2846_v1, %v2846_v1 }
 0x1cf   : > { %v2936_v8 = vadd.f32 %v2040_v5, %v1036_v62  ;;  %v1080_v9 = vadd.f32 %v2814_v19, %v2934_v4  ;;  %v1238_v53 = vadd.f32 (!%p3230_p11), %v1237_v45, %v2844_v61  ;;  %v1273_v62 = vmul.f32 (!%p3230_p11), %v2844_v61, %v2844_v61 }
 0x1d1   : > { %v1081_v10 = vadd.f32 %v2814_v19, %v2936_v8  ;;  %v2041_v11 = vpop.f32.mrb[56].mxu0  ;;  %v1041_v12 = vpop.f32.mrb[56].mxu1  ;;  %v1239_v56 = vadd.f32 (!%p3230_p11), %v1238_v53, %v2846_v1 }
 0x1d2   : > { %v2042_v14 = vpop.f32.mrb[57].mxu0  ;;  %v2144_v21 = vpop.f32.mrb[57].mxu1 }
 0x1d3   : > { %v1926_v15 = vpack.c.bf16 %v1081_v10, %v1080_v9  ;;  %v2043_v18 = vadd.f32 %v2042_v14, %v2041_v11  ;;  %v2044_v23 = vpop.f32.mrb[58].mxu0  ;;  %v1044_v26 = vpop.f32.mrb[58].mxu1  ;;  %v1240_v59 = vadd.f32 (!%p3230_p11), %v1239_v56, %v2853_v13  ;;  %v1275_v11 = vmul.f32 (!%p3230_p11), %v2853_v13, %v2853_v13 }
 0x1d4   : > { %v2045_v27 = vpop.f32.mrb[59].mxu0  ;;  %v2145_v29 = vpop.f32.mrb[59].mxu1  ;;  %v1277_v23 = vmul.f32 (!%p3230_p11), %v2862_v30, %v2862_v30 }
 0x1d5   : > { %1940 = vst [vmem:[%s2823_s29 + $0x68] sm:$0xff] %v1926_v15   ;;  %v2943_v28 = vadd.f32 %v2043_v18, %v1041_v12  ;;  %1232 = sbr.rel (%p3230_p11) target bundleno = 543 (0x21f), region = 48  ;;  %v1241_v5 = vadd.f32 (!%p3230_p11), %v1240_v59, %v2855_v17  ;;  %v1276_v15 = vmul.f32 (!%p3230_p11), %v2855_v17, %v2855_v17  ;;  %v1278_v29 = vmul.f32 (!%p3230_p11), %v2864_v35, %v2864_v35 }
 0x1d7   : > { %v1082_v32 = vadd.f32 %v2814_v19, %v2943_v28  ;;  %v1268_v19 = vmul.f32 (!%p3230_p11), %v2817_v0, %v2817_v0  ;;  %v1242_v10 = vadd.f32 (!%p3230_p11), %v1241_v5, %v2862_v30 }
 0x1d9   : > { %v1856_v33 = vpack.c.bf16 %v1082_v32, %v1082_v32  ;;  %v1296_v51 = vadd.f32 (!%p3230_p11), %v1268_v19, %v1267_v39  ;;  %v1243_v14 = vadd.f32 (!%p3230_p11), %v1242_v10, %v2864_v35  ;;  %v1280_v39 = vmul.f32 (!%p3230_p11), %v2873_v52, %v2873_v52 }
 0x1db   : > { %1228 = vst [vmem:[%s2823_s29 + $0x70] sm:$0xf] %v1856_v33  ;;  %v1297_v55 = vadd.f32 (!%p3230_p11), %v1296_v51, %v1269_v43  ;;  %v1244_v21 = vadd.f32 (!%p3230_p11), %v1243_v14, %v2871_v48  ;;  %v1281_v43 = vmul.f32 (!%p3230_p11), %v2880_v3, %v2880_v3  ;;  %v1282_v51 = vmul.f32 (!%p3230_p11), %v2882_v6, %v2882_v6 }
 0x1dd   : > { %v1298_v58 = vadd.f32 %v1297_v55, %v1270_v50  ;;  %v1245_v27 = vadd.f32 %v1244_v21, %v2873_v52  ;;  %v1283_v55 = vmul.f32 %v2889_v22, %v2889_v22 }
 0x1df   : > { %v1299_v63 = vadd.f32 %v1298_v58, %v1271_v54  ;;  %v1246_v33 = vadd.f32 %v1245_v27, %v2880_v3  ;;  %v1284_v58 = vmul.f32 %v2891_v25, %v2891_v25 }
 0x1e1   : > { %v1300_v9 = vadd.f32 %v1299_v63, %v1272_v57  ;;  %v1247_v38 = vadd.f32 %v1246_v33, %v2882_v6  ;;  %v1285_v63 = vmul.f32 %v2898_v41, %v2898_v41 }
 0x1e3   : > { %v1301_v12 = vadd.f32 %v1300_v9, %v1273_v62  ;;  %v1248_v40 = vadd.f32 %v1247_v38, %v2889_v22  ;;  %v1286_v9 = vmul.f32 %v2900_v44, %v2900_v44 }
 0x1e5   : > { %v1302_v18 = vadd.f32 %v1301_v12, %v1274_v7  ;;  %v1249_v50 = vadd.f32 %v1248_v40, %v2891_v25  ;;  %v1287_v12 = vmul.f32 %v2907_v60, %v2907_v60 }
 0x1e7   : > { %v1303_v26 = vadd.f32 %v1302_v18, %v1275_v11  ;;  %v1250_v54 = vadd.f32 %v1249_v50, %v2898_v41  ;;  %v1288_v18 = vmul.f32 %v2909_v2, %v2909_v2 }
 0x1e9   : > { %v1304_v32 = vadd.f32 %v1303_v26, %v1276_v15  ;;  %v1251_v57 = vadd.f32 %v1250_v54, %v2900_v44  ;;  %v1289_v26 = vmul.f32 %v2916_v20, %v2916_v20 }
 0x1eb   : > { %v1305_v37 = vadd.f32 %v1304_v32, %v1277_v23  ;;  %v1252_v62 = vadd.f32 %v1251_v57, %v2907_v60  ;;  %v1290_v32 = vmul.f32 %v2918_v24, %v2918_v24 }
 0x1ed   : > { %v1306_v19 = vadd.f32 %v1305_v37, %v1278_v29  ;;  %v1253_v7 = vadd.f32 %v1252_v62, %v2909_v2  ;;  %v1291_v37 = vmul.f32 %v2925_v42, %v2925_v42 }
 0x1ef   : > { %v1307_v45 = vadd.f32 %v1306_v19, %v1279_v36  ;;  %v1254_v11 = vadd.f32 %v1253_v7, %v2916_v20  ;;  %v1292_v19 = vmul.f32 %v2927_v47, %v2927_v47 }
 0x1f1   : > { %v1308_v53 = vadd.f32 %v1307_v45, %v1280_v39  ;;  %v1255_v15 = vadd.f32 %v1254_v11, %v2918_v24  ;;  %v1293_v45 = vmul.f32 %v2934_v4, %v2934_v4 }
 0x1f3   : > { %v1309_v56 = vadd.f32 %v1308_v53, %v1281_v43  ;;  %v1256_v23 = vadd.f32 %v1255_v15, %v2925_v42  ;;  %v1294_v53 = vmul.f32 %v2936_v8, %v2936_v8 }
 0x1f5   : > { %v1310_v59 = vadd.f32 %v1309_v56, %v1282_v51  ;;  %v1257_v29 = vadd.f32 %v1256_v23, %v2927_v47  ;;  %v1295_v56 = vmul.f32 %v2943_v28, %v2943_v28 }
 0x1f7   : > { %v1311_v5 = vadd.f32 %v1310_v59, %v1283_v55  ;;  %v1258_v36 = vadd.f32 %v1257_v29, %v2934_v4 }
 0x1f9   : > { %v1312_v10 = vadd.f32 %v1311_v5, %v1284_v58  ;;  %v1259_v39 = vadd.f32 %v1258_v36, %v2936_v8 }
 0x1fb   : > { %v1313_v14 = vadd.f32 %v1312_v10, %v1285_v63  ;;  %v1260_v43 = vadd.f32 %v1259_v39, %v2943_v28 }
 0x1fd   : > { %v1314_v21 = vadd.f32 %v1313_v14, %v1286_v9  ;;  %v1261_v51 = vrot.slane %v1260_v43, 4 }
 0x1ff   : > { %v1315_v27 = vadd.f32 %v1314_v21, %v1287_v12  ;;  %v1262_v55 = vadd.f32 %v1261_v51, %v1260_v43 }
 0x201   : > { %v1316_v33 = vadd.f32 %v1315_v27, %v1288_v18  ;;  %v1263_v58 = vrot.slane %v1262_v55, 2 }
 0x203   : > { %v1317_v38 = vadd.f32 %v1316_v33, %v1289_v26  ;;  %v1264_v63 = vadd.f32 %v1263_v58, %v1262_v55 }
 0x205   : > { %v1318_v40 = vadd.f32 %v1317_v38, %v1290_v32  ;;  %v1265_v9 = vrot.slane %v1264_v63, 1 }
 0x207   : > { %v1319_v50 = vadd.f32 %v1318_v40, %v1291_v37  ;;  %v1266_v12 = vadd.f32 %v1265_v9, %v1264_v63 }
 0x209   : > { %v1320_v54 = vadd.f32 %v1319_v50, %v1292_v19 }
 0x20b   : > { %v1321_v57 = vadd.f32 %v1320_v54, %v1293_v45 }
 0x20d   : > { %v1322_v59 = vadd.f32 %v1321_v57, %v1294_v53 }
 0x20f   : > { %v1323_v62 = vadd.f32 %v1322_v59, %v1295_v56 }
 0x211   : > { %v1324_v5 = vrot.slane %v1323_v62, 4 }
 0x213   : > { %v1325_v7 = vadd.f32 %v1324_v5, %v1323_v62 }
 0x215   : > { %v1326_v10 = vrot.slane %v1325_v7, 2 }
 0x217   : > { %v1327_v11 = vadd.f32 %v1326_v10, %v1325_v7 }
 0x219   : > { %v1328_v14 = vrot.slane %v1327_v11, 1 }
 0x21b   : > { %v1329_v15 = vadd.f32 %v1328_v14, %v1327_v11 }
 0x21d   : > { %v1331_v18 = vsel %vm1330_vm1, %v1266_v12, %v1329_v15 }
 0x21e   : > { %1332 = vst [vmem:[%s2950_s30] sm:$0x3] %v1331_v18 }
 0x21f PF: > { %p1822_p0 = scmp.ne.s32.totalorder %s2563_s19, 1 }
 0x220   : > { %v1337_v21 = vlaneseq (!%p1822_p0)  ;;  %s1367_s6 = smul.u32 (!%p1822_p0), 232, %s2563_s19 }
 0x221   : > { %1336 = sbr.rel (%p1822_p0) target bundleno = 628 (0x274), region = 52 }
 0x222   : > { %v3043_v23 = vshrl.u32 (!%p1822_p0), %v1337_v21, 7  ;;  %v3047_v27 = vstv (!%p1822_p0), %s1367_s6 }
 0x224   : > { %v1339_v26 = vadd.s32 (!%p1822_p0), 8, %v3043_v23  ;;  %v1340_v29 = vadd.s32 (!%p1822_p0), 16, %v3043_v23  ;;  %v1341_v32 = vadd.s32 (!%p1822_p0), 24, %v3043_v23  ;;  %v1369_v33 = vadd.s32 (!%p1822_p0), %v3047_v27, %v3043_v23 }
 0x225   : > { %v1342_v37 = vadd.s32 (!%p1822_p0), 32, %v3043_v23  ;;  %v1343_v39 = vadd.s32 (!%p1822_p0), 40, %v3043_v23  ;;  %v1344_v40 = vadd.s32 (!%p1822_p0), 48, %v3043_v23  ;;  %v1345_v51 = vadd.s32 (!%p1822_p0), 56, %v3043_v23 }
 0x226   : > { %v1370_v36 = vadd.s32 (!%p1822_p0), %v3047_v27, %v1339_v26  ;;  %v1371_v38 = vadd.s32 (!%p1822_p0), %v3047_v27, %v1340_v29  ;;  %v1372_v19 = vadd.s32 (!%p1822_p0), %v3047_v27, %v1341_v32  ;;  %vm1398_vm2 = vcmp.lt.s32.totalorder (!%p1822_p0), %v1369_v33, 450 }
 0x227   : > { %v1373_v43 = vadd.s32 (!%p1822_p0), %v3047_v27, %v1342_v37  ;;  %v1427_v45 = vsel (!%p1822_p0), %vm1398_vm2, %v2812_v16, 0.0  ;;  %v1374_v53 = vadd.s32 (!%p1822_p0), %v3047_v27, %v1343_v39  ;;  %v1346_v56 = vadd.s32 (!%p1822_p0), 64, %v3043_v23 }
 0x228   : > { %vm1399_vm3 = vcmp.lt.s32.totalorder %v1370_v36, 450  ;;  %vm1400_vm4 = vcmp.lt.s32.totalorder %v1371_v38, 450  ;;  %vm1401_vm5 = vcmp.lt.s32.totalorder %v1372_v19, 450  ;;  %v1375_v57 = vadd.s32 %v3047_v27, %v1344_v40 }
 0x229   : > { %v1428_v50 = vsel %vm1399_vm3, %v2817_v0, 0.0  ;;  %v1429_v55 = vsel %vm1400_vm4, %v2826_v31, 0.0  ;;  %vm1402_vm6 = vcmp.lt.s32.totalorder %v1373_v43, 450  ;;  %v1430_v59 = vsel %vm1401_vm5, %v2828_v34, 0.0 }
 0x22a   : > { %v1456_v54 = vadd.f32 %v1428_v50, %v1427_v45  ;;  %v1347_v16 = vadd.s32 72, %v3043_v23  ;;  %v1376_v0 = vadd.s32 %v3047_v27, %v1345_v51  ;;  %vm1403_vm7 = vcmp.lt.s32.totalorder %v1374_v53, 450 }
 0x22b   : > { %v1431_v63 = vsel %vm1402_vm6, %v2835_v46, 0.0  ;;  %v1490_v5 = vmul.f32 %v1427_v45, %v1427_v45  ;;  %v1491_v7 = vmul.f32 %v1428_v50, %v1428_v50  ;;  %v1348_v31 = vadd.s32 80, %v3043_v23 }
 0x22c   : > { %v1457_v58 = vadd.f32 %v1456_v54, %v1429_v55  ;;  %v1377_v9 = vadd.s32 %v3047_v27, %v1346_v56  ;;  %vm1404_vm8 = vcmp.lt.s32.totalorder %v1375_v57, 450  ;;  %v1432_v11 = vsel %vm1403_vm7, %v2837_v49, 0.0 }
 0x22d   : > { %v1492_v12 = vmul.f32 %v1429_v55, %v1429_v55  ;;  %v1349_v34 = vadd.s32 88, %v3043_v23  ;;  %v1378_v14 = vadd.s32 %v3047_v27, %v1347_v16  ;;  %vm1405_vm9 = vcmp.lt.s32.totalorder %v1376_v0, 450 }
 0x22e   : > { %v1458_v62 = vadd.f32 %v1457_v58, %v1430_v59  ;;  %v1433_v18 = vsel %vm1404_vm8, %v2844_v61, 0.0  ;;  %v1493_v46 = vmul.f32 %v1430_v59, %v1430_v59  ;;  %v1519_v21 = vadd.f32 %v1491_v7, %v1490_v5 }
 0x22f   : > { %v1350_v26 = vadd.s32 96, %v3043_v23  ;;  %v1379_v29 = vadd.s32 %v3047_v27, %v1348_v31  ;;  %vm1406_vm10 = vcmp.lt.s32.totalorder %v1377_v9, 450  ;;  %v1434_v33 = vsel %vm1405_vm9, %v2846_v1, 0.0 }
 0x230   : > { %v1459_v10 = vadd.f32 %v1458_v62, %v1431_v63  ;;  %v1494_v49 = vmul.f32 %v1431_v63, %v1431_v63  ;;  %v1520_v36 = vadd.f32 %v1519_v21, %v1492_v12  ;;  %v1351_v37 = vadd.s32 104, %v3043_v23 }
 0x231   : > { %v1380_v38 = vadd.s32 %v3047_v27, %v1349_v34  ;;  %vm1407_vm11 = vcmp.lt.s32.totalorder %v1378_v14, 450  ;;  %v1435_v61 = vsel %vm1406_vm10, %v2853_v13, 0.0  ;;  %v1495_v19 = vmul.f32 %v1432_v11, %v1432_v11 }
 0x232   : > { %v1460_v15 = vadd.f32 %v1459_v10, %v1432_v11  ;;  %v1521_v40 = vadd.f32 %v1520_v36, %v1493_v46  ;;  %v1352_v43 = vadd.s32 112, %v3043_v23  ;;  %v1381_v45 = vadd.s32 %v3047_v27, %v1350_v26 }
 0x233   : > { %vm1408_vm12 = vcmp.lt.s32.totalorder %v1379_v29, 450  ;;  %v1436_v1 = vsel %vm1407_vm11, %v2855_v17, 0.0  ;;  %v1496_v51 = vmul.f32 %v1433_v18, %v1433_v18  ;;  %v1353_v54 = vadd.s32 120, %v3043_v23 }
 0x234   : > { %v1461_v32 = vadd.f32 %v1460_v15, %v1433_v18  ;;  %v1522_v53 = vadd.f32 %v1521_v40, %v1494_v49  ;;  %v1382_v55 = vadd.s32 %v3047_v27, %v1351_v37  ;;  %vm1409_vm13 = vcmp.lt.s32.totalorder %v1380_v38, 450 }
 0x235   : > { %v1437_v13 = vsel %vm1408_vm12, %v2862_v30, 0.0  ;;  %v1497_v57 = vmul.f32 %v1434_v33, %v1434_v33  ;;  %v1354_v59 = vadd.s32 128, %v3043_v23  ;;  %v1383_v16 = vadd.s32 %v3047_v27, %v1352_v43 }
 0x236   : > { %v1462_v39 = vadd.f32 %v1461_v32, %v1434_v33  ;;  %v1523_v58 = vadd.f32 %v1522_v53, %v1495_v19  ;;  %vm1410_vm14 = vcmp.lt.s32.totalorder %v1381_v45, 450  ;;  %v1438_v17 = vsel %vm1409_vm13, %v2864_v35, 0.0 }
 0x237   : > { %v1498_v62 = vmul.f32 %v1435_v61, %v1435_v61  ;;  %v1355_v5 = vadd.s32 136, %v3043_v23  ;;  %v1384_v7 = vadd.s32 %v3047_v27, %v1353_v54  ;;  %vm1411_vm15 = vcmp.lt.s32.totalorder %v1382_v55, 450 }
 0x238   : > { %v1463_v50 = vadd.f32 %v1462_v39, %v1435_v61  ;;  %v1524_v63 = vadd.f32 %v1523_v58, %v1496_v51  ;;  %v1439_v30 = vsel %vm1410_vm14, %v2871_v48, 0.0  ;;  %v1499_v9 = vmul.f32 %v1436_v1, %v1436_v1 }
 0x239   : > { %v1356_v11 = vadd.s32 144, %v3043_v23  ;;  %v1385_v12 = vadd.s32 %v3047_v27, %v1354_v59  ;;  %vm1412_vm0 = vcmp.lt.s32.totalorder %v1383_v16, 450  ;;  %v1440_v35 = vsel %vm1411_vm15, %v2873_v52, 0.0 }
 0x23a   : > { %v1464_v56 = vadd.f32 %v1463_v50, %v1436_v1  ;;  %v1525_v10 = vadd.f32 %v1524_v63, %v1497_v57  ;;  %v1500_v14 = vmul.f32 %v1437_v13, %v1437_v13  ;;  %v1357_v18 = vadd.s32 152, %v3043_v23 }
 0x23b   : > { %v1386_v46 = vadd.s32 %v3047_v27, %v1355_v5  ;;  %vm1413_vm1 = vcmp.lt.s32.totalorder %v1384_v7, 450  ;;  %v1441_v48 = vsel %vm1412_vm0, %v2880_v3, 0.0  ;;  %v1501_v26 = vmul.f32 %v1438_v17, %v1438_v17 }
 0x23c   : > { %v1465_v0 = vadd.f32 %v1464_v56, %v1437_v13  ;;  %v1526_v15 = vadd.f32 %v1525_v10, %v1498_v62  ;;  %v1358_v32 = vadd.s32 160, %v3043_v23  ;;  %v1387_v33 = vadd.s32 %v3047_v27, %v1356_v11 }
 0x23d   : > { %vm1414_vm2 = vcmp.lt.s32.totalorder %v1385_v12, 450  ;;  %v1442_v52 = vsel %vm1413_vm1, %v2882_v6, 0.0  ;;  %v1502_v36 = vmul.f32 %v1439_v30, %v1439_v30  ;;  %v1359_v38 = vadd.s32 168, %v3043_v23 }
 0x23e   : > { %v1466_v31 = vadd.f32 %v1465_v0, %v1438_v17  ;;  %v1527_v29 = vadd.f32 %v1526_v15, %v1499_v9  ;;  %v1388_v39 = vadd.s32 %v3047_v27, %v1357_v18  ;;  %vm1415_vm3 = vcmp.lt.s32.totalorder %v1386_v46, 450 }
 0x23f   : > { %v1443_v3 = vsel %vm1414_vm2, %v2889_v22, 0.0  ;;  %v1503_v19 = vmul.f32 %v1440_v35, %v1440_v35  ;;  %v1360_v43 = vadd.s32 176, %v3043_v23  ;;  %v1389_v45 = vadd.s32 %v3047_v27, %v1358_v32 }
 0x240   : > { %v1467_v34 = vadd.f32 %v1466_v31, %v1439_v30  ;;  %v1528_v37 = vadd.f32 %v1527_v29, %v1500_v14  ;;  %vm1416_vm4 = vcmp.lt.s32.totalorder %v1387_v33, 450  ;;  %v1444_v6 = vsel %vm1415_vm3, %v2891_v25, 0.0 }
 0x241   : > { %v1504_v1 = vmul.f32 %v1441_v48, %v1441_v48  ;;  %v1361_v53 = vadd.s32 184, %v3043_v23  ;;  %v1390_v54 = vadd.s32 %v3047_v27, %v1359_v38  ;;  %vm1417_vm5 = vcmp.lt.s32.totalorder %v1388_v39, 450 }
 0x242   : > { %v1468_v21 = vadd.f32 %v1467_v34, %v1440_v35  ;;  %v1529_v40 = vadd.f32 %v1528_v37, %v1501_v26  ;;  %v1445_v22 = vsel %vm1416_vm4, %v2898_v41, 0.0  ;;  %v1505_v56 = vmul.f32 %v1442_v52, %v1442_v52 }
 0x243   : > { %v1362_v57 = vadd.s32 192, %v3043_v23  ;;  %v1391_v58 = vadd.s32 %v3047_v27, %v1360_v43  ;;  %vm1418_vm6 = vcmp.lt.s32.totalorder %v1389_v45, 450  ;;  %v1446_v25 = vsel %vm1417_vm5, %v2900_v44, 0.0 }
 0x244   : > { %v1469_v49 = vadd.f32 %v1468_v21, %v1441_v48  ;;  %v1530_v51 = vadd.f32 %v1529_v40, %v1502_v36  ;;  %v1506_v16 = vmul.f32 %v1443_v3, %v1443_v3  ;;  %v1363_v17 = vadd.s32 200, %v3043_v23 }
 0x245   : > { %v1392_v62 = vadd.s32 %v3047_v27, %v1361_v53  ;;  %vm1419_vm7 = vcmp.lt.s32.totalorder %v1390_v54, 450  ;;  %v1447_v41 = vsel %vm1418_vm6, %v2907_v60, 0.0  ;;  %v1507_v5 = vmul.f32 %v1444_v6, %v1444_v6 }
 0x246   : > { %v1470_v61 = vadd.f32 %v1469_v49, %v1442_v52  ;;  %v1531_v13 = vadd.f32 %v1530_v51, %v1503_v19  ;;  %v1364_v31 = vadd.s32 208, %v3043_v23  ;;  %v1393_v30 = vadd.s32 %v3047_v27, %v1362_v57 }
 0x247   : > { %vm1420_vm8 = vcmp.lt.s32.totalorder %v1391_v58, 450  ;;  %v1448_v44 = vsel %vm1419_vm7, %v2909_v2, 0.0  ;;  %v1508_v10 = vmul.f32 %v1445_v22, %v1445_v22  ;;  %v1365_v12 = vadd.s32 216, %v3043_v23 }
 0x248   : > { %v1471_v50 = vadd.f32 %v1470_v61, %v1443_v3  ;;  %v1532_v0 = vadd.f32 %v1531_v13, %v1504_v1  ;;  %v1394_v34 = vadd.s32 %v3047_v27, %v1363_v17  ;;  %vm1421_vm9 = vcmp.lt.s32.totalorder %v1392_v62, 450 }
 0x249   : > { %v1449_v60 = vsel %vm1420_vm8, %v2916_v20, 0.0  ;;  %v1509_v14 = vmul.f32 %v1446_v25, %v1446_v25  ;;  %v1366_v18 = vadd.s32 224, %v3043_v23  ;;  %v1395_v46 = vadd.s32 %v3047_v27, %v1364_v31 }
 0x24a   : > { %v1472_v55 = vadd.f32 %v1471_v50, %v1444_v6  ;;  %v1533_v7 = vadd.f32 %v1532_v0, %v1505_v56  ;;  %vm1422_vm10 = vcmp.lt.s32.totalorder %v1393_v30, 450  ;;  %v1450_v2 = vsel %vm1421_vm9, %v2918_v24, 0.0 }
 0x24b   : > { %v1510_v48 = vmul.f32 %v1447_v41, %v1447_v41  ;;  %v1396_v29 = vadd.s32 %v3047_v27, %v1365_v12  ;;  %vm1423_vm11 = vcmp.lt.s32.totalorder %v1394_v34, 450  ;;  %v1451_v33 = vsel %vm1422_vm10, %v2925_v42, 0.0 }
 0x24c   : > { %v1473_v59 = vadd.f32 %v1472_v55, %v1445_v22  ;;  %v1534_v11 = vadd.f32 %v1533_v7, %v1506_v16  ;;  %v1511_v49 = vmul.f32 %v1448_v44, %v1448_v44  ;;  %v1397_v52 = vadd.s32 %v3047_v27, %v1366_v18 }
 0x24d   : > { %vm1424_vm12 = vcmp.lt.s32.totalorder %v1395_v46, 450  ;;  %v1452_v36 = vsel %vm1423_vm11, %v2927_v47, 0.0  ;;  %v1512_v37 = vmul.f32 %v1449_v60, %v1449_v60  ;;  %vm1425_vm13 = vcmp.lt.s32.totalorder %v1396_v29, 450 }
 0x24e   : > { %v1474_v63 = vadd.f32 %v1473_v59, %v1446_v25  ;;  %v1535_v15 = vadd.f32 %v1534_v11, %v1507_v5  ;;  %v1453_v39 = vsel %vm1424_vm12, %v2934_v4, 0.0  ;;  %v1513_v61 = vmul.f32 %v1450_v2, %v1450_v2 }
 0x24f   : > { %vm1426_vm14 = vcmp.lt.s32.totalorder %v1397_v52, 450  ;;  %v1454_v42 = vsel %vm1425_vm13, %v2936_v8, 0.0  ;;  %v1514_v40 = vmul.f32 %v1451_v33, %v1451_v33  ;;  %v1515_v50 = vmul.f32 %v1452_v36, %v1452_v36 }
 0x250   : > { %v1475_v9 = vadd.f32 %v1474_v63, %v1447_v41  ;;  %v1536_v26 = vadd.f32 %v1535_v15, %v1508_v10  ;;  %v1455_v27 = vsel %vm1426_vm14, %v2943_v28, 0.0  ;;  %v1516_v1 = vmul.f32 %v1453_v39, %v1453_v39 }
 0x251   : > { %v1517_v54 = vmul.f32 %v1454_v42, %v1454_v42  ;;  %v1518_v22 = vmul.f32 %v1455_v27, %v1455_v27  ;;  %vm1553_vm15 = vcmask 1040384  }
 0x252   : > { %v1476_v35 = vadd.f32 %v1475_v9, %v1448_v44  ;;  %v1537_v20 = vadd.f32 %v1536_v26, %v1509_v14 }
 0x254   : > { %v1477_v21 = vadd.f32 %v1476_v35, %v1449_v60  ;;  %v1538_v38 = vadd.f32 %v1537_v20, %v1510_v48 }
 0x256   : > { %v1478_v32 = vadd.f32 %v1477_v21, %v1450_v2  ;;  %v1539_v3 = vadd.f32 %v1538_v38, %v1511_v49 }
 0x258   : > { %v1479_v23 = vadd.f32 %v1478_v32, %v1451_v33  ;;  %v1540_v43 = vadd.f32 %v1539_v3, %v1512_v37 }
 0x25a   : > { %v1480_v24 = vadd.f32 %v1479_v23, %v1452_v36  ;;  %v1541_v6 = vadd.f32 %v1540_v43, %v1513_v61 }
 0x25c   : > { %v1481_v19 = vadd.f32 %v1480_v24, %v1453_v39  ;;  %v1542_v51 = vadd.f32 %v1541_v6, %v1514_v40 }
 0x25e   : > { %v1482_v45 = vadd.f32 %v1481_v19, %v1454_v42  ;;  %v1543_v55 = vadd.f32 %v1542_v51, %v1515_v50 }
 0x260   : > { %v1483_v47 = vadd.f32 %v1482_v45, %v1455_v27  ;;  %v1544_v56 = vadd.f32 %v1543_v55, %v1516_v1 }
 0x262   : > { %v1484_v53 = vrot.slane %v1483_v47, 4  ;;  %v1545_v57 = vadd.f32 %v1544_v56, %v1517_v54 }
 0x264   : > { %v1485_v4 = vadd.f32 %v1484_v53, %v1483_v47  ;;  %v1546_v8 = vadd.f32 %v1545_v57, %v1518_v22 }
 0x266   : > { %v1486_v13 = vrot.slane %v1485_v4, 2  ;;  %v1547_v59 = vrot.slane %v1546_v8, 4 }
 0x268   : > { %v1487_v58 = vadd.f32 %v1486_v13, %v1485_v4  ;;  %v1548_v25 = vadd.f32 %v1547_v59, %v1546_v8 }
 0x26a   : > { %v1488_v16 = vrot.slane %v1487_v58, 1  ;;  %v1549_v28 = vrot.slane %v1548_v25, 2 }
 0x26c   : > { %v1550_v0 = vadd.f32 %v1549_v28, %v1548_v25  ;;  %v1489_v17 = vadd.f32 %v1488_v16, %v1487_v58 }
 0x26e   : > { %v1551_v62 = vrot.slane %v1550_v0, 1 }
 0x270   : > { %v1552_v63 = vadd.f32 %v1551_v62, %v1550_v0 }
 0x272   : > { %v1554_v41 = vsel %vm1553_vm15, %v1489_v17, %v1552_v63 }
 0x273   : > { %1555 = vst [vmem:[%s2950_s30] sm:$0x3] %v1554_v41 }
 0x274 PF: > { %s1857_s25 = smul.u32 1856, %s2563_s19  ;;  %s1575_s20 = sshll.u32 %s2823_s29, 4  ;;  %s3143_s20 = int_to_ptr.vmem [resolvable:$true] %s1575_s20 }
 0x275   : > { %s1557_s27 = scalar_lea.sflag [#allocation4], %s2715_s8  ;;  %s2400_s5 = scalar_lea.vmem %s3143_s20, 1856 }
 0x276   : > { %s3141_s24 = scalar_lea.hbm %s3215_s3, %s1857_s25  ;;  %p2401_p1 = scmp.ne.s32.totalorder %s3143_s20, %s2400_s5 }
 0x277   : > { %p3231_p3 = scmp.ne.s32.totalorder %s3225_s13, 0  ;;  %s2513_s7 = smov [#allocation8]  }
 0x278   : > { %s2404_s9 = sshll.u32 %s2513_s7, 4  ;;  %s2405_s9 = int_to_ptr.vmem [resolvable:$false] %s2404_s9 }
 0x279   : > { %p2402_p5 = pnand %p2401_p1, %p3231_p3  ;;  %s2406_s26 = scalar_lea.vmem %s2405_s9, 3712 }
 0x27a   : > { %p2407_p12 = scmp.lt.s32.totalorder %s3143_s20, %s2405_s9  ;;  %p2408_p2 = scmp.lt.s32.totalorder %s2406_s26, %s2400_s5 }
 0x27b   : > { %p2403_p7 = pneg %p2402_p5 }
 0x27c   : > { %p2409_p13 = por %p2408_p2, %p2407_p12 }
 0x27e   : > { %p2410_p6 = pnand %p2409_p13, %p2403_p7 }
 0x280   : > { %2413 = shalt.err (!%p2410_p6)
}
 0x281   : > { %s2414_s11 = scalar_lea.hbm %s3141_s24, 1856  ;;  %s2418_s29 = scalar_lea.hbm %s3215_s3, 3712 }
 0x282   : > { %p2415_p10 = scmp.ne.s32.totalorder %s3141_s24, %s2414_s11  ;;  %p2419_p8 = scmp.lt.u32.totalorder %s3141_s24, %s3215_s3 }
 0x283   : > { %p2420_p11 = scmp.lt.u32.totalorder %s2418_s29, %s2414_s11  ;;  %p2422_p1 = scmp.lt.u32.totalorder %s2414_s11, %s3141_s24 }
 0x284   : > { %p2416_p4 = pnand %p2415_p10, %p3231_p3 }
 0x285   : > { %p2421_p0 = por %p2420_p11, %p2419_p8 }
 0x286   : > { %p2417_p9 = pneg %p2416_p4 }
 0x287   : > { %p2423_p5 = por %p2422_p1, %p2421_p0 }
 0x289   : > { %p2424_p7 = pnand %p2423_p5, %p2417_p9 }
 0x28b   : > { %2427 = shalt.err (!%p2424_p7)
}
 0x28c   : > { %s2514_s14 = smov 64   ;;  %s2515_s28 = smov 4  }
 0x28d   : > { %2160 = dma.vmem_to_hbm [thread:$0]  (%p3231_p3), %s3143_s20, 1856, %s3141_s24, %s1557_s27, %s2514_s14, %s2514_s14, %s2515_s28  }
 0x28e   : > { %s1825_s5 = sshll.u32 %s2563_s19, 5  ;;  %s1591_s7 = sshll.u32 %s2950_s30, 4  ;;  %s1592_s7 = int_to_ptr.vmem [resolvable:$true] %s1591_s7 }
 0x28f   : > { %s3174_s11 = scalar_lea.hbm %s3216_s4, %s1825_s5  ;;  %s1562_s23 = scalar_lea.sflag [#allocation10], %s2715_s8 }
 0x290   : > { %s2428_s21 = scalar_lea.vmem %s1592_s7, 32  ;;  %s2516_s29 = smov [#allocation9]  }
 0x291   : > { %p2429_p12 = scmp.ne.s32.totalorder %s1592_s7, %s2428_s21  ;;  %s2432_s6 = sshll.u32 %s2516_s29, 4  ;;  %s2433_s6 = int_to_ptr.vmem [resolvable:$false] %s2432_s6 }
 0x292   : > { %s2434_s25 = scalar_lea.vmem %s2433_s6, 64  ;;  %p2435_p6 = scmp.lt.s32.totalorder %s1592_s7, %s2433_s6 }
 0x293   : > { %p2430_p2 = pnand %p2429_p12, %p3231_p3  ;;  %p2436_p10 = scmp.lt.s32.totalorder %s2434_s25, %s2428_s21 }
 0x295   : > { %p2431_p13 = pneg %p2430_p2  ;;  %p2437_p4 = por %p2436_p10, %p2435_p6 }
 0x297   : > { %p2438_p9 = pnand %p2437_p4, %p2431_p13 }
 0x299   : > { %2441 = shalt.err (!%p2438_p9)
}
 0x29a   : > { %s2442_s19 = scalar_lea.hbm %s3174_s11, 32  ;;  %s2446_s20 = scalar_lea.hbm %s3216_s4, 64 }
 0x29b   : > { %p2443_p8 = scmp.ne.s32.totalorder %s3174_s11, %s2442_s19  ;;  %p2447_p1 = scmp.lt.u32.totalorder %s3174_s11, %s3216_s4 }
 0x29c   : > { %p2448_p5 = scmp.lt.u32.totalorder %s2446_s20, %s2442_s19  ;;  %p2450_p12 = scmp.lt.u32.totalorder %s2442_s19, %s3174_s11 }
 0x29d   : > { %p2444_p11 = pnand %p2443_p8, %p3231_p3 }
 0x29e   : > { %p2449_p7 = por %p2448_p5, %p2447_p1 }
 0x29f   : > { %p2445_p0 = pneg %p2444_p11 }
 0x2a0   : > { %p2451_p2 = por %p2450_p12, %p2449_p7 }
 0x2a2   : > { %p2452_p13 = pnand %p2451_p2, %p2445_p0 }
 0x2a4   : > { %2455 = shalt.err (!%p2452_p13)
}
 0x2a5   : > { %2161 = dma.vmem_to_hbm [thread:$0]  (%p3231_p3), %s1592_s7, 32, %s3174_s11, %s1562_s23  }
 0x2a6 PF: > { %s1603_s14 = sand.u32 1, %s2490_s15   ;;  %p3232_p6 = scmp.ne.s32.totalorder %s3221_s22, 0 }
 0x2a7   : > { %p3233_p10 = scmp.ge.s32.totalorder %s2502_s18, 2  ;;  %s1604_s28 = scalar_lea.sflag [#allocation4], %s1603_s14 }
 0x2a9   : > { %p2176_p4 = pnand %p3233_p10, %p3232_p6 }
 0x2ab   : > { %2481 = dma.done.wait (!%p2176_p4), %s1604_s28, 1856  }
 0x2ac   : > { %2483 = vsyncadd (!%p2176_p4), %s1604_s28, 4294965440  ;;  %s1613_s5 = scalar_lea.sflag [#allocation10], %s1603_s14 }
 0x2ad   : > { %2485 = dma.done.wait (!%p2176_p4), %s1613_s5, 32  }
 0x2ae   : > { %2487 = vsyncadd (!%p2176_p4), %s1613_s5, 4294967264  ;;  %p22_p3 = scmp.ge.s32.totalorder %s2653_s10, 4   ;;  %s3234_s15 = smov %s2494_s16 }
 0x2af   : > { %s3235_s16 = smov %s2498_s17  ;;  %s3236_s17 = smov %s2663_s12 }
 0x2b0   : > { %s3237_s18 = smov %s2653_s10  ;;  %24 = sbr.rel (!%p22_p3) target bundleno = 8 (0x8), region = 110 }
 0x2b7   :  { %1618 = vsyncpa [#allocation3], 1 }
 0x2b8   :  { %1620 = vsyncpa [#allocation3 + $0x1], 1 }
 0x2b9   :  { %1621 = vsyncpa [#allocation6], 1 }
 0x2ba   :  { %1622 = vsyncpa [#allocation4], 1 }
 0x2bb   :  { %1624 = vsyncpa [#allocation4 + $0x1], 1 }
 0x2bc   :  { %1625 = vsyncpa [#allocation10], 1 }
 0x2bd   :  { %1627 = vsyncpa [#allocation10 + $0x1], 1 }

// kernel: custom_cnn_forward.7
= control target key start
LH: loop header
LB: loop body
LE: loop exit
PB: predicated region body
PF: predicated region fallthrough
CT: control target
= control target key end

     0   :  { %10 = vsyncpa [#allocation3], 0  ;;  %s3501_s0 = inlined_call_operand.hbm [shape: bf16[112,1664], index: 0, kind: input, shape index: {}]   ;;  %s3502_s1 = inlined_call_operand.hbm [shape: bf16[1664,128], index: 1, kind: input, shape index: {}]   ;;  %s3503_s2 = inlined_call_operand.hbm [shape: f32[1,128], index: 2, kind: input, shape index: {}]   ;;  %s3504_s3 = inlined_call_operand.hbm [shape: bf16[112,128], index: 3, kind: output, shape index: {0}]   ;;  %s3505_s4 = inlined_call_operand.hbm [shape: f32[2,2,128], index: 4, kind: output, shape index: {1}]  }
   0x1   :  { %12 = vsyncpa [#allocation3 + $0x1], 0 }
   0x2   :  { %13 = vsyncpa [#allocation6], 0 }
   0x3   :  { %14 = vsyncpa [#allocation4], 0 }
   0x4   :  { %16 = vsyncpa [#allocation4 + $0x1], 0 }
   0x5   :  { %17 = vsyncpa [#allocation10], 0 }
   0x6   :  { %19 = vsyncpa [#allocation10 + $0x1], 0  ;;  %s3125_s15 = smov 0   ;;  %s3127_s16 = smov 0  }
   0x7   :  { %s3129_s17 = smov 0   ;;  %s3131_s18 = smov 0  }
   0x8 LB: > { %s3146_s19 = sadd.s32 4294967295, %s3087_s18   ;;  %s2144_s20 = sadd.s32 4294967294, %s3087_s18   ;;  %s3087_s18 = sphi %s3131_s18, %s3526_s18   ;;  %s3083_s17 = sphi %s3129_s17, %s3525_s17   ;;  %s3079_s16 = sphi %s3127_s16, %s3524_s16   ;;  %s3075_s15 = sphi %s3125_s15, %s3523_s15  }
   0x9   : > { %p45_p0 = scmp.ne.s32.totalorder %s3079_s16, %s3075_s15  ;;  %p3506_p1 = scmp.eq.s32.totalorder %s3146_s19, 0 }
   0xa   : > { %p117_p3 = scmp.eq.s32.totalorder %s2144_s20, 1  ;;  %p2145_p5 = scmp.ge.s32.totalorder %s3087_s18, 1 }
   0xb   : > { %p3155_p4 = por %p3506_p1, %p45_p0  ;;  %p150_p7 = scmp.lt.s32.totalorder %s3087_s18, 3 }
   0xc   : > { %p3160_p6 = por %p117_p3, %p45_p0  ;;  %s3089_s24 = smov [#allocation5]  }
   0xd   : > { %s3509_s21 = scalar_select %p3155_p4, 1, 0 }
   0xe   : > { %s3510_s22 = scalar_select %p3160_p6, 1, 0 }
   0xf   : > { %p3165_p8 = pnand %p2145_p5, %p150_p7  ;;  %s162_s25 = sshll.u32 %s3089_s24, 4  ;;  %s3169_s25 = int_to_ptr.vmem [resolvable:$true] %s162_s25 }
  0x10   : > { %s3090_s27 = smov [#allocation7]   ;;  %s2899_s5 = scalar_lea.hbm %s3502_s1, 13312 }
  0x11   : > { %p2660_p9 = pneg %p3165_p8  ;;  %s176_s28 = sshll.u32 %s3090_s27, 4  ;;  %s3180_s28 = int_to_ptr.vmem [resolvable:$true] %s176_s28 }
  0x12   : > { %p2900_p12 = scmp.ne.s32.totalorder %s3502_s1, %s2899_s5  ;;  %p2906_p5 = scmp.lt.u32.totalorder %s2899_s5, %s3502_s1 }
  0x13   : > { %p3176_p11 = pnand %p2660_p9, %p3506_p1 }
  0x15   : > { %p2901_p13 = pneg %p3176_p11 }
  0x17   : > { %p2902_p0 = pnand %p2901_p13, %p2900_p12 }
  0x19   : > { %p2903_p3 = pneg %p2902_p0 }
  0x1b   : > { %p2908_p7 = pnand %p2906_p5, %p2903_p3 }
  0x1d   : > { %2911 = shalt.err (!%p2908_p7)
}
  0x1e   : > { %s2912_s10 = scalar_lea.vmem %s3169_s25, 13312  ;;  %p2920_p2 = scmp.lt.s32.totalorder %s3169_s25, %s3169_s25 }
  0x1f   : > { %p2913_p9 = scmp.ne.s32.totalorder %s3169_s25, %s2912_s10  ;;  %p2921_p12 = scmp.lt.s32.totalorder %s2912_s10, %s2912_s10 }
  0x21   : > { %p2915_p10 = pnand %p2913_p9, %p2901_p13  ;;  %p2922_p0 = por %p2921_p12, %p2920_p2 }
  0x23   : > { %p2916_p1 = pneg %p2915_p10 }
  0x25   : > { %p2923_p6 = pnand %p2922_p0, %p2916_p1 }
  0x27   : > { %2926 = shalt.err (!%p2923_p6)
}
  0x28   : > { %s3091_s11 = smov 64   ;;  %s3092_s12 = smov 4  }
  0x29   : > { %2663 = dma.hbm_to_vmem [thread:$0]  (!%p3176_p11), %s3502_s1, 13312, %s3169_s25, [#allocation6], %s3091_s11, %s3091_s11, %s3092_s12  }
  0x2a   : > { %s2927_s27 = scalar_lea.hbm %s3503_s2, 16 }
  0x2b   : > { %p2928_p2 = scmp.ne.s32.totalorder %s3503_s2, %s2927_s27  ;;  %p2934_p10 = scmp.lt.u32.totalorder %s2927_s27, %s3503_s2 }
  0x2d   : > { %p2930_p1 = pnand %p2928_p2, %p2901_p13 }
  0x2f   : > { %p2931_p6 = pneg %p2930_p1 }
  0x31   : > { %p2936_p3 = pnand %p2934_p10, %p2931_p6 }
  0x33   : > { %2939 = shalt.err (!%p2936_p3)
}
  0x34   : > { %s2940_s25 = scalar_lea.vmem %s3180_s28, 16  ;;  %s2947_s7 = scalar_lea.vmem %s3180_s28, 32 }
  0x35   : > { %p2941_p5 = scmp.ne.s32.totalorder %s3180_s28, %s2940_s25  ;;  %p2948_p12 = scmp.lt.s32.totalorder %s3180_s28, %s3180_s28 }
  0x36   : > { %p2949_p0 = scmp.lt.s32.totalorder %s2947_s7, %s2940_s25 }
  0x37   : > { %p2943_p7 = pnand %p2941_p5, %p2901_p13 }
  0x38   : > { %p2950_p2 = por %p2949_p0, %p2948_p12 }
  0x39   : > { %p2944_p9 = pneg %p2943_p7 }
  0x3b   : > { %p2951_p1 = pnand %p2950_p2, %p2944_p9 }
  0x3d   : > { %2954 = shalt.err (!%p2951_p1)
}
  0x3e   : > { %2666 = dma.hbm_to_vmem [thread:$0]  (!%p3176_p11), %s3503_s2, 16, %s3180_s28, [#allocation6]  }
  0x3f   : > { %s3236_s10 = sadd.s32 1, %s3087_s18   ;;  %s32_s11 = sadd.s32 1, %s3083_s17 }
  0x40   : > { %s29_s26 = ssub.s32 %s3087_s18, %s3236_s10  ;;  %p39_p6 = scmp.ne.s32.totalorder %s3083_s17, %s3079_s16 }
  0x41   : > { %p30_p13 = scmp.eq.s32.totalorder %s29_s26, 0  ;;  %p40_p10 = scmp.eq.s32.totalorder %s3087_s18, 0 }
  0x42   : > { %p2680_p3 = scmp.lt.s32.totalorder %s3087_s18, 2  ;;  %p3513_p7 = scmp.eq.s32.totalorder %s3146_s19, 1 }
  0x43   : > { %s3246_s12 = scalar_select %p30_p13, %s3083_s17, %s32_s11  }
  0x44   : > { %p41_p5 = por %p40_p10, %p39_p6  ;;  %p3250_p9 = por %p3513_p7, %p39_p6 }
  0x45   : > { %s187_s14 = sand.u32 1, %s3083_s17   ;;  %s2681_s20 = smul.u32 5824, %s3087_s18 }
  0x46   : > { %s3514_s13 = scalar_select %p3250_p9, 1, 0 }
  0x47   : > { %s2642_s28 = smul.u32 364, %s187_s14  ;;  %s3259_s29 = scalar_lea.hbm %s3501_s0, %s2681_s20 }
  0x48   : > { %p3261_p11 = pnand %p2680_p3, %p41_p5  ;;  %s3267_s25 = scalar_lea.sflag [#allocation3], %s187_s14 }
  0x49   : > { %s191_s5 = scalar_lea.vmem [#allocation2], %s2642_s28  ;;  %s2955_s7 = scalar_lea.hbm %s3259_s29, 5824 }
  0x4a   : > { %s199_s6 = sshll.u32 %s191_s5, 4  ;;  %p2956_p12 = scmp.ne.s32.totalorder %s3259_s29, %s2955_s7  ;;  %s3265_s6 = int_to_ptr.vmem [resolvable:$true] %s199_s6 }
  0x4b   : > { %p2957_p0 = pneg %p3261_p11  ;;  %s2960_s26 = scalar_lea.hbm %s3501_s0, 11648 }
  0x4c   : > { %p2961_p13 = scmp.lt.u32.totalorder %s3259_s29, %s3501_s0  ;;  %p2962_p6 = scmp.lt.u32.totalorder %s2960_s26, %s2955_s7 }
  0x4d   : > { %p2958_p2 = pnand %p2957_p0, %p2956_p12  ;;  %p2964_p3 = scmp.lt.u32.totalorder %s2955_s7, %s3259_s29 }
  0x4e   : > { %p2963_p10 = por %p2962_p6, %p2961_p13 }
  0x4f   : > { %p2959_p1 = pneg %p2958_p2 }
  0x50   : > { %p2965_p5 = por %p2964_p3, %p2963_p10 }
  0x52   : > { %p2966_p7 = pnand %p2965_p5, %p2959_p1 }
  0x54   : > { %2969 = shalt.err (!%p2966_p7)
}
  0x55   : > { %s2970_s14 = scalar_lea.vmem %s3265_s6, 5824  ;;  %s3093_s28 = smov [#allocation2]  }
  0x56   : > { %p2971_p12 = scmp.ne.s32.totalorder %s3265_s6, %s2970_s14  ;;  %s2975_s24 = sshll.u32 %s3093_s28, 4  ;;  %s2976_s24 = int_to_ptr.vmem [resolvable:$false] %s2975_s24 }
  0x57   : > { %s2977_s27 = scalar_lea.vmem %s2976_s24, 11648  ;;  %p2978_p4 = scmp.lt.s32.totalorder %s3265_s6, %s2976_s24 }
  0x58   : > { %p2973_p2 = pnand %p2971_p12, %p2957_p0  ;;  %p2979_p13 = scmp.lt.s32.totalorder %s2977_s27, %s2970_s14 }
  0x5a   : > { %p2974_p9 = pneg %p2973_p2  ;;  %p2980_p6 = por %p2979_p13, %p2978_p4 }
  0x5c   : > { %p2981_p10 = pnand %p2980_p6, %p2974_p9 }
  0x5e   : > { %2984 = shalt.err (!%p2981_p10)
}
  0x5f   : > { %s3094_s5 = smov 832   ;;  %s3095_s7 = smov 52  }
  0x60   : > { %2670 = dma.hbm_to_vmem [thread:$0]  (!%p3261_p11), %s3259_s29, 5824, %s3265_s6, %s3267_s25, %s3094_s5, %s3094_s5, %s3095_s7  }
  0x61   : > { %211 = sbr.rel (%p3165_p8) target bundleno = 573 (0x23d), region = 32  ;;  %s3298_s8 = sand.u32 (!%p3165_p8), 1, %s3079_s16  }
  0x62   : > { %s2644_s9 = smul.u32 (!%p3165_p8), 364, %s3298_s8  ;;  %s214_s26 = scalar_lea.sflag (!%p3165_p8), [#allocation3], %s3298_s8 }
  0x63   : > { %p3516_p4 = scmp.ne.s32.totalorder (!%p3165_p8), %s3509_s21, 0 }
  0x64   : > { %s3302_s11 = scalar_lea.vmem (!%p3165_p8), [#allocation2], %s2644_s9 }
  0x68   : > { %3058 = dma.done.wait (%p3516_p4), %s214_s26, 5824  }
  0x69   : > { %3060 = vsyncadd (%p3516_p4), %s214_s26, 4294961472  ;;  %p3517_p9 = scmp.eq.s32.totalorder %s3146_s19, 0 }
  0x6b   : > { %3062 = dma.done.wait (%p3517_p9), [#allocation6], 13328   ;;  %p3518_p8 = pmov %p3517_p9 }
  0x6c   : > { %s2153_s23 = sshll.u32 %s3298_s8, 1  ;;  %v2725_v0 = vld [vmem:[#allocation5 + $0x40] sm:$0xff]   ;;  %v2729_v4 = vld [vmem:[#allocation5 + $0x48] sm:$0xff]   ;;  %v2733_v8 = vld [vmem:[#allocation5 + $0x50] sm:$0xff]   ;;  %s2645_s21 = smul.u32 28, %s3298_s8 }
  0x6d   : > { %3064 = vsyncadd (%p3518_p8), [#allocation6], 4294953968  ;;  %v2726_v1 = vld [vmem:[#allocation5 + $0xc0] sm:$0xff]   ;;  %2350 = vmatprep.subr.bf16.mxu0 %v2725_v0  ;;  %v2730_v5 = vld [vmem:[#allocation5 + $0xc8] sm:$0xff]   ;;  %s3389_s30 = scalar_lea.vmem [#allocation9], %s2153_s23  ;;  %p3519_p11 = scmp.eq.s32.totalorder %s3146_s19, 1 }
  0x6e   : > { %v2727_v2 = vld [vmem:[#allocation5] sm:$0xff]   ;;  %2390 = vmatprep.subr.bf16.mxu1 %v2726_v1  ;;  %v2731_v6 = vld [vmem:[#allocation5 + $0x8] sm:$0xff]   ;;  %v2734_v9 = vld [vmem:[#allocation5 + $0xd0] sm:$0xff]   ;;  %s3381_s29 = scalar_lea.vmem [#allocation8], %s2645_s21  ;;  %vm1916_vm0 = vcmask (!%p3519_p11), 1040384  }
  0x6f   : > { %v2728_v3 = vld [vmem:[#allocation5 + $0x80] sm:$0xff]   ;;  %2351 = vmatpush3.bf16.msra.mxu0 %v2727_v2  ;;  %v2732_v7 = vld [vmem:[#allocation5 + $0x88] sm:$0xff]   ;;  %v2735_v10 = vld [vmem:[#allocation5 + $0x10] sm:$0xff]  }
  0x70   : > { %2391 = vmatpush3.bf16.msra.mxu1 %v2728_v3  ;;  %2352 = vmatprep.subr.bf16.mxu0 %v2729_v4  ;;  %v2736_v11 = vld [vmem:[#allocation5 + $0x90] sm:$0xff]   ;;  %v2737_v12 = vld [vmem:[#allocation5 + $0x58] sm:$0xff]   ;;  %v2741_v16 = vld [vmem:[#allocation5 + $0x60] sm:$0xff]  }
  0x71   : > { %2392 = vmatprep.subr.bf16.mxu1 %v2730_v5  ;;  %v2738_v13 = vld [vmem:[#allocation5 + $0xd8] sm:$0xff]   ;;  %v2742_v17 = vld [vmem:[#allocation5 + $0xe0] sm:$0xff]   ;;  %v2745_v20 = vld [vmem:[#allocation5 + $0x68] sm:$0xff]  }
  0x72   : > { %v2739_v14 = vld [vmem:[#allocation5 + $0x18] sm:$0xff]   ;;  %v2743_v18 = vld [vmem:[#allocation5 + $0x20] sm:$0xff]   ;;  %v2746_v21 = vld [vmem:[#allocation5 + $0xe8] sm:$0xff]  }
  0x73   : > { %2353 = vmatpush3.bf16.msra.mxu0 %v2731_v6  ;;  %v2740_v15 = vld [vmem:[#allocation5 + $0x98] sm:$0xff]   ;;  %v2744_v19 = vld [vmem:[#allocation5 + $0xa0] sm:$0xff]   ;;  %v2747_v22 = vld [vmem:[#allocation5 + $0x28] sm:$0xff]  }
  0x74   : > { %2393 = vmatpush3.bf16.msra.mxu1 %v2732_v7  ;;  %2354 = vmatprep.subr.bf16.mxu0 %v2733_v8  ;;  %v2748_v23 = vld [vmem:[#allocation5 + $0xa8] sm:$0xff]   ;;  %v2749_v24 = vld [vmem:[#allocation5 + $0x70] sm:$0xff]   ;;  %v2753_v28 = vld [vmem:[#allocation5 + $0x78] sm:$0xff]  }
  0x75   : > { %2394 = vmatprep.subr.bf16.mxu1 %v2734_v9  ;;  %v2750_v25 = vld [vmem:[#allocation5 + $0xf0] sm:$0xff]   ;;  %v2754_v29 = vld [vmem:[#allocation5 + $0xf8] sm:$0xff]   ;;  %v2763_v36 = vld [vmem:[#allocation5 + $0x140] sm:$0xff]  }
  0x76   : > { %v2751_v26 = vld [vmem:[#allocation5 + $0x30] sm:$0xff]   ;;  %v2755_v30 = vld [vmem:[#allocation5 + $0x38] sm:$0xff]   ;;  %v2764_v37 = vld [vmem:[#allocation5 + $0x1c0] sm:$0xff]  }
  0x77   : > { %2355 = vmatpush3.bf16.msra.mxu0 %v2735_v10  ;;  %v2752_v27 = vld [vmem:[#allocation5 + $0xb0] sm:$0xff]   ;;  %v2756_v31 = vld [vmem:[#allocation5 + $0xb8] sm:$0xff]   ;;  %v2765_v38 = vld [vmem:[#allocation5 + $0x100] sm:$0xff]  }
  0x78   : > { %2395 = vmatpush3.bf16.msra.mxu1 %v2736_v11  ;;  %2356 = vmatprep.subr.bf16.mxu0 %v2737_v12  ;;  %v2757_v32 = vld [vmem:[%s3302_s11] ss:$52 sps:$4 sm:$0xff]   ;;  %v2759_v33 = vld [vmem:[%s3302_s11 + $0x4] ss:$52 sps:$4 sm:$0xff]   ;;  %v2760_v34 = vld [vmem:[%s3302_s11 + $0x8] ss:$52 sps:$4 sm:$0xff]  }
  0x79   : > { %2396 = vmatprep.subr.bf16.mxu1 %v2738_v13  ;;  %v2762_v35 = vld [vmem:[%s3302_s11 + $0xc] ss:$52 sps:$4 sm:$0xff]   ;;  %1415 = vmatprep.mubr.bf16.mxu0 %v2759_v33  ;;  %v2773_v45 = vld [vmem:[%s3302_s11 + $0x74] ss:$52 sps:$4 sm:$0xff]   ;;  %v2776_v47 = vld [vmem:[%s3302_s11 + $0x70] ss:$52 sps:$4 sm:$0xff]  }
  0x7a   : > { %1479 = vmatprep.mubr.bf16.mxu1 %v2762_v35  ;;  %v2766_v39 = vld [vmem:[#allocation5 + $0x180] sm:$0xff]   ;;  %v2767_v40 = vld [vmem:[#allocation5 + $0x148] sm:$0xff]   ;;  %v2777_v48 = vld [vmem:[#allocation5 + $0x150] sm:$0xff]  }
  0x7b   : > { %2357 = vmatpush3.bf16.msra.mxu0 %v2739_v14  ;;  %v2768_v41 = vld [vmem:[#allocation5 + $0x1c8] sm:$0xff]   ;;  %v2775_v46 = vld [vmem:[%s3302_s11 + $0x68] ss:$52 sps:$4 sm:$0xff]  }
  0x7c   : > { %2397 = vmatpush3.bf16.msra.mxu1 %v2740_v15  ;;  %2358 = vmatprep.subr.bf16.mxu0 %v2741_v16  ;;  %v2769_v42 = vld [vmem:[#allocation5 + $0x108] sm:$0xff]   ;;  %v2778_v49 = vld [vmem:[#allocation5 + $0x1d0] sm:$0xff]   ;;  %v2781_v52 = vld [vmem:[#allocation5 + $0x158] sm:$0xff]  }
  0x7d   : > { %2398 = vmatprep.subr.bf16.mxu1 %v2742_v17  ;;  %v2770_v43 = vld [vmem:[#allocation5 + $0x188] sm:$0xff]   ;;  %v2779_v50 = vld [vmem:[#allocation5 + $0x110] sm:$0xff]   ;;  %v2782_v53 = vld [vmem:[#allocation5 + $0x1d8] sm:$0xff]  }
  0x7e   : > { %v2771_v44 = vld [vmem:[%s3302_s11 + $0x6c] ss:$52 sps:$4 sm:$0xff]   ;;  %v2783_v54 = vld [vmem:[#allocation5 + $0x118] sm:$0xff]   ;;  %v300_v4 = vld [vmem:[%s3302_s11 + $0x138] sm:$0xff] }
  0x7f   : > { %2359 = vmatpush3.bf16.msra.mxu0 %v2743_v18  ;;  %v2780_v51 = vld [vmem:[#allocation5 + $0x190] sm:$0xff]   ;;  %v2784_v55 = vld [vmem:[#allocation5 + $0x198] sm:$0xff]   ;;  %v2791_v60 = vld [vmem:[#allocation5 + $0x160] sm:$0xff]   ;;  %v2194_v6 = vcombine.high %v300_v4, %v300_v4  ;;  %v2193_v8 = vcombine.low %v300_v4, %v300_v4 }
  0x80   : > { %2399 = vmatpush3.bf16.msra.mxu1 %v2744_v19  ;;  %2360 = vmatprep.subr.bf16.mxu0 %v2745_v20  ;;  %v2785_v56 = vld [vmem:[%s3302_s11 + $0xd4] ss:$52 sps:$4 sm:$0xff]   ;;  %v2787_v57 = vld [vmem:[%s3302_s11 + $0xdc] ss:$52 sps:$4 sm:$0xff]   ;;  %v2790_v59 = vld [vmem:[%s3302_s11 + $0xd8] ss:$52 sps:$4 sm:$0xff]  }
  0x81   : > { %2400 = vmatprep.subr.bf16.mxu1 %v2746_v21  ;;  %v2789_v58 = vld [vmem:[%s3302_s11 + $0xd0] ss:$52 sps:$4 sm:$0xff]   ;;  %v2803_v10 = vld [vmem:[#allocation5 + $0x170] sm:$0xff]  }
  0x82   : > { %v2792_v61 = vld [vmem:[#allocation5 + $0x1e0] sm:$0xff]   ;;  %v2795_v0 = vld [vmem:[#allocation5 + $0x168] sm:$0xff]   ;;  %v2804_v11 = vld [vmem:[#allocation5 + $0x1f0] sm:$0xff]  }
  0x83   : > { %2361 = vmatpush3.bf16.msra.mxu0 %v2747_v22  ;;  %v2793_v62 = vld [vmem:[#allocation5 + $0x120] sm:$0xff]   ;;  %v2796_v1 = vld [vmem:[#allocation5 + $0x1e8] sm:$0xff]   ;;  %v2805_v12 = vld [vmem:[#allocation5 + $0x130] sm:$0xff]  }
  0x84   : > { %2401 = vmatpush3.bf16.msra.mxu1 %v2748_v23  ;;  %2362 = vmatprep.subr.bf16.mxu0 %v2749_v24  ;;  %v2794_v63 = vld [vmem:[#allocation5 + $0x1a0] sm:$0xff]   ;;  %v2797_v2 = vld [vmem:[#allocation5 + $0x128] sm:$0xff]   ;;  %v2806_v13 = vld [vmem:[#allocation5 + $0x1b0] sm:$0xff]  }
  0x85   : > { %2402 = vmatprep.subr.bf16.mxu1 %v2750_v25  ;;  %v2798_v3 = vld [vmem:[#allocation5 + $0x1a8] sm:$0xff]   ;;  %v2807_v14 = vld [vmem:[#allocation5 + $0x178] sm:$0xff]   ;;  %v2817_v22 = vld [vmem:[#allocation5 + $0x240] sm:$0xff]  }
  0x86   : > { %v301_v5 = vld [vmem:[%s3302_s11 + $0x140] sm:$0xff]  ;;  %v2813_v19 = vld [vmem:[%s3302_s11 + $0x14] ss:$52 sps:$4 sm:$0xff]   ;;  %v2814_v20 = vld [vmem:[%s3302_s11 + $0x18] ss:$52 sps:$4 sm:$0xff]  }
  0x87   : > { %2363 = vmatpush3.bf16.msra.mxu0 %v2751_v26  ;;  %v2196_v7 = vcombine.high %v301_v5, %v301_v5  ;;  %v2195_v9 = vcombine.low %v301_v5, %v301_v5  ;;  %v2808_v15 = vld [vmem:[#allocation5 + $0x1f8] sm:$0xff]   ;;  %v2818_v23 = vld [vmem:[#allocation5 + $0x2c0] sm:$0xff]   ;;  %v2821_v26 = vld [vmem:[#allocation5 + $0x248] sm:$0xff]  }
  0x88   : > { %2403 = vmatpush3.bf16.msra.mxu1 %v2752_v27  ;;  %2364 = vmatprep.subr.bf16.mxu0 %v2753_v28  ;;  %v2809_v16 = vld [vmem:[#allocation5 + $0x138] sm:$0xff]   ;;  %v2819_v24 = vld [vmem:[#allocation5 + $0x200] sm:$0xff]   ;;  %v2822_v27 = vld [vmem:[#allocation5 + $0x2c8] sm:$0xff]  }
  0x89   : > { %2404 = vmatprep.subr.bf16.mxu1 %v2754_v29  ;;  %v2810_v17 = vld [vmem:[#allocation5 + $0x1b8] sm:$0xff]   ;;  %v2820_v25 = vld [vmem:[#allocation5 + $0x280] sm:$0xff]   ;;  %v2823_v28 = vld [vmem:[#allocation5 + $0x208] sm:$0xff]  }
  0x8a   : > { %v2811_v18 = vld [vmem:[%s3302_s11 + $0x10] ss:$52 sps:$4 sm:$0xff]   ;;  %v2830_v33 = vld [vmem:[%s3302_s11 + $0x80] ss:$52 sps:$4 sm:$0xff]  }
  0x8b   : > { %2365 = vmatpush3.bf16.msra.mxu0 %v2755_v30  ;;  %v2816_v21 = vld [vmem:[%s3302_s11 + $0x1c] ss:$52 sps:$4 sm:$0xff]   ;;  %v2824_v29 = vld [vmem:[#allocation5 + $0x288] sm:$0xff]  }
  0x8c   : > { %2405 = vmatpush3.bf16.msra.mxu1 %v2756_v31  ;;  %2430 = vmatprep.subr.bf16.mxu0 %v2763_v36  ;;  %v2825_v30 = vld [vmem:[%s3302_s11 + $0x7c] ss:$52 sps:$4 sm:$0xff]   ;;  %v2827_v31 = vld [vmem:[%s3302_s11 + $0x84] ss:$52 sps:$4 sm:$0xff]   ;;  %v2865_v4 = vld [vmem:[%s3302_s11 + $0x20] ss:$52 sps:$4 sm:$0xff]  }
  0x8d   : > { %2470 = vmatprep.subr.bf16.mxu1 %v2764_v37  ;;  %v2832_v35 = vld [vmem:[#allocation5 + $0x2d0] sm:$0xff]   ;;  %v2867_v5 = vld [vmem:[%s3302_s11 + $0x24] ss:$52 sps:$4 sm:$0xff]  }
  0x8e   : > { %1416 = vmatmul.mubr.bf16.vlgmr.msra.gmra.mrb[0].mxu0 %v2757_v32  ;;  %v2829_v32 = vld [vmem:[%s3302_s11 + $0x78] ss:$52 sps:$4 sm:$0xff]  }
  0x8f   : > { %1480 = vmatmul.mubr.bf16.vlgmr.msra.gmra.mrb[0].mxu1 %v2760_v34  ;;  %2431 = vmatpush3.bf16.msra.mxu0 %v2765_v38  ;;  %v2831_v34 = vld [vmem:[#allocation5 + $0x250] sm:$0xff]   ;;  %v2835_v38 = vld [vmem:[#allocation5 + $0x258] sm:$0xff]  }
  0x90   : > { %2471 = vmatpush3.bf16.msra.mxu1 %v2766_v39  ;;  %2432 = vmatprep.subr.bf16.mxu0 %v2767_v40  ;;  %v2833_v36 = vld [vmem:[#allocation5 + $0x210] sm:$0xff]   ;;  %v2836_v39 = vld [vmem:[#allocation5 + $0x2d8] sm:$0xff]  }
  0x91   : > { %2472 = vmatprep.subr.bf16.mxu1 %v2768_v41  ;;  %1423 = vmatprep.mubr.bf16.mxu0 %v2771_v44  ;;  %v2834_v37 = vld [vmem:[#allocation5 + $0x290] sm:$0xff]   ;;  %v2837_v40 = vld [vmem:[#allocation5 + $0x218] sm:$0xff]  }
  0x92   : > { %1487 = vmatprep.mubr.bf16.mxu1 %v2773_v45  ;;  %v2838_v41 = vld [vmem:[#allocation5 + $0x298] sm:$0xff]  }
  0x93   : > { %2433 = vmatpush3.bf16.msra.mxu0 %v2769_v42  ;;  %v2839_v42 = vld [vmem:[%s3302_s11 + $0xe4] ss:$52 sps:$4 sm:$0xff]   ;;  %v2843_v44 = vld [vmem:[%s3302_s11 + $0xe0] ss:$52 sps:$4 sm:$0xff]   ;;  %v2844_v45 = vld [vmem:[%s3302_s11 + $0xe8] ss:$52 sps:$4 sm:$0xff]  }
  0x94   : > { %2473 = vmatpush3.bf16.msra.mxu1 %v2770_v43  ;;  %2434 = vmatprep.subr.bf16.mxu0 %v2777_v48  ;;  %v2841_v43 = vld [vmem:[%s3302_s11 + $0xec] ss:$52 sps:$4 sm:$0xff]  }
  0x95   : > { %2474 = vmatprep.subr.bf16.mxu1 %v2778_v49  ;;  %v2847_v48 = vld [vmem:[#allocation5 + $0x220] sm:$0xff]  }
  0x96   : > { %1424 = vmatmul.mubr.bf16.gmra.mrb[4].mxu0 %v2775_v46  ;;  %v2845_v46 = vld [vmem:[#allocation5 + $0x260] sm:$0xff]  }
  0x97   : > { %1488 = vmatmul.mubr.bf16.gmra.mrb[4].mxu1 %v2776_v47  ;;  %2435 = vmatpush3.bf16.msra.mxu0 %v2779_v50  ;;  %v2846_v47 = vld [vmem:[#allocation5 + $0x2e0] sm:$0xff]   ;;  %v2849_v50 = vld [vmem:[#allocation5 + $0x268] sm:$0xff]  }
  0x98   : > { %2475 = vmatpush3.bf16.msra.mxu1 %v2780_v51  ;;  %2436 = vmatprep.subr.bf16.mxu0 %v2781_v52  ;;  %v2848_v49 = vld [vmem:[#allocation5 + $0x2a0] sm:$0xff]   ;;  %v2850_v51 = vld [vmem:[#allocation5 + $0x2e8] sm:$0xff]  }
  0x99   : > { %2476 = vmatprep.subr.bf16.mxu1 %v2782_v53  ;;  %1431 = vmatprep.mubr.bf16.mxu0 %v2785_v56  ;;  %v2851_v52 = vld [vmem:[#allocation5 + $0x228] sm:$0xff]  }
  0x9a   : > { %1495 = vmatprep.mubr.bf16.mxu1 %v2787_v57  ;;  %v2852_v53 = vld [vmem:[#allocation5 + $0x2a8] sm:$0xff]  }
  0x9b   : > { %2437 = vmatpush3.bf16.msra.mxu0 %v2783_v54  ;;  %v302_v54 = vld [vmem:[%s3302_s11 + $0x148] sm:$0xff]  ;;  %v303_v56 = vld [vmem:[%s3302_s11 + $0x150] sm:$0xff] }
  0x9c   : > { %2477 = vmatpush3.bf16.msra.mxu1 %v2784_v55  ;;  %2438 = vmatprep.subr.bf16.mxu0 %v2791_v60  ;;  %v2198_v55 = vcombine.high %v302_v54, %v302_v54  ;;  %v2197_v57 = vcombine.low %v302_v54, %v302_v54  ;;  %v2857_v60 = vld [vmem:[#allocation5 + $0x270] sm:$0xff]  }
  0x9d   : > { %2478 = vmatprep.subr.bf16.mxu1 %v2792_v61  ;;  %v2858_v61 = vld [vmem:[#allocation5 + $0x2f0] sm:$0xff]  }
  0x9e   : > { %1432 = vmatmul.mubr.bf16.gmra.mrb[8].mxu0 %v2789_v58  ;;  %v2200_v58 = vcombine.high %v303_v56, %v303_v56 }
  0x9f   : > { %1496 = vmatmul.mubr.bf16.gmra.mrb[8].mxu1 %v2790_v59  ;;  %2439 = vmatpush3.bf16.msra.mxu0 %v2793_v62  ;;  %v2199_v59 = vcombine.low %v303_v56, %v303_v56  ;;  %v2859_v62 = vld [vmem:[#allocation5 + $0x230] sm:$0xff]  }
  0xa0   : > { %2479 = vmatpush3.bf16.msra.mxu1 %v2794_v63  ;;  %2440 = vmatprep.subr.bf16.mxu0 %v2795_v0  ;;  %v2860_v63 = vld [vmem:[#allocation5 + $0x2b0] sm:$0xff]   ;;  %v2861_v0 = vld [vmem:[#allocation5 + $0x278] sm:$0xff]  }
  0xa1   : > { %2480 = vmatprep.subr.bf16.mxu1 %v2796_v1  ;;  %1439 = vmatprep.mubr.bf16.mxu0 %v2194_v6  ;;  %v2862_v1 = vld [vmem:[#allocation5 + $0x2f8] sm:$0xff]  }
  0xa2   : > { %1503 = vmatprep.mubr.bf16.mxu1 %v2196_v7  ;;  %v2868_v6 = vld [vmem:[%s3302_s11 + $0x28] ss:$52 sps:$4 sm:$0xff]   ;;  %v2870_v7 = vld [vmem:[%s3302_s11 + $0x2c] ss:$52 sps:$4 sm:$0xff]  }
  0xa3   : > { %2441 = vmatpush3.bf16.msra.mxu0 %v2797_v2  ;;  %v2863_v2 = vld [vmem:[#allocation5 + $0x238] sm:$0xff]  }
  0xa4   : > { %2481 = vmatpush3.bf16.msra.mxu1 %v2798_v3  ;;  %2442 = vmatprep.subr.bf16.mxu0 %v2803_v10  ;;  %v2864_v3 = vld [vmem:[#allocation5 + $0x2b8] sm:$0xff]   ;;  %v2873_v10 = vld [vmem:[%s3302_s11 + $0x8c] ss:$52 sps:$4 sm:$0xff]  }
  0xa5   : > { %2482 = vmatprep.subr.bf16.mxu1 %v2804_v11  ;;  %v2875_v11 = vld [vmem:[%s3302_s11 + $0x94] ss:$52 sps:$4 sm:$0xff]  }
  0xa6   : > { %1440 = vmatmul.mubr.bf16.gmra.mrb[12].mxu0 %v2193_v8  ;;  %v2871_v8 = vld [vmem:[#allocation5 + $0x300] sm:$0xff]  }
  0xa7   : > { %1504 = vmatmul.mubr.bf16.gmra.mrb[12].mxu1 %v2195_v9  ;;  %2443 = vmatpush3.bf16.msra.mxu0 %v2805_v12  ;;  %v2872_v9 = vld [vmem:[#allocation5 + $0x308] sm:$0xff]   ;;  %v2877_v12 = vld [vmem:[%s3302_s11 + $0x88] ss:$52 sps:$4 sm:$0xff]  }
  0xa8   : > { %2483 = vmatpush3.bf16.msra.mxu1 %v2806_v13  ;;  %2444 = vmatprep.subr.bf16.mxu0 %v2807_v14  ;;  %v2879_v13 = vld [vmem:[#allocation5 + $0x310] sm:$0xff]   ;;  %v2878_v14 = vld [vmem:[%s3302_s11 + $0x90] ss:$52 sps:$4 sm:$0xff]  }
  0xa9   : > { %2484 = vmatprep.subr.bf16.mxu1 %v2808_v15  ;;  %1543 = vmatprep.mubr.bf16.mxu0 %v2813_v19  ;;  %v2881_v15 = vld [vmem:[%s3302_s11 + $0xf4] ss:$52 sps:$4 sm:$0xff]   ;;  %v304_v19 = vld [vmem:[%s3302_s11 + $0x158] sm:$0xff] }
  0xaa   : > { %1607 = vmatprep.mubr.bf16.mxu1 %v2816_v21  ;;  %v2885_v21 = vld [vmem:[%s3302_s11 + $0xf0] ss:$52 sps:$4 sm:$0xff]  }
  0xab   : > { %2445 = vmatpush3.bf16.msra.mxu0 %v2809_v16  ;;  %v2880_v16 = vld [vmem:[#allocation5 + $0x318] sm:$0xff]  }
  0xac   : > { %2485 = vmatpush3.bf16.msra.mxu1 %v2810_v17  ;;  %2510 = vmatprep.subr.bf16.mxu0 %v2817_v22  ;;  %v2883_v17 = vld [vmem:[%s3302_s11 + $0xfc] ss:$52 sps:$4 sm:$0xff]   ;;  %v2886_v22 = vld [vmem:[%s3302_s11 + $0xf8] ss:$52 sps:$4 sm:$0xff]  }
  0xad   : > { %2550 = vmatprep.subr.bf16.mxu1 %v2818_v23  ;;  %v2202_v23 = vcombine.high %v304_v19, %v304_v19 }
  0xae   : > { %1544 = vmatmul.mubr.bf16.vlgmr.msra.gmra.mrb[16].mxu0 %v2811_v18  ;;  %v2887_v18 = vld [vmem:[#allocation5 + $0x320] sm:$0xff]  }
  0xaf   : > { %1608 = vmatmul.mubr.bf16.vlgmr.msra.gmra.mrb[16].mxu1 %v2814_v20  ;;  %2511 = vmatpush3.bf16.msra.mxu0 %v2819_v24  ;;  %v305_v20 = vld [vmem:[%s3302_s11 + $0x160] sm:$0xff] }
  0xb0   : > { %2551 = vmatpush3.bf16.msra.mxu1 %v2820_v25  ;;  %2512 = vmatprep.subr.bf16.mxu0 %v2821_v26  ;;  %v2204_v24 = vcombine.high %v305_v20, %v305_v20  ;;  %v2888_v25 = vld [vmem:[#allocation5 + $0x328] sm:$0xff]   ;;  %v2893_v26 = vld [vmem:[#allocation5 + $0x330] sm:$0xff]  }
  0xb1   : > { %2552 = vmatprep.subr.bf16.mxu1 %v2822_v27  ;;  %1551 = vmatprep.mubr.bf16.mxu0 %v2825_v30  ;;  %v2201_v27 = vcombine.low %v304_v19, %v304_v19  ;;  %v2896_v30 = vld [vmem:[%s3302_s11 + $0x100] ss:$52 sps:$4 sm:$0xff]  }
  0xb2   : > { %1615 = vmatprep.mubr.bf16.mxu1 %v2827_v31  ;;  %v2894_v31 = vld [vmem:[#allocation5 + $0x338] sm:$0xff]  }
  0xb3   : > { %2513 = vmatpush3.bf16.msra.mxu0 %v2823_v28  ;;  %v2203_v28 = vcombine.low %v305_v20, %v305_v20 }
  0xb4   : > { %2553 = vmatpush3.bf16.msra.mxu1 %v2824_v29  ;;  %2514 = vmatprep.subr.bf16.mxu0 %v2831_v34  ;;  %v2895_v29 = vld [vmem:[%s3302_s11 + $0x30] ss:$52 sps:$4 sm:$0xff]  }
  0xb5   : > { %2554 = vmatprep.subr.bf16.mxu1 %v2832_v35 }
  0xb6   : > { %1552 = vmatmul.mubr.bf16.gmra.mrb[20].mxu0 %v2829_v32  ;;  %v2897_v32 = vld [vmem:[%s3302_s11 + $0x98] ss:$52 sps:$4 sm:$0xff]  }
  0xb7   : > { %1616 = vmatmul.mubr.bf16.gmra.mrb[20].mxu1 %v2830_v33  ;;  %2515 = vmatpush3.bf16.msra.mxu0 %v2833_v36  ;;  %v2898_v33 = vld [vmem:[%s3302_s11 + $0x168] ss:$0 sps:$4 sm:$0xff]  }
  0xb8   : > { %2555 = vmatpush3.bf16.msra.mxu1 %v2834_v37  ;;  %2516 = vmatprep.subr.bf16.mxu0 %v2835_v38 }
  0xb9   : > { %2556 = vmatprep.subr.bf16.mxu1 %v2836_v39  ;;  %1559 = vmatprep.mubr.bf16.mxu0 %v2839_v42 }
  0xba   : > { %1623 = vmatprep.mubr.bf16.mxu1 %v2841_v43 }
  0xbb   : > { %2517 = vmatpush3.bf16.msra.mxu0 %v2837_v40 }
  0xbc   : > { %2557 = vmatpush3.bf16.msra.mxu1 %v2838_v41  ;;  %2518 = vmatprep.subr.bf16.mxu0 %v2845_v46 }
  0xbd   : > { %2558 = vmatprep.subr.bf16.mxu1 %v2846_v47 }
  0xbe   : > { %1560 = vmatmul.mubr.bf16.gmra.mrb[24].mxu0 %v2843_v44 }
  0xbf   : > { %1624 = vmatmul.mubr.bf16.gmra.mrb[24].mxu1 %v2844_v45  ;;  %2519 = vmatpush3.bf16.msra.mxu0 %v2847_v48 }
  0xc0   : > { %2559 = vmatpush3.bf16.msra.mxu1 %v2848_v49  ;;  %2520 = vmatprep.subr.bf16.mxu0 %v2849_v50 }
  0xc1   : > { %2560 = vmatprep.subr.bf16.mxu1 %v2850_v51  ;;  %1567 = vmatprep.mubr.bf16.mxu0 %v2198_v55 }
  0xc2   : > { %1631 = vmatprep.mubr.bf16.mxu1 %v2200_v58 }
  0xc3   : > { %2521 = vmatpush3.bf16.msra.mxu0 %v2851_v52 }
  0xc4   : > { %2561 = vmatpush3.bf16.msra.mxu1 %v2852_v53  ;;  %2522 = vmatprep.subr.bf16.mxu0 %v2857_v60 }
  0xc5   : > { %2562 = vmatprep.subr.bf16.mxu1 %v2858_v61 }
  0xc6   : > { %1568 = vmatmul.mubr.bf16.gmra.mrb[28].mxu0 %v2197_v57 }
  0xc7   : > { %1632 = vmatmul.mubr.bf16.gmra.mrb[28].mxu1 %v2199_v59  ;;  %2523 = vmatpush3.bf16.msra.mxu0 %v2859_v62 }
  0xc8   : > { %2563 = vmatpush3.bf16.msra.mxu1 %v2860_v63  ;;  %2524 = vmatprep.subr.bf16.mxu0 %v2861_v0 }
  0xc9   : > { %2564 = vmatprep.subr.bf16.mxu1 %v2862_v1  ;;  %1671 = vmatprep.mubr.bf16.mxu0 %v2867_v5 }
  0xca   : > { %1735 = vmatprep.mubr.bf16.mxu1 %v2870_v7 }
  0xcb   : > { %2525 = vmatpush3.bf16.msra.mxu0 %v2863_v2 }
  0xcc   : > { %2565 = vmatpush3.bf16.msra.mxu1 %v2864_v3  ;;  %2602 = vmatprep.subr.bf16.mxu0 %v2871_v8 }
  0xcd   : > { %2626 = vmatprep.subr.bf16.mxu1 %v2871_v8 }
  0xce   : > { %1672 = vmatmul.mubr.bf16.vlgmr.msra.gmra.mrb[32].mxu0 %v2865_v4 }
  0xcf   : > { %1736 = vmatmul.mubr.bf16.vlgmr.msra.gmra.mrb[32].mxu1 %v2868_v6  ;;  %2603 = vmatpush3.bf16.msra.mxu0 %v2871_v8 }
  0xd0   : > { %2634 = vmatpush3.bf16.msra.mxu1 %v2871_v8  ;;  %2604 = vmatprep.subr.bf16.mxu0 %v2872_v9 }
  0xd1   : > { %2627 = vmatprep.subr.bf16.mxu1 %v2872_v9  ;;  %1679 = vmatprep.mubr.bf16.mxu0 %v2873_v10 }
  0xd2   : > { %1743 = vmatprep.mubr.bf16.mxu1 %v2875_v11 }
  0xd3   : > { %2605 = vmatpush3.bf16.msra.mxu0 %v2872_v9 }
  0xd4   : > { %2635 = vmatpush3.bf16.msra.mxu1 %v2872_v9  ;;  %2606 = vmatprep.subr.bf16.mxu0 %v2879_v13 }
  0xd5   : > { %2628 = vmatprep.subr.bf16.mxu1 %v2879_v13 }
  0xd6   : > { %1680 = vmatmul.mubr.bf16.gmra.mrb[36].mxu0 %v2877_v12 }
  0xd7   : > { %1744 = vmatmul.mubr.bf16.gmra.mrb[36].mxu1 %v2878_v14  ;;  %1687 = vmatprep.mubr.bf16.mxu0 %v2881_v15 }
  0xd8   : > { %2607 = vmatpush3.bf16.msra.mxu0 %v2879_v13  ;;  %1751 = vmatprep.mubr.bf16.mxu1 %v2883_v17 }
  0xd9   : > { %2636 = vmatpush3.bf16.msra.mxu1 %v2879_v13  ;;  %2608 = vmatprep.subr.bf16.mxu0 %v2880_v16 }
  0xda   : > { %2629 = vmatprep.subr.bf16.mxu1 %v2880_v16 }
  0xdc   : > { %2609 = vmatpush3.bf16.msra.mxu0 %v2880_v16 }
  0xdd   : > { %2637 = vmatpush3.bf16.msra.mxu1 %v2880_v16  ;;  %2610 = vmatprep.subr.bf16.mxu0 %v2887_v18 }
  0xde   : > { %1688 = vmatmul.mubr.bf16.gmra.mrb[40].mxu0 %v2885_v21  ;;  %2630 = vmatprep.subr.bf16.mxu1 %v2887_v18 }
  0xdf   : > { %1752 = vmatmul.mubr.bf16.gmra.mrb[40].mxu1 %v2886_v22  ;;  %1695 = vmatprep.mubr.bf16.mxu0 %v2202_v23 }
  0xe0   : > { %2611 = vmatpush3.bf16.msra.mxu0 %v2887_v18  ;;  %1759 = vmatprep.mubr.bf16.mxu1 %v2204_v24 }
  0xe1   : > { %2638 = vmatpush3.bf16.msra.mxu1 %v2887_v18  ;;  %2612 = vmatprep.subr.bf16.mxu0 %v2888_v25 }
  0xe2   : > { %2631 = vmatprep.subr.bf16.mxu1 %v2888_v25 }
  0xe4   : > { %2613 = vmatpush3.bf16.msra.mxu0 %v2888_v25 }
  0xe5   : > { %2639 = vmatpush3.bf16.msra.mxu1 %v2888_v25  ;;  %2614 = vmatprep.subr.bf16.mxu0 %v2893_v26 }
  0xe6   : > { %1696 = vmatmul.mubr.bf16.gmra.mrb[44].mxu0 %v2201_v27  ;;  %2632 = vmatprep.subr.bf16.mxu1 %v2893_v26 }
  0xe7   : > { %1760 = vmatmul.mubr.bf16.gmra.mrb[44].mxu1 %v2203_v28  ;;  %2618 = vmatprep.mubr.bf16.mxu0 %v2895_v29 }
  0xe8   : > { %2615 = vmatpush3.bf16.msra.mxu0 %v2893_v26  ;;  %2622 = vmatprep.mubr.bf16.mxu1 %v2896_v30 }
  0xe9   : > { %2640 = vmatpush3.bf16.msra.mxu1 %v2893_v26  ;;  %2616 = vmatprep.subr.bf16.mxu0 %v2894_v31 }
  0xea   : > { %2633 = vmatprep.subr.bf16.mxu1 %v2894_v31 }
  0xec   : > { %2617 = vmatpush3.bf16.msra.mxu0 %v2894_v31 }
  0xed   : > { %2641 = vmatpush3.bf16.msra.mxu1 %v2894_v31 }
  0xef   : > { %2619 = vmatmul.mubr.bf16.vlgmr.msra.gmra.mrb[48].mxu0 %v2897_v32 }
  0xf0   : > { %2623 = vmatmul.mubr.bf16.vlgmr.msra.gmra.mrb[48].mxu1 %v2898_v33 }
 0x161   : > { %v2366_v34 = vpop.f32.mrb[0].mxu0 }
 0x162   : > { %v2406_v35 = vpop.f32.mrb[0].mxu1  ;;  %v2367_v36 = vpop.f32.mrb[1].mxu0 }
 0x163   : > { %v2368_v37 = vadd.f32 %v2367_v36, %v2366_v34  ;;  %v2407_v38 = vpop.f32.mrb[1].mxu1  ;;  %v2369_v39 = vpop.f32.mrb[2].mxu0 }
 0x164   : > { %v2408_v40 = vadd.f32 %v2407_v38, %v2406_v35  ;;  %v2409_v41 = vpop.f32.mrb[2].mxu1  ;;  %v2370_v42 = vpop.f32.mrb[3].mxu0 }
 0x165   : > { %v2371_v43 = vadd.f32 %v2370_v42, %v2369_v39  ;;  %v2410_v44 = vpop.f32.mrb[3].mxu1 }
 0x166   : > { %v1482_v45 = vadd.f32 %v2408_v40, %v2368_v37  ;;  %v2411_v46 = vadd.f32 %v2410_v44, %v2409_v41 }
 0x168   : > { %v1485_v47 = vadd.f32 %v2411_v46, %v2371_v43 }
 0x169   : > { %v2372_v48 = vpop.f32.mrb[4].mxu0 }
 0x16a   : > { %v2412_v49 = vpop.f32.mrb[4].mxu1  ;;  %v2373_v50 = vpop.f32.mrb[5].mxu0 }
 0x16b   : > { %v2374_v51 = vadd.f32 %v2373_v50, %v2372_v48  ;;  %v2413_v52 = vpop.f32.mrb[5].mxu1  ;;  %v2375_v53 = vpop.f32.mrb[6].mxu0 }
 0x16c   : > { %v2414_v54 = vadd.f32 %v2413_v52, %v2412_v49  ;;  %v2415_v55 = vpop.f32.mrb[6].mxu1  ;;  %v2376_v56 = vpop.f32.mrb[7].mxu0 }
 0x16d   : > { %v2377_v57 = vadd.f32 %v2376_v56, %v2375_v53  ;;  %v2416_v58 = vpop.f32.mrb[7].mxu1 }
 0x16e   : > { %v1490_v59 = vadd.f32 %v2414_v54, %v2374_v51  ;;  %v2417_v60 = vadd.f32 %v2416_v58, %v2415_v55 }
 0x170   : > { %v1493_v61 = vadd.f32 %v2417_v60, %v2377_v57 }
 0x171   : > { %v2378_v62 = vpop.f32.mrb[8].mxu0 }
 0x172   : > { %v2418_v63 = vpop.f32.mrb[8].mxu1  ;;  %v2379_v0 = vpop.f32.mrb[9].mxu0 }
 0x173   : > { %v2380_v1 = vadd.f32 %v2379_v0, %v2378_v62  ;;  %v2419_v2 = vpop.f32.mrb[9].mxu1  ;;  %v2381_v3 = vpop.f32.mrb[10].mxu0 }
 0x174   : > { %v2420_v4 = vadd.f32 %v2419_v2, %v2418_v63  ;;  %v2421_v5 = vpop.f32.mrb[10].mxu1  ;;  %v2382_v6 = vpop.f32.mrb[11].mxu0 }
 0x175   : > { %v2383_v7 = vadd.f32 %v2382_v6, %v2381_v3  ;;  %v2422_v8 = vpop.f32.mrb[11].mxu1 }
 0x176   : > { %v1498_v9 = vadd.f32 %v2420_v4, %v2380_v1  ;;  %v2423_v10 = vadd.f32 %v2422_v8, %v2421_v5 }
 0x178   : > { %v1501_v11 = vadd.f32 %v2423_v10, %v2383_v7 }
 0x179   : > { %v2384_v12 = vpop.f32.mrb[12].mxu0 }
 0x17a   : > { %v2424_v13 = vpop.f32.mrb[12].mxu1  ;;  %v2385_v14 = vpop.f32.mrb[13].mxu0 }
 0x17b   : > { %v2425_v15 = vpop.f32.mrb[13].mxu1  ;;  %v2386_v16 = vadd.f32 %v2385_v14, %v2384_v12  ;;  %v2387_v18 = vpop.f32.mrb[14].mxu0 }
 0x17c   : > { %v2426_v17 = vadd.f32 %v2425_v15, %v2424_v13  ;;  %v2427_v19 = vpop.f32.mrb[14].mxu1  ;;  %v2388_v20 = vpop.f32.mrb[15].mxu0 }
 0x17d   : > { %v2428_v21 = vpop.f32.mrb[15].mxu1 }
 0x17e   : > { %v1506_v22 = vadd.f32 %v2426_v17, %v2386_v16 }
 0x181   : > { %v2446_v23 = vpop.f32.mrb[16].mxu0 }
 0x182   : > { %v2486_v24 = vpop.f32.mrb[16].mxu1  ;;  %v2447_v25 = vpop.f32.mrb[17].mxu0 }
 0x183   : > { %v2448_v26 = vadd.f32 %v2447_v25, %v2446_v23  ;;  %v2487_v27 = vpop.f32.mrb[17].mxu1  ;;  %v2449_v28 = vpop.f32.mrb[18].mxu0 }
 0x184   : > { %v2488_v29 = vadd.f32 %v2487_v27, %v2486_v24  ;;  %v2489_v30 = vpop.f32.mrb[18].mxu1  ;;  %v2450_v31 = vpop.f32.mrb[19].mxu0 }
 0x185   : > { %v1546_v32 = vadd.f32 %v2448_v26, %v1482_v45  ;;  %v2451_v33 = vadd.f32 %v2450_v31, %v2449_v28  ;;  %v2490_v34 = vpop.f32.mrb[19].mxu1 }
 0x186   : > { %v2491_v35 = vadd.f32 %v2490_v34, %v2489_v30 }
 0x187   : > { %v1610_v36 = vadd.f32 %v2488_v29, %v1546_v32  ;;  %v1549_v37 = vadd.f32 %v2451_v33, %v1485_v47 }
 0x189   : > { %v1613_v38 = vadd.f32 %v2491_v35, %v1549_v37  ;;  %v2452_v39 = vpop.f32.mrb[20].mxu0 }
 0x18a   : > { %v2492_v40 = vpop.f32.mrb[20].mxu1  ;;  %v2453_v41 = vpop.f32.mrb[21].mxu0 }
 0x18b   : > { %v2454_v42 = vadd.f32 %v2453_v41, %v2452_v39  ;;  %v2493_v43 = vpop.f32.mrb[21].mxu1  ;;  %v2455_v44 = vpop.f32.mrb[22].mxu0 }
 0x18c   : > { %v2494_v46 = vadd.f32 %v2493_v43, %v2492_v40  ;;  %v2495_v48 = vpop.f32.mrb[22].mxu1  ;;  %v2456_v49 = vpop.f32.mrb[23].mxu0 }
 0x18d   : > { %v1554_v50 = vadd.f32 %v2454_v42, %v1490_v59  ;;  %v2457_v51 = vadd.f32 %v2456_v49, %v2455_v44  ;;  %v2496_v52 = vpop.f32.mrb[23].mxu1 }
 0x18e   : > { %v2497_v53 = vadd.f32 %v2496_v52, %v2495_v48 }
 0x18f   : > { %v1618_v45 = vadd.f32 %v2494_v46, %v1554_v50  ;;  %v1557_v54 = vadd.f32 %v2457_v51, %v1493_v61 }
 0x191   : > { %v1621_v55 = vadd.f32 %v2497_v53, %v1557_v54  ;;  %v2458_v56 = vpop.f32.mrb[24].mxu0 }
 0x192   : > { %v2498_v57 = vpop.f32.mrb[24].mxu1  ;;  %v2459_v47 = vpop.f32.mrb[25].mxu0 }
 0x193   : > { %v2499_v58 = vpop.f32.mrb[25].mxu1  ;;  %v2460_v60 = vadd.f32 %v2459_v47, %v2458_v56  ;;  %v2461_v63 = vpop.f32.mrb[26].mxu0 }
 0x194   : > { %v2500_v62 = vadd.f32 %v2499_v58, %v2498_v57  ;;  %v2501_v0 = vpop.f32.mrb[26].mxu1  ;;  %v2462_v1 = vpop.f32.mrb[27].mxu0 }
 0x195   : > { %v2502_v2 = vpop.f32.mrb[27].mxu1  ;;  %v1562_v3 = vadd.f32 %v2460_v60, %v1498_v9  ;;  %v2463_v4 = vadd.f32 %v2462_v1, %v2461_v63 }
 0x196   : > { %v2503_v5 = vadd.f32 %v2502_v2, %v2501_v0 }
 0x197   : > { %v1626_v59 = vadd.f32 %v2500_v62, %v1562_v3  ;;  %v1565_v6 = vadd.f32 %v2463_v4, %v1501_v11 }
 0x199   : > { %v1629_v7 = vadd.f32 %v2503_v5, %v1565_v6  ;;  %v2464_v8 = vpop.f32.mrb[28].mxu0 }
 0x19a   : > { %v2504_v10 = vpop.f32.mrb[28].mxu1  ;;  %v2465_v61 = vpop.f32.mrb[29].mxu0 }
 0x19b   : > { %v2466_v12 = vadd.f32 %v2465_v61, %v2464_v8  ;;  %v2505_v13 = vpop.f32.mrb[29].mxu1  ;;  %v2467_v14 = vpop.f32.mrb[30].mxu0 }
 0x19c   : > { %v2506_v15 = vadd.f32 %v2505_v13, %v2504_v10  ;;  %v2507_v16 = vpop.f32.mrb[30].mxu1  ;;  %v2468_v17 = vpop.f32.mrb[31].mxu0 }
 0x19d   : > { %v1570_v18 = vadd.f32 %v2466_v12, %v1506_v22  ;;  %v2508_v19 = vpop.f32.mrb[31].mxu1 }
 0x19f   : > { %v1634_v20 = vadd.f32 %v2506_v15, %v1570_v18 }
 0x1a1   : > { %v2526_v21 = vpop.f32.mrb[32].mxu0 }
 0x1a2   : > { %v2566_v23 = vpop.f32.mrb[32].mxu1  ;;  %v2527_v9 = vpop.f32.mrb[33].mxu0 }
 0x1a3   : > { %v2528_v24 = vadd.f32 %v2527_v9, %v2526_v21  ;;  %v2567_v25 = vpop.f32.mrb[33].mxu1  ;;  %v2529_v26 = vpop.f32.mrb[34].mxu0  ;;  %v2310_v21 = vld [vmem:[#allocation7] ss:$0 sm:$0xff] }
 0x1a4   : > { %v2568_v11 = vadd.f32 %v2567_v25, %v2566_v23  ;;  %v2569_v27 = vpop.f32.mrb[34].mxu1  ;;  %v2530_v28 = vpop.f32.mrb[35].mxu0 }
 0x1a5   : > { %v1674_v29 = vadd.f32 %v2528_v24, %v1610_v36  ;;  %v2531_v30 = vadd.f32 %v2530_v28, %v2529_v26  ;;  %v2570_v31 = vpop.f32.mrb[35].mxu1 }
 0x1a6   : > { %v2571_v32 = vadd.f32 %v2570_v31, %v2569_v27 }
 0x1a7   : > { %v1677_v33 = vadd.f32 %v2531_v30, %v1613_v38  ;;  %v1738_v34 = vadd.f32 %v2568_v11, %v1674_v29 }
 0x1a9   : > { %v2532_v35 = vpop.f32.mrb[36].mxu0  ;;  %v1741_v37 = vadd.f32 %v2571_v32, %v1677_v33 }
 0x1aa   : > { %v2572_v22 = vpop.f32.mrb[36].mxu1  ;;  %v2533_v39 = vpop.f32.mrb[37].mxu0 }
 0x1ab   : > { %v2534_v40 = vadd.f32 %v2533_v39, %v2532_v35  ;;  %v2573_v41 = vpop.f32.mrb[37].mxu1  ;;  %v2535_v42 = vpop.f32.mrb[38].mxu0 }
 0x1ac   : > { %v2574_v43 = vadd.f32 %v2573_v41, %v2572_v22  ;;  %v2575_v44 = vpop.f32.mrb[38].mxu1  ;;  %v2536_v46 = vpop.f32.mrb[39].mxu0 }
 0x1ad   : > { %v1682_v48 = vadd.f32 %v2534_v40, %v1618_v45  ;;  %v2537_v49 = vadd.f32 %v2536_v46, %v2535_v42  ;;  %v2576_v50 = vpop.f32.mrb[39].mxu1 }
 0x1ae   : > { %v2577_v51 = vadd.f32 %v2576_v50, %v2575_v44 }
 0x1af   : > { %v1685_v36 = vadd.f32 %v2537_v49, %v1621_v55  ;;  %v1746_v52 = vadd.f32 %v2574_v43, %v1682_v48 }
 0x1b1   : > { %v2538_v53 = vpop.f32.mrb[40].mxu0  ;;  %v1749_v54 = vadd.f32 %v2577_v51, %v1685_v36 }
 0x1b2   : > { %v2578_v38 = vpop.f32.mrb[40].mxu1  ;;  %v2539_v56 = vpop.f32.mrb[41].mxu0 }
 0x1b3   : > { %v2540_v57 = vadd.f32 %v2539_v56, %v2538_v53  ;;  %v2579_v47 = vpop.f32.mrb[41].mxu1  ;;  %v2541_v58 = vpop.f32.mrb[42].mxu0 }
 0x1b4   : > { %v2580_v60 = vadd.f32 %v2579_v47, %v2578_v38  ;;  %v2581_v62 = vpop.f32.mrb[42].mxu1  ;;  %v2542_v63 = vpop.f32.mrb[43].mxu0 }
 0x1b5   : > { %v1690_v0 = vadd.f32 %v2540_v57, %v1626_v59  ;;  %v2543_v1 = vadd.f32 %v2542_v63, %v2541_v58  ;;  %v2582_v2 = vpop.f32.mrb[43].mxu1 }
 0x1b6   : > { %v2583_v3 = vadd.f32 %v2582_v2, %v2581_v62 }
 0x1b7   : > { %v1693_v45 = vadd.f32 %v2543_v1, %v1629_v7  ;;  %v1754_v4 = vadd.f32 %v2580_v60, %v1690_v0 }
 0x1b9   : > { %v2544_v5 = vpop.f32.mrb[44].mxu0  ;;  %v1757_v55 = vadd.f32 %v2583_v3, %v1693_v45 }
 0x1ba   : > { %v2584_v6 = vpop.f32.mrb[44].mxu1  ;;  %v2545_v8 = vpop.f32.mrb[45].mxu0 }
 0x1bb   : > { %v2546_v10 = vadd.f32 %v2545_v8, %v2544_v5  ;;  %v2585_v61 = vpop.f32.mrb[45].mxu1  ;;  %v2547_v12 = vpop.f32.mrb[46].mxu0 }
 0x1bc   : > { %v2586_v13 = vadd.f32 %v2585_v61, %v2584_v6  ;;  %v2587_v14 = vpop.f32.mrb[46].mxu1  ;;  %v2548_v15 = vpop.f32.mrb[47].mxu0 }
 0x1bd   : > { %v1698_v16 = vadd.f32 %v2546_v10, %v1634_v20  ;;  %v2588_v17 = vpop.f32.mrb[47].mxu1 }
 0x1bf   : > { %v1762_v18 = vadd.f32 %v2586_v13, %v1698_v16 }
 0x1c2   : > { %v2620_v59 = vpop.f32.mrb[48].mxu0 }
 0x1c3   : > { %v3359_v19 = vadd.f32 %v2620_v59, %v1746_v52  ;;  %v2624_v7 = vpop.f32.mrb[48].mxu1  ;;  %v1801_v23 = vpop.f32.mrb[49].mxu0 }
 0x1c4   : > { %v3362_v9 = vadd.f32 %v2624_v7, %v1762_v18  ;;  %v3364_v24 = vadd.f32 %v1801_v23, %v1738_v34  ;;  %v1817_v25 = vpop.f32.mrb[49].mxu1  ;;  %v2621_v26 = vpop.f32.mrb[50].mxu0 }
 0x1c5   : > { %v3366_v11 = vadd.f32 %v1817_v25, %v1754_v4  ;;  %v3368_v27 = vadd.f32 %v2621_v26, %v1749_v54  ;;  %v2625_v20 = vpop.f32.mrb[50].mxu1  ;;  %v1804_v28 = vpop.f32.mrb[51].mxu0  ;;  %v1840_v32 = vadd.f32 %v2310_v21, %v3359_v19  ;;  %v1899_v49 = vmul.f32 (!%p3519_p11), %v3359_v19, %v3359_v19 }
 0x1c6   : > { %v1844_v29 = vadd.f32 %v2310_v21, %v3362_v9  ;;  %v3371_v30 = vadd.f32 %v1804_v28, %v1741_v37  ;;  %v1820_v31 = vpop.f32.mrb[51].mxu1  ;;  %v1838_v22 = vadd.f32 %v2310_v21, %v3364_v24  ;;  %v1897_v46 = vmul.f32 (!%p3519_p11), %v3364_v24, %v3364_v24 }
 0x1c7   : > { %v1841_v33 = vadd.f32 %v2310_v21, %v3368_v27  ;;  %v3375_v34 = vadd.f32 %v1820_v31, %v1757_v55  ;;  %v1842_v40 = vadd.f32 %v2310_v21, %v3366_v11  ;;  %1884 = sbr.rel (%p3519_p11) target bundleno = 484 (0x1e4), region = 48  ;;  %v1900_v51 = vmul.f32 (!%p3519_p11), %v3368_v27, %v3368_v27 }
 0x1c8   : > { %v2331_v35 = vpack.c.bf16 %v1844_v29, %v1844_v29  ;;  %v1839_v39 = vadd.f32 %v2310_v21, %v3371_v30  ;;  %v1885_v44 = vadd.f32 (!%p3519_p11), %v3371_v30, %v3364_v24  ;;  %v1898_v48 = vmul.f32 (!%p3519_p11), %v3371_v30, %v3371_v30 }
 0x1c9   : > { %v2341_v41 = vpack.c.bf16 %v1841_v33, %v1840_v32  ;;  %v1843_v42 = vadd.f32 %v2310_v21, %v3375_v34  ;;  %v1901_v53 = vmul.f32 (!%p3519_p11), %v3366_v11, %v3366_v11  ;;  %v1902_v56 = vmul.f32 (!%p3519_p11), %v3375_v34, %v3375_v34 }
 0x1ca   : > { %1880 = vst [vmem:[%s3381_s29 + $0x18] sm:$0xf] %v2331_v35  ;;  %v2336_v37 = vpack.c.bf16 %v1839_v39, %v1838_v22  ;;  %v1886_v50 = vadd.f32 (!%p3519_p11), %v1885_v44, %v3359_v19  ;;  %v1904_v36 = vadd.f32 (!%p3519_p11), %v1898_v48, %v1897_v46  ;;  %v1903_v58 = vmul.f32 (!%p3519_p11), %v3362_v9, %v3362_v9 }
 0x1cb   : > { %2348 = vst [vmem:[%s3381_s29 + $0x8] sm:$0xff] %v2341_v41   ;;  %v2346_v43 = vpack.c.bf16 %v1843_v42, %v1842_v40 }
 0x1cc   : > { %2337 = vst [vmem:[%s3381_s29] sm:$0xff] %v2336_v37   ;;  %v1887_v52 = vadd.f32 (!%p3519_p11), %v1886_v50, %v3368_v27  ;;  %v1905_v54 = vadd.f32 (!%p3519_p11), %v1904_v36, %v1899_v49 }
 0x1cd   : > { %2349 = vst [vmem:[%s3381_s29 + $0x10] sm:$0xff] %v2346_v43  }
 0x1ce   : > { %v1888_v38 = vadd.f32 %v1887_v52, %v3366_v11  ;;  %v1906_v57 = vadd.f32 %v1905_v54, %v1900_v51 }
 0x1d0   : > { %v1889_v47 = vadd.f32 %v1888_v38, %v3375_v34  ;;  %v1907_v60 = vadd.f32 %v1906_v57, %v1901_v53 }
 0x1d2   : > { %v1890_v62 = vadd.f32 %v1889_v47, %v3362_v9  ;;  %v1908_v63 = vadd.f32 %v1907_v60, %v1902_v56 }
 0x1d4   : > { %v1891_v0 = vrot.slane %v1890_v62, 4  ;;  %v1909_v1 = vadd.f32 %v1908_v63, %v1903_v58 }
 0x1d6   : > { %v1892_v2 = vadd.f32 %v1891_v0, %v1890_v62  ;;  %v1910_v3 = vrot.slane %v1909_v1, 4 }
 0x1d8   : > { %v1893_v45 = vrot.slane %v1892_v2, 2  ;;  %v1911_v4 = vadd.f32 %v1910_v3, %v1909_v1 }
 0x1da   : > { %v1894_v5 = vadd.f32 %v1893_v45, %v1892_v2  ;;  %v1912_v55 = vrot.slane %v1911_v4, 2 }
 0x1dc   : > { %v1895_v6 = vrot.slane %v1894_v5, 1  ;;  %v1913_v8 = vadd.f32 %v1912_v55, %v1911_v4 }
 0x1de   : > { %v1896_v10 = vadd.f32 %v1895_v6, %v1894_v5  ;;  %v1914_v61 = vrot.slane %v1913_v8, 1 }
 0x1e0   : > { %v1915_v12 = vadd.f32 %v1914_v61, %v1913_v8 }
 0x1e2   : > { %v1917_v13 = vsel %vm1916_vm0, %v1896_v10, %v1915_v12 }
 0x1e3   : > { %1918 = vst [vmem:[%s3389_s30] sm:$0x3] %v1917_v13 }
 0x1e4 PF: > { %p2319_p0 = scmp.ne.s32.totalorder %s3146_s19, 1 }
 0x1e5   : > { %v1923_v14 = vlaneseq (!%p2319_p0)  ;;  %s1931_s6 = smul.u32 (!%p2319_p0), 56, %s3146_s19  ;;  %vm1985_vm8 = vcmask (!%p2319_p0), 1040384  }
 0x1e6   : > { %1922 = sbr.rel (%p2319_p0) target bundleno = 523 (0x20b), region = 52 }
 0x1e7   : > { %v1924_v15 = vshrl.u32 (!%p2319_p0), %v1923_v14, 7  ;;  %v1932_v16 = vstv (!%p2319_p0), %s1931_s6 }
 0x1e9   : > { %v1925_v17 = vadd.s32 (!%p2319_p0), 8, %v1924_v15  ;;  %v1926_v18 = vadd.s32 (!%p2319_p0), 16, %v1924_v15  ;;  %v1927_v59 = vadd.s32 (!%p2319_p0), 24, %v1924_v15  ;;  %v1928_v21 = vadd.s32 (!%p2319_p0), 32, %v1924_v15 }
 0x1ea   : > { %v1929_v7 = vadd.s32 (!%p2319_p0), 40, %v1924_v15  ;;  %v1930_v23 = vadd.s32 (!%p2319_p0), 48, %v1924_v15  ;;  %v1933_v25 = vadd.s32 (!%p2319_p0), %v1932_v16, %v1924_v15 }
 0x1eb   : > { %v1934_v26 = vadd.s32 (!%p2319_p0), %v1932_v16, %v1925_v17  ;;  %v1935_v20 = vadd.s32 (!%p2319_p0), %v1932_v16, %v1926_v18  ;;  %v1936_v28 = vadd.s32 (!%p2319_p0), %v1932_v16, %v1927_v59  ;;  %v1937_v29 = vadd.s32 (!%p2319_p0), %v1932_v16, %v1928_v21 }
 0x1ec   : > { %v1938_v31 = vadd.s32 (!%p2319_p0), %v1932_v16, %v1929_v7  ;;  %vm1940_vm1 = vcmp.lt.s32.totalorder (!%p2319_p0), %v1933_v25, 98  ;;  %v1939_v32 = vadd.s32 (!%p2319_p0), %v1932_v16, %v1930_v23 }
 0x1ed   : > { %vm1941_vm2 = vcmp.lt.s32.totalorder %v1934_v26, 98  ;;  %vm1942_vm3 = vcmp.lt.s32.totalorder %v1935_v20, 98  ;;  %vm1943_vm4 = vcmp.lt.s32.totalorder %v1936_v28, 98  ;;  %vm1944_vm5 = vcmp.lt.s32.totalorder %v1937_v29, 98 }
 0x1ee   : > { %v1947_v33 = vsel %vm1940_vm1, %v3364_v24, 0.0  ;;  %v1948_v35 = vsel %vm1941_vm2, %v3371_v30, 0.0  ;;  %v1949_v22 = vsel %vm1942_vm3, %v3359_v19, 0.0  ;;  %v1950_v39 = vsel %vm1943_vm4, %v3368_v27, 0.0 }
 0x1ef   : > { %vm1945_vm6 = vcmp.lt.s32.totalorder %v1938_v31, 98  ;;  %v1954_v40 = vadd.f32 %v1948_v35, %v1947_v33  ;;  %v1966_v41 = vmul.f32 %v1947_v33, %v1947_v33  ;;  %v1967_v42 = vmul.f32 %v1948_v35, %v1948_v35 }
 0x1f0   : > { %v1951_v37 = vsel %vm1944_vm5, %v3366_v11, 0.0  ;;  %v1968_v43 = vmul.f32 %v1949_v22, %v1949_v22  ;;  %vm1946_vm7 = vcmp.lt.s32.totalorder %v1939_v32, 98  ;;  %v1969_v46 = vmul.f32 %v1950_v39, %v1950_v39 }
 0x1f1   : > { %v1955_v44 = vadd.f32 %v1954_v40, %v1949_v22  ;;  %v1973_v48 = vadd.f32 %v1967_v42, %v1966_v41  ;;  %v1952_v49 = vsel %vm1945_vm6, %v3375_v34, 0.0  ;;  %v1970_v50 = vmul.f32 %v1951_v37, %v1951_v37 }
 0x1f2   : > { %v1953_v19 = vsel %vm1946_vm7, %v3362_v9, 0.0  ;;  %v1971_v27 = vmul.f32 %v1952_v49, %v1952_v49 }
 0x1f3   : > { %v1956_v24 = vadd.f32 %v1955_v44, %v1950_v39  ;;  %v1974_v30 = vadd.f32 %v1973_v48, %v1968_v43  ;;  %v1972_v53 = vmul.f32 %v1953_v19, %v1953_v19 }
 0x1f5   : > { %v1957_v51 = vadd.f32 %v1956_v24, %v1951_v37  ;;  %v1975_v36 = vadd.f32 %v1974_v30, %v1969_v46 }
 0x1f7   : > { %v1958_v52 = vadd.f32 %v1957_v51, %v1952_v49  ;;  %v1976_v54 = vadd.f32 %v1975_v36, %v1970_v50 }
 0x1f9   : > { %v1959_v38 = vadd.f32 %v1958_v52, %v1953_v19  ;;  %v1977_v11 = vadd.f32 %v1976_v54, %v1971_v27 }
 0x1fb   : > { %v1960_v56 = vrot.slane %v1959_v38, 4  ;;  %v1978_v57 = vadd.f32 %v1977_v11, %v1972_v53 }
 0x1fd   : > { %v1961_v47 = vadd.f32 %v1960_v56, %v1959_v38  ;;  %v1979_v58 = vrot.slane %v1978_v57, 4 }
 0x1ff   : > { %v1962_v60 = vrot.slane %v1961_v47, 2  ;;  %v1980_v34 = vadd.f32 %v1979_v58, %v1978_v57 }
 0x201   : > { %v1963_v62 = vadd.f32 %v1962_v60, %v1961_v47  ;;  %v1981_v63 = vrot.slane %v1980_v34, 2 }
 0x203   : > { %v1964_v0 = vrot.slane %v1963_v62, 1  ;;  %v1982_v1 = vadd.f32 %v1981_v63, %v1980_v34 }
 0x205   : > { %v1965_v9 = vadd.f32 %v1964_v0, %v1963_v62  ;;  %v1983_v2 = vrot.slane %v1982_v1, 1 }
 0x207   : > { %v1984_v3 = vadd.f32 %v1983_v2, %v1982_v1 }
 0x209   : > { %v1986_v45 = vsel %vm1985_vm8, %v1965_v9, %v1984_v3 }
 0x20a   : > { %1987 = vst [vmem:[%s3389_s30] sm:$0x3] %v1986_v45 }
 0x20b PF: > { %s2332_s25 = smul.u32 448, %s3146_s19  ;;  %s2007_s20 = sshll.u32 %s3381_s29, 4  ;;  %s3432_s20 = int_to_ptr.vmem [resolvable:$true] %s2007_s20 }
 0x20c   : > { %s1989_s27 = scalar_lea.sflag [#allocation4], %s3298_s8  ;;  %s2985_s5 = scalar_lea.vmem %s3432_s20, 448 }
 0x20d   : > { %s3430_s24 = scalar_lea.hbm %s3504_s3, %s2332_s25  ;;  %p2986_p1 = scmp.ne.s32.totalorder %s3432_s20, %s2985_s5 }
 0x20e   : > { %p3520_p3 = scmp.ne.s32.totalorder %s3514_s13, 0  ;;  %s3096_s7 = smov [#allocation8]  }
 0x20f   : > { %s2989_s9 = sshll.u32 %s3096_s7, 4  ;;  %s2990_s9 = int_to_ptr.vmem [resolvable:$false] %s2989_s9 }
 0x210   : > { %p2987_p5 = pnand %p2986_p1, %p3520_p3  ;;  %s2991_s26 = scalar_lea.vmem %s2990_s9, 896 }
 0x211   : > { %p2992_p12 = scmp.lt.s32.totalorder %s3432_s20, %s2990_s9  ;;  %p2993_p2 = scmp.lt.s32.totalorder %s2991_s26, %s2985_s5 }
 0x212   : > { %p2988_p7 = pneg %p2987_p5 }
 0x213   : > { %p2994_p13 = por %p2993_p2, %p2992_p12 }
 0x215   : > { %p2995_p6 = pnand %p2994_p13, %p2988_p7 }
 0x217   : > { %2998 = shalt.err (!%p2995_p6)
}
 0x218   : > { %s2999_s11 = scalar_lea.hbm %s3430_s24, 448  ;;  %s3003_s29 = scalar_lea.hbm %s3504_s3, 896 }
 0x219   : > { %p3000_p10 = scmp.ne.s32.totalorder %s3430_s24, %s2999_s11  ;;  %p3004_p8 = scmp.lt.u32.totalorder %s3430_s24, %s3504_s3 }
 0x21a   : > { %p3005_p11 = scmp.lt.u32.totalorder %s3003_s29, %s2999_s11  ;;  %p3007_p1 = scmp.lt.u32.totalorder %s2999_s11, %s3430_s24 }
 0x21b   : > { %p3001_p4 = pnand %p3000_p10, %p3520_p3 }
 0x21c   : > { %p3006_p0 = por %p3005_p11, %p3004_p8 }
 0x21d   : > { %p3002_p9 = pneg %p3001_p4 }
 0x21e   : > { %p3008_p5 = por %p3007_p1, %p3006_p0 }
 0x220   : > { %p3009_p7 = pnand %p3008_p5, %p3002_p9 }
 0x222   : > { %3012 = shalt.err (!%p3009_p7)
}
 0x223   : > { %s3097_s14 = smov 64   ;;  %s3098_s28 = smov 4  }
 0x224   : > { %2656 = dma.vmem_to_hbm [thread:$0]  (%p3520_p3), %s3432_s20, 448, %s3430_s24, %s1989_s27, %s3097_s14, %s3097_s14, %s3098_s28  }
 0x225   : > { %s2322_s5 = sshll.u32 %s3146_s19, 5  ;;  %s2023_s7 = sshll.u32 %s3389_s30, 4  ;;  %s2024_s7 = int_to_ptr.vmem [resolvable:$true] %s2023_s7 }
 0x226   : > { %s3463_s11 = scalar_lea.hbm %s3505_s4, %s2322_s5  ;;  %s1994_s23 = scalar_lea.sflag [#allocation10], %s3298_s8 }
 0x227   : > { %s3013_s21 = scalar_lea.vmem %s2024_s7, 32  ;;  %s3099_s29 = smov [#allocation9]  }
 0x228   : > { %p3014_p12 = scmp.ne.s32.totalorder %s2024_s7, %s3013_s21  ;;  %s3017_s6 = sshll.u32 %s3099_s29, 4  ;;  %s3018_s6 = int_to_ptr.vmem [resolvable:$false] %s3017_s6 }
 0x229   : > { %s3019_s25 = scalar_lea.vmem %s3018_s6, 64  ;;  %p3020_p6 = scmp.lt.s32.totalorder %s2024_s7, %s3018_s6 }
 0x22a   : > { %p3015_p2 = pnand %p3014_p12, %p3520_p3  ;;  %p3021_p10 = scmp.lt.s32.totalorder %s3019_s25, %s3013_s21 }
 0x22c   : > { %p3016_p13 = pneg %p3015_p2  ;;  %p3022_p4 = por %p3021_p10, %p3020_p6 }
 0x22e   : > { %p3023_p9 = pnand %p3022_p4, %p3016_p13 }
 0x230   : > { %3026 = shalt.err (!%p3023_p9)
}
 0x231   : > { %s3027_s19 = scalar_lea.hbm %s3463_s11, 32  ;;  %s3031_s20 = scalar_lea.hbm %s3505_s4, 64 }
 0x232   : > { %p3028_p8 = scmp.ne.s32.totalorder %s3463_s11, %s3027_s19  ;;  %p3032_p1 = scmp.lt.u32.totalorder %s3463_s11, %s3505_s4 }
 0x233   : > { %p3033_p5 = scmp.lt.u32.totalorder %s3031_s20, %s3027_s19  ;;  %p3035_p12 = scmp.lt.u32.totalorder %s3027_s19, %s3463_s11 }
 0x234   : > { %p3029_p11 = pnand %p3028_p8, %p3520_p3 }
 0x235   : > { %p3034_p7 = por %p3033_p5, %p3032_p1 }
 0x236   : > { %p3030_p0 = pneg %p3029_p11 }
 0x237   : > { %p3036_p2 = por %p3035_p12, %p3034_p7 }
 0x239   : > { %p3037_p13 = pnand %p3036_p2, %p3030_p0 }
 0x23b   : > { %3040 = shalt.err (!%p3037_p13)
}
 0x23c   : > { %2657 = dma.vmem_to_hbm [thread:$0]  (%p3520_p3), %s2024_s7, 32, %s3463_s11, %s1994_s23  }
 0x23d PF: > { %s2035_s14 = sand.u32 1, %s3075_s15   ;;  %p3521_p6 = scmp.ne.s32.totalorder %s3510_s22, 0 }
 0x23e   : > { %p3522_p10 = scmp.ge.s32.totalorder %s3087_s18, 2  ;;  %s2036_s28 = scalar_lea.sflag [#allocation4], %s2035_s14 }
 0x240   : > { %p2672_p4 = pnand %p3522_p10, %p3521_p6 }
 0x242   : > { %3066 = dma.done.wait (!%p2672_p4), %s2036_s28, 448  }
 0x243   : > { %3068 = vsyncadd (!%p2672_p4), %s2036_s28, 4294966848  ;;  %s2045_s5 = scalar_lea.sflag [#allocation10], %s2035_s14 }
 0x244   : > { %3070 = dma.done.wait (!%p2672_p4), %s2045_s5, 32  }
 0x245   : > { %3072 = vsyncadd (!%p2672_p4), %s2045_s5, 4294967264  ;;  %p22_p3 = scmp.ge.s32.totalorder %s3236_s10, 4   ;;  %s3523_s15 = smov %s3079_s16 }
 0x246   : > { %s3524_s16 = smov %s3083_s17  ;;  %s3525_s17 = smov %s3246_s12 }
 0x247   : > { %s3526_s18 = smov %s3236_s10  ;;  %24 = sbr.rel (!%p22_p3) target bundleno = 8 (0x8), region = 110 }
 0x24e   :  { %2050 = vsyncpa [#allocation3], 1 }
 0x24f   :  { %2052 = vsyncpa [#allocation3 + $0x1], 1 }
 0x250   :  { %2053 = vsyncpa [#allocation6], 1 }
 0x251   :  { %2054 = vsyncpa [#allocation4], 1 }
 0x252   :  { %2056 = vsyncpa [#allocation4 + $0x1], 1 }
 0x253   :  { %2057 = vsyncpa [#allocation10], 1 }
 0x254   :  { %2059 = vsyncpa [#allocation10 + $0x1], 1 }

// kernel: custom_cnn_forward.8
= control target key start
LH: loop header
LB: loop body
LE: loop exit
PB: predicated region body
PF: predicated region fallthrough
CT: control target
= control target key end

     0   :  { %10 = vsyncpa [#allocation3], 0  ;;  %s2744_s0 = inlined_call_operand.hbm [shape: bf16[32,1152], index: 0, kind: input, shape index: {}]   ;;  %s2745_s1 = inlined_call_operand.hbm [shape: bf16[1152,256], index: 1, kind: input, shape index: {}]   ;;  %s2746_s2 = inlined_call_operand.hbm [shape: f32[1,256], index: 2, kind: input, shape index: {}]   ;;  %s2747_s3 = inlined_call_operand.hbm [shape: bf16[32,256], index: 3, kind: output, shape index: {0}]   ;;  %s2748_s4 = inlined_call_operand.hbm [shape: f32[2,2,256], index: 4, kind: output, shape index: {1}]  }
   0x1   :  { %12 = vsyncpa [#allocation3 + $0x1], 0 }
   0x2   :  { %13 = vsyncpa [#allocation6], 0 }
   0x3   :  { %14 = vsyncpa [#allocation4], 0 }
   0x4   :  { %16 = vsyncpa [#allocation4 + $0x1], 0 }
   0x5   :  { %17 = vsyncpa [#allocation10], 0 }
   0x6   :  { %19 = vsyncpa [#allocation10 + $0x1], 0  ;;  %s2437_s15 = smov 0   ;;  %s2439_s16 = smov 0  }
   0x7   :  { %s2441_s17 = smov 0   ;;  %s2443_s18 = smov 0  }
   0x8 LB: > { %s2458_s19 = sadd.s32 4294967295, %s2398_s18   ;;  %s1696_s20 = sadd.s32 4294967294, %s2398_s18   ;;  %s2398_s18 = sphi %s2443_s18, %s2769_s18   ;;  %s2394_s17 = sphi %s2441_s17, %s2768_s17   ;;  %s2390_s16 = sphi %s2439_s16, %s2767_s16   ;;  %s2386_s15 = sphi %s2437_s15, %s2766_s15  }
   0x9   : > { %p45_p0 = scmp.ne.s32.totalorder %s2390_s16, %s2386_s15  ;;  %p2749_p1 = scmp.eq.s32.totalorder %s2458_s19, 0 }
   0xa   : > { %p117_p3 = scmp.eq.s32.totalorder %s1696_s20, 1  ;;  %p1697_p5 = scmp.ge.s32.totalorder %s2398_s18, 1 }
   0xb   : > { %p2467_p4 = por %p2749_p1, %p45_p0  ;;  %p150_p7 = scmp.lt.s32.totalorder %s2398_s18, 3 }
   0xc   : > { %p2472_p6 = por %p117_p3, %p45_p0  ;;  %s2400_s24 = smov [#allocation5]  }
   0xd   : > { %s2752_s21 = scalar_select %p2467_p4, 1, 0 }
   0xe   : > { %s2753_s22 = scalar_select %p2472_p6, 1, 0 }
   0xf   : > { %p2477_p8 = pnand %p1697_p5, %p150_p7  ;;  %s162_s25 = sshll.u32 %s2400_s24, 4  ;;  %s2481_s25 = int_to_ptr.vmem [resolvable:$true] %s162_s25 }
  0x10   : > { %s2401_s27 = smov [#allocation7]   ;;  %s2210_s5 = scalar_lea.hbm %s2745_s1, 18432 }
  0x11   : > { %p1916_p9 = pneg %p2477_p8  ;;  %s176_s28 = sshll.u32 %s2401_s27, 4  ;;  %s2492_s28 = int_to_ptr.vmem [resolvable:$true] %s176_s28 }
  0x12   : > { %p2211_p12 = scmp.ne.s32.totalorder %s2745_s1, %s2210_s5  ;;  %p2217_p5 = scmp.lt.u32.totalorder %s2210_s5, %s2745_s1 }
  0x13   : > { %p2488_p11 = pnand %p1916_p9, %p2749_p1 }
  0x15   : > { %p2212_p13 = pneg %p2488_p11 }
  0x17   : > { %p2213_p0 = pnand %p2212_p13, %p2211_p12 }
  0x19   : > { %p2214_p3 = pneg %p2213_p0 }
  0x1b   : > { %p2219_p7 = pnand %p2217_p5, %p2214_p3 }
  0x1d   : > { %2222 = shalt.err (!%p2219_p7)
}
  0x1e   : > { %s2223_s10 = scalar_lea.vmem %s2481_s25, 18432  ;;  %p2231_p2 = scmp.lt.s32.totalorder %s2481_s25, %s2481_s25 }
  0x1f   : > { %p2224_p9 = scmp.ne.s32.totalorder %s2481_s25, %s2223_s10  ;;  %p2232_p12 = scmp.lt.s32.totalorder %s2223_s10, %s2223_s10 }
  0x21   : > { %p2226_p10 = pnand %p2224_p9, %p2212_p13  ;;  %p2233_p0 = por %p2232_p12, %p2231_p2 }
  0x23   : > { %p2227_p1 = pneg %p2226_p10 }
  0x25   : > { %p2234_p6 = pnand %p2233_p0, %p2227_p1 }
  0x27   : > { %2237 = shalt.err (!%p2234_p6)
}
  0x28   : > { %s2402_s11 = smov 128   ;;  %s2403_s12 = smov 8  }
  0x29   : > { %1919 = dma.hbm_to_vmem [thread:$0]  (!%p2488_p11), %s2745_s1, 18432, %s2481_s25, [#allocation6], %s2402_s11, %s2402_s11, %s2403_s12  }
  0x2a   : > { %s2238_s27 = scalar_lea.hbm %s2746_s2, 32 }
  0x2b   : > { %p2239_p2 = scmp.ne.s32.totalorder %s2746_s2, %s2238_s27  ;;  %p2245_p10 = scmp.lt.u32.totalorder %s2238_s27, %s2746_s2 }
  0x2d   : > { %p2241_p1 = pnand %p2239_p2, %p2212_p13 }
  0x2f   : > { %p2242_p6 = pneg %p2241_p1 }
  0x31   : > { %p2247_p3 = pnand %p2245_p10, %p2242_p6 }
  0x33   : > { %2250 = shalt.err (!%p2247_p3)
}
  0x34   : > { %s2251_s25 = scalar_lea.vmem %s2492_s28, 32  ;;  %p2259_p12 = scmp.lt.s32.totalorder %s2492_s28, %s2492_s28 }
  0x35   : > { %p2252_p5 = scmp.ne.s32.totalorder %s2492_s28, %s2251_s25  ;;  %p2260_p0 = scmp.lt.s32.totalorder %s2251_s25, %s2251_s25 }
  0x37   : > { %p2254_p7 = pnand %p2252_p5, %p2212_p13  ;;  %p2261_p2 = por %p2260_p0, %p2259_p12 }
  0x39   : > { %p2255_p9 = pneg %p2254_p7 }
  0x3b   : > { %p2262_p1 = pnand %p2261_p2, %p2255_p9 }
  0x3d   : > { %2265 = shalt.err (!%p2262_p1)
}
  0x3e   : > { %1922 = dma.hbm_to_vmem [thread:$0]  (!%p2488_p11), %s2746_s2, 32, %s2492_s28, [#allocation6]  }
  0x3f   : > { %s2547_s9 = sadd.s32 1, %s2398_s18   ;;  %s32_s26 = sadd.s32 1, %s2394_s17 }
  0x40   : > { %s29_s10 = ssub.s32 %s2398_s18, %s2547_s9  ;;  %p39_p13 = scmp.ne.s32.totalorder %s2394_s17, %s2390_s16 }
  0x41   : > { %p30_p6 = scmp.eq.s32.totalorder %s29_s10, 0  ;;  %p40_p10 = scmp.eq.s32.totalorder %s2398_s18, 0 }
  0x42   : > { %p2756_p3 = scmp.eq.s32.totalorder %s2458_s19, 1  ;;  %p1936_p7 = scmp.lt.s32.totalorder %s2398_s18, 2 }
  0x43   : > { %s2563_s12 = scalar_select %p30_p6, %s2394_s17, %s32_s26  }
  0x44   : > { %p2557_p5 = por %p2756_p3, %p39_p13  ;;  %p41_p9 = por %p40_p10, %p39_p13 }
  0x45   : > { %s187_s13 = sand.u32 1, %s2394_s17   ;;  %s1900_s28 = smul.u32 1152, %s2398_s18 }
  0x46   : > { %s2757_s11 = scalar_select %p2557_p5, 1, 0 }
  0x47   : > { %s1899_s14 = smul.u32 72, %s187_s13  ;;  %p2567_p11 = pnand %p1936_p7, %p41_p9 }
  0x48   : > { %s2574_s29 = scalar_lea.hbm %s2744_s0, %s1900_s28  ;;  %s2578_s6 = scalar_lea.sflag [#allocation3], %s187_s13 }
  0x49   : > { %s191_s30 = scalar_lea.vmem [#allocation2], %s1899_s14  ;;  %s2266_s25 = scalar_lea.hbm %s2574_s29, 1152 }
  0x4a   : > { %s199_s5 = sshll.u32 %s191_s30, 4  ;;  %p2267_p12 = scmp.ne.s32.totalorder %s2574_s29, %s2266_s25  ;;  %s2576_s5 = int_to_ptr.vmem [resolvable:$true] %s199_s5 }
  0x4b   : > { %p2268_p0 = pneg %p2567_p11  ;;  %s2271_s26 = scalar_lea.hbm %s2744_s0, 2304 }
  0x4c   : > { %p2272_p13 = scmp.lt.u32.totalorder %s2574_s29, %s2744_s0  ;;  %p2273_p6 = scmp.lt.u32.totalorder %s2271_s26, %s2266_s25 }
  0x4d   : > { %p2269_p2 = pnand %p2268_p0, %p2267_p12  ;;  %p2275_p3 = scmp.lt.u32.totalorder %s2266_s25, %s2574_s29 }
  0x4e   : > { %p2274_p10 = por %p2273_p6, %p2272_p13 }
  0x4f   : > { %p2270_p1 = pneg %p2269_p2 }
  0x50   : > { %p2276_p7 = por %p2275_p3, %p2274_p10 }
  0x52   : > { %p2277_p9 = pnand %p2276_p7, %p2270_p1 }
  0x54   : > { %2280 = shalt.err (!%p2277_p9)
}
  0x55   : > { %s2281_s13 = scalar_lea.vmem %s2576_s5, 1152  ;;  %s2404_s14 = smov [#allocation2]  }
  0x56   : > { %p2282_p12 = scmp.ne.s32.totalorder %s2576_s5, %s2281_s13  ;;  %s2286_s24 = sshll.u32 %s2404_s14, 4  ;;  %s2287_s24 = int_to_ptr.vmem [resolvable:$false] %s2286_s24 }
  0x57   : > { %s2288_s27 = scalar_lea.vmem %s2287_s24, 2304  ;;  %p2289_p4 = scmp.lt.s32.totalorder %s2576_s5, %s2287_s24 }
  0x58   : > { %p2284_p2 = pnand %p2282_p12, %p2268_p0  ;;  %p2290_p13 = scmp.lt.s32.totalorder %s2288_s27, %s2281_s13 }
  0x5a   : > { %p2285_p5 = pneg %p2284_p2  ;;  %p2291_p6 = por %p2290_p13, %p2289_p4 }
  0x5c   : > { %p2292_p10 = pnand %p2291_p6, %p2285_p5 }
  0x5e   : > { %2295 = shalt.err (!%p2292_p10)
}
  0x5f   : > { %s2405_s30 = smov 576   ;;  %s2406_s25 = smov 36  }
  0x60   : > { %1926 = dma.hbm_to_vmem [thread:$0]  (!%p2567_p11), %s2574_s29, 1152, %s2576_s5, %s2578_s6, %s2405_s30, %s2405_s30, %s2406_s25  }
  0x61   : > { %211 = sbr.rel (%p2477_p8) target bundleno = 585 (0x249), region = 32  ;;  %s2609_s7 = sand.u32 (!%p2477_p8), 1, %s2390_s16  }
  0x62   : > { %s1901_s8 = smul.u32 (!%p2477_p8), 72, %s2609_s7  ;;  %s214_s26 = scalar_lea.sflag (!%p2477_p8), [#allocation3], %s2609_s7 }
  0x63   : > { %p2759_p4 = scmp.ne.s32.totalorder (!%p2477_p8), %s2752_s21, 0 }
  0x64   : > { %s2613_s10 = scalar_lea.vmem (!%p2477_p8), [#allocation2], %s1901_s8 }
  0x68   : > { %2369 = dma.done.wait (%p2759_p4), %s214_s26, 1152  }
  0x69   : > { %2371 = vsyncadd (%p2759_p4), %s214_s26, 4294966144  ;;  %p2760_p5 = scmp.eq.s32.totalorder %s2458_s19, 0 }
  0x6b   : > { %2373 = dma.done.wait (%p2760_p5), [#allocation6], 18464   ;;  %p2761_p8 = pmov %p2760_p5 }
  0x6c   : > { %s1708_s23 = sshll.u32 %s2609_s7, 2  ;;  %v1981_v0 = vld [vmem:[#allocation5 + $0x4] ss:$8 sps:$4 sm:$0xff]   ;;  %v1985_v2 = vld [vmem:[#allocation5] ss:$8 sps:$4 sm:$0xff]   ;;  %s1707_s21 = sshll.u32 %s2609_s7, 4 }
  0x6d   : > { %2375 = vsyncadd (%p2761_p8), [#allocation6], 4294948832  ;;  %v1983_v1 = vld [vmem:[#allocation5 + $0x204] ss:$8 sps:$4 sm:$0xff]   ;;  %1178 = vmatprep.subr.bf16.mxu1 %v1981_v0  ;;  %v1986_v3 = vld [vmem:[#allocation5 + $0x200] ss:$8 sps:$4 sm:$0xff]  }
  0x6e   : > { %1264 = vmatprep.subr.bf16.mxu0 %v1983_v1  ;;  %v1987_v4 = vld [vmem:[#allocation5 + $0x14] ss:$8 sps:$4 sm:$0xff]   ;;  %1179 = vmatpush1.bf16.msra.mxu1 %v1985_v2  ;;  %v1991_v6 = vld [vmem:[#allocation5 + $0x10] ss:$8 sps:$4 sm:$0xff]   ;;  %v1993_v8 = vld [vmem:[#allocation5 + $0x24] ss:$8 sps:$4 sm:$0xff]  }
  0x6f   : > { %1265 = vmatpush1.bf16.msra.mxu0 %v1986_v3  ;;  %v1989_v5 = vld [vmem:[#allocation5 + $0x214] ss:$8 sps:$4 sm:$0xff]   ;;  %1180 = vmatprep.subr.bf16.mxu1 %v1987_v4  ;;  %v1992_v7 = vld [vmem:[#allocation5 + $0x210] ss:$8 sps:$4 sm:$0xff]   ;;  %v1995_v9 = vld [vmem:[#allocation5 + $0x224] ss:$8 sps:$4 sm:$0xff]  }
  0x70   : > { %1266 = vmatprep.subr.bf16.mxu0 %v1989_v5  ;;  %v1997_v10 = vld [vmem:[#allocation5 + $0x20] ss:$8 sps:$4 sm:$0xff]   ;;  %v1999_v12 = vld [vmem:[#allocation5 + $0x34] ss:$8 sps:$4 sm:$0xff]   ;;  %v2003_v14 = vld [vmem:[#allocation5 + $0x30] ss:$8 sps:$4 sm:$0xff]  }
  0x71   : > { %v1998_v11 = vld [vmem:[#allocation5 + $0x220] ss:$8 sps:$4 sm:$0xff]   ;;  %v2001_v13 = vld [vmem:[#allocation5 + $0x234] ss:$8 sps:$4 sm:$0xff]   ;;  %v2004_v15 = vld [vmem:[#allocation5 + $0x230] ss:$8 sps:$4 sm:$0xff]  }
  0x72   : > { %1181 = vmatpush1.bf16.msra.mxu1 %v1991_v6  ;;  %v2005_v16 = vld [vmem:[#allocation5 + $0x44] ss:$8 sps:$4 sm:$0xff]   ;;  %v2009_v18 = vld [vmem:[#allocation5 + $0x40] ss:$8 sps:$4 sm:$0xff]   ;;  %v2011_v20 = vld [vmem:[#allocation5 + $0x54] ss:$8 sps:$4 sm:$0xff]  }
  0x73   : > { %1267 = vmatpush1.bf16.msra.mxu0 %v1992_v7  ;;  %1182 = vmatprep.subr.bf16.mxu1 %v1993_v8  ;;  %v2007_v17 = vld [vmem:[#allocation5 + $0x244] ss:$8 sps:$4 sm:$0xff]   ;;  %v2010_v19 = vld [vmem:[#allocation5 + $0x240] ss:$8 sps:$4 sm:$0xff]   ;;  %v2013_v21 = vld [vmem:[#allocation5 + $0x254] ss:$8 sps:$4 sm:$0xff]  }
  0x74   : > { %1268 = vmatprep.subr.bf16.mxu0 %v1995_v9  ;;  %v2015_v22 = vld [vmem:[#allocation5 + $0x50] ss:$8 sps:$4 sm:$0xff]   ;;  %v2017_v24 = vld [vmem:[#allocation5 + $0x64] ss:$8 sps:$4 sm:$0xff]   ;;  %v2021_v26 = vld [vmem:[#allocation5 + $0x60] ss:$8 sps:$4 sm:$0xff]  }
  0x75   : > { %v2016_v23 = vld [vmem:[#allocation5 + $0x250] ss:$8 sps:$4 sm:$0xff]   ;;  %v2019_v25 = vld [vmem:[#allocation5 + $0x264] ss:$8 sps:$4 sm:$0xff]   ;;  %v2022_v27 = vld [vmem:[#allocation5 + $0x260] ss:$8 sps:$4 sm:$0xff]  }
  0x76   : > { %1183 = vmatpush1.bf16.msra.mxu1 %v1997_v10  ;;  %v2023_v28 = vld [vmem:[#allocation5 + $0x74] ss:$8 sps:$4 sm:$0xff]   ;;  %v2027_v30 = vld [vmem:[#allocation5 + $0x70] ss:$8 sps:$4 sm:$0xff]   ;;  %v2029_v32 = vld [vmem:[#allocation5 + $0x84] ss:$8 sps:$4 sm:$0xff]  }
  0x77   : > { %1269 = vmatpush1.bf16.msra.mxu0 %v1998_v11  ;;  %1184 = vmatprep.subr.bf16.mxu1 %v1999_v12  ;;  %v2025_v29 = vld [vmem:[#allocation5 + $0x274] ss:$8 sps:$4 sm:$0xff]   ;;  %v2028_v31 = vld [vmem:[#allocation5 + $0x270] ss:$8 sps:$4 sm:$0xff]   ;;  %v2031_v33 = vld [vmem:[#allocation5 + $0x284] ss:$8 sps:$4 sm:$0xff]  }
  0x78   : > { %1270 = vmatprep.subr.bf16.mxu0 %v2001_v13  ;;  %v2033_v34 = vld [vmem:[#allocation5 + $0x80] ss:$8 sps:$4 sm:$0xff]   ;;  %v2035_v36 = vld [vmem:[#allocation5 + $0x94] ss:$8 sps:$4 sm:$0xff]   ;;  %v2039_v38 = vld [vmem:[#allocation5 + $0x90] ss:$8 sps:$4 sm:$0xff]  }
  0x79   : > { %v2034_v35 = vld [vmem:[#allocation5 + $0x280] ss:$8 sps:$4 sm:$0xff]   ;;  %v2037_v37 = vld [vmem:[#allocation5 + $0x294] ss:$8 sps:$4 sm:$0xff]   ;;  %v2040_v39 = vld [vmem:[#allocation5 + $0x290] ss:$8 sps:$4 sm:$0xff]  }
  0x7a   : > { %1185 = vmatpush1.bf16.msra.mxu1 %v2003_v14  ;;  %v2041_v40 = vld [vmem:[#allocation5 + $0xa4] ss:$8 sps:$4 sm:$0xff]   ;;  %v2045_v42 = vld [vmem:[#allocation5 + $0xa0] ss:$8 sps:$4 sm:$0xff]   ;;  %v2047_v44 = vld [vmem:[#allocation5 + $0xb4] ss:$8 sps:$4 sm:$0xff]  }
  0x7b   : > { %1271 = vmatpush1.bf16.msra.mxu0 %v2004_v15  ;;  %1186 = vmatprep.subr.bf16.mxu1 %v2005_v16  ;;  %v2043_v41 = vld [vmem:[#allocation5 + $0x2a4] ss:$8 sps:$4 sm:$0xff]   ;;  %v2046_v43 = vld [vmem:[#allocation5 + $0x2a0] ss:$8 sps:$4 sm:$0xff]   ;;  %v2049_v45 = vld [vmem:[#allocation5 + $0x2b4] ss:$8 sps:$4 sm:$0xff]  }
  0x7c   : > { %1272 = vmatprep.subr.bf16.mxu0 %v2007_v17  ;;  %v2051_v46 = vld [vmem:[#allocation5 + $0xb0] ss:$8 sps:$4 sm:$0xff]   ;;  %v2053_v49 = vld [vmem:[#allocation5 + $0xc4] ss:$8 sps:$4 sm:$0xff]   ;;  %v2057_v52 = vld [vmem:[#allocation5 + $0xc0] ss:$8 sps:$4 sm:$0xff]  }
  0x7d   : > { %v2052_v47 = vld [vmem:[#allocation5 + $0x2b0] ss:$8 sps:$4 sm:$0xff]   ;;  %v2055_v50 = vld [vmem:[#allocation5 + $0x2c4] ss:$8 sps:$4 sm:$0xff]   ;;  %v2058_v53 = vld [vmem:[#allocation5 + $0x2c0] ss:$8 sps:$4 sm:$0xff]  }
  0x7e   : > { %1187 = vmatpush1.bf16.msra.mxu1 %v2009_v18  ;;  %v2079_v48 = vld [vmem:[%s2613_s10 + $0x4] ss:$36 sps:$4 sm:$0xff]   ;;  %v2085_v51 = vld [vmem:[%s2613_s10 + $0x14] ss:$36 sps:$4 sm:$0xff]   ;;  %s2644_s20 = scalar_lea.vmem [#allocation8], %s1707_s21  ;;  %s2650_s29 = scalar_lea.vmem [#allocation9], %s1708_s23 }
  0x7f   : > { %1273 = vmatpush1.bf16.msra.mxu0 %v2010_v19  ;;  %1188 = vmatprep.subr.bf16.mxu1 %v2011_v20  ;;  %v2059_v54 = vld [vmem:[#allocation5 + $0xd4] ss:$8 sps:$4 sm:$0xff]   ;;  %v2063_v56 = vld [vmem:[#allocation5 + $0xd0] ss:$8 sps:$4 sm:$0xff]   ;;  %v2065_v58 = vld [vmem:[#allocation5 + $0xe4] ss:$8 sps:$4 sm:$0xff]  }
  0x80   : > { %1274 = vmatprep.subr.bf16.mxu0 %v2013_v21  ;;  %1210 = vmatprep.mubr.bf16.mxu1 %v2079_v48  ;;  %v2061_v55 = vld [vmem:[#allocation5 + $0x2d4] ss:$8 sps:$4 sm:$0xff]   ;;  %v2064_v57 = vld [vmem:[#allocation5 + $0x2d0] ss:$8 sps:$4 sm:$0xff]   ;;  %v2067_v59 = vld [vmem:[#allocation5 + $0x2e4] ss:$8 sps:$4 sm:$0xff]  }
  0x81   : > { %1296 = vmatprep.mubr.bf16.mxu0 %v2085_v51  ;;  %v2069_v60 = vld [vmem:[#allocation5 + $0xe0] ss:$8 sps:$4 sm:$0xff]   ;;  %v2071_v62 = vld [vmem:[#allocation5 + $0xf4] ss:$8 sps:$4 sm:$0xff]   ;;  %v2075_v0 = vld [vmem:[#allocation5 + $0xf0] ss:$8 sps:$4 sm:$0xff]  }
  0x82   : > { %1189 = vmatpush1.bf16.msra.mxu1 %v2015_v22  ;;  %v2070_v61 = vld [vmem:[#allocation5 + $0x2e0] ss:$8 sps:$4 sm:$0xff]   ;;  %v2073_v63 = vld [vmem:[#allocation5 + $0x2f4] ss:$8 sps:$4 sm:$0xff]   ;;  %v2076_v1 = vld [vmem:[#allocation5 + $0x2f0] ss:$8 sps:$4 sm:$0xff]  }
  0x83   : > { %1275 = vmatpush1.bf16.msra.mxu0 %v2016_v23  ;;  %1190 = vmatprep.subr.bf16.mxu1 %v2017_v24  ;;  %v2082_v2 = vld [vmem:[#allocation5 + $0x104] ss:$8 sps:$4 sm:$0xff]   ;;  %v2077_v4 = vld [vmem:[%s2613_s10] ss:$36 sps:$4 sm:$0xff]   ;;  %v2080_v5 = vld [vmem:[#allocation5 + $0x100] ss:$8 sps:$4 sm:$0xff]  }
  0x84   : > { %1276 = vmatprep.subr.bf16.mxu0 %v2019_v25  ;;  %v2088_v3 = vld [vmem:[#allocation5 + $0x304] ss:$8 sps:$4 sm:$0xff]   ;;  %v2086_v7 = vld [vmem:[#allocation5 + $0x300] ss:$8 sps:$4 sm:$0xff]   ;;  %v2091_v8 = vld [vmem:[#allocation5 + $0x114] ss:$8 sps:$4 sm:$0xff]  }
  0x85   : > { %v2083_v6 = vld [vmem:[%s2613_s10 + $0x10] ss:$36 sps:$4 sm:$0xff]   ;;  %v2094_v9 = vld [vmem:[#allocation5 + $0x314] ss:$8 sps:$4 sm:$0xff]   ;;  %v2089_v10 = vld [vmem:[#allocation5 + $0x110] ss:$8 sps:$4 sm:$0xff]  }
  0x86   : > { %1191 = vmatpush1.bf16.msra.mxu1 %v2021_v26  ;;  %v2092_v11 = vld [vmem:[#allocation5 + $0x310] ss:$8 sps:$4 sm:$0xff]   ;;  %v2097_v12 = vld [vmem:[#allocation5 + $0x124] ss:$8 sps:$4 sm:$0xff]   ;;  %v2095_v14 = vld [vmem:[#allocation5 + $0x120] ss:$8 sps:$4 sm:$0xff]  }
  0x87   : > { %1277 = vmatpush1.bf16.msra.mxu0 %v2022_v27  ;;  %1192 = vmatprep.subr.bf16.mxu1 %v2023_v28  ;;  %v2100_v13 = vld [vmem:[#allocation5 + $0x324] ss:$8 sps:$4 sm:$0xff]   ;;  %v2098_v15 = vld [vmem:[#allocation5 + $0x320] ss:$8 sps:$4 sm:$0xff]   ;;  %v2103_v16 = vld [vmem:[#allocation5 + $0x134] ss:$8 sps:$4 sm:$0xff]  }
  0x88   : > { %1278 = vmatprep.subr.bf16.mxu0 %v2025_v29  ;;  %v2106_v17 = vld [vmem:[#allocation5 + $0x334] ss:$8 sps:$4 sm:$0xff]   ;;  %v2101_v18 = vld [vmem:[#allocation5 + $0x130] ss:$8 sps:$4 sm:$0xff]   ;;  %v2109_v20 = vld [vmem:[#allocation5 + $0x144] ss:$8 sps:$4 sm:$0xff]  }
  0x89   : > { %v2104_v19 = vld [vmem:[#allocation5 + $0x330] ss:$8 sps:$4 sm:$0xff]   ;;  %v2112_v21 = vld [vmem:[#allocation5 + $0x344] ss:$8 sps:$4 sm:$0xff]   ;;  %v2107_v22 = vld [vmem:[#allocation5 + $0x140] ss:$8 sps:$4 sm:$0xff]  }
  0x8a   : > { %1193 = vmatpush1.bf16.msra.mxu1 %v2027_v30  ;;  %v2110_v23 = vld [vmem:[#allocation5 + $0x340] ss:$8 sps:$4 sm:$0xff]   ;;  %v2115_v24 = vld [vmem:[#allocation5 + $0x154] ss:$8 sps:$4 sm:$0xff]   ;;  %v2113_v26 = vld [vmem:[#allocation5 + $0x150] ss:$8 sps:$4 sm:$0xff]  }
  0x8b   : > { %1279 = vmatpush1.bf16.msra.mxu0 %v2028_v31  ;;  %1194 = vmatprep.subr.bf16.mxu1 %v2029_v32  ;;  %v2118_v25 = vld [vmem:[#allocation5 + $0x354] ss:$8 sps:$4 sm:$0xff]   ;;  %v2116_v27 = vld [vmem:[#allocation5 + $0x350] ss:$8 sps:$4 sm:$0xff]   ;;  %v2121_v28 = vld [vmem:[#allocation5 + $0x164] ss:$8 sps:$4 sm:$0xff]  }
  0x8c   : > { %1280 = vmatprep.subr.bf16.mxu0 %v2031_v33  ;;  %v2124_v29 = vld [vmem:[#allocation5 + $0x364] ss:$8 sps:$4 sm:$0xff]   ;;  %v2119_v30 = vld [vmem:[#allocation5 + $0x160] ss:$8 sps:$4 sm:$0xff]   ;;  %v2127_v32 = vld [vmem:[#allocation5 + $0x174] ss:$8 sps:$4 sm:$0xff]  }
  0x8d   : > { %v2122_v31 = vld [vmem:[#allocation5 + $0x360] ss:$8 sps:$4 sm:$0xff]   ;;  %v2130_v33 = vld [vmem:[#allocation5 + $0x374] ss:$8 sps:$4 sm:$0xff]   ;;  %p2762_p11 = scmp.eq.s32.totalorder %s2458_s19, 1 }
  0x8e   : > { %1195 = vmatpush1.bf16.msra.mxu1 %v2033_v34  ;;  %v2181_v34 = vld [vmem:[%s2613_s10 + $0xc] ss:$36 sps:$4 sm:$0xff]   ;;  %vm1459_vm0 = vcmask (!%p2762_p11), 1040384  }
  0x8f   : > { %1281 = vmatpush1.bf16.msra.mxu0 %v2034_v35  ;;  %1196 = vmatprep.subr.bf16.mxu1 %v2035_v36  ;;  %v2184_v35 = vld [vmem:[%s2613_s10 + $0x1c] ss:$36 sps:$4 sm:$0xff]   ;;  %v2143_v48 = vld [vmem:[#allocation5 + $0x1a0] ss:$8 sps:$4 sm:$0xff]  }
  0x90   : > { %1282 = vmatprep.subr.bf16.mxu0 %v2037_v37  ;;  %v2125_v36 = vld [vmem:[#allocation5 + $0x170] ss:$8 sps:$4 sm:$0xff]   ;;  %v2154_v51 = vld [vmem:[#allocation5 + $0x3b4] ss:$8 sps:$4 sm:$0xff]  }
  0x91   : > { %v2128_v37 = vld [vmem:[#allocation5 + $0x370] ss:$8 sps:$4 sm:$0xff]  }
  0x92   : > { %1197 = vmatpush1.bf16.msra.mxu1 %v2039_v38  ;;  %v2133_v38 = vld [vmem:[#allocation5 + $0x184] ss:$8 sps:$4 sm:$0xff]  }
  0x93   : > { %1283 = vmatpush1.bf16.msra.mxu0 %v2040_v39  ;;  %1198 = vmatprep.subr.bf16.mxu1 %v2041_v40  ;;  %v2136_v39 = vld [vmem:[#allocation5 + $0x384] ss:$8 sps:$4 sm:$0xff]   ;;  %v2131_v40 = vld [vmem:[#allocation5 + $0x180] ss:$8 sps:$4 sm:$0xff]  }
  0x94   : > { %1284 = vmatprep.subr.bf16.mxu0 %v2043_v41  ;;  %v2134_v41 = vld [vmem:[#allocation5 + $0x380] ss:$8 sps:$4 sm:$0xff]  }
  0x96   : > { %1199 = vmatpush1.bf16.msra.mxu1 %v2045_v42  ;;  %v2139_v42 = vld [vmem:[#allocation5 + $0x194] ss:$8 sps:$4 sm:$0xff]  }
  0x97   : > { %1285 = vmatpush1.bf16.msra.mxu0 %v2046_v43  ;;  %1200 = vmatprep.subr.bf16.mxu1 %v2047_v44  ;;  %v2142_v43 = vld [vmem:[#allocation5 + $0x394] ss:$8 sps:$4 sm:$0xff]   ;;  %v2137_v44 = vld [vmem:[#allocation5 + $0x190] ss:$8 sps:$4 sm:$0xff]  }
  0x98   : > { %1286 = vmatprep.subr.bf16.mxu0 %v2049_v45  ;;  %v2140_v45 = vld [vmem:[#allocation5 + $0x390] ss:$8 sps:$4 sm:$0xff]  }
  0x9a   : > { %1201 = vmatpush1.bf16.msra.mxu1 %v2051_v46  ;;  %v2145_v46 = vld [vmem:[#allocation5 + $0x1a4] ss:$8 sps:$4 sm:$0xff]  }
  0x9b   : > { %1287 = vmatpush1.bf16.msra.mxu0 %v2052_v47  ;;  %1202 = vmatprep.subr.bf16.mxu1 %v2053_v49  ;;  %v2148_v47 = vld [vmem:[#allocation5 + $0x3a4] ss:$8 sps:$4 sm:$0xff]   ;;  %v2146_v49 = vld [vmem:[#allocation5 + $0x3a0] ss:$8 sps:$4 sm:$0xff]  }
  0x9c   : > { %1288 = vmatprep.subr.bf16.mxu0 %v2055_v50  ;;  %v2151_v50 = vld [vmem:[#allocation5 + $0x1b4] ss:$8 sps:$4 sm:$0xff]  }
  0x9e   : > { %1203 = vmatpush1.bf16.msra.mxu1 %v2057_v52  ;;  %v2149_v52 = vld [vmem:[#allocation5 + $0x1b0] ss:$8 sps:$4 sm:$0xff]  }
  0x9f   : > { %1289 = vmatpush1.bf16.msra.mxu0 %v2058_v53  ;;  %1204 = vmatprep.subr.bf16.mxu1 %v2059_v54  ;;  %v2152_v53 = vld [vmem:[#allocation5 + $0x3b0] ss:$8 sps:$4 sm:$0xff]   ;;  %v2157_v54 = vld [vmem:[#allocation5 + $0x1c4] ss:$8 sps:$4 sm:$0xff]  }
  0xa0   : > { %1290 = vmatprep.subr.bf16.mxu0 %v2061_v55  ;;  %v2160_v55 = vld [vmem:[#allocation5 + $0x3c4] ss:$8 sps:$4 sm:$0xff]  }
  0xa2   : > { %1205 = vmatpush1.bf16.msra.mxu1 %v2063_v56  ;;  %v2155_v56 = vld [vmem:[#allocation5 + $0x1c0] ss:$8 sps:$4 sm:$0xff]  }
  0xa3   : > { %1291 = vmatpush1.bf16.msra.mxu0 %v2064_v57  ;;  %1206 = vmatprep.subr.bf16.mxu1 %v2065_v58  ;;  %v2158_v57 = vld [vmem:[#allocation5 + $0x3c0] ss:$8 sps:$4 sm:$0xff]   ;;  %v2163_v58 = vld [vmem:[#allocation5 + $0x1d4] ss:$8 sps:$4 sm:$0xff]  }
  0xa4   : > { %1292 = vmatprep.subr.bf16.mxu0 %v2067_v59  ;;  %v2166_v59 = vld [vmem:[#allocation5 + $0x3d4] ss:$8 sps:$4 sm:$0xff]  }
  0xa6   : > { %1207 = vmatpush1.bf16.msra.mxu1 %v2069_v60  ;;  %v2161_v60 = vld [vmem:[#allocation5 + $0x1d0] ss:$8 sps:$4 sm:$0xff]  }
  0xa7   : > { %1293 = vmatpush1.bf16.msra.mxu0 %v2070_v61  ;;  %1208 = vmatprep.subr.bf16.mxu1 %v2071_v62  ;;  %v2164_v61 = vld [vmem:[#allocation5 + $0x3d0] ss:$8 sps:$4 sm:$0xff]   ;;  %v2169_v62 = vld [vmem:[#allocation5 + $0x1e4] ss:$8 sps:$4 sm:$0xff]  }
  0xa8   : > { %1294 = vmatprep.subr.bf16.mxu0 %v2073_v63  ;;  %v2172_v63 = vld [vmem:[#allocation5 + $0x3e4] ss:$8 sps:$4 sm:$0xff]  }
  0xaa   : > { %1209 = vmatpush1.bf16.msra.mxu1 %v2075_v0  ;;  %v2167_v0 = vld [vmem:[#allocation5 + $0x1e0] ss:$8 sps:$4 sm:$0xff]  }
  0xab   : > { %1295 = vmatpush1.bf16.msra.mxu0 %v2076_v1  ;;  %1221 = vmatprep.subr.bf16.mxu1 %v2082_v2  ;;  %v2170_v1 = vld [vmem:[#allocation5 + $0x3e0] ss:$8 sps:$4 sm:$0xff]   ;;  %v2175_v2 = vld [vmem:[#allocation5 + $0x1f4] ss:$8 sps:$4 sm:$0xff]  }
  0xac   : > { %1307 = vmatprep.subr.bf16.mxu0 %v2088_v3  ;;  %v2178_v3 = vld [vmem:[#allocation5 + $0x3f4] ss:$8 sps:$4 sm:$0xff]  }
  0xad   : > { %1211 = vmatmul.mubr.bf16.vlgmr.msra.gmra.mrb[0].mxu1 %v2077_v4  ;;  %v2173_v4 = vld [vmem:[#allocation5 + $0x1f0] ss:$8 sps:$4 sm:$0xff]  }
  0xae   : > { %1297 = vmatmul.mubr.bf16.vlgmr.msra.gmra.mrb[0].mxu0 %v2083_v6  ;;  %1222 = vmatpush1.bf16.msra.mxu1 %v2080_v5  ;;  %v2176_v5 = vld [vmem:[#allocation5 + $0x3f0] ss:$8 sps:$4 sm:$0xff]   ;;  %v2187_v6 = vld [vmem:[#allocation5 + $0x404] ss:$8 sps:$4 sm:$0xff]  }
  0xaf   : > { %1308 = vmatpush1.bf16.msra.mxu0 %v2086_v7  ;;  %1223 = vmatprep.subr.bf16.mxu1 %v2091_v8  ;;  %v2179_v7 = vld [vmem:[%s2613_s10 + $0x8] ss:$36 sps:$4 sm:$0xff]   ;;  %v2182_v8 = vld [vmem:[%s2613_s10 + $0x18] ss:$36 sps:$4 sm:$0xff]  }
  0xb0   : > { %1309 = vmatprep.subr.bf16.mxu0 %v2094_v9  ;;  %1253 = vmatprep.mubr.bf16.mxu1 %v2181_v34  ;;  %v2185_v9 = vld [vmem:[#allocation5 + $0x400] ss:$8 sps:$4 sm:$0xff]  }
  0xb1   : > { %1339 = vmatprep.mubr.bf16.mxu0 %v2184_v35 }
  0xb2   : > { %1224 = vmatpush1.bf16.msra.mxu1 %v2089_v10  ;;  %v2190_v10 = vld [vmem:[#allocation5 + $0x414] ss:$8 sps:$4 sm:$0xff]  }
  0xb3   : > { %1310 = vmatpush1.bf16.msra.mxu0 %v2092_v11  ;;  %1225 = vmatprep.subr.bf16.mxu1 %v2097_v12  ;;  %v2188_v11 = vld [vmem:[#allocation5 + $0x410] ss:$8 sps:$4 sm:$0xff]   ;;  %v2407_v12 = vmov 0  }
  0xb4   : > { %1311 = vmatprep.subr.bf16.mxu0 %v2100_v13  ;;  %v2193_v13 = vld [vmem:[#allocation5 + $0x424] ss:$8 sps:$4 sm:$0xff]  }
  0xb6   : > { %1226 = vmatpush1.bf16.msra.mxu1 %v2095_v14  ;;  %v2191_v14 = vld [vmem:[#allocation5 + $0x420] ss:$8 sps:$4 sm:$0xff]  }
  0xb7   : > { %1312 = vmatpush1.bf16.msra.mxu0 %v2098_v15  ;;  %1227 = vmatprep.subr.bf16.mxu1 %v2103_v16  ;;  %v2196_v15 = vld [vmem:[#allocation5 + $0x434] ss:$8 sps:$4 sm:$0xff]   ;;  %v2194_v16 = vld [vmem:[#allocation5 + $0x430] ss:$8 sps:$4 sm:$0xff]  }
  0xb8   : > { %1313 = vmatprep.subr.bf16.mxu0 %v2106_v17  ;;  %v2199_v17 = vld [vmem:[#allocation5 + $0x444] ss:$8 sps:$4 sm:$0xff]  }
  0xba   : > { %1228 = vmatpush1.bf16.msra.mxu1 %v2101_v18  ;;  %v2197_v18 = vld [vmem:[#allocation5 + $0x440] ss:$8 sps:$4 sm:$0xff]  }
  0xbb   : > { %1314 = vmatpush1.bf16.msra.mxu0 %v2104_v19  ;;  %1229 = vmatprep.subr.bf16.mxu1 %v2109_v20  ;;  %v2202_v19 = vld [vmem:[#allocation5 + $0x454] ss:$8 sps:$4 sm:$0xff]   ;;  %v2200_v20 = vld [vmem:[#allocation5 + $0x450] ss:$8 sps:$4 sm:$0xff]  }
  0xbc   : > { %1315 = vmatprep.subr.bf16.mxu0 %v2112_v21  ;;  %v2205_v21 = vld [vmem:[#allocation5 + $0x464] ss:$8 sps:$4 sm:$0xff]  }
  0xbe   : > { %1230 = vmatpush1.bf16.msra.mxu1 %v2107_v22  ;;  %v2203_v22 = vld [vmem:[#allocation5 + $0x460] ss:$8 sps:$4 sm:$0xff]  }
  0xbf   : > { %1316 = vmatpush1.bf16.msra.mxu0 %v2110_v23  ;;  %1231 = vmatprep.subr.bf16.mxu1 %v2115_v24  ;;  %v2208_v23 = vld [vmem:[#allocation5 + $0x474] ss:$8 sps:$4 sm:$0xff]   ;;  %v2206_v24 = vld [vmem:[#allocation5 + $0x470] ss:$8 sps:$4 sm:$0xff]  }
  0xc0   : > { %1317 = vmatprep.subr.bf16.mxu0 %v2118_v25  ;;  %v2209_v25 = vld [vmem:[%s2613_s10 + $0x20] ss:$36 sps:$4 sm:$0xff]  }
  0xc2   : > { %1232 = vmatpush1.bf16.msra.mxu1 %v2113_v26 }
  0xc3   : > { %1318 = vmatpush1.bf16.msra.mxu0 %v2116_v27  ;;  %1233 = vmatprep.subr.bf16.mxu1 %v2121_v28 }
  0xc4   : > { %1319 = vmatprep.subr.bf16.mxu0 %v2124_v29 }
  0xc6   : > { %1234 = vmatpush1.bf16.msra.mxu1 %v2119_v30  ;;  %v1395_v30 = vlaneseq }
  0xc7   : > { %1320 = vmatpush1.bf16.msra.mxu0 %v2122_v31  ;;  %1235 = vmatprep.subr.bf16.mxu1 %v2127_v32 }
  0xc8   : > { %1321 = vmatprep.subr.bf16.mxu0 %v2130_v33  ;;  %v2633_v31 = vshrl.u32 %v1395_v30, 7  ;;  %v1393_v33 = vld [vmem:[#allocation7] sm:$0x3] }
  0xca   : > { %1236 = vmatpush1.bf16.msra.mxu1 %v2125_v36  ;;  %v1397_v32 = vsub.s32 0, %v2633_v31  ;;  %v1401_v34 = vsub.s32 1, %v2633_v31 }
  0xcb   : > { %1322 = vmatpush1.bf16.msra.mxu0 %v2128_v37  ;;  %1237 = vmatprep.subr.bf16.mxu1 %v2133_v38 }
  0xcc   : > { %1323 = vmatprep.subr.bf16.mxu0 %v2136_v39  ;;  %v1398_v35 = vrot.slane %v1393_v33, %v1397_v32  ;;  %v1402_v37 = vrot.slane %v1393_v33, %v1401_v34 }
  0xce   : > { %1238 = vmatpush1.bf16.msra.mxu1 %v2131_v40 }
  0xcf   : > { %1324 = vmatpush1.bf16.msra.mxu0 %v2134_v41  ;;  %1239 = vmatprep.subr.bf16.mxu1 %v2139_v42 }
  0xd0   : > { %1325 = vmatprep.subr.bf16.mxu0 %v2142_v43 }
  0xd2   : > { %1240 = vmatpush1.bf16.msra.mxu1 %v2137_v44 }
  0xd3   : > { %1326 = vmatpush1.bf16.msra.mxu0 %v2140_v45  ;;  %1241 = vmatprep.subr.bf16.mxu1 %v2145_v46 }
  0xd4   : > { %1327 = vmatprep.subr.bf16.mxu0 %v2148_v47 }
  0xd6   : > { %1242 = vmatpush1.bf16.msra.mxu1 %v2143_v48 }
  0xd7   : > { %1328 = vmatpush1.bf16.msra.mxu0 %v2146_v49  ;;  %1243 = vmatprep.subr.bf16.mxu1 %v2151_v50 }
  0xd8   : > { %1329 = vmatprep.subr.bf16.mxu0 %v2154_v51 }
  0xda   : > { %1244 = vmatpush1.bf16.msra.mxu1 %v2149_v52 }
  0xdb   : > { %1330 = vmatpush1.bf16.msra.mxu0 %v2152_v53  ;;  %1245 = vmatprep.subr.bf16.mxu1 %v2157_v54 }
  0xdc   : > { %1331 = vmatprep.subr.bf16.mxu0 %v2160_v55 }
  0xde   : > { %1246 = vmatpush1.bf16.msra.mxu1 %v2155_v56 }
  0xdf   : > { %1332 = vmatpush1.bf16.msra.mxu0 %v2158_v57  ;;  %1247 = vmatprep.subr.bf16.mxu1 %v2163_v58 }
  0xe0   : > { %1333 = vmatprep.subr.bf16.mxu0 %v2166_v59 }
  0xe2   : > { %1248 = vmatpush1.bf16.msra.mxu1 %v2161_v60 }
  0xe3   : > { %1334 = vmatpush1.bf16.msra.mxu0 %v2164_v61  ;;  %1249 = vmatprep.subr.bf16.mxu1 %v2169_v62 }
  0xe4   : > { %1335 = vmatprep.subr.bf16.mxu0 %v2172_v63 }
  0xe6   : > { %1250 = vmatpush1.bf16.msra.mxu1 %v2167_v0 }
  0xe7   : > { %1336 = vmatpush1.bf16.msra.mxu0 %v2170_v1  ;;  %1251 = vmatprep.subr.bf16.mxu1 %v2175_v2 }
  0xe8   : > { %1337 = vmatprep.subr.bf16.mxu0 %v2178_v3 }
  0xea   : > { %1252 = vmatpush1.bf16.msra.mxu1 %v2173_v4 }
  0xeb   : > { %1338 = vmatpush1.bf16.msra.mxu0 %v2176_v5 }
  0xec   : > { %1350 = vmatprep.subr.bf16.mxu0 %v2187_v6 }
  0xed   : > { %1254 = vmatmul.mubr.bf16.vlgmr.msra.gmra.mrb[0].mxu1 %v2179_v7 }
  0xee   : > { %1340 = vmatmul.mubr.bf16.vlgmr.msra.gmra.mrb[0].mxu0 %v2182_v8 }
  0xef   : > { %1351 = vmatpush1.bf16.msra.mxu0 %v2185_v9  ;;  %1382 = vmatprep.mubr.bf16.mxu0 %v2407_v12 }
  0xf0   : > { %1352 = vmatprep.subr.bf16.mxu0 %v2190_v10 }
  0xf3   : > { %1353 = vmatpush1.bf16.msra.mxu0 %v2188_v11 }
  0xf4   : > { %1354 = vmatprep.subr.bf16.mxu0 %v2193_v13 }
  0xf7   : > { %1355 = vmatpush1.bf16.msra.mxu0 %v2191_v14 }
  0xf8   : > { %1356 = vmatprep.subr.bf16.mxu0 %v2196_v15 }
  0xfb   : > { %1357 = vmatpush1.bf16.msra.mxu0 %v2194_v16 }
  0xfc   : > { %1358 = vmatprep.subr.bf16.mxu0 %v2199_v17 }
  0xff   : > { %1359 = vmatpush1.bf16.msra.mxu0 %v2197_v18 }
 0x100   : > { %1360 = vmatprep.subr.bf16.mxu0 %v2202_v19 }
 0x103   : > { %1361 = vmatpush1.bf16.msra.mxu0 %v2200_v20 }
 0x104   : > { %1362 = vmatprep.subr.bf16.mxu0 %v2205_v21 }
 0x107   : > { %1363 = vmatpush1.bf16.msra.mxu0 %v2203_v22 }
 0x108   : > { %1364 = vmatprep.subr.bf16.mxu0 %v2208_v23 }
 0x10b   : > { %1365 = vmatpush1.bf16.msra.mxu0 %v2206_v24 }
 0x10e   : > { %1383 = vmatmul.mubr.bf16.vlgmr.msra.gmra.mrb[0].mxu0 %v2209_v25 }
 0x1c0   : > { %v1255_v26 = vpop.f32.mrb[0].mxu1 }
 0x1c1   : > { %v1257_v27 = vpop.f32.mrb[1].mxu1 }
 0x1c2   : > { %v1259_v28 = vpop.f32.mrb[2].mxu1 }
 0x1c3   : > { %v1261_v29 = vpop.f32.mrb[3].mxu1 }
 0x1e1   : > { %v1384_v36 = vpop.f32.mrb[0].mxu0 }
 0x1e2   : > { %v2637_v38 = vadd.f32 %v1384_v36, %v1255_v26  ;;  %v1386_v39 = vpop.f32.mrb[1].mxu0 }
 0x1e3   : > { %v2640_v40 = vadd.f32 %v1386_v39, %v1257_v27  ;;  %v1388_v41 = vpop.f32.mrb[2].mxu0 }
 0x1e4   : > { %v1405_v42 = vadd.f32 %v2637_v38, %v1398_v35  ;;  %v1885_v43 = vadd.f32 %v1388_v41, %v1259_v28  ;;  %v1390_v44 = vpop.f32.mrb[3].mxu0  ;;  %v1441_v53 = vmul.f32 (!%p2762_p11), %v2637_v38, %v2637_v38 }
 0x1e5   : > { %v1406_v45 = vadd.f32 %v2640_v40, %v1402_v37  ;;  %v1886_v46 = vadd.f32 %v1390_v44, %v1261_v29  ;;  %1426 = sbr.rel (%p2762_p11) target bundleno = 507 (0x1fb), region = 48  ;;  %v1442_v54 = vmul.f32 (!%p2762_p11), %v2640_v40, %v2640_v40 }
 0x1e6   : > { %v1407_v47 = vadd.f32 %v1885_v43, %v1398_v35  ;;  %v1427_v51 = vadd.f32 (!%p2762_p11), %v1885_v43, %v2637_v38  ;;  %v1443_v55 = vmul.f32 (!%p2762_p11), %v1885_v43, %v1885_v43 }
 0x1e7   : > { %v1878_v48 = vpack.c.bf16 %v1406_v45, %v1405_v42  ;;  %v1408_v49 = vadd.f32 %v1886_v46, %v1402_v37  ;;  %v1434_v52 = vadd.f32 (!%p2762_p11), %v1886_v46, %v2640_v40  ;;  %v1444_v56 = vmul.f32 (!%p2762_p11), %v1886_v46, %v1886_v46 }
 0x1e8   : > { %v1428_v57 = vrot.slane (!%p2762_p11), %v1427_v51, 4  ;;  %v1445_v59 = vadd.f32 (!%p2762_p11), %v1443_v55, %v1441_v53 }
 0x1e9   : > { %1421 = vst [vmem:[%s2644_s20] sm:$0xff] %v1878_v48  ;;  %v1879_v50 = vpack.c.bf16 %v1408_v49, %v1407_v47  ;;  %v1435_v58 = vrot.slane (!%p2762_p11), %v1434_v52, 4  ;;  %v1452_v60 = vadd.f32 (!%p2762_p11), %v1444_v56, %v1442_v54 }
 0x1ea   : > { %v1429_v61 = vadd.f32 (!%p2762_p11), %v1428_v57, %v1427_v51  ;;  %v1446_v63 = vrot.slane (!%p2762_p11), %v1445_v59, 4 }
 0x1eb   : > { %1422 = vst [vmem:[%s2644_s20 + $0x8] sm:$0xff] %v1879_v50  ;;  %v1436_v62 = vadd.f32 (!%p2762_p11), %v1435_v58, %v1434_v52  ;;  %v1453_v0 = vrot.slane (!%p2762_p11), %v1452_v60, 4 }
 0x1ec   : > { %v1430_v1 = vrot.slane %v1429_v61, 2  ;;  %v1447_v3 = vadd.f32 %v1446_v63, %v1445_v59 }
 0x1ed   : > { %v1437_v2 = vrot.slane %v1436_v62, 2  ;;  %v1454_v4 = vadd.f32 %v1453_v0, %v1452_v60 }
 0x1ee   : > { %v1431_v5 = vadd.f32 %v1430_v1, %v1429_v61  ;;  %v1448_v7 = vrot.slane %v1447_v3, 2 }
 0x1ef   : > { %v1438_v6 = vadd.f32 %v1437_v2, %v1436_v62  ;;  %v1455_v8 = vrot.slane %v1454_v4, 2 }
 0x1f0   : > { %v1432_v9 = vrot.slane %v1431_v5, 1  ;;  %v1449_v11 = vadd.f32 %v1448_v7, %v1447_v3 }
 0x1f1   : > { %v1439_v10 = vrot.slane %v1438_v6, 1  ;;  %v1456_v12 = vadd.f32 %v1455_v8, %v1454_v4 }
 0x1f2   : > { %v1433_v13 = vadd.f32 %v1432_v9, %v1431_v5  ;;  %v1450_v15 = vrot.slane %v1449_v11, 1 }
 0x1f3   : > { %v1440_v14 = vadd.f32 %v1439_v10, %v1438_v6  ;;  %v1457_v16 = vrot.slane %v1456_v12, 1 }
 0x1f4   : > { %v1451_v17 = vadd.f32 %v1450_v15, %v1449_v11 }
 0x1f5   : > { %v1458_v18 = vadd.f32 %v1457_v16, %v1456_v12 }
 0x1f6   : > { %v1460_v19 = vsel %vm1459_vm0, %v1433_v13, %v1451_v17 }
 0x1f7   : > { %v1461_v20 = vsel %vm1459_vm0, %v1440_v14, %v1458_v18 }
 0x1f8   : > { %v1464_v21 = vcombine.low %v1460_v19, %v1461_v20 }
 0x1fa   : > { %1865 = vst.sshfl [vmem:[%s2650_s29] sm:$0x33 pattern:$0x76325410] %v1464_v21 }
 0x1fb PF: > { %p1866_p0 = scmp.ne.s32.totalorder %s2458_s19, 1 }
 0x1fc   : > { %v1480_v22 = vadd.s32 (!%p1866_p0), 8, %v2633_v31  ;;  %s1867_s5 = sshll.u32 (!%p1866_p0), %s2458_s19, 4  ;;  %vm1523_vm3 = vcmask (!%p1866_p0), 1040384  }
 0x1fd   : > { %1477 = sbr.rel (%p1866_p0) target bundleno = 535 (0x217), region = 52  ;;  %v1482_v23 = vstv (!%p1866_p0), %s1867_s5 }
 0x1fe   : > { %v1483_v24 = vadd.s32 (!%p1866_p0), %v1482_v23, %v2633_v31  ;;  %v1484_v25 = vadd.s32 (!%p1866_p0), %v1482_v23, %v1480_v22 }
 0x200   : > { %vm1485_vm1 = vcmp.lt.s32.totalorder (!%p1866_p0), %v1483_v24, 18  ;;  %vm1486_vm2 = vcmp.lt.s32.totalorder (!%p1866_p0), %v1484_v25, 18 }
 0x201   : > { %v1487_v26 = vsel (!%p1866_p0), %vm1485_vm1, %v2637_v38, 0.0  ;;  %v1488_v27 = vsel (!%p1866_p0), %vm1485_vm1, %v2640_v40, 0.0  ;;  %v1489_v28 = vsel (!%p1866_p0), %vm1486_vm2, %v1885_v43, 0.0  ;;  %v1490_v29 = vsel (!%p1866_p0), %vm1486_vm2, %v1886_v46, 0.0 }
 0x202   : > { %v1491_v30 = vadd.f32 (!%p1866_p0), %v1489_v28, %v1487_v26  ;;  %v1498_v32 = vadd.f32 (!%p1866_p0), %v1490_v29, %v1488_v27  ;;  %v1505_v33 = vmul.f32 (!%p1866_p0), %v1487_v26, %v1487_v26  ;;  %v1506_v34 = vmul.f32 (!%p1866_p0), %v1488_v27, %v1488_v27 }
 0x203   : > { %v1507_v35 = vmul.f32 (!%p1866_p0), %v1489_v28, %v1489_v28  ;;  %v1508_v36 = vmul.f32 (!%p1866_p0), %v1490_v29, %v1490_v29 }
 0x204   : > { %v1492_v37 = vrot.slane %v1491_v30, 4  ;;  %v1499_v39 = vrot.slane %v1498_v32, 4 }
 0x205   : > { %v1509_v41 = vadd.f32 %v1507_v35, %v1505_v33  ;;  %v1516_v42 = vadd.f32 %v1508_v36, %v1506_v34 }
 0x206   : > { %v1493_v31 = vadd.f32 %v1492_v37, %v1491_v30  ;;  %v1500_v44 = vadd.f32 %v1499_v39, %v1498_v32 }
 0x207   : > { %v1510_v45 = vrot.slane %v1509_v41, 4  ;;  %v1517_v47 = vrot.slane %v1516_v42, 4 }
 0x208   : > { %v1494_v48 = vrot.slane %v1493_v31, 2  ;;  %v1501_v38 = vrot.slane %v1500_v44, 2 }
 0x209   : > { %v1511_v49 = vadd.f32 %v1510_v45, %v1509_v41  ;;  %v1518_v40 = vadd.f32 %v1517_v47, %v1516_v42 }
 0x20a   : > { %v1495_v43 = vadd.f32 %v1494_v48, %v1493_v31  ;;  %v1502_v46 = vadd.f32 %v1501_v38, %v1500_v44 }
 0x20b   : > { %v1512_v50 = vrot.slane %v1511_v49, 2  ;;  %v1519_v51 = vrot.slane %v1518_v40, 2 }
 0x20c   : > { %v1496_v52 = vrot.slane %v1495_v43, 1  ;;  %v1503_v53 = vrot.slane %v1502_v46, 1 }
 0x20d   : > { %v1513_v54 = vadd.f32 %v1512_v50, %v1511_v49  ;;  %v1520_v55 = vadd.f32 %v1519_v51, %v1518_v40 }
 0x20e   : > { %v1497_v56 = vadd.f32 %v1496_v52, %v1495_v43  ;;  %v1504_v57 = vadd.f32 %v1503_v53, %v1502_v46 }
 0x20f   : > { %v1514_v58 = vrot.slane %v1513_v54, 1  ;;  %v1521_v59 = vrot.slane %v1520_v55, 1 }
 0x211   : > { %v1515_v60 = vadd.f32 %v1514_v58, %v1513_v54  ;;  %v1522_v61 = vadd.f32 %v1521_v59, %v1520_v55 }
 0x213   : > { %v1524_v62 = vsel %vm1523_vm3, %v1497_v56, %v1515_v60  ;;  %v1525_v63 = vsel %vm1523_vm3, %v1504_v57, %v1522_v61 }
 0x214   : > { %v1528_v0 = vcombine.low %v1524_v62, %v1525_v63 }
 0x216   : > { %1868 = vst.sshfl [vmem:[%s2650_s29] sm:$0x33 pattern:$0x76325410] %v1528_v0 }
 0x217 PF: > { %s1881_s6 = sshll.u32 %s2458_s19, 8  ;;  %s1558_s24 = sshll.u32 %s2644_s20, 4  ;;  %s2675_s24 = int_to_ptr.vmem [resolvable:$true] %s1558_s24 }
 0x218   : > { %s2672_s14 = scalar_lea.hbm %s2747_s3, %s1881_s6  ;;  %s1539_s27 = scalar_lea.sflag [#allocation4], %s2609_s7 }
 0x219   : > { %s2296_s30 = scalar_lea.vmem %s2675_s24, 256  ;;  %p2763_p3 = scmp.ne.s32.totalorder %s2757_s11, 0 }
 0x21a   : > { %p2297_p1 = scmp.ne.s32.totalorder %s2675_s24, %s2296_s30  ;;  %s2408_s25 = smov [#allocation8]  }
 0x21b   : > { %s2300_s8 = sshll.u32 %s2408_s25, 4  ;;  %s2301_s8 = int_to_ptr.vmem [resolvable:$false] %s2300_s8 }
 0x21c   : > { %p2298_p7 = pnand %p2297_p1, %p2763_p3  ;;  %s2302_s26 = scalar_lea.vmem %s2301_s8, 512 }
 0x21d   : > { %p2303_p12 = scmp.lt.s32.totalorder %s2675_s24, %s2301_s8  ;;  %p2304_p2 = scmp.lt.s32.totalorder %s2302_s26, %s2296_s30 }
 0x21e   : > { %p2299_p9 = pneg %p2298_p7 }
 0x21f   : > { %p2305_p13 = por %p2304_p2, %p2303_p12 }
 0x221   : > { %p2306_p6 = pnand %p2305_p13, %p2299_p9 }
 0x223   : > { %2309 = shalt.err (!%p2306_p6)
}
 0x224   : > { %s2310_s10 = scalar_lea.hbm %s2672_s14, 256  ;;  %s2314_s20 = scalar_lea.hbm %s2747_s3, 512 }
 0x225   : > { %p2311_p10 = scmp.ne.s32.totalorder %s2672_s14, %s2310_s10  ;;  %p2315_p8 = scmp.lt.u32.totalorder %s2672_s14, %s2747_s3 }
 0x226   : > { %p2316_p11 = scmp.lt.u32.totalorder %s2314_s20, %s2310_s10  ;;  %p2318_p1 = scmp.lt.u32.totalorder %s2310_s10, %s2672_s14 }
 0x227   : > { %p2312_p4 = pnand %p2311_p10, %p2763_p3 }
 0x228   : > { %p2317_p0 = por %p2316_p11, %p2315_p8 }
 0x229   : > { %p2313_p5 = pneg %p2312_p4 }
 0x22a   : > { %p2319_p7 = por %p2318_p1, %p2317_p0 }
 0x22c   : > { %p2320_p9 = pnand %p2319_p7, %p2313_p5 }
 0x22e   : > { %2323 = shalt.err (!%p2320_p9)
}
 0x22f   : > { %s2409_s28 = smov 128   ;;  %s2410_s13 = smov 8  }
 0x230   : > { %1912 = dma.vmem_to_hbm [thread:$0]  (%p2763_p3), %s2675_s24, 256, %s2672_s14, %s1539_s27, %s2409_s28, %s2409_s28, %s2410_s13  }
 0x231   : > { %s1882_s30 = sshll.u32 %s2458_s19, 6  ;;  %s1575_s25 = sshll.u32 %s2650_s29, 4  ;;  %s1576_s25 = int_to_ptr.vmem [resolvable:$true] %s1575_s25 }
 0x232   : > { %s2706_s10 = scalar_lea.hbm %s2748_s4, %s1882_s30  ;;  %s1544_s23 = scalar_lea.sflag [#allocation10], %s2609_s7 }
 0x233   : > { %s2324_s21 = scalar_lea.vmem %s1576_s25, 64  ;;  %s2411_s20 = smov [#allocation9]  }
 0x234   : > { %p2325_p12 = scmp.ne.s32.totalorder %s1576_s25, %s2324_s21  ;;  %s2328_s5 = sshll.u32 %s2411_s20, 4  ;;  %s2329_s5 = int_to_ptr.vmem [resolvable:$false] %s2328_s5 }
 0x235   : > { %s2330_s6 = scalar_lea.vmem %s2329_s5, 128  ;;  %p2331_p6 = scmp.lt.s32.totalorder %s1576_s25, %s2329_s5 }
 0x236   : > { %p2326_p2 = pnand %p2325_p12, %p2763_p3  ;;  %p2332_p10 = scmp.lt.s32.totalorder %s2330_s6, %s2324_s21 }
 0x238   : > { %p2327_p13 = pneg %p2326_p2  ;;  %p2333_p4 = por %p2332_p10, %p2331_p6 }
 0x23a   : > { %p2334_p5 = pnand %p2333_p4, %p2327_p13 }
 0x23c   : > { %2337 = shalt.err (!%p2334_p5)
}
 0x23d   : > { %s2338_s19 = scalar_lea.hbm %s2706_s10, 64  ;;  %s2342_s14 = scalar_lea.hbm %s2748_s4, 128 }
 0x23e   : > { %p2339_p8 = scmp.ne.s32.totalorder %s2706_s10, %s2338_s19  ;;  %p2343_p1 = scmp.lt.u32.totalorder %s2706_s10, %s2748_s4 }
 0x23f   : > { %p2344_p7 = scmp.lt.u32.totalorder %s2342_s14, %s2338_s19  ;;  %p2346_p12 = scmp.lt.u32.totalorder %s2338_s19, %s2706_s10 }
 0x240   : > { %p2340_p11 = pnand %p2339_p8, %p2763_p3 }
 0x241   : > { %p2345_p9 = por %p2344_p7, %p2343_p1 }
 0x242   : > { %p2341_p0 = pneg %p2340_p11 }
 0x243   : > { %p2347_p2 = por %p2346_p12, %p2345_p9 }
 0x245   : > { %p2348_p13 = pnand %p2347_p2, %p2341_p0 }
 0x247   : > { %2351 = shalt.err (!%p2348_p13)
}
 0x248   : > { %1913 = dma.vmem_to_hbm [thread:$0]  (%p2763_p3), %s1576_s25, 64, %s2706_s10, %s1544_s23  }
 0x249 PF: > { %s1587_s28 = sand.u32 1, %s2386_s15   ;;  %p2764_p6 = scmp.ne.s32.totalorder %s2753_s22, 0 }
 0x24a   : > { %p2765_p10 = scmp.ge.s32.totalorder %s2398_s18, 2  ;;  %s1588_s13 = scalar_lea.sflag [#allocation4], %s1587_s28 }
 0x24c   : > { %p1928_p4 = pnand %p2765_p10, %p2764_p6 }
 0x24e   : > { %2377 = dma.done.wait (!%p1928_p4), %s1588_s13, 256  }
 0x24f   : > { %2379 = vsyncadd (!%p1928_p4), %s1588_s13, 4294967040  ;;  %s1597_s30 = scalar_lea.sflag [#allocation10], %s1587_s28 }
 0x250   : > { %2381 = dma.done.wait (!%p1928_p4), %s1597_s30, 64  }
 0x251   : > { %2383 = vsyncadd (!%p1928_p4), %s1597_s30, 4294967232  ;;  %p22_p3 = scmp.ge.s32.totalorder %s2547_s9, 4   ;;  %s2766_s15 = smov %s2390_s16 }
 0x252   : > { %s2767_s16 = smov %s2394_s17  ;;  %s2768_s17 = smov %s2563_s12 }
 0x253   : > { %s2769_s18 = smov %s2547_s9  ;;  %24 = sbr.rel (!%p22_p3) target bundleno = 8 (0x8), region = 110 }
 0x25a   :  { %1602 = vsyncpa [#allocation3], 1 }
 0x25b   :  { %1604 = vsyncpa [#allocation3 + $0x1], 1 }
 0x25c   :  { %1605 = vsyncpa [#allocation6], 1 }
 0x25d   :  { %1606 = vsyncpa [#allocation4], 1 }
 0x25e   :  { %1608 = vsyncpa [#allocation4 + $0x1], 1 }
 0x25f   :  { %1609 = vsyncpa [#allocation10], 1 }
 0x260   :  { %1611 = vsyncpa [#allocation10 + $0x1], 1 }

// kernel: custom_cnn_forward.9
= control target key start
LH: loop header
LB: loop body
LE: loop exit
PB: predicated region body
PF: predicated region fallthrough
CT: control target
= control target key end

     0   :  { %10 = vsyncpa [#allocation3], 0  ;;  %s4237_s0 = inlined_call_operand.hbm [shape: bf16[32,2304], index: 0, kind: input, shape index: {}]   ;;  %s4238_s1 = inlined_call_operand.hbm [shape: bf16[2304,256], index: 1, kind: input, shape index: {}]   ;;  %s4239_s2 = inlined_call_operand.hbm [shape: f32[1,256], index: 2, kind: input, shape index: {}]   ;;  %s4240_s3 = inlined_call_operand.hbm [shape: bf16[32,256], index: 3, kind: output, shape index: {0}]   ;;  %s4241_s4 = inlined_call_operand.hbm [shape: f32[2,2,256], index: 4, kind: output, shape index: {1}]  }
   0x1   :  { %12 = vsyncpa [#allocation3 + $0x1], 0 }
   0x2   :  { %13 = vsyncpa [#allocation6], 0 }
   0x3   :  { %14 = vsyncpa [#allocation4], 0 }
   0x4   :  { %16 = vsyncpa [#allocation4 + $0x1], 0 }
   0x5   :  { %17 = vsyncpa [#allocation10], 0 }
   0x6   :  { %19 = vsyncpa [#allocation10 + $0x1], 0  ;;  %s3921_s15 = smov 0   ;;  %s3923_s16 = smov 0  }
   0x7   :  { %s3925_s17 = smov 0   ;;  %s3927_s18 = smov 0  }
   0x8 LB: > { %s3942_s19 = sadd.s32 4294967295, %s3883_s18   ;;  %s2783_s20 = sadd.s32 4294967294, %s3883_s18   ;;  %s3883_s18 = sphi %s3927_s18, %s4262_s18   ;;  %s3879_s17 = sphi %s3925_s17, %s4261_s17   ;;  %s3875_s16 = sphi %s3923_s16, %s4260_s16   ;;  %s3871_s15 = sphi %s3921_s15, %s4259_s15  }
   0x9   : > { %p45_p0 = scmp.ne.s32.totalorder %s3875_s16, %s3871_s15  ;;  %p4242_p1 = scmp.eq.s32.totalorder %s3942_s19, 0 }
   0xa   : > { %p117_p3 = scmp.eq.s32.totalorder %s2783_s20, 1  ;;  %p2784_p5 = scmp.ge.s32.totalorder %s3883_s18, 1 }
   0xb   : > { %p3951_p4 = por %p4242_p1, %p45_p0  ;;  %p150_p7 = scmp.lt.s32.totalorder %s3883_s18, 3 }
   0xc   : > { %p3956_p6 = por %p117_p3, %p45_p0  ;;  %s3885_s24 = smov [#allocation5]  }
   0xd   : > { %s4245_s21 = scalar_select %p3951_p4, 1, 0 }
   0xe   : > { %s4246_s22 = scalar_select %p3956_p6, 1, 0 }
   0xf   : > { %p3961_p8 = pnand %p2784_p5, %p150_p7  ;;  %s162_s25 = sshll.u32 %s3885_s24, 4  ;;  %s3965_s25 = int_to_ptr.vmem [resolvable:$true] %s162_s25 }
  0x10   : > { %s3886_s27 = smov [#allocation7]   ;;  %s3695_s5 = scalar_lea.hbm %s4238_s1, 36864 }
  0x11   : > { %p3172_p9 = pneg %p3961_p8  ;;  %s176_s28 = sshll.u32 %s3886_s27, 4  ;;  %s3976_s28 = int_to_ptr.vmem [resolvable:$true] %s176_s28 }
  0x12   : > { %p3696_p12 = scmp.ne.s32.totalorder %s4238_s1, %s3695_s5  ;;  %p3702_p5 = scmp.lt.u32.totalorder %s3695_s5, %s4238_s1 }
  0x13   : > { %p3972_p11 = pnand %p3172_p9, %p4242_p1 }
  0x15   : > { %p3697_p13 = pneg %p3972_p11 }
  0x17   : > { %p3698_p0 = pnand %p3697_p13, %p3696_p12 }
  0x19   : > { %p3699_p3 = pneg %p3698_p0 }
  0x1b   : > { %p3704_p7 = pnand %p3702_p5, %p3699_p3 }
  0x1d   : > { %3707 = shalt.err (!%p3704_p7)
}
  0x1e   : > { %s3708_s10 = scalar_lea.vmem %s3965_s25, 36864  ;;  %p3716_p2 = scmp.lt.s32.totalorder %s3965_s25, %s3965_s25 }
  0x1f   : > { %p3709_p9 = scmp.ne.s32.totalorder %s3965_s25, %s3708_s10  ;;  %p3717_p12 = scmp.lt.s32.totalorder %s3708_s10, %s3708_s10 }
  0x21   : > { %p3711_p10 = pnand %p3709_p9, %p3697_p13  ;;  %p3718_p0 = por %p3717_p12, %p3716_p2 }
  0x23   : > { %p3712_p1 = pneg %p3711_p10 }
  0x25   : > { %p3719_p6 = pnand %p3718_p0, %p3712_p1 }
  0x27   : > { %3722 = shalt.err (!%p3719_p6)
}
  0x28   : > { %s3887_s11 = smov 128   ;;  %s3888_s12 = smov 8  }
  0x29   : > { %3175 = dma.hbm_to_vmem [thread:$0]  (!%p3972_p11), %s4238_s1, 36864, %s3965_s25, [#allocation6], %s3887_s11, %s3887_s11, %s3888_s12  }
  0x2a   : > { %s3723_s27 = scalar_lea.hbm %s4239_s2, 32 }
  0x2b   : > { %p3724_p2 = scmp.ne.s32.totalorder %s4239_s2, %s3723_s27  ;;  %p3730_p10 = scmp.lt.u32.totalorder %s3723_s27, %s4239_s2 }
  0x2d   : > { %p3726_p1 = pnand %p3724_p2, %p3697_p13 }
  0x2f   : > { %p3727_p6 = pneg %p3726_p1 }
  0x31   : > { %p3732_p3 = pnand %p3730_p10, %p3727_p6 }
  0x33   : > { %3735 = shalt.err (!%p3732_p3)
}
  0x34   : > { %s3736_s25 = scalar_lea.vmem %s3976_s28, 32  ;;  %p3744_p12 = scmp.lt.s32.totalorder %s3976_s28, %s3976_s28 }
  0x35   : > { %p3737_p5 = scmp.ne.s32.totalorder %s3976_s28, %s3736_s25  ;;  %p3745_p0 = scmp.lt.s32.totalorder %s3736_s25, %s3736_s25 }
  0x37   : > { %p3739_p7 = pnand %p3737_p5, %p3697_p13  ;;  %p3746_p2 = por %p3745_p0, %p3744_p12 }
  0x39   : > { %p3740_p9 = pneg %p3739_p7 }
  0x3b   : > { %p3747_p1 = pnand %p3746_p2, %p3740_p9 }
  0x3d   : > { %3750 = shalt.err (!%p3747_p1)
}
  0x3e   : > { %3178 = dma.hbm_to_vmem [thread:$0]  (!%p3972_p11), %s4239_s2, 32, %s3976_s28, [#allocation6]  }
  0x3f   : > { %s4031_s9 = sadd.s32 1, %s3883_s18   ;;  %s32_s26 = sadd.s32 1, %s3879_s17 }
  0x40   : > { %s29_s10 = ssub.s32 %s3883_s18, %s4031_s9  ;;  %p39_p13 = scmp.ne.s32.totalorder %s3879_s17, %s3875_s16 }
  0x41   : > { %p30_p6 = scmp.eq.s32.totalorder %s29_s10, 0  ;;  %p40_p10 = scmp.eq.s32.totalorder %s3883_s18, 0 }
  0x42   : > { %p4249_p3 = scmp.eq.s32.totalorder %s3942_s19, 1  ;;  %p3192_p7 = scmp.lt.s32.totalorder %s3883_s18, 2 }
  0x43   : > { %s4047_s12 = scalar_select %p30_p6, %s3879_s17, %s32_s26  }
  0x44   : > { %p4041_p5 = por %p4249_p3, %p39_p13  ;;  %p41_p9 = por %p40_p10, %p39_p13 }
  0x45   : > { %s187_s13 = sand.u32 1, %s3879_s17   ;;  %s3156_s28 = smul.u32 2304, %s3883_s18 }
  0x46   : > { %s4250_s11 = scalar_select %p4041_p5, 1, 0 }
  0x47   : > { %s3155_s14 = smul.u32 144, %s187_s13  ;;  %p4051_p11 = pnand %p3192_p7, %p41_p9 }
  0x48   : > { %s4058_s29 = scalar_lea.hbm %s4237_s0, %s3156_s28  ;;  %s4062_s6 = scalar_lea.sflag [#allocation3], %s187_s13 }
  0x49   : > { %s191_s30 = scalar_lea.vmem [#allocation2], %s3155_s14  ;;  %s3751_s25 = scalar_lea.hbm %s4058_s29, 2304 }
  0x4a   : > { %s199_s5 = sshll.u32 %s191_s30, 4  ;;  %p3752_p12 = scmp.ne.s32.totalorder %s4058_s29, %s3751_s25  ;;  %s4060_s5 = int_to_ptr.vmem [resolvable:$true] %s199_s5 }
  0x4b   : > { %p3753_p0 = pneg %p4051_p11  ;;  %s3756_s26 = scalar_lea.hbm %s4237_s0, 4608 }
  0x4c   : > { %p3757_p13 = scmp.lt.u32.totalorder %s4058_s29, %s4237_s0  ;;  %p3758_p6 = scmp.lt.u32.totalorder %s3756_s26, %s3751_s25 }
  0x4d   : > { %p3754_p2 = pnand %p3753_p0, %p3752_p12  ;;  %p3760_p3 = scmp.lt.u32.totalorder %s3751_s25, %s4058_s29 }
  0x4e   : > { %p3759_p10 = por %p3758_p6, %p3757_p13 }
  0x4f   : > { %p3755_p1 = pneg %p3754_p2 }
  0x50   : > { %p3761_p7 = por %p3760_p3, %p3759_p10 }
  0x52   : > { %p3762_p9 = pnand %p3761_p7, %p3755_p1 }
  0x54   : > { %3765 = shalt.err (!%p3762_p9)
}
  0x55   : > { %s3766_s13 = scalar_lea.vmem %s4060_s5, 2304  ;;  %s3889_s14 = smov [#allocation2]  }
  0x56   : > { %p3767_p12 = scmp.ne.s32.totalorder %s4060_s5, %s3766_s13  ;;  %s3771_s24 = sshll.u32 %s3889_s14, 4  ;;  %s3772_s24 = int_to_ptr.vmem [resolvable:$false] %s3771_s24 }
  0x57   : > { %s3773_s27 = scalar_lea.vmem %s3772_s24, 4608  ;;  %p3774_p4 = scmp.lt.s32.totalorder %s4060_s5, %s3772_s24 }
  0x58   : > { %p3769_p2 = pnand %p3767_p12, %p3753_p0  ;;  %p3775_p13 = scmp.lt.s32.totalorder %s3773_s27, %s3766_s13 }
  0x5a   : > { %p3770_p5 = pneg %p3769_p2  ;;  %p3776_p6 = por %p3775_p13, %p3774_p4 }
  0x5c   : > { %p3777_p10 = pnand %p3776_p6, %p3770_p5 }
  0x5e   : > { %3780 = shalt.err (!%p3777_p10)
}
  0x5f   : > { %s3890_s30 = smov 1152   ;;  %s3891_s25 = smov 72  }
  0x60   : > { %3182 = dma.hbm_to_vmem [thread:$0]  (!%p4051_p11), %s4058_s29, 2304, %s4060_s5, %s4062_s6, %s3890_s30, %s3890_s30, %s3891_s25  }
  0x61   : > { %211 = sbr.rel (%p3961_p8) target bundleno = 745 (0x2e9), region = 32  ;;  %s4093_s7 = sand.u32 (!%p3961_p8), 1, %s3875_s16  }
  0x62   : > { %s3157_s8 = smul.u32 (!%p3961_p8), 144, %s4093_s7  ;;  %s214_s26 = scalar_lea.sflag (!%p3961_p8), [#allocation3], %s4093_s7 }
  0x63   : > { %p4252_p4 = scmp.ne.s32.totalorder (!%p3961_p8), %s4245_s21, 0 }
  0x64   : > { %s4097_s10 = scalar_lea.vmem (!%p3961_p8), [#allocation2], %s3157_s8 }
  0x68   : > { %3854 = dma.done.wait (%p4252_p4), %s214_s26, 2304  }
  0x69   : > { %3856 = vsyncadd (%p4252_p4), %s214_s26, 4294964992  ;;  %p4253_p5 = scmp.eq.s32.totalorder %s3942_s19, 0 }
  0x6b   : > { %3858 = dma.done.wait (%p4253_p5), [#allocation6], 36896   ;;  %p4254_p8 = pmov %p4253_p5 }
  0x6c   : > { %s2795_s23 = sshll.u32 %s4093_s7, 2  ;;  %v3236_v0 = vld [vmem:[#allocation5 + $0x4] ss:$8 sps:$4 sm:$0xff]   ;;  %v3240_v2 = vld [vmem:[#allocation5] ss:$8 sps:$4 sm:$0xff]   ;;  %s2794_s21 = sshll.u32 %s4093_s7, 4 }
  0x6d   : > { %3860 = vsyncadd (%p4254_p8), [#allocation6], 4294930400  ;;  %v3238_v1 = vld [vmem:[#allocation5 + $0x404] ss:$8 sps:$4 sm:$0xff]   ;;  %2093 = vmatprep.subr.bf16.mxu1 %v3236_v0  ;;  %v3241_v3 = vld [vmem:[#allocation5 + $0x400] ss:$8 sps:$4 sm:$0xff]  }
  0x6e   : > { %2265 = vmatprep.subr.bf16.mxu0 %v3238_v1  ;;  %v3242_v4 = vld [vmem:[#allocation5 + $0x14] ss:$8 sps:$4 sm:$0xff]   ;;  %2094 = vmatpush1.bf16.msra.mxu1 %v3240_v2  ;;  %v3246_v6 = vld [vmem:[#allocation5 + $0x10] ss:$8 sps:$4 sm:$0xff]   ;;  %v3248_v8 = vld [vmem:[#allocation5 + $0x24] ss:$8 sps:$4 sm:$0xff]  }
  0x6f   : > { %2266 = vmatpush1.bf16.msra.mxu0 %v3241_v3  ;;  %v3244_v5 = vld [vmem:[#allocation5 + $0x414] ss:$8 sps:$4 sm:$0xff]   ;;  %2095 = vmatprep.subr.bf16.mxu1 %v3242_v4  ;;  %v3247_v7 = vld [vmem:[#allocation5 + $0x410] ss:$8 sps:$4 sm:$0xff]   ;;  %v3250_v9 = vld [vmem:[#allocation5 + $0x424] ss:$8 sps:$4 sm:$0xff]  }
  0x70   : > { %2267 = vmatprep.subr.bf16.mxu0 %v3244_v5  ;;  %v3252_v10 = vld [vmem:[#allocation5 + $0x20] ss:$8 sps:$4 sm:$0xff]   ;;  %v3254_v12 = vld [vmem:[#allocation5 + $0x34] ss:$8 sps:$4 sm:$0xff]   ;;  %v3258_v14 = vld [vmem:[#allocation5 + $0x30] ss:$8 sps:$4 sm:$0xff]  }
  0x71   : > { %v3253_v11 = vld [vmem:[#allocation5 + $0x420] ss:$8 sps:$4 sm:$0xff]   ;;  %v3256_v13 = vld [vmem:[#allocation5 + $0x434] ss:$8 sps:$4 sm:$0xff]   ;;  %v3259_v15 = vld [vmem:[#allocation5 + $0x430] ss:$8 sps:$4 sm:$0xff]  }
  0x72   : > { %2096 = vmatpush1.bf16.msra.mxu1 %v3246_v6  ;;  %v3260_v16 = vld [vmem:[#allocation5 + $0x44] ss:$8 sps:$4 sm:$0xff]   ;;  %v3264_v18 = vld [vmem:[#allocation5 + $0x40] ss:$8 sps:$4 sm:$0xff]   ;;  %v3266_v20 = vld [vmem:[#allocation5 + $0x54] ss:$8 sps:$4 sm:$0xff]  }
  0x73   : > { %2268 = vmatpush1.bf16.msra.mxu0 %v3247_v7  ;;  %2097 = vmatprep.subr.bf16.mxu1 %v3248_v8  ;;  %v3262_v17 = vld [vmem:[#allocation5 + $0x444] ss:$8 sps:$4 sm:$0xff]   ;;  %v3265_v19 = vld [vmem:[#allocation5 + $0x440] ss:$8 sps:$4 sm:$0xff]   ;;  %v3268_v21 = vld [vmem:[#allocation5 + $0x454] ss:$8 sps:$4 sm:$0xff]  }
  0x74   : > { %2269 = vmatprep.subr.bf16.mxu0 %v3250_v9  ;;  %v3270_v22 = vld [vmem:[#allocation5 + $0x50] ss:$8 sps:$4 sm:$0xff]   ;;  %v3272_v24 = vld [vmem:[#allocation5 + $0x64] ss:$8 sps:$4 sm:$0xff]   ;;  %v3276_v26 = vld [vmem:[#allocation5 + $0x60] ss:$8 sps:$4 sm:$0xff]  }
  0x75   : > { %v3271_v23 = vld [vmem:[#allocation5 + $0x450] ss:$8 sps:$4 sm:$0xff]   ;;  %v3274_v25 = vld [vmem:[#allocation5 + $0x464] ss:$8 sps:$4 sm:$0xff]   ;;  %v3277_v27 = vld [vmem:[#allocation5 + $0x460] ss:$8 sps:$4 sm:$0xff]  }
  0x76   : > { %2098 = vmatpush1.bf16.msra.mxu1 %v3252_v10  ;;  %v3278_v28 = vld [vmem:[#allocation5 + $0x74] ss:$8 sps:$4 sm:$0xff]   ;;  %v3282_v30 = vld [vmem:[#allocation5 + $0x70] ss:$8 sps:$4 sm:$0xff]   ;;  %v3284_v32 = vld [vmem:[#allocation5 + $0x84] ss:$8 sps:$4 sm:$0xff]  }
  0x77   : > { %2270 = vmatpush1.bf16.msra.mxu0 %v3253_v11  ;;  %2099 = vmatprep.subr.bf16.mxu1 %v3254_v12  ;;  %v3280_v29 = vld [vmem:[#allocation5 + $0x474] ss:$8 sps:$4 sm:$0xff]   ;;  %v3283_v31 = vld [vmem:[#allocation5 + $0x470] ss:$8 sps:$4 sm:$0xff]   ;;  %v3286_v33 = vld [vmem:[#allocation5 + $0x484] ss:$8 sps:$4 sm:$0xff]  }
  0x78   : > { %2271 = vmatprep.subr.bf16.mxu0 %v3256_v13  ;;  %v3288_v34 = vld [vmem:[#allocation5 + $0x80] ss:$8 sps:$4 sm:$0xff]   ;;  %v3290_v36 = vld [vmem:[#allocation5 + $0x94] ss:$8 sps:$4 sm:$0xff]   ;;  %v3294_v38 = vld [vmem:[#allocation5 + $0x90] ss:$8 sps:$4 sm:$0xff]  }
  0x79   : > { %v3289_v35 = vld [vmem:[#allocation5 + $0x480] ss:$8 sps:$4 sm:$0xff]   ;;  %v3292_v37 = vld [vmem:[#allocation5 + $0x494] ss:$8 sps:$4 sm:$0xff]   ;;  %v3295_v39 = vld [vmem:[#allocation5 + $0x490] ss:$8 sps:$4 sm:$0xff]  }
  0x7a   : > { %2100 = vmatpush1.bf16.msra.mxu1 %v3258_v14  ;;  %v3296_v40 = vld [vmem:[#allocation5 + $0xa4] ss:$8 sps:$4 sm:$0xff]   ;;  %v3300_v42 = vld [vmem:[#allocation5 + $0xa0] ss:$8 sps:$4 sm:$0xff]   ;;  %v3302_v44 = vld [vmem:[#allocation5 + $0xb4] ss:$8 sps:$4 sm:$0xff]  }
  0x7b   : > { %2272 = vmatpush1.bf16.msra.mxu0 %v3259_v15  ;;  %2101 = vmatprep.subr.bf16.mxu1 %v3260_v16  ;;  %v3298_v41 = vld [vmem:[#allocation5 + $0x4a4] ss:$8 sps:$4 sm:$0xff]   ;;  %v3301_v43 = vld [vmem:[#allocation5 + $0x4a0] ss:$8 sps:$4 sm:$0xff]   ;;  %v3304_v45 = vld [vmem:[#allocation5 + $0x4b4] ss:$8 sps:$4 sm:$0xff]  }
  0x7c   : > { %2273 = vmatprep.subr.bf16.mxu0 %v3262_v17  ;;  %v3306_v46 = vld [vmem:[#allocation5 + $0xb0] ss:$8 sps:$4 sm:$0xff]   ;;  %v3334_v48 = vld [vmem:[%s4097_s10 + $0x4] ss:$72 sps:$4 sm:$0xff]   ;;  %v3312_v52 = vld [vmem:[#allocation5 + $0xc0] ss:$8 sps:$4 sm:$0xff]  }
  0x7d   : > { %v3307_v47 = vld [vmem:[#allocation5 + $0x4b0] ss:$8 sps:$4 sm:$0xff]   ;;  %v3308_v49 = vld [vmem:[#allocation5 + $0xc4] ss:$8 sps:$4 sm:$0xff]   ;;  %2125 = vmatprep.mubr.bf16.mxu1 %v3334_v48  ;;  %v3313_v53 = vld [vmem:[#allocation5 + $0x4c0] ss:$8 sps:$4 sm:$0xff]  }
  0x7e   : > { %2102 = vmatpush1.bf16.msra.mxu1 %v3264_v18  ;;  %v3310_v50 = vld [vmem:[#allocation5 + $0x4c4] ss:$8 sps:$4 sm:$0xff]   ;;  %v3314_v54 = vld [vmem:[#allocation5 + $0xd4] ss:$8 sps:$4 sm:$0xff]   ;;  %v3318_v56 = vld [vmem:[#allocation5 + $0xd0] ss:$8 sps:$4 sm:$0xff]  }
  0x7f   : > { %2274 = vmatpush1.bf16.msra.mxu0 %v3265_v19  ;;  %2103 = vmatprep.subr.bf16.mxu1 %v3266_v20  ;;  %v3340_v51 = vld [vmem:[%s4097_s10 + $0x24] ss:$72 sps:$4 sm:$0xff]   ;;  %v3319_v57 = vld [vmem:[#allocation5 + $0x4d0] ss:$8 sps:$4 sm:$0xff]   ;;  %v3324_v60 = vld [vmem:[#allocation5 + $0xe0] ss:$8 sps:$4 sm:$0xff]  }
  0x80   : > { %2275 = vmatprep.subr.bf16.mxu0 %v3268_v21  ;;  %v3316_v55 = vld [vmem:[#allocation5 + $0x4d4] ss:$8 sps:$4 sm:$0xff]   ;;  %2297 = vmatprep.mubr.bf16.mxu0 %v3340_v51  ;;  %v3320_v58 = vld [vmem:[#allocation5 + $0xe4] ss:$8 sps:$4 sm:$0xff]   ;;  %v3325_v61 = vld [vmem:[#allocation5 + $0x4e0] ss:$8 sps:$4 sm:$0xff]  }
  0x81   : > { %v3322_v59 = vld [vmem:[#allocation5 + $0x4e4] ss:$8 sps:$4 sm:$0xff]   ;;  %v3326_v62 = vld [vmem:[#allocation5 + $0xf4] ss:$8 sps:$4 sm:$0xff]   ;;  %v3330_v0 = vld [vmem:[#allocation5 + $0xf0] ss:$8 sps:$4 sm:$0xff]  }
  0x82   : > { %2104 = vmatpush1.bf16.msra.mxu1 %v3270_v22  ;;  %v3328_v63 = vld [vmem:[#allocation5 + $0x4f4] ss:$8 sps:$4 sm:$0xff]   ;;  %v3331_v1 = vld [vmem:[#allocation5 + $0x4f0] ss:$8 sps:$4 sm:$0xff]   ;;  %v3337_v2 = vld [vmem:[#allocation5 + $0x104] ss:$8 sps:$4 sm:$0xff]  }
  0x83   : > { %2276 = vmatpush1.bf16.msra.mxu0 %v3271_v23  ;;  %2105 = vmatprep.subr.bf16.mxu1 %v3272_v24  ;;  %v3343_v3 = vld [vmem:[#allocation5 + $0x504] ss:$8 sps:$4 sm:$0xff]   ;;  %v3332_v4 = vld [vmem:[%s4097_s10] ss:$72 sps:$4 sm:$0xff]   ;;  %v3346_v8 = vld [vmem:[#allocation5 + $0x114] ss:$8 sps:$4 sm:$0xff]  }
  0x84   : > { %2277 = vmatprep.subr.bf16.mxu0 %v3274_v25  ;;  %v3335_v5 = vld [vmem:[#allocation5 + $0x100] ss:$8 sps:$4 sm:$0xff]   ;;  %v3349_v9 = vld [vmem:[#allocation5 + $0x514] ss:$8 sps:$4 sm:$0xff]   ;;  %v3344_v10 = vld [vmem:[#allocation5 + $0x110] ss:$8 sps:$4 sm:$0xff]  }
  0x85   : > { %v3338_v6 = vld [vmem:[%s4097_s10 + $0x20] ss:$72 sps:$4 sm:$0xff]   ;;  %v3352_v12 = vld [vmem:[#allocation5 + $0x124] ss:$8 sps:$4 sm:$0xff]   ;;  %v3358_v16 = vld [vmem:[#allocation5 + $0x134] ss:$8 sps:$4 sm:$0xff]  }
  0x86   : > { %2106 = vmatpush1.bf16.msra.mxu1 %v3276_v26  ;;  %v3341_v7 = vld [vmem:[#allocation5 + $0x500] ss:$8 sps:$4 sm:$0xff]   ;;  %v3347_v11 = vld [vmem:[#allocation5 + $0x510] ss:$8 sps:$4 sm:$0xff]   ;;  %v3355_v13 = vld [vmem:[#allocation5 + $0x524] ss:$8 sps:$4 sm:$0xff]  }
  0x87   : > { %2278 = vmatpush1.bf16.msra.mxu0 %v3277_v27  ;;  %2107 = vmatprep.subr.bf16.mxu1 %v3278_v28  ;;  %v3350_v14 = vld [vmem:[#allocation5 + $0x120] ss:$8 sps:$4 sm:$0xff]   ;;  %v3361_v17 = vld [vmem:[#allocation5 + $0x534] ss:$8 sps:$4 sm:$0xff]   ;;  %v3356_v18 = vld [vmem:[#allocation5 + $0x130] ss:$8 sps:$4 sm:$0xff]  }
  0x88   : > { %2279 = vmatprep.subr.bf16.mxu0 %v3280_v29  ;;  %v3353_v15 = vld [vmem:[#allocation5 + $0x520] ss:$8 sps:$4 sm:$0xff]   ;;  %v3359_v19 = vld [vmem:[#allocation5 + $0x530] ss:$8 sps:$4 sm:$0xff]   ;;  %v3364_v20 = vld [vmem:[#allocation5 + $0x144] ss:$8 sps:$4 sm:$0xff]  }
  0x89   : > { %v3367_v21 = vld [vmem:[#allocation5 + $0x544] ss:$8 sps:$4 sm:$0xff]   ;;  %v3362_v22 = vld [vmem:[#allocation5 + $0x140] ss:$8 sps:$4 sm:$0xff]   ;;  %v3370_v24 = vld [vmem:[#allocation5 + $0x154] ss:$8 sps:$4 sm:$0xff]  }
  0x8a   : > { %2108 = vmatpush1.bf16.msra.mxu1 %v3282_v30  ;;  %v3365_v23 = vld [vmem:[#allocation5 + $0x540] ss:$8 sps:$4 sm:$0xff]   ;;  %v3373_v25 = vld [vmem:[#allocation5 + $0x554] ss:$8 sps:$4 sm:$0xff]   ;;  %v3368_v26 = vld [vmem:[#allocation5 + $0x150] ss:$8 sps:$4 sm:$0xff]  }
  0x8b   : > { %2280 = vmatpush1.bf16.msra.mxu0 %v3283_v31  ;;  %2109 = vmatprep.subr.bf16.mxu1 %v3284_v32  ;;  %v3371_v27 = vld [vmem:[#allocation5 + $0x550] ss:$8 sps:$4 sm:$0xff]   ;;  %v3376_v28 = vld [vmem:[#allocation5 + $0x164] ss:$8 sps:$4 sm:$0xff]   ;;  %v3374_v30 = vld [vmem:[#allocation5 + $0x160] ss:$8 sps:$4 sm:$0xff]  }
  0x8c   : > { %2281 = vmatprep.subr.bf16.mxu0 %v3286_v33  ;;  %v3379_v29 = vld [vmem:[#allocation5 + $0x564] ss:$8 sps:$4 sm:$0xff]   ;;  %v3377_v31 = vld [vmem:[#allocation5 + $0x560] ss:$8 sps:$4 sm:$0xff]   ;;  %v3382_v32 = vld [vmem:[#allocation5 + $0x174] ss:$8 sps:$4 sm:$0xff]  }
  0x8d   : > { %v3385_v33 = vld [vmem:[#allocation5 + $0x574] ss:$8 sps:$4 sm:$0xff]   ;;  %v3398_v48 = vld [vmem:[#allocation5 + $0x1a0] ss:$8 sps:$4 sm:$0xff]   ;;  %s4137_s20 = scalar_lea.vmem [#allocation8], %s2794_s21  ;;  %s4143_s29 = scalar_lea.vmem [#allocation9], %s2795_s23 }
  0x8e   : > { %2110 = vmatpush1.bf16.msra.mxu1 %v3288_v34  ;;  %v3436_v34 = vld [vmem:[%s4097_s10 + $0xc] ss:$72 sps:$4 sm:$0xff]   ;;  %p4255_p11 = scmp.eq.s32.totalorder %s3942_s19, 1 }
  0x8f   : > { %2282 = vmatpush1.bf16.msra.mxu0 %v3289_v35  ;;  %2111 = vmatprep.subr.bf16.mxu1 %v3290_v36  ;;  %v3380_v35 = vld [vmem:[#allocation5 + $0x170] ss:$8 sps:$4 sm:$0xff]   ;;  %v3409_v51 = vld [vmem:[#allocation5 + $0x5b4] ss:$8 sps:$4 sm:$0xff]   ;;  %vm2546_vm0 = vcmask (!%p4255_p11), 1040384  }
  0x90   : > { %2283 = vmatprep.subr.bf16.mxu0 %v3292_v37  ;;  %v3383_v36 = vld [vmem:[#allocation5 + $0x570] ss:$8 sps:$4 sm:$0xff]   ;;  %v3442_v37 = vld [vmem:[%s4097_s10 + $0x2c] ss:$72 sps:$4 sm:$0xff]  }
  0x92   : > { %2112 = vmatpush1.bf16.msra.mxu1 %v3294_v38  ;;  %v3388_v38 = vld [vmem:[#allocation5 + $0x184] ss:$8 sps:$4 sm:$0xff]  }
  0x93   : > { %2284 = vmatpush1.bf16.msra.mxu0 %v3295_v39  ;;  %2113 = vmatprep.subr.bf16.mxu1 %v3296_v40  ;;  %v3391_v39 = vld [vmem:[#allocation5 + $0x584] ss:$8 sps:$4 sm:$0xff]   ;;  %v3386_v40 = vld [vmem:[#allocation5 + $0x180] ss:$8 sps:$4 sm:$0xff]  }
  0x94   : > { %2285 = vmatprep.subr.bf16.mxu0 %v3298_v41  ;;  %v3389_v41 = vld [vmem:[#allocation5 + $0x580] ss:$8 sps:$4 sm:$0xff]  }
  0x96   : > { %2114 = vmatpush1.bf16.msra.mxu1 %v3300_v42  ;;  %v3394_v42 = vld [vmem:[#allocation5 + $0x194] ss:$8 sps:$4 sm:$0xff]  }
  0x97   : > { %2286 = vmatpush1.bf16.msra.mxu0 %v3301_v43  ;;  %2115 = vmatprep.subr.bf16.mxu1 %v3302_v44  ;;  %v3397_v43 = vld [vmem:[#allocation5 + $0x594] ss:$8 sps:$4 sm:$0xff]   ;;  %v3392_v44 = vld [vmem:[#allocation5 + $0x190] ss:$8 sps:$4 sm:$0xff]  }
  0x98   : > { %2287 = vmatprep.subr.bf16.mxu0 %v3304_v45  ;;  %v3395_v45 = vld [vmem:[#allocation5 + $0x590] ss:$8 sps:$4 sm:$0xff]  }
  0x9a   : > { %2116 = vmatpush1.bf16.msra.mxu1 %v3306_v46  ;;  %v3400_v46 = vld [vmem:[#allocation5 + $0x1a4] ss:$8 sps:$4 sm:$0xff]  }
  0x9b   : > { %2288 = vmatpush1.bf16.msra.mxu0 %v3307_v47  ;;  %2117 = vmatprep.subr.bf16.mxu1 %v3308_v49  ;;  %v3403_v47 = vld [vmem:[#allocation5 + $0x5a4] ss:$8 sps:$4 sm:$0xff]   ;;  %v3401_v49 = vld [vmem:[#allocation5 + $0x5a0] ss:$8 sps:$4 sm:$0xff]  }
  0x9c   : > { %2289 = vmatprep.subr.bf16.mxu0 %v3310_v50  ;;  %v3406_v50 = vld [vmem:[#allocation5 + $0x1b4] ss:$8 sps:$4 sm:$0xff]  }
  0x9e   : > { %2118 = vmatpush1.bf16.msra.mxu1 %v3312_v52  ;;  %v3404_v52 = vld [vmem:[#allocation5 + $0x1b0] ss:$8 sps:$4 sm:$0xff]  }
  0x9f   : > { %2290 = vmatpush1.bf16.msra.mxu0 %v3313_v53  ;;  %2119 = vmatprep.subr.bf16.mxu1 %v3314_v54  ;;  %v3407_v53 = vld [vmem:[#allocation5 + $0x5b0] ss:$8 sps:$4 sm:$0xff]   ;;  %v3412_v54 = vld [vmem:[#allocation5 + $0x1c4] ss:$8 sps:$4 sm:$0xff]  }
  0xa0   : > { %2291 = vmatprep.subr.bf16.mxu0 %v3316_v55  ;;  %v3415_v55 = vld [vmem:[#allocation5 + $0x5c4] ss:$8 sps:$4 sm:$0xff]  }
  0xa2   : > { %2120 = vmatpush1.bf16.msra.mxu1 %v3318_v56  ;;  %v3410_v56 = vld [vmem:[#allocation5 + $0x1c0] ss:$8 sps:$4 sm:$0xff]  }
  0xa3   : > { %2292 = vmatpush1.bf16.msra.mxu0 %v3319_v57  ;;  %2121 = vmatprep.subr.bf16.mxu1 %v3320_v58  ;;  %v3413_v57 = vld [vmem:[#allocation5 + $0x5c0] ss:$8 sps:$4 sm:$0xff]   ;;  %v3418_v58 = vld [vmem:[#allocation5 + $0x1d4] ss:$8 sps:$4 sm:$0xff]  }
  0xa4   : > { %2293 = vmatprep.subr.bf16.mxu0 %v3322_v59  ;;  %v3421_v59 = vld [vmem:[#allocation5 + $0x5d4] ss:$8 sps:$4 sm:$0xff]  }
  0xa6   : > { %2122 = vmatpush1.bf16.msra.mxu1 %v3324_v60  ;;  %v3416_v60 = vld [vmem:[#allocation5 + $0x1d0] ss:$8 sps:$4 sm:$0xff]  }
  0xa7   : > { %2294 = vmatpush1.bf16.msra.mxu0 %v3325_v61  ;;  %2123 = vmatprep.subr.bf16.mxu1 %v3326_v62  ;;  %v3419_v61 = vld [vmem:[#allocation5 + $0x5d0] ss:$8 sps:$4 sm:$0xff]   ;;  %v3424_v62 = vld [vmem:[#allocation5 + $0x1e4] ss:$8 sps:$4 sm:$0xff]  }
  0xa8   : > { %2295 = vmatprep.subr.bf16.mxu0 %v3328_v63  ;;  %v3427_v63 = vld [vmem:[#allocation5 + $0x5e4] ss:$8 sps:$4 sm:$0xff]  }
  0xaa   : > { %2124 = vmatpush1.bf16.msra.mxu1 %v3330_v0  ;;  %v3422_v0 = vld [vmem:[#allocation5 + $0x1e0] ss:$8 sps:$4 sm:$0xff]  }
  0xab   : > { %2296 = vmatpush1.bf16.msra.mxu0 %v3331_v1  ;;  %2136 = vmatprep.subr.bf16.mxu1 %v3337_v2  ;;  %v3425_v1 = vld [vmem:[#allocation5 + $0x5e0] ss:$8 sps:$4 sm:$0xff]   ;;  %v3430_v2 = vld [vmem:[#allocation5 + $0x1f4] ss:$8 sps:$4 sm:$0xff]  }
  0xac   : > { %2308 = vmatprep.subr.bf16.mxu0 %v3343_v3  ;;  %v3433_v3 = vld [vmem:[#allocation5 + $0x5f4] ss:$8 sps:$4 sm:$0xff]  }
  0xad   : > { %2126 = vmatmul.mubr.bf16.vlgmr.msra.gmra.mrb[0].mxu1 %v3332_v4  ;;  %v3428_v4 = vld [vmem:[#allocation5 + $0x1f0] ss:$8 sps:$4 sm:$0xff]  }
  0xae   : > { %2298 = vmatmul.mubr.bf16.vlgmr.msra.gmra.mrb[0].mxu0 %v3338_v6  ;;  %2137 = vmatpush1.bf16.msra.mxu1 %v3335_v5  ;;  %v3431_v5 = vld [vmem:[#allocation5 + $0x5f0] ss:$8 sps:$4 sm:$0xff]   ;;  %v3439_v6 = vld [vmem:[#allocation5 + $0x204] ss:$8 sps:$4 sm:$0xff]  }
  0xaf   : > { %2309 = vmatpush1.bf16.msra.mxu0 %v3341_v7  ;;  %2138 = vmatprep.subr.bf16.mxu1 %v3346_v8  ;;  %v3445_v7 = vld [vmem:[#allocation5 + $0x604] ss:$8 sps:$4 sm:$0xff]   ;;  %v3434_v8 = vld [vmem:[%s4097_s10 + $0x8] ss:$72 sps:$4 sm:$0xff]  }
  0xb0   : > { %2310 = vmatprep.subr.bf16.mxu0 %v3349_v9  ;;  %2168 = vmatprep.mubr.bf16.mxu1 %v3436_v34  ;;  %v3437_v9 = vld [vmem:[#allocation5 + $0x200] ss:$8 sps:$4 sm:$0xff]   ;;  %v3478_v34 = vld [vmem:[#allocation5 + $0x264] ss:$8 sps:$4 sm:$0xff]  }
  0xb1   : > { %2340 = vmatprep.mubr.bf16.mxu0 %v3442_v37  ;;  %v3479_v37 = vld [vmem:[#allocation5 + $0x660] ss:$8 sps:$4 sm:$0xff]  }
  0xb2   : > { %2139 = vmatpush1.bf16.msra.mxu1 %v3344_v10  ;;  %v3440_v10 = vld [vmem:[%s4097_s10 + $0x28] ss:$72 sps:$4 sm:$0xff]  }
  0xb3   : > { %2311 = vmatpush1.bf16.msra.mxu0 %v3347_v11  ;;  %2140 = vmatprep.subr.bf16.mxu1 %v3352_v12  ;;  %v3443_v11 = vld [vmem:[#allocation5 + $0x600] ss:$8 sps:$4 sm:$0xff]   ;;  %v3448_v12 = vld [vmem:[#allocation5 + $0x214] ss:$8 sps:$4 sm:$0xff]  }
  0xb4   : > { %2312 = vmatprep.subr.bf16.mxu0 %v3355_v13  ;;  %v3451_v13 = vld [vmem:[#allocation5 + $0x614] ss:$8 sps:$4 sm:$0xff]  }
  0xb6   : > { %2141 = vmatpush1.bf16.msra.mxu1 %v3350_v14  ;;  %v3446_v14 = vld [vmem:[#allocation5 + $0x210] ss:$8 sps:$4 sm:$0xff]  }
  0xb7   : > { %2313 = vmatpush1.bf16.msra.mxu0 %v3353_v15  ;;  %2142 = vmatprep.subr.bf16.mxu1 %v3358_v16  ;;  %v3449_v15 = vld [vmem:[#allocation5 + $0x610] ss:$8 sps:$4 sm:$0xff]   ;;  %v3454_v16 = vld [vmem:[#allocation5 + $0x224] ss:$8 sps:$4 sm:$0xff]  }
  0xb8   : > { %2314 = vmatprep.subr.bf16.mxu0 %v3361_v17  ;;  %v3457_v17 = vld [vmem:[#allocation5 + $0x624] ss:$8 sps:$4 sm:$0xff]  }
  0xba   : > { %2143 = vmatpush1.bf16.msra.mxu1 %v3356_v18  ;;  %v3452_v18 = vld [vmem:[#allocation5 + $0x220] ss:$8 sps:$4 sm:$0xff]  }
  0xbb   : > { %2315 = vmatpush1.bf16.msra.mxu0 %v3359_v19  ;;  %2144 = vmatprep.subr.bf16.mxu1 %v3364_v20  ;;  %v3538_v19 = vld [vmem:[%s4097_s10 + $0x14] ss:$72 sps:$4 sm:$0xff]   ;;  %v3455_v20 = vld [vmem:[#allocation5 + $0x620] ss:$8 sps:$4 sm:$0xff]  }
  0xbc   : > { %2316 = vmatprep.subr.bf16.mxu0 %v3367_v21  ;;  %v3460_v21 = vld [vmem:[#allocation5 + $0x234] ss:$8 sps:$4 sm:$0xff]  }
  0xbe   : > { %2145 = vmatpush1.bf16.msra.mxu1 %v3362_v22  ;;  %v3463_v22 = vld [vmem:[#allocation5 + $0x634] ss:$8 sps:$4 sm:$0xff]  }
  0xbf   : > { %2317 = vmatpush1.bf16.msra.mxu0 %v3365_v23  ;;  %2146 = vmatprep.subr.bf16.mxu1 %v3370_v24  ;;  %v3544_v23 = vld [vmem:[%s4097_s10 + $0x34] ss:$72 sps:$4 sm:$0xff]   ;;  %v3458_v24 = vld [vmem:[#allocation5 + $0x230] ss:$8 sps:$4 sm:$0xff]  }
  0xc0   : > { %2318 = vmatprep.subr.bf16.mxu0 %v3373_v25  ;;  %v3461_v25 = vld [vmem:[#allocation5 + $0x630] ss:$8 sps:$4 sm:$0xff]  }
  0xc2   : > { %2147 = vmatpush1.bf16.msra.mxu1 %v3368_v26  ;;  %v3466_v26 = vld [vmem:[#allocation5 + $0x244] ss:$8 sps:$4 sm:$0xff]  }
  0xc3   : > { %2319 = vmatpush1.bf16.msra.mxu0 %v3371_v27  ;;  %2148 = vmatprep.subr.bf16.mxu1 %v3376_v28  ;;  %v3469_v27 = vld [vmem:[#allocation5 + $0x644] ss:$8 sps:$4 sm:$0xff]   ;;  %v3464_v28 = vld [vmem:[#allocation5 + $0x240] ss:$8 sps:$4 sm:$0xff]  }
  0xc4   : > { %2320 = vmatprep.subr.bf16.mxu0 %v3379_v29  ;;  %v3467_v29 = vld [vmem:[#allocation5 + $0x640] ss:$8 sps:$4 sm:$0xff]  }
  0xc6   : > { %2149 = vmatpush1.bf16.msra.mxu1 %v3374_v30  ;;  %v3472_v30 = vld [vmem:[#allocation5 + $0x254] ss:$8 sps:$4 sm:$0xff]  }
  0xc7   : > { %2321 = vmatpush1.bf16.msra.mxu0 %v3377_v31  ;;  %2150 = vmatprep.subr.bf16.mxu1 %v3382_v32  ;;  %v3475_v31 = vld [vmem:[#allocation5 + $0x654] ss:$8 sps:$4 sm:$0xff]   ;;  %v3470_v32 = vld [vmem:[#allocation5 + $0x250] ss:$8 sps:$4 sm:$0xff]  }
  0xc8   : > { %2322 = vmatprep.subr.bf16.mxu0 %v3385_v33  ;;  %v3473_v33 = vld [vmem:[#allocation5 + $0x650] ss:$8 sps:$4 sm:$0xff]  }
  0xca   : > { %2151 = vmatpush1.bf16.msra.mxu1 %v3380_v35  ;;  %v3481_v35 = vld [vmem:[#allocation5 + $0x664] ss:$8 sps:$4 sm:$0xff]  }
  0xcb   : > { %2323 = vmatpush1.bf16.msra.mxu0 %v3383_v36  ;;  %2152 = vmatprep.subr.bf16.mxu1 %v3388_v38  ;;  %v3476_v36 = vld [vmem:[#allocation5 + $0x260] ss:$8 sps:$4 sm:$0xff]   ;;  %v3484_v38 = vld [vmem:[#allocation5 + $0x274] ss:$8 sps:$4 sm:$0xff]  }
  0xcc   : > { %2324 = vmatprep.subr.bf16.mxu0 %v3391_v39  ;;  %v3487_v39 = vld [vmem:[#allocation5 + $0x674] ss:$8 sps:$4 sm:$0xff]  }
  0xce   : > { %2153 = vmatpush1.bf16.msra.mxu1 %v3386_v40  ;;  %v3482_v40 = vld [vmem:[#allocation5 + $0x270] ss:$8 sps:$4 sm:$0xff]  }
  0xcf   : > { %2325 = vmatpush1.bf16.msra.mxu0 %v3389_v41  ;;  %2154 = vmatprep.subr.bf16.mxu1 %v3394_v42  ;;  %v3485_v41 = vld [vmem:[#allocation5 + $0x670] ss:$8 sps:$4 sm:$0xff]   ;;  %v3490_v42 = vld [vmem:[#allocation5 + $0x284] ss:$8 sps:$4 sm:$0xff]  }
  0xd0   : > { %2326 = vmatprep.subr.bf16.mxu0 %v3397_v43  ;;  %v3493_v43 = vld [vmem:[#allocation5 + $0x684] ss:$8 sps:$4 sm:$0xff]  }
  0xd2   : > { %2155 = vmatpush1.bf16.msra.mxu1 %v3392_v44  ;;  %v3488_v44 = vld [vmem:[#allocation5 + $0x280] ss:$8 sps:$4 sm:$0xff]  }
  0xd3   : > { %2327 = vmatpush1.bf16.msra.mxu0 %v3395_v45  ;;  %2156 = vmatprep.subr.bf16.mxu1 %v3400_v46  ;;  %v3491_v45 = vld [vmem:[#allocation5 + $0x680] ss:$8 sps:$4 sm:$0xff]   ;;  %v3496_v46 = vld [vmem:[#allocation5 + $0x294] ss:$8 sps:$4 sm:$0xff]  }
  0xd4   : > { %2328 = vmatprep.subr.bf16.mxu0 %v3403_v47  ;;  %v3499_v47 = vld [vmem:[#allocation5 + $0x694] ss:$8 sps:$4 sm:$0xff]  }
  0xd6   : > { %2157 = vmatpush1.bf16.msra.mxu1 %v3398_v48  ;;  %v3494_v48 = vld [vmem:[#allocation5 + $0x290] ss:$8 sps:$4 sm:$0xff]  }
  0xd7   : > { %2329 = vmatpush1.bf16.msra.mxu0 %v3401_v49  ;;  %2158 = vmatprep.subr.bf16.mxu1 %v3406_v50  ;;  %v3497_v49 = vld [vmem:[#allocation5 + $0x690] ss:$8 sps:$4 sm:$0xff]   ;;  %v3502_v50 = vld [vmem:[#allocation5 + $0x2a4] ss:$8 sps:$4 sm:$0xff]  }
  0xd8   : > { %2330 = vmatprep.subr.bf16.mxu0 %v3409_v51  ;;  %v3505_v51 = vld [vmem:[#allocation5 + $0x6a4] ss:$8 sps:$4 sm:$0xff]  }
  0xda   : > { %2159 = vmatpush1.bf16.msra.mxu1 %v3404_v52  ;;  %v3500_v52 = vld [vmem:[#allocation5 + $0x2a0] ss:$8 sps:$4 sm:$0xff]  }
  0xdb   : > { %2331 = vmatpush1.bf16.msra.mxu0 %v3407_v53  ;;  %2160 = vmatprep.subr.bf16.mxu1 %v3412_v54  ;;  %v3503_v53 = vld [vmem:[#allocation5 + $0x6a0] ss:$8 sps:$4 sm:$0xff]   ;;  %v3508_v54 = vld [vmem:[#allocation5 + $0x2b4] ss:$8 sps:$4 sm:$0xff]  }
  0xdc   : > { %2332 = vmatprep.subr.bf16.mxu0 %v3415_v55  ;;  %v3511_v55 = vld [vmem:[#allocation5 + $0x6b4] ss:$8 sps:$4 sm:$0xff]  }
  0xde   : > { %2161 = vmatpush1.bf16.msra.mxu1 %v3410_v56  ;;  %v3506_v56 = vld [vmem:[#allocation5 + $0x2b0] ss:$8 sps:$4 sm:$0xff]  }
  0xdf   : > { %2333 = vmatpush1.bf16.msra.mxu0 %v3413_v57  ;;  %2162 = vmatprep.subr.bf16.mxu1 %v3418_v58  ;;  %v3509_v57 = vld [vmem:[#allocation5 + $0x6b0] ss:$8 sps:$4 sm:$0xff]   ;;  %v3514_v58 = vld [vmem:[#allocation5 + $0x2c4] ss:$8 sps:$4 sm:$0xff]  }
  0xe0   : > { %2334 = vmatprep.subr.bf16.mxu0 %v3421_v59  ;;  %v3517_v59 = vld [vmem:[#allocation5 + $0x6c4] ss:$8 sps:$4 sm:$0xff]  }
  0xe2   : > { %2163 = vmatpush1.bf16.msra.mxu1 %v3416_v60  ;;  %v3512_v60 = vld [vmem:[#allocation5 + $0x2c0] ss:$8 sps:$4 sm:$0xff]  }
  0xe3   : > { %2335 = vmatpush1.bf16.msra.mxu0 %v3419_v61  ;;  %2164 = vmatprep.subr.bf16.mxu1 %v3424_v62  ;;  %v3515_v61 = vld [vmem:[#allocation5 + $0x6c0] ss:$8 sps:$4 sm:$0xff]   ;;  %v3520_v62 = vld [vmem:[#allocation5 + $0x2d4] ss:$8 sps:$4 sm:$0xff]  }
  0xe4   : > { %2336 = vmatprep.subr.bf16.mxu0 %v3427_v63  ;;  %v3523_v63 = vld [vmem:[#allocation5 + $0x6d4] ss:$8 sps:$4 sm:$0xff]  }
  0xe6   : > { %2165 = vmatpush1.bf16.msra.mxu1 %v3422_v0  ;;  %v3518_v0 = vld [vmem:[#allocation5 + $0x2d0] ss:$8 sps:$4 sm:$0xff]  }
  0xe7   : > { %2337 = vmatpush1.bf16.msra.mxu0 %v3425_v1  ;;  %2166 = vmatprep.subr.bf16.mxu1 %v3430_v2  ;;  %v3521_v1 = vld [vmem:[#allocation5 + $0x6d0] ss:$8 sps:$4 sm:$0xff]   ;;  %v3526_v2 = vld [vmem:[#allocation5 + $0x2e4] ss:$8 sps:$4 sm:$0xff]  }
  0xe8   : > { %2338 = vmatprep.subr.bf16.mxu0 %v3433_v3  ;;  %v3529_v3 = vld [vmem:[#allocation5 + $0x6e4] ss:$8 sps:$4 sm:$0xff]  }
  0xea   : > { %2167 = vmatpush1.bf16.msra.mxu1 %v3428_v4  ;;  %v3524_v4 = vld [vmem:[#allocation5 + $0x2e0] ss:$8 sps:$4 sm:$0xff]  }
  0xeb   : > { %2339 = vmatpush1.bf16.msra.mxu0 %v3431_v5  ;;  %2179 = vmatprep.subr.bf16.mxu1 %v3439_v6  ;;  %v3527_v5 = vld [vmem:[#allocation5 + $0x6e0] ss:$8 sps:$4 sm:$0xff]   ;;  %v3532_v6 = vld [vmem:[#allocation5 + $0x2f4] ss:$8 sps:$4 sm:$0xff]  }
  0xec   : > { %2351 = vmatprep.subr.bf16.mxu0 %v3445_v7  ;;  %v3535_v7 = vld [vmem:[#allocation5 + $0x6f4] ss:$8 sps:$4 sm:$0xff]  }
  0xed   : > { %2169 = vmatmul.mubr.bf16.vlgmr.msra.gmra.mrb[0].mxu1 %v3434_v8  ;;  %v3530_v8 = vld [vmem:[#allocation5 + $0x2f0] ss:$8 sps:$4 sm:$0xff]  }
  0xee   : > { %2341 = vmatmul.mubr.bf16.vlgmr.msra.gmra.mrb[0].mxu0 %v3440_v10  ;;  %2180 = vmatpush1.bf16.msra.mxu1 %v3437_v9  ;;  %v3533_v9 = vld [vmem:[#allocation5 + $0x6f0] ss:$8 sps:$4 sm:$0xff]   ;;  %v3541_v10 = vld [vmem:[#allocation5 + $0x304] ss:$8 sps:$4 sm:$0xff]  }
  0xef   : > { %2352 = vmatpush1.bf16.msra.mxu0 %v3443_v11  ;;  %2181 = vmatprep.subr.bf16.mxu1 %v3448_v12  ;;  %v3547_v11 = vld [vmem:[#allocation5 + $0x704] ss:$8 sps:$4 sm:$0xff]   ;;  %v3536_v12 = vld [vmem:[%s4097_s10 + $0x10] ss:$72 sps:$4 sm:$0xff]  }
  0xf0   : > { %2353 = vmatprep.subr.bf16.mxu0 %v3451_v13  ;;  %2211 = vmatprep.mubr.bf16.mxu1 %v3538_v19  ;;  %v3539_v13 = vld [vmem:[#allocation5 + $0x300] ss:$8 sps:$4 sm:$0xff]   ;;  %v3643_v19 = vld [vmem:[%s4097_s10 + $0x3c] ss:$72 sps:$4 sm:$0xff]  }
  0xf1   : > { %2383 = vmatprep.mubr.bf16.mxu0 %v3544_v23  ;;  %v3559_v23 = vld [vmem:[#allocation5 + $0x724] ss:$8 sps:$4 sm:$0xff]  }
  0xf2   : > { %2182 = vmatpush1.bf16.msra.mxu1 %v3446_v14  ;;  %v3542_v14 = vld [vmem:[%s4097_s10 + $0x30] ss:$72 sps:$4 sm:$0xff]  }
  0xf3   : > { %2354 = vmatpush1.bf16.msra.mxu0 %v3449_v15  ;;  %2183 = vmatprep.subr.bf16.mxu1 %v3454_v16  ;;  %v3545_v15 = vld [vmem:[#allocation5 + $0x700] ss:$8 sps:$4 sm:$0xff]   ;;  %v3550_v16 = vld [vmem:[#allocation5 + $0x314] ss:$8 sps:$4 sm:$0xff]  }
  0xf4   : > { %2355 = vmatprep.subr.bf16.mxu0 %v3457_v17  ;;  %v3553_v17 = vld [vmem:[#allocation5 + $0x714] ss:$8 sps:$4 sm:$0xff]  }
  0xf6   : > { %2184 = vmatpush1.bf16.msra.mxu1 %v3452_v18  ;;  %v3640_v18 = vld [vmem:[%s4097_s10 + $0x1c] ss:$72 sps:$4 sm:$0xff]  }
  0xf7   : > { %2356 = vmatpush1.bf16.msra.mxu0 %v3455_v20  ;;  %2185 = vmatprep.subr.bf16.mxu1 %v3460_v21  ;;  %v3548_v20 = vld [vmem:[#allocation5 + $0x310] ss:$8 sps:$4 sm:$0xff]  }
  0xf8   : > { %2357 = vmatprep.subr.bf16.mxu0 %v3463_v22  ;;  %v3551_v21 = vld [vmem:[#allocation5 + $0x710] ss:$8 sps:$4 sm:$0xff]   ;;  %v3556_v22 = vld [vmem:[#allocation5 + $0x324] ss:$8 sps:$4 sm:$0xff]  }
  0xfa   : > { %2186 = vmatpush1.bf16.msra.mxu1 %v3458_v24  ;;  %v3554_v24 = vld [vmem:[#allocation5 + $0x320] ss:$8 sps:$4 sm:$0xff]  }
  0xfb   : > { %2358 = vmatpush1.bf16.msra.mxu0 %v3461_v25  ;;  %2187 = vmatprep.subr.bf16.mxu1 %v3466_v26  ;;  %v3557_v25 = vld [vmem:[#allocation5 + $0x720] ss:$8 sps:$4 sm:$0xff]   ;;  %v3562_v26 = vld [vmem:[#allocation5 + $0x334] ss:$8 sps:$4 sm:$0xff]  }
  0xfc   : > { %2359 = vmatprep.subr.bf16.mxu0 %v3469_v27  ;;  %v3565_v27 = vld [vmem:[#allocation5 + $0x734] ss:$8 sps:$4 sm:$0xff]  }
  0xfe   : > { %2188 = vmatpush1.bf16.msra.mxu1 %v3464_v28  ;;  %v3560_v28 = vld [vmem:[#allocation5 + $0x330] ss:$8 sps:$4 sm:$0xff]  }
  0xff   : > { %2360 = vmatpush1.bf16.msra.mxu0 %v3467_v29  ;;  %2189 = vmatprep.subr.bf16.mxu1 %v3472_v30  ;;  %v3563_v29 = vld [vmem:[#allocation5 + $0x730] ss:$8 sps:$4 sm:$0xff]   ;;  %v3568_v30 = vld [vmem:[#allocation5 + $0x344] ss:$8 sps:$4 sm:$0xff]  }
 0x100   : > { %2361 = vmatprep.subr.bf16.mxu0 %v3475_v31  ;;  %v3571_v31 = vld [vmem:[#allocation5 + $0x744] ss:$8 sps:$4 sm:$0xff]  }
 0x102   : > { %2190 = vmatpush1.bf16.msra.mxu1 %v3470_v32  ;;  %v3566_v32 = vld [vmem:[#allocation5 + $0x340] ss:$8 sps:$4 sm:$0xff]  }
 0x103   : > { %2362 = vmatpush1.bf16.msra.mxu0 %v3473_v33  ;;  %2191 = vmatprep.subr.bf16.mxu1 %v3478_v34  ;;  %v3569_v33 = vld [vmem:[#allocation5 + $0x740] ss:$8 sps:$4 sm:$0xff]   ;;  %v3574_v34 = vld [vmem:[#allocation5 + $0x354] ss:$8 sps:$4 sm:$0xff]  }
 0x104   : > { %2363 = vmatprep.subr.bf16.mxu0 %v3481_v35  ;;  %v3577_v35 = vld [vmem:[#allocation5 + $0x754] ss:$8 sps:$4 sm:$0xff]  }
 0x106   : > { %2192 = vmatpush1.bf16.msra.mxu1 %v3476_v36  ;;  %v3572_v36 = vld [vmem:[#allocation5 + $0x350] ss:$8 sps:$4 sm:$0xff]  }
 0x107   : > { %2364 = vmatpush1.bf16.msra.mxu0 %v3479_v37  ;;  %2193 = vmatprep.subr.bf16.mxu1 %v3484_v38  ;;  %v3575_v37 = vld [vmem:[#allocation5 + $0x750] ss:$8 sps:$4 sm:$0xff]   ;;  %v3580_v38 = vld [vmem:[#allocation5 + $0x364] ss:$8 sps:$4 sm:$0xff]  }
 0x108   : > { %2365 = vmatprep.subr.bf16.mxu0 %v3487_v39  ;;  %v3583_v39 = vld [vmem:[#allocation5 + $0x764] ss:$8 sps:$4 sm:$0xff]  }
 0x10a   : > { %2194 = vmatpush1.bf16.msra.mxu1 %v3482_v40  ;;  %v3578_v40 = vld [vmem:[#allocation5 + $0x360] ss:$8 sps:$4 sm:$0xff]  }
 0x10b   : > { %2366 = vmatpush1.bf16.msra.mxu0 %v3485_v41  ;;  %2195 = vmatprep.subr.bf16.mxu1 %v3490_v42  ;;  %v3581_v41 = vld [vmem:[#allocation5 + $0x760] ss:$8 sps:$4 sm:$0xff]   ;;  %v3586_v42 = vld [vmem:[#allocation5 + $0x374] ss:$8 sps:$4 sm:$0xff]  }
 0x10c   : > { %2367 = vmatprep.subr.bf16.mxu0 %v3493_v43  ;;  %v3589_v43 = vld [vmem:[#allocation5 + $0x774] ss:$8 sps:$4 sm:$0xff]  }
 0x10e   : > { %2196 = vmatpush1.bf16.msra.mxu1 %v3488_v44  ;;  %v3584_v44 = vld [vmem:[#allocation5 + $0x370] ss:$8 sps:$4 sm:$0xff]  }
 0x10f   : > { %2368 = vmatpush1.bf16.msra.mxu0 %v3491_v45  ;;  %2197 = vmatprep.subr.bf16.mxu1 %v3496_v46  ;;  %v3587_v45 = vld [vmem:[#allocation5 + $0x770] ss:$8 sps:$4 sm:$0xff]   ;;  %v3592_v46 = vld [vmem:[#allocation5 + $0x384] ss:$8 sps:$4 sm:$0xff]  }
 0x110   : > { %2369 = vmatprep.subr.bf16.mxu0 %v3499_v47  ;;  %v3595_v47 = vld [vmem:[#allocation5 + $0x784] ss:$8 sps:$4 sm:$0xff]  }
 0x112   : > { %2198 = vmatpush1.bf16.msra.mxu1 %v3494_v48  ;;  %v3590_v48 = vld [vmem:[#allocation5 + $0x380] ss:$8 sps:$4 sm:$0xff]  }
 0x113   : > { %2370 = vmatpush1.bf16.msra.mxu0 %v3497_v49  ;;  %2199 = vmatprep.subr.bf16.mxu1 %v3502_v50  ;;  %v3593_v49 = vld [vmem:[#allocation5 + $0x780] ss:$8 sps:$4 sm:$0xff]   ;;  %v3598_v50 = vld [vmem:[#allocation5 + $0x394] ss:$8 sps:$4 sm:$0xff]  }
 0x114   : > { %2371 = vmatprep.subr.bf16.mxu0 %v3505_v51  ;;  %v3601_v51 = vld [vmem:[#allocation5 + $0x794] ss:$8 sps:$4 sm:$0xff]  }
 0x116   : > { %2200 = vmatpush1.bf16.msra.mxu1 %v3500_v52  ;;  %v3596_v52 = vld [vmem:[#allocation5 + $0x390] ss:$8 sps:$4 sm:$0xff]  }
 0x117   : > { %2372 = vmatpush1.bf16.msra.mxu0 %v3503_v53  ;;  %2201 = vmatprep.subr.bf16.mxu1 %v3508_v54  ;;  %v3599_v53 = vld [vmem:[#allocation5 + $0x790] ss:$8 sps:$4 sm:$0xff]   ;;  %v3604_v54 = vld [vmem:[#allocation5 + $0x3a4] ss:$8 sps:$4 sm:$0xff]  }
 0x118   : > { %2373 = vmatprep.subr.bf16.mxu0 %v3511_v55  ;;  %v3607_v55 = vld [vmem:[#allocation5 + $0x7a4] ss:$8 sps:$4 sm:$0xff]  }
 0x11a   : > { %2202 = vmatpush1.bf16.msra.mxu1 %v3506_v56  ;;  %v3602_v56 = vld [vmem:[#allocation5 + $0x3a0] ss:$8 sps:$4 sm:$0xff]  }
 0x11b   : > { %2374 = vmatpush1.bf16.msra.mxu0 %v3509_v57  ;;  %2203 = vmatprep.subr.bf16.mxu1 %v3514_v58  ;;  %v3605_v57 = vld [vmem:[#allocation5 + $0x7a0] ss:$8 sps:$4 sm:$0xff]   ;;  %v3610_v58 = vld [vmem:[#allocation5 + $0x3b4] ss:$8 sps:$4 sm:$0xff]  }
 0x11c   : > { %2375 = vmatprep.subr.bf16.mxu0 %v3517_v59  ;;  %v3613_v59 = vld [vmem:[#allocation5 + $0x7b4] ss:$8 sps:$4 sm:$0xff]  }
 0x11e   : > { %2204 = vmatpush1.bf16.msra.mxu1 %v3512_v60  ;;  %v3608_v60 = vld [vmem:[#allocation5 + $0x3b0] ss:$8 sps:$4 sm:$0xff]  }
 0x11f   : > { %2376 = vmatpush1.bf16.msra.mxu0 %v3515_v61  ;;  %2205 = vmatprep.subr.bf16.mxu1 %v3520_v62  ;;  %v3611_v61 = vld [vmem:[#allocation5 + $0x7b0] ss:$8 sps:$4 sm:$0xff]   ;;  %v3616_v62 = vld [vmem:[#allocation5 + $0x3c4] ss:$8 sps:$4 sm:$0xff]  }
 0x120   : > { %2377 = vmatprep.subr.bf16.mxu0 %v3523_v63  ;;  %v3619_v63 = vld [vmem:[#allocation5 + $0x7c4] ss:$8 sps:$4 sm:$0xff]  }
 0x122   : > { %2206 = vmatpush1.bf16.msra.mxu1 %v3518_v0  ;;  %v3614_v0 = vld [vmem:[#allocation5 + $0x3c0] ss:$8 sps:$4 sm:$0xff]  }
 0x123   : > { %2378 = vmatpush1.bf16.msra.mxu0 %v3521_v1  ;;  %2207 = vmatprep.subr.bf16.mxu1 %v3526_v2  ;;  %v3617_v1 = vld [vmem:[#allocation5 + $0x7c0] ss:$8 sps:$4 sm:$0xff]   ;;  %v3622_v2 = vld [vmem:[#allocation5 + $0x3d4] ss:$8 sps:$4 sm:$0xff]  }
 0x124   : > { %2379 = vmatprep.subr.bf16.mxu0 %v3529_v3  ;;  %v3625_v3 = vld [vmem:[#allocation5 + $0x7d4] ss:$8 sps:$4 sm:$0xff]  }
 0x126   : > { %2208 = vmatpush1.bf16.msra.mxu1 %v3524_v4  ;;  %v3620_v4 = vld [vmem:[#allocation5 + $0x3d0] ss:$8 sps:$4 sm:$0xff]  }
 0x127   : > { %2380 = vmatpush1.bf16.msra.mxu0 %v3527_v5  ;;  %2209 = vmatprep.subr.bf16.mxu1 %v3532_v6  ;;  %v3623_v5 = vld [vmem:[#allocation5 + $0x7d0] ss:$8 sps:$4 sm:$0xff]   ;;  %v3628_v6 = vld [vmem:[#allocation5 + $0x3e4] ss:$8 sps:$4 sm:$0xff]  }
 0x128   : > { %2381 = vmatprep.subr.bf16.mxu0 %v3535_v7  ;;  %v3631_v7 = vld [vmem:[#allocation5 + $0x7e4] ss:$8 sps:$4 sm:$0xff]  }
 0x12a   : > { %2210 = vmatpush1.bf16.msra.mxu1 %v3530_v8  ;;  %v3626_v8 = vld [vmem:[#allocation5 + $0x3e0] ss:$8 sps:$4 sm:$0xff]  }
 0x12b   : > { %2382 = vmatpush1.bf16.msra.mxu0 %v3533_v9  ;;  %2222 = vmatprep.subr.bf16.mxu1 %v3541_v10  ;;  %v3629_v9 = vld [vmem:[#allocation5 + $0x7e0] ss:$8 sps:$4 sm:$0xff]   ;;  %v3634_v10 = vld [vmem:[#allocation5 + $0x3f4] ss:$8 sps:$4 sm:$0xff]  }
 0x12c   : > { %2394 = vmatprep.subr.bf16.mxu0 %v3547_v11  ;;  %v3637_v11 = vld [vmem:[#allocation5 + $0x7f4] ss:$8 sps:$4 sm:$0xff]  }
 0x12d   : > { %2212 = vmatmul.mubr.bf16.vlgmr.msra.gmra.mrb[0].mxu1 %v3536_v12  ;;  %v3632_v12 = vld [vmem:[#allocation5 + $0x3f0] ss:$8 sps:$4 sm:$0xff]  }
 0x12e   : > { %2384 = vmatmul.mubr.bf16.vlgmr.msra.gmra.mrb[0].mxu0 %v3542_v14  ;;  %2223 = vmatpush1.bf16.msra.mxu1 %v3539_v13  ;;  %v3635_v13 = vld [vmem:[#allocation5 + $0x7f0] ss:$8 sps:$4 sm:$0xff]   ;;  %v3646_v14 = vld [vmem:[#allocation5 + $0x804] ss:$8 sps:$4 sm:$0xff]  }
 0x12f   : > { %2395 = vmatpush1.bf16.msra.mxu0 %v3545_v15  ;;  %2224 = vmatprep.subr.bf16.mxu1 %v3550_v16  ;;  %v3638_v15 = vld [vmem:[%s4097_s10 + $0x18] ss:$72 sps:$4 sm:$0xff]  }
 0x130   : > { %2396 = vmatprep.subr.bf16.mxu0 %v3553_v17  ;;  %2254 = vmatprep.mubr.bf16.mxu1 %v3640_v18  ;;  %v3641_v16 = vld [vmem:[%s4097_s10 + $0x38] ss:$72 sps:$4 sm:$0xff]   ;;  %v3694_v18 = vld [vmem:[%s4097_s10 + $0x44] ss:$72 sps:$4 sm:$0xff]  }
 0x131   : > { %2426 = vmatprep.mubr.bf16.mxu0 %v3643_v19  ;;  %v3644_v17 = vld [vmem:[#allocation5 + $0x800] ss:$8 sps:$4 sm:$0xff]   ;;  %v3649_v19 = vld [vmem:[#allocation5 + $0x814] ss:$8 sps:$4 sm:$0xff]  }
 0x132   : > { %2225 = vmatpush1.bf16.msra.mxu1 %v3548_v20  ;;  %v3647_v20 = vld [vmem:[#allocation5 + $0x810] ss:$8 sps:$4 sm:$0xff]  }
 0x133   : > { %2397 = vmatpush1.bf16.msra.mxu0 %v3551_v21  ;;  %2226 = vmatprep.subr.bf16.mxu1 %v3556_v22  ;;  %v3652_v21 = vld [vmem:[#allocation5 + $0x824] ss:$8 sps:$4 sm:$0xff]   ;;  %v3650_v22 = vld [vmem:[#allocation5 + $0x820] ss:$8 sps:$4 sm:$0xff]  }
 0x134   : > { %2398 = vmatprep.subr.bf16.mxu0 %v3559_v23  ;;  %v3655_v23 = vld [vmem:[#allocation5 + $0x834] ss:$8 sps:$4 sm:$0xff]  }
 0x136   : > { %2227 = vmatpush1.bf16.msra.mxu1 %v3554_v24  ;;  %v3653_v24 = vld [vmem:[#allocation5 + $0x830] ss:$8 sps:$4 sm:$0xff]  }
 0x137   : > { %2399 = vmatpush1.bf16.msra.mxu0 %v3557_v25  ;;  %2228 = vmatprep.subr.bf16.mxu1 %v3562_v26  ;;  %v3658_v25 = vld [vmem:[#allocation5 + $0x844] ss:$8 sps:$4 sm:$0xff]   ;;  %v3656_v26 = vld [vmem:[#allocation5 + $0x840] ss:$8 sps:$4 sm:$0xff]  }
 0x138   : > { %2400 = vmatprep.subr.bf16.mxu0 %v3565_v27  ;;  %v3661_v27 = vld [vmem:[#allocation5 + $0x854] ss:$8 sps:$4 sm:$0xff]  }
 0x13a   : > { %2229 = vmatpush1.bf16.msra.mxu1 %v3560_v28  ;;  %v3659_v28 = vld [vmem:[#allocation5 + $0x850] ss:$8 sps:$4 sm:$0xff]  }
 0x13b   : > { %2401 = vmatpush1.bf16.msra.mxu0 %v3563_v29  ;;  %2230 = vmatprep.subr.bf16.mxu1 %v3568_v30  ;;  %v3664_v29 = vld [vmem:[#allocation5 + $0x864] ss:$8 sps:$4 sm:$0xff]   ;;  %v3662_v30 = vld [vmem:[#allocation5 + $0x860] ss:$8 sps:$4 sm:$0xff]  }
 0x13c   : > { %2402 = vmatprep.subr.bf16.mxu0 %v3571_v31  ;;  %v3667_v31 = vld [vmem:[#allocation5 + $0x874] ss:$8 sps:$4 sm:$0xff]  }
 0x13e   : > { %2231 = vmatpush1.bf16.msra.mxu1 %v3566_v32  ;;  %v3665_v32 = vld [vmem:[#allocation5 + $0x870] ss:$8 sps:$4 sm:$0xff]  }
 0x13f   : > { %2403 = vmatpush1.bf16.msra.mxu0 %v3569_v33  ;;  %2232 = vmatprep.subr.bf16.mxu1 %v3574_v34  ;;  %v3670_v33 = vld [vmem:[#allocation5 + $0x884] ss:$8 sps:$4 sm:$0xff]   ;;  %v3668_v34 = vld [vmem:[#allocation5 + $0x880] ss:$8 sps:$4 sm:$0xff]  }
 0x140   : > { %2404 = vmatprep.subr.bf16.mxu0 %v3577_v35  ;;  %v3673_v35 = vld [vmem:[#allocation5 + $0x894] ss:$8 sps:$4 sm:$0xff]  }
 0x142   : > { %2233 = vmatpush1.bf16.msra.mxu1 %v3572_v36  ;;  %v3671_v36 = vld [vmem:[#allocation5 + $0x890] ss:$8 sps:$4 sm:$0xff]  }
 0x143   : > { %2405 = vmatpush1.bf16.msra.mxu0 %v3575_v37  ;;  %2234 = vmatprep.subr.bf16.mxu1 %v3580_v38  ;;  %v3676_v37 = vld [vmem:[#allocation5 + $0x8a4] ss:$8 sps:$4 sm:$0xff]   ;;  %v3674_v38 = vld [vmem:[#allocation5 + $0x8a0] ss:$8 sps:$4 sm:$0xff]  }
 0x144   : > { %2406 = vmatprep.subr.bf16.mxu0 %v3583_v39  ;;  %v3679_v39 = vld [vmem:[#allocation5 + $0x8b4] ss:$8 sps:$4 sm:$0xff]  }
 0x146   : > { %2235 = vmatpush1.bf16.msra.mxu1 %v3578_v40  ;;  %v3677_v40 = vld [vmem:[#allocation5 + $0x8b0] ss:$8 sps:$4 sm:$0xff]  }
 0x147   : > { %2407 = vmatpush1.bf16.msra.mxu0 %v3581_v41  ;;  %2236 = vmatprep.subr.bf16.mxu1 %v3586_v42  ;;  %v3682_v41 = vld [vmem:[#allocation5 + $0x8c4] ss:$8 sps:$4 sm:$0xff]   ;;  %v3680_v42 = vld [vmem:[#allocation5 + $0x8c0] ss:$8 sps:$4 sm:$0xff]  }
 0x148   : > { %2408 = vmatprep.subr.bf16.mxu0 %v3589_v43  ;;  %v3685_v43 = vld [vmem:[#allocation5 + $0x8d4] ss:$8 sps:$4 sm:$0xff]  }
 0x14a   : > { %2237 = vmatpush1.bf16.msra.mxu1 %v3584_v44  ;;  %v3683_v44 = vld [vmem:[#allocation5 + $0x8d0] ss:$8 sps:$4 sm:$0xff]  }
 0x14b   : > { %2409 = vmatpush1.bf16.msra.mxu0 %v3587_v45  ;;  %2238 = vmatprep.subr.bf16.mxu1 %v3592_v46  ;;  %v3688_v45 = vld [vmem:[#allocation5 + $0x8e4] ss:$8 sps:$4 sm:$0xff]   ;;  %v3686_v46 = vld [vmem:[#allocation5 + $0x8e0] ss:$8 sps:$4 sm:$0xff]  }
 0x14c   : > { %2410 = vmatprep.subr.bf16.mxu0 %v3595_v47  ;;  %v3691_v47 = vld [vmem:[#allocation5 + $0x8f4] ss:$8 sps:$4 sm:$0xff]  }
 0x14e   : > { %2239 = vmatpush1.bf16.msra.mxu1 %v3590_v48  ;;  %v3689_v48 = vld [vmem:[#allocation5 + $0x8f0] ss:$8 sps:$4 sm:$0xff]  }
 0x14f   : > { %2411 = vmatpush1.bf16.msra.mxu0 %v3593_v49  ;;  %2240 = vmatprep.subr.bf16.mxu1 %v3598_v50  ;;  %v3692_v49 = vld [vmem:[%s4097_s10 + $0x40] ss:$72 sps:$4 sm:$0xff]  }
 0x150   : > { %2412 = vmatprep.subr.bf16.mxu0 %v3601_v51 }
 0x152   : > { %2241 = vmatpush1.bf16.msra.mxu1 %v3596_v52 }
 0x153   : > { %2413 = vmatpush1.bf16.msra.mxu0 %v3599_v53  ;;  %2242 = vmatprep.subr.bf16.mxu1 %v3604_v54  ;;  %v2482_v54 = vlaneseq }
 0x154   : > { %2414 = vmatprep.subr.bf16.mxu0 %v3607_v55 }
 0x155   : > { %v4126_v55 = vshrl.u32 %v2482_v54, 7 }
 0x156   : > { %2243 = vmatpush1.bf16.msra.mxu1 %v3602_v56 }
 0x157   : > { %2415 = vmatpush1.bf16.msra.mxu0 %v3605_v57  ;;  %2244 = vmatprep.subr.bf16.mxu1 %v3610_v58  ;;  %v2484_v56 = vsub.s32 0, %v4126_v55  ;;  %v2480_v57 = vld [vmem:[#allocation7] sm:$0x3]  ;;  %v2488_v58 = vsub.s32 1, %v4126_v55 }
 0x158   : > { %2416 = vmatprep.subr.bf16.mxu0 %v3613_v59 }
 0x159   : > { %v2485_v59 = vrot.slane %v2480_v57, %v2484_v56 }
 0x15a   : > { %2245 = vmatpush1.bf16.msra.mxu1 %v3608_v60 }
 0x15b   : > { %2417 = vmatpush1.bf16.msra.mxu0 %v3611_v61  ;;  %2246 = vmatprep.subr.bf16.mxu1 %v3616_v62  ;;  %v2489_v61 = vrot.slane %v2480_v57, %v2488_v58 }
 0x15c   : > { %2418 = vmatprep.subr.bf16.mxu0 %v3619_v63 }
 0x15e   : > { %2247 = vmatpush1.bf16.msra.mxu1 %v3614_v0 }
 0x15f   : > { %2419 = vmatpush1.bf16.msra.mxu0 %v3617_v1  ;;  %2248 = vmatprep.subr.bf16.mxu1 %v3622_v2 }
 0x160   : > { %2420 = vmatprep.subr.bf16.mxu0 %v3625_v3 }
 0x162   : > { %2249 = vmatpush1.bf16.msra.mxu1 %v3620_v4 }
 0x163   : > { %2421 = vmatpush1.bf16.msra.mxu0 %v3623_v5  ;;  %2250 = vmatprep.subr.bf16.mxu1 %v3628_v6 }
 0x164   : > { %2422 = vmatprep.subr.bf16.mxu0 %v3631_v7 }
 0x166   : > { %2251 = vmatpush1.bf16.msra.mxu1 %v3626_v8 }
 0x167   : > { %2423 = vmatpush1.bf16.msra.mxu0 %v3629_v9  ;;  %2252 = vmatprep.subr.bf16.mxu1 %v3634_v10 }
 0x168   : > { %2424 = vmatprep.subr.bf16.mxu0 %v3637_v11 }
 0x16a   : > { %2253 = vmatpush1.bf16.msra.mxu1 %v3632_v12 }
 0x16b   : > { %2425 = vmatpush1.bf16.msra.mxu0 %v3635_v13 }
 0x16c   : > { %2437 = vmatprep.subr.bf16.mxu0 %v3646_v14 }
 0x16d   : > { %2255 = vmatmul.mubr.bf16.vlgmr.msra.gmra.mrb[0].mxu1 %v3638_v15 }
 0x16e   : > { %2427 = vmatmul.mubr.bf16.vlgmr.msra.gmra.mrb[0].mxu0 %v3641_v16 }
 0x16f   : > { %2438 = vmatpush1.bf16.msra.mxu0 %v3644_v17  ;;  %2469 = vmatprep.mubr.bf16.mxu0 %v3694_v18 }
 0x170   : > { %2439 = vmatprep.subr.bf16.mxu0 %v3649_v19 }
 0x173   : > { %2440 = vmatpush1.bf16.msra.mxu0 %v3647_v20 }
 0x174   : > { %2441 = vmatprep.subr.bf16.mxu0 %v3652_v21 }
 0x177   : > { %2442 = vmatpush1.bf16.msra.mxu0 %v3650_v22 }
 0x178   : > { %2443 = vmatprep.subr.bf16.mxu0 %v3655_v23 }
 0x17b   : > { %2444 = vmatpush1.bf16.msra.mxu0 %v3653_v24 }
 0x17c   : > { %2445 = vmatprep.subr.bf16.mxu0 %v3658_v25 }
 0x17f   : > { %2446 = vmatpush1.bf16.msra.mxu0 %v3656_v26 }
 0x180   : > { %2447 = vmatprep.subr.bf16.mxu0 %v3661_v27 }
 0x183   : > { %2448 = vmatpush1.bf16.msra.mxu0 %v3659_v28 }
 0x184   : > { %2449 = vmatprep.subr.bf16.mxu0 %v3664_v29 }
 0x187   : > { %2450 = vmatpush1.bf16.msra.mxu0 %v3662_v30 }
 0x188   : > { %2451 = vmatprep.subr.bf16.mxu0 %v3667_v31 }
 0x18b   : > { %2452 = vmatpush1.bf16.msra.mxu0 %v3665_v32 }
 0x18c   : > { %2453 = vmatprep.subr.bf16.mxu0 %v3670_v33 }
 0x18f   : > { %2454 = vmatpush1.bf16.msra.mxu0 %v3668_v34 }
 0x190   : > { %2455 = vmatprep.subr.bf16.mxu0 %v3673_v35 }
 0x193   : > { %2456 = vmatpush1.bf16.msra.mxu0 %v3671_v36 }
 0x194   : > { %2457 = vmatprep.subr.bf16.mxu0 %v3676_v37 }
 0x197   : > { %2458 = vmatpush1.bf16.msra.mxu0 %v3674_v38 }
 0x198   : > { %2459 = vmatprep.subr.bf16.mxu0 %v3679_v39 }
 0x19b   : > { %2460 = vmatpush1.bf16.msra.mxu0 %v3677_v40 }
 0x19c   : > { %2461 = vmatprep.subr.bf16.mxu0 %v3682_v41 }
 0x19f   : > { %2462 = vmatpush1.bf16.msra.mxu0 %v3680_v42 }
 0x1a0   : > { %2463 = vmatprep.subr.bf16.mxu0 %v3685_v43 }
 0x1a3   : > { %2464 = vmatpush1.bf16.msra.mxu0 %v3683_v44 }
 0x1a4   : > { %2465 = vmatprep.subr.bf16.mxu0 %v3688_v45 }
 0x1a7   : > { %2466 = vmatpush1.bf16.msra.mxu0 %v3686_v46 }
 0x1a8   : > { %2467 = vmatprep.subr.bf16.mxu0 %v3691_v47 }
 0x1ab   : > { %2468 = vmatpush1.bf16.msra.mxu0 %v3689_v48 }
 0x1ae   : > { %2470 = vmatmul.mubr.bf16.vlgmr.msra.gmra.mrb[0].mxu0 %v3692_v49 }
 0x240   : > { %v2256_v50 = vpop.f32.mrb[0].mxu1 }
 0x241   : > { %v2258_v51 = vpop.f32.mrb[1].mxu1 }
 0x242   : > { %v2260_v52 = vpop.f32.mrb[2].mxu1 }
 0x243   : > { %v2262_v53 = vpop.f32.mrb[3].mxu1 }
 0x281   : > { %v2471_v60 = vpop.f32.mrb[0].mxu0 }
 0x282   : > { %v4130_v62 = vadd.f32 %v2471_v60, %v2256_v50  ;;  %v2473_v63 = vpop.f32.mrb[1].mxu0 }
 0x283   : > { %v4133_v0 = vadd.f32 %v2473_v63, %v2258_v51  ;;  %v2475_v1 = vpop.f32.mrb[2].mxu0 }
 0x284   : > { %v2492_v2 = vadd.f32 %v4130_v62, %v2485_v59  ;;  %v3125_v3 = vadd.f32 %v2475_v1, %v2260_v52  ;;  %v2477_v4 = vpop.f32.mrb[3].mxu0  ;;  %v2528_v13 = vmul.f32 (!%p4255_p11), %v4130_v62, %v4130_v62 }
 0x285   : > { %v2493_v5 = vadd.f32 %v4133_v0, %v2489_v61  ;;  %v3126_v6 = vadd.f32 %v2477_v4, %v2262_v53  ;;  %2513 = sbr.rel (%p4255_p11) target bundleno = 667 (0x29b), region = 48  ;;  %v2529_v14 = vmul.f32 (!%p4255_p11), %v4133_v0, %v4133_v0 }
 0x286   : > { %v2494_v7 = vadd.f32 %v3125_v3, %v2485_v59  ;;  %v2514_v11 = vadd.f32 (!%p4255_p11), %v3125_v3, %v4130_v62  ;;  %v2530_v15 = vmul.f32 (!%p4255_p11), %v3125_v3, %v3125_v3 }
 0x287   : > { %v3118_v8 = vpack.c.bf16 %v2493_v5, %v2492_v2  ;;  %v2495_v9 = vadd.f32 %v3126_v6, %v2489_v61  ;;  %v2521_v12 = vadd.f32 (!%p4255_p11), %v3126_v6, %v4133_v0  ;;  %v2531_v16 = vmul.f32 (!%p4255_p11), %v3126_v6, %v3126_v6 }
 0x288   : > { %v2515_v17 = vrot.slane (!%p4255_p11), %v2514_v11, 4  ;;  %v2532_v19 = vadd.f32 (!%p4255_p11), %v2530_v15, %v2528_v13 }
 0x289   : > { %2508 = vst [vmem:[%s4137_s20] sm:$0xff] %v3118_v8  ;;  %v3119_v10 = vpack.c.bf16 %v2495_v9, %v2494_v7  ;;  %v2522_v18 = vrot.slane (!%p4255_p11), %v2521_v12, 4  ;;  %v2539_v20 = vadd.f32 (!%p4255_p11), %v2531_v16, %v2529_v14 }
 0x28a   : > { %v2516_v21 = vadd.f32 (!%p4255_p11), %v2515_v17, %v2514_v11  ;;  %v2533_v23 = vrot.slane (!%p4255_p11), %v2532_v19, 4 }
 0x28b   : > { %2509 = vst [vmem:[%s4137_s20 + $0x8] sm:$0xff] %v3119_v10  ;;  %v2523_v22 = vadd.f32 (!%p4255_p11), %v2522_v18, %v2521_v12  ;;  %v2540_v24 = vrot.slane (!%p4255_p11), %v2539_v20, 4 }
 0x28c   : > { %v2517_v25 = vrot.slane %v2516_v21, 2  ;;  %v2534_v27 = vadd.f32 %v2533_v23, %v2532_v19 }
 0x28d   : > { %v2524_v26 = vrot.slane %v2523_v22, 2  ;;  %v2541_v28 = vadd.f32 %v2540_v24, %v2539_v20 }
 0x28e   : > { %v2518_v29 = vadd.f32 %v2517_v25, %v2516_v21  ;;  %v2535_v31 = vrot.slane %v2534_v27, 2 }
 0x28f   : > { %v2525_v30 = vadd.f32 %v2524_v26, %v2523_v22  ;;  %v2542_v32 = vrot.slane %v2541_v28, 2 }
 0x290   : > { %v2519_v33 = vrot.slane %v2518_v29, 1  ;;  %v2536_v35 = vadd.f32 %v2535_v31, %v2534_v27 }
 0x291   : > { %v2526_v34 = vrot.slane %v2525_v30, 1  ;;  %v2543_v36 = vadd.f32 %v2542_v32, %v2541_v28 }
 0x292   : > { %v2520_v37 = vadd.f32 %v2519_v33, %v2518_v29  ;;  %v2537_v39 = vrot.slane %v2536_v35, 1 }
 0x293   : > { %v2527_v38 = vadd.f32 %v2526_v34, %v2525_v30  ;;  %v2544_v40 = vrot.slane %v2543_v36, 1 }
 0x294   : > { %v2538_v41 = vadd.f32 %v2537_v39, %v2536_v35 }
 0x295   : > { %v2545_v42 = vadd.f32 %v2544_v40, %v2543_v36 }
 0x296   : > { %v2547_v43 = vsel %vm2546_vm0, %v2520_v37, %v2538_v41 }
 0x297   : > { %v2548_v44 = vsel %vm2546_vm0, %v2527_v38, %v2545_v42 }
 0x298   : > { %v2551_v45 = vcombine.low %v2547_v43, %v2548_v44 }
 0x29a   : > { %3105 = vst.sshfl [vmem:[%s4143_s29] sm:$0x33 pattern:$0x76325410] %v2551_v45 }
 0x29b PF: > { %p3106_p0 = scmp.ne.s32.totalorder %s3942_s19, 1 }
 0x29c   : > { %v2567_v46 = vadd.s32 (!%p3106_p0), 8, %v4126_v55  ;;  %s3107_s5 = sshll.u32 (!%p3106_p0), %s3942_s19, 4  ;;  %vm2610_vm3 = vcmask (!%p3106_p0), 1040384  }
 0x29d   : > { %2564 = sbr.rel (%p3106_p0) target bundleno = 695 (0x2b7), region = 52  ;;  %v2569_v47 = vstv (!%p3106_p0), %s3107_s5 }
 0x29e   : > { %v2570_v48 = vadd.s32 (!%p3106_p0), %v2569_v47, %v4126_v55  ;;  %v2571_v49 = vadd.s32 (!%p3106_p0), %v2569_v47, %v2567_v46 }
 0x2a0   : > { %vm2572_vm1 = vcmp.lt.s32.totalorder (!%p3106_p0), %v2570_v48, 18  ;;  %vm2573_vm2 = vcmp.lt.s32.totalorder (!%p3106_p0), %v2571_v49, 18 }
 0x2a1   : > { %v2574_v50 = vsel (!%p3106_p0), %vm2572_vm1, %v4130_v62, 0.0  ;;  %v2575_v51 = vsel (!%p3106_p0), %vm2572_vm1, %v4133_v0, 0.0  ;;  %v2576_v52 = vsel (!%p3106_p0), %vm2573_vm2, %v3125_v3, 0.0  ;;  %v2577_v53 = vsel (!%p3106_p0), %vm2573_vm2, %v3126_v6, 0.0 }
 0x2a2   : > { %v2578_v54 = vadd.f32 (!%p3106_p0), %v2576_v52, %v2574_v50  ;;  %v2585_v56 = vadd.f32 (!%p3106_p0), %v2577_v53, %v2575_v51  ;;  %v2592_v57 = vmul.f32 (!%p3106_p0), %v2574_v50, %v2574_v50  ;;  %v2593_v58 = vmul.f32 (!%p3106_p0), %v2575_v51, %v2575_v51 }
 0x2a3   : > { %v2594_v59 = vmul.f32 (!%p3106_p0), %v2576_v52, %v2576_v52  ;;  %v2595_v60 = vmul.f32 (!%p3106_p0), %v2577_v53, %v2577_v53 }
 0x2a4   : > { %v2579_v61 = vrot.slane %v2578_v54, 4  ;;  %v2586_v63 = vrot.slane %v2585_v56, 4 }
 0x2a5   : > { %v2596_v1 = vadd.f32 %v2594_v59, %v2592_v57  ;;  %v2603_v2 = vadd.f32 %v2595_v60, %v2593_v58 }
 0x2a6   : > { %v2580_v55 = vadd.f32 %v2579_v61, %v2578_v54  ;;  %v2587_v4 = vadd.f32 %v2586_v63, %v2585_v56 }
 0x2a7   : > { %v2597_v5 = vrot.slane %v2596_v1, 4  ;;  %v2604_v7 = vrot.slane %v2603_v2, 4 }
 0x2a8   : > { %v2581_v8 = vrot.slane %v2580_v55, 2  ;;  %v2588_v62 = vrot.slane %v2587_v4, 2 }
 0x2a9   : > { %v2598_v9 = vadd.f32 %v2597_v5, %v2596_v1  ;;  %v2605_v0 = vadd.f32 %v2604_v7, %v2603_v2 }
 0x2aa   : > { %v2582_v3 = vadd.f32 %v2581_v8, %v2580_v55  ;;  %v2589_v6 = vadd.f32 %v2588_v62, %v2587_v4 }
 0x2ab   : > { %v2599_v10 = vrot.slane %v2598_v9, 2  ;;  %v2606_v11 = vrot.slane %v2605_v0, 2 }
 0x2ac   : > { %v2583_v12 = vrot.slane %v2582_v3, 1  ;;  %v2590_v13 = vrot.slane %v2589_v6, 1 }
 0x2ad   : > { %v2600_v14 = vadd.f32 %v2599_v10, %v2598_v9  ;;  %v2607_v15 = vadd.f32 %v2606_v11, %v2605_v0 }
 0x2ae   : > { %v2584_v16 = vadd.f32 %v2583_v12, %v2582_v3  ;;  %v2591_v17 = vadd.f32 %v2590_v13, %v2589_v6 }
 0x2af   : > { %v2601_v18 = vrot.slane %v2600_v14, 1  ;;  %v2608_v19 = vrot.slane %v2607_v15, 1 }
 0x2b1   : > { %v2602_v20 = vadd.f32 %v2601_v18, %v2600_v14  ;;  %v2609_v21 = vadd.f32 %v2608_v19, %v2607_v15 }
 0x2b3   : > { %v2611_v22 = vsel %vm2610_vm3, %v2584_v16, %v2602_v20  ;;  %v2612_v23 = vsel %vm2610_vm3, %v2591_v17, %v2609_v21 }
 0x2b4   : > { %v2615_v24 = vcombine.low %v2611_v22, %v2612_v23 }
 0x2b6   : > { %3108 = vst.sshfl [vmem:[%s4143_s29] sm:$0x33 pattern:$0x76325410] %v2615_v24 }
 0x2b7 PF: > { %s3121_s6 = sshll.u32 %s3942_s19, 8  ;;  %s2645_s24 = sshll.u32 %s4137_s20, 4  ;;  %s4168_s24 = int_to_ptr.vmem [resolvable:$true] %s2645_s24 }
 0x2b8   : > { %s4165_s14 = scalar_lea.hbm %s4240_s3, %s3121_s6  ;;  %s2626_s27 = scalar_lea.sflag [#allocation4], %s4093_s7 }
 0x2b9   : > { %s3781_s30 = scalar_lea.vmem %s4168_s24, 256  ;;  %p4256_p3 = scmp.ne.s32.totalorder %s4250_s11, 0 }
 0x2ba   : > { %p3782_p1 = scmp.ne.s32.totalorder %s4168_s24, %s3781_s30  ;;  %s3892_s25 = smov [#allocation8]  }
 0x2bb   : > { %s3785_s8 = sshll.u32 %s3892_s25, 4  ;;  %s3786_s8 = int_to_ptr.vmem [resolvable:$false] %s3785_s8 }
 0x2bc   : > { %p3783_p7 = pnand %p3782_p1, %p4256_p3  ;;  %s3787_s26 = scalar_lea.vmem %s3786_s8, 512 }
 0x2bd   : > { %p3788_p12 = scmp.lt.s32.totalorder %s4168_s24, %s3786_s8  ;;  %p3789_p2 = scmp.lt.s32.totalorder %s3787_s26, %s3781_s30 }
 0x2be   : > { %p3784_p9 = pneg %p3783_p7 }
 0x2bf   : > { %p3790_p13 = por %p3789_p2, %p3788_p12 }
 0x2c1   : > { %p3791_p6 = pnand %p3790_p13, %p3784_p9 }
 0x2c3   : > { %3794 = shalt.err (!%p3791_p6)
}
 0x2c4   : > { %s3795_s10 = scalar_lea.hbm %s4165_s14, 256  ;;  %s3799_s20 = scalar_lea.hbm %s4240_s3, 512 }
 0x2c5   : > { %p3796_p10 = scmp.ne.s32.totalorder %s4165_s14, %s3795_s10  ;;  %p3800_p8 = scmp.lt.u32.totalorder %s4165_s14, %s4240_s3 }
 0x2c6   : > { %p3801_p11 = scmp.lt.u32.totalorder %s3799_s20, %s3795_s10  ;;  %p3803_p1 = scmp.lt.u32.totalorder %s3795_s10, %s4165_s14 }
 0x2c7   : > { %p3797_p4 = pnand %p3796_p10, %p4256_p3 }
 0x2c8   : > { %p3802_p0 = por %p3801_p11, %p3800_p8 }
 0x2c9   : > { %p3798_p5 = pneg %p3797_p4 }
 0x2ca   : > { %p3804_p7 = por %p3803_p1, %p3802_p0 }
 0x2cc   : > { %p3805_p9 = pnand %p3804_p7, %p3798_p5 }
 0x2ce   : > { %3808 = shalt.err (!%p3805_p9)
}
 0x2cf   : > { %s3893_s28 = smov 128   ;;  %s3894_s13 = smov 8  }
 0x2d0   : > { %3168 = dma.vmem_to_hbm [thread:$0]  (%p4256_p3), %s4168_s24, 256, %s4165_s14, %s2626_s27, %s3893_s28, %s3893_s28, %s3894_s13  }
 0x2d1   : > { %s3122_s30 = sshll.u32 %s3942_s19, 6  ;;  %s2662_s25 = sshll.u32 %s4143_s29, 4  ;;  %s2663_s25 = int_to_ptr.vmem [resolvable:$true] %s2662_s25 }
 0x2d2   : > { %s4199_s10 = scalar_lea.hbm %s4241_s4, %s3122_s30  ;;  %s2631_s23 = scalar_lea.sflag [#allocation10], %s4093_s7 }
 0x2d3   : > { %s3809_s21 = scalar_lea.vmem %s2663_s25, 64  ;;  %s3895_s20 = smov [#allocation9]  }
 0x2d4   : > { %p3810_p12 = scmp.ne.s32.totalorder %s2663_s25, %s3809_s21  ;;  %s3813_s5 = sshll.u32 %s3895_s20, 4  ;;  %s3814_s5 = int_to_ptr.vmem [resolvable:$false] %s3813_s5 }
 0x2d5   : > { %s3815_s6 = scalar_lea.vmem %s3814_s5, 128  ;;  %p3816_p6 = scmp.lt.s32.totalorder %s2663_s25, %s3814_s5 }
 0x2d6   : > { %p3811_p2 = pnand %p3810_p12, %p4256_p3  ;;  %p3817_p10 = scmp.lt.s32.totalorder %s3815_s6, %s3809_s21 }
 0x2d8   : > { %p3812_p13 = pneg %p3811_p2  ;;  %p3818_p4 = por %p3817_p10, %p3816_p6 }
 0x2da   : > { %p3819_p5 = pnand %p3818_p4, %p3812_p13 }
 0x2dc   : > { %3822 = shalt.err (!%p3819_p5)
}
 0x2dd   : > { %s3823_s19 = scalar_lea.hbm %s4199_s10, 64  ;;  %s3827_s14 = scalar_lea.hbm %s4241_s4, 128 }
 0x2de   : > { %p3824_p8 = scmp.ne.s32.totalorder %s4199_s10, %s3823_s19  ;;  %p3828_p1 = scmp.lt.u32.totalorder %s4199_s10, %s4241_s4 }
 0x2df   : > { %p3829_p7 = scmp.lt.u32.totalorder %s3827_s14, %s3823_s19  ;;  %p3831_p12 = scmp.lt.u32.totalorder %s3823_s19, %s4199_s10 }
 0x2e0   : > { %p3825_p11 = pnand %p3824_p8, %p4256_p3 }
 0x2e1   : > { %p3830_p9 = por %p3829_p7, %p3828_p1 }
 0x2e2   : > { %p3826_p0 = pneg %p3825_p11 }
 0x2e3   : > { %p3832_p2 = por %p3831_p12, %p3830_p9 }
 0x2e5   : > { %p3833_p13 = pnand %p3832_p2, %p3826_p0 }
 0x2e7   : > { %3836 = shalt.err (!%p3833_p13)
}
 0x2e8   : > { %3169 = dma.vmem_to_hbm [thread:$0]  (%p4256_p3), %s2663_s25, 64, %s4199_s10, %s2631_s23  }
 0x2e9 PF: > { %s2674_s28 = sand.u32 1, %s3871_s15   ;;  %p4257_p6 = scmp.ne.s32.totalorder %s4246_s22, 0 }
 0x2ea   : > { %p4258_p10 = scmp.ge.s32.totalorder %s3883_s18, 2  ;;  %s2675_s13 = scalar_lea.sflag [#allocation4], %s2674_s28 }
 0x2ec   : > { %p3184_p4 = pnand %p4258_p10, %p4257_p6 }
 0x2ee   : > { %3862 = dma.done.wait (!%p3184_p4), %s2675_s13, 256  }
 0x2ef   : > { %3864 = vsyncadd (!%p3184_p4), %s2675_s13, 4294967040  ;;  %s2684_s30 = scalar_lea.sflag [#allocation10], %s2674_s28 }
 0x2f0   : > { %3866 = dma.done.wait (!%p3184_p4), %s2684_s30, 64  }
 0x2f1   : > { %3868 = vsyncadd (!%p3184_p4), %s2684_s30, 4294967232  ;;  %p22_p3 = scmp.ge.s32.totalorder %s4031_s9, 4   ;;  %s4259_s15 = smov %s3875_s16 }
 0x2f2   : > { %s4260_s16 = smov %s3879_s17  ;;  %s4261_s17 = smov %s4047_s12 }
 0x2f3   : > { %s4262_s18 = smov %s4031_s9  ;;  %24 = sbr.rel (!%p22_p3) target bundleno = 8 (0x8), region = 110 }
 0x2fa   :  { %2689 = vsyncpa [#allocation3], 1 }
 0x2fb   :  { %2691 = vsyncpa [#allocation3 + $0x1], 1 }
 0x2fc   :  { %2692 = vsyncpa [#allocation6], 1 }
 0x2fd   :  { %2693 = vsyncpa [#allocation4], 1 }
 0x2fe   :  { %2695 = vsyncpa [#allocation4 + $0x1], 1 }
 0x2ff   :  { %2696 = vsyncpa [#allocation10], 1 }
 0x300   :  { %2698 = vsyncpa [#allocation10 + $0x1], 1 }

// kernel: custom_cnn_forward.11
= control target key start
LH: loop header
LB: loop body
LE: loop exit
PB: predicated region body
PF: predicated region fallthrough
CT: control target
= control target key end

     0   :  { %8 = vsyncpa [#allocation3], 0  ;;  %s444_s0 = inlined_call_operand.hbm [shape: bf16[2,1,128], index: 0, kind: input, shape index: {}]   ;;  %s445_s1 = inlined_call_operand.hbm [shape: f32[128,128], index: 1, kind: input, shape index: {}]   ;;  %s446_s2 = inlined_call_operand.hbm [shape: f32[1,128], index: 2, kind: input, shape index: {}]   ;;  %s447_s3 = inlined_call_operand.hbm [shape: f32[2,128], index: 3, kind: output, shape index: {}]  }
   0x1   :  { %9 = vsyncpa [#allocation6], 0 }
   0x2   :  { %10 = vsyncpa [#allocation4], 0  ;;  %s365_s12 = smov [#allocation5]   ;;  %s271_s16 = scalar_lea.hbm %s445_s1, 2048 }
   0x3   :  { %s28_s13 = sshll.u32 %s365_s12, 4  ;;  %p272_p0 = scmp.ne.s32.totalorder %s445_s1, %s271_s16  ;;  %s29_s13 = int_to_ptr.vmem [resolvable:$true] %s28_s13 }
   0x4   :  { %p275_p1 = scmp.lt.u32.totalorder %s271_s16, %s445_s1 }
   0x6   :  { %p277_p2 = pnand %p275_p1, %p272_p0 }
   0x8   :  { %280 = shalt.err (!%p277_p2)
}
   0x9   :  { %s281_s21 = scalar_lea.vmem %s29_s13, 2048  ;;  %p286_p4 = scmp.lt.s32.totalorder %s29_s13, %s29_s13 }
   0xa   :  { %p282_p3 = scmp.ne.s32.totalorder %s29_s13, %s281_s21  ;;  %p287_p5 = scmp.lt.s32.totalorder %s281_s21, %s281_s21 }
   0xc   :  { %p288_p6 = por %p287_p5, %p286_p4 }
   0xe   :  { %p289_p7 = pnand %p288_p6, %p282_p3 }
  0x10   :  { %292 = shalt.err (!%p289_p7)
}
  0x11   :  { %s366_s22 = smov 128   ;;  %s367_s23 = smov 8  }
  0x12   :  { %34 = dma.hbm_to_vmem [thread:$0]  %s445_s1, 2048, %s29_s13, [#allocation6], %s366_s22, %s366_s22, %s367_s23  }
  0x13   :  { %s368_s26 = smov [#allocation2]   ;;  %s293_s30 = scalar_lea.hbm %s444_s0, 32 }
  0x14   :  { %s16_s27 = sshll.u32 %s368_s26, 4  ;;  %p294_p8 = scmp.ne.s32.totalorder %s444_s0, %s293_s30  ;;  %s17_s27 = int_to_ptr.vmem [resolvable:$true] %s16_s27 }
  0x15   :  { %p297_p9 = scmp.lt.u32.totalorder %s293_s30, %s444_s0 }
  0x17   :  { %p299_p10 = pnand %p297_p9, %p294_p8 }
  0x19   :  { %302 = shalt.err (!%p299_p10)
}
  0x1a   :  { %s303_s8 = scalar_lea.vmem %s17_s27, 32  ;;  %p308_p12 = scmp.lt.s32.totalorder %s17_s27, %s17_s27 }
  0x1b   :  { %p304_p11 = scmp.ne.s32.totalorder %s17_s27, %s303_s8  ;;  %p309_p13 = scmp.lt.s32.totalorder %s303_s8, %s303_s8 }
  0x1d   :  { %p310_p0 = por %p309_p13, %p308_p12 }
  0x1f   :  { %p311_p1 = pnand %p310_p0, %p304_p11 }
  0x21   :  { %314 = shalt.err (!%p311_p1)
}
  0x22   :  { %s369_s1 = smov 16   ;;  %s370_s9 = smov 1  }
  0x23   :  { %22 = dma.hbm_to_vmem [thread:$0]  %s444_s0, 32, %s17_s27, [#allocation3], %s369_s1, %s369_s1, %s370_s9  }
  0x24   :  { %s371_s12 = smov [#allocation7]   ;;  %s315_s16 = scalar_lea.hbm %s446_s2, 16 }
  0x25   :  { %s41_s13 = sshll.u32 %s371_s12, 4  ;;  %p316_p2 = scmp.ne.s32.totalorder %s446_s2, %s315_s16  ;;  %s42_s13 = int_to_ptr.vmem [resolvable:$true] %s41_s13 }
  0x26   :  { %p319_p3 = scmp.lt.u32.totalorder %s315_s16, %s446_s2 }
  0x28   :  { %p321_p4 = pnand %p319_p3, %p316_p2 }
  0x2a   :  { %324 = shalt.err (!%p321_p4)
}
  0x2b   :  { %s325_s21 = scalar_lea.vmem %s42_s13, 16  ;;  %s329_s0 = scalar_lea.vmem %s42_s13, 32 }
  0x2c   :  { %p326_p5 = scmp.ne.s32.totalorder %s42_s13, %s325_s21  ;;  %p330_p6 = scmp.lt.s32.totalorder %s42_s13, %s42_s13 }
  0x2d   :  { %p331_p7 = scmp.lt.s32.totalorder %s329_s0, %s325_s21 }
  0x2f   :  { %p332_p8 = por %p331_p7, %p330_p6 }
  0x31   :  { %p333_p9 = pnand %p332_p8, %p326_p5 }
  0x33   :  { %336 = shalt.err (!%p333_p9)
}
  0x34   :  { %44 = dma.hbm_to_vmem [thread:$0]  %s446_s2, 16, %s42_s13, [#allocation6]  }
  0x35   :  { %359 = dma.done.wait [#allocation3], 32  }
  0x36   :  { %360 = vsyncadd [#allocation3], 4294967264 }
  0x37   :  { %361 = dma.done.wait [#allocation6], 2064  }
  0x38   :  { %362 = vsyncadd [#allocation6], 4294965232  ;;  %v372_v0 = vmov 0.0|0.0   ;;  %vm373_vm0 = vmmov 0   ;;  %v374_v1 = vmov 0.0   ;;  %v60_v2 = vld [vmem:[#allocation5] sm:$0xff]  ;;  %v85_v17 = vlaneseq }
  0x39   :  { %236 = vmatprep.subr.bf16.mxu0 %v372_v0  ;;  %233 = vmatprep.mubr.msk.f32.mxu0 %vm373_vm0, %v374_v1  ;;  %v61_v3 = vld [vmem:[#allocation5 + $0x8] sm:$0xff]  ;;  %v62_v4 = vld [vmem:[#allocation5 + $0x10] sm:$0xff]  ;;  %v63_v6 = vld [vmem:[#allocation5 + $0x18] sm:$0xff]  ;;  %vm93_vm1 = vcmask 1041409   ;;  %s375_s2 = smov [#allocation8]  }
  0x3a   :  { %v237_v5 = vpack.c.bf16 %v61_v3, %v60_v2  ;;  %v240_v7 = vpack.c.bf16 %v63_v6, %v62_v4  ;;  %v64_v8 = vld [vmem:[#allocation5 + $0x20] sm:$0xff]  ;;  %v65_v9 = vld [vmem:[#allocation5 + $0x28] sm:$0xff]  ;;  %v66_v11 = vld [vmem:[#allocation5 + $0x30] sm:$0xff]  ;;  %v86_v22 = vshrl.u32 %v85_v17, 7  ;;  %s173_s24 = sshll.u32 %s375_s2, 4  ;;  %s174_s24 = int_to_ptr.vmem [resolvable:$true] %s173_s24 }
  0x3b   :  { %v243_v10 = vpack.c.bf16 %v65_v9, %v64_v8  ;;  %v67_v12 = vld [vmem:[#allocation5 + $0x38] sm:$0xff]  ;;  %v68_v14 = vld [vmem:[#allocation5 + $0x40] sm:$0xff]  ;;  %v69_v15 = vld [vmem:[#allocation5 + $0x48] sm:$0xff]  ;;  %s337_s25 = scalar_lea.vmem %s174_s24, 32  ;;  %p342_p11 = scmp.lt.s32.totalorder %s174_s24, %s174_s24 }
  0x3c   :  { %238 = vmatpush3.bf16.msra.mxu0 %v237_v5  ;;  %v246_v13 = vpack.c.bf16 %v67_v12, %v66_v11  ;;  %v249_v16 = vpack.c.bf16 %v69_v15, %v68_v14  ;;  %v70_v18 = vld [vmem:[#allocation5 + $0x50] sm:$0xff]  ;;  %v71_v19 = vld [vmem:[#allocation5 + $0x58] sm:$0xff]  ;;  %v72_v21 = vld [vmem:[#allocation5 + $0x60] sm:$0xff]  ;;  %v87_v29 = vsub.s32 0, %v86_v22  ;;  %p338_p10 = scmp.ne.s32.totalorder %s174_s24, %s337_s25  ;;  %p343_p12 = scmp.lt.s32.totalorder %s337_s25, %s337_s25 }
  0x3d   :  { %239 = vmatprep.subr.bf16.mxu0 %v372_v0  ;;  %v252_v20 = vpack.c.bf16 %v71_v19, %v70_v18  ;;  %v73_v23 = vld [vmem:[#allocation5 + $0x68] sm:$0xff]  ;;  %v54_v24 = vld [vmem:[#allocation2] sm:$0x1]  ;;  %v55_v25 = vld [vmem:[#allocation2 + $0x1] sm:$0x1] }
  0x3e   :  { %v255_v26 = vpack.c.bf16 %v73_v23, %v72_v21  ;;  %v56_v27 = vunpack.c.l.bf16 %v54_v24  ;;  %v57_v28 = vunpack.c.l.bf16 %v55_v25  ;;  %v74_v30 = vld [vmem:[#allocation5 + $0x70] sm:$0xff]  ;;  %v75_v31 = vld [vmem:[#allocation5 + $0x78] sm:$0xff]  ;;  %v183_v36 = vld [vmem:[#allocation7] ss:$0 sm:$0xff]  ;;  %p344_p13 = por %p343_p12, %p342_p11 }
  0x3f   :  { %v258_v32 = vpack.c.bf16 %v75_v31, %v74_v30 }
  0x40   :  { %241 = vmatpush3.bf16.msra.mxu0 %v240_v7  ;;  %v88_v33 = vrot.slane %v56_v27, %v87_v29  ;;  %v92_v34 = vrot.slane %v57_v28, %v87_v29  ;;  %p345_p0 = pnand %p344_p13, %p338_p10 }
  0x41   :  { %242 = vmatprep.subr.bf16.mxu0 %v372_v0 }
  0x42   :  { %v94_v35 = vsel %vm93_vm1, %v92_v34, %v88_v33 }
  0x44   :  { %244 = vmatpush3.bf16.msra.mxu0 %v243_v10 }
  0x45   :  { %245 = vmatprep.subr.bf16.mxu0 %v372_v0 }
  0x48   :  { %247 = vmatpush3.bf16.msra.mxu0 %v246_v13 }
  0x49   :  { %248 = vmatprep.subr.bf16.mxu0 %v372_v0 }
  0x4c   :  { %250 = vmatpush3.bf16.msra.mxu0 %v249_v16 }
  0x4d   :  { %251 = vmatprep.subr.bf16.mxu0 %v372_v0 }
  0x50   :  { %253 = vmatpush3.bf16.msra.mxu0 %v252_v20 }
  0x51   :  { %254 = vmatprep.subr.bf16.mxu0 %v372_v0 }
  0x54   :  { %256 = vmatpush3.bf16.msra.mxu0 %v255_v26 }
  0x55   :  { %257 = vmatprep.subr.bf16.mxu0 %v372_v0 }
  0x58   :  { %259 = vmatpush3.bf16.msra.mxu0 %v258_v32 }
  0x5b   :  { %234 = vmatmul.mubr.f32.vlgmr.msra.gmra.mrb[0].mxu0 %v94_v35 }
 0x12e   :  { %v162_v37 = vpop.f32.mrb[0].mxu0 }
 0x12f   :  { %v163_v38 = vadd.f32 %v183_v36, %v162_v37  ;;  %v235_v39 = vpop.f32.mrb[1].mxu0 }
 0x131   :  { %166 = vst [vmem:[#allocation8] sm:$0x3] %v163_v38 }
 0x132   :  { %348 = shalt.err (!%p345_p0)
}
 0x133   :  { %s349_s28 = scalar_lea.hbm %s447_s3, 32 }
 0x134   :  { %p350_p1 = scmp.ne.s32.totalorder %s447_s3, %s349_s28  ;;  %p353_p2 = scmp.lt.u32.totalorder %s349_s28, %s447_s3 }
 0x136   :  { %p355_p3 = pnand %p353_p2, %p350_p1 }
 0x138   :  { %358 = shalt.err (!%p355_p3)
}
 0x139   :  { %176 = dma.vmem_to_hbm [thread:$0]  %s174_s24, 32, %s447_s3, [#allocation4]  }
 0x13a   :  { %363 = dma.done.wait [#allocation4], 32  }
 0x13b   :  { %364 = vsyncadd [#allocation4], 4294967264 }
 0x13c   :  { %180 = vsyncpa [#allocation3], 1 }
 0x13d   :  { %181 = vsyncpa [#allocation6], 1 }
 0x13e   :  { %182 = vsyncpa [#allocation4], 1 }

// kernel: custom_cnn_forward.10
= control target key start
LH: loop header
LB: loop body
LE: loop exit
PB: predicated region body
PF: predicated region fallthrough
CT: control target
= control target key end

     0   :  { %10 = vsyncpa [#allocation3], 0  ;;  %s3287_s0 = inlined_call_operand.hbm [shape: bf16[32,2304], index: 0, kind: input, shape index: {}]   ;;  %s3288_s1 = inlined_call_operand.hbm [shape: bf16[2304,128], index: 1, kind: input, shape index: {}]   ;;  %s3289_s2 = inlined_call_operand.hbm [shape: f32[1,128], index: 2, kind: input, shape index: {}]   ;;  %s3290_s3 = inlined_call_operand.hbm [shape: bf16[32,128], index: 3, kind: output, shape index: {0}]   ;;  %s3291_s4 = inlined_call_operand.hbm [shape: f32[2,2,128], index: 4, kind: output, shape index: {1}]  }
   0x1   :  { %12 = vsyncpa [#allocation3 + $0x1], 0 }
   0x2   :  { %13 = vsyncpa [#allocation6], 0 }
   0x3   :  { %14 = vsyncpa [#allocation4], 0 }
   0x4   :  { %16 = vsyncpa [#allocation4 + $0x1], 0 }
   0x5   :  { %17 = vsyncpa [#allocation10], 0 }
   0x6   :  { %19 = vsyncpa [#allocation10 + $0x1], 0  ;;  %s2991_s15 = smov 0   ;;  %s2993_s16 = smov 0  }
   0x7   :  { %s2995_s17 = smov 0   ;;  %s2997_s18 = smov 0  }
   0x8 LB: > { %s3012_s19 = sadd.s32 4294967295, %s2953_s18   ;;  %s2119_s20 = sadd.s32 4294967294, %s2953_s18   ;;  %s2953_s18 = sphi %s2997_s18, %s3312_s18   ;;  %s2949_s17 = sphi %s2995_s17, %s3311_s17   ;;  %s2945_s16 = sphi %s2993_s16, %s3310_s16   ;;  %s2941_s15 = sphi %s2991_s15, %s3309_s15  }
   0x9   : > { %p45_p0 = scmp.ne.s32.totalorder %s2945_s16, %s2941_s15  ;;  %p3292_p1 = scmp.eq.s32.totalorder %s3012_s19, 0 }
   0xa   : > { %p117_p3 = scmp.eq.s32.totalorder %s2119_s20, 1  ;;  %p2120_p5 = scmp.ge.s32.totalorder %s2953_s18, 1 }
   0xb   : > { %p3021_p4 = por %p3292_p1, %p45_p0  ;;  %p150_p7 = scmp.lt.s32.totalorder %s2953_s18, 3 }
   0xc   : > { %p3026_p6 = por %p117_p3, %p45_p0  ;;  %s2955_s24 = smov [#allocation5]  }
   0xd   : > { %s3295_s21 = scalar_select %p3021_p4, 1, 0 }
   0xe   : > { %s3296_s22 = scalar_select %p3026_p6, 1, 0 }
   0xf   : > { %p3031_p8 = pnand %p2120_p5, %p150_p7  ;;  %s162_s25 = sshll.u32 %s2955_s24, 4  ;;  %s3035_s25 = int_to_ptr.vmem [resolvable:$true] %s162_s25 }
  0x10   : > { %s2956_s27 = smov [#allocation7]   ;;  %s2765_s5 = scalar_lea.hbm %s3288_s1, 18432 }
  0x11   : > { %p2530_p9 = pneg %p3031_p8  ;;  %s176_s28 = sshll.u32 %s2956_s27, 4  ;;  %s3046_s28 = int_to_ptr.vmem [resolvable:$true] %s176_s28 }
  0x12   : > { %p2766_p12 = scmp.ne.s32.totalorder %s3288_s1, %s2765_s5  ;;  %p2772_p5 = scmp.lt.u32.totalorder %s2765_s5, %s3288_s1 }
  0x13   : > { %p3042_p11 = pnand %p2530_p9, %p3292_p1 }
  0x15   : > { %p2767_p13 = pneg %p3042_p11 }
  0x17   : > { %p2768_p0 = pnand %p2767_p13, %p2766_p12 }
  0x19   : > { %p2769_p3 = pneg %p2768_p0 }
  0x1b   : > { %p2774_p7 = pnand %p2772_p5, %p2769_p3 }
  0x1d   : > { %2777 = shalt.err (!%p2774_p7)
}
  0x1e   : > { %s2778_s10 = scalar_lea.vmem %s3035_s25, 18432  ;;  %p2786_p2 = scmp.lt.s32.totalorder %s3035_s25, %s3035_s25 }
  0x1f   : > { %p2779_p9 = scmp.ne.s32.totalorder %s3035_s25, %s2778_s10  ;;  %p2787_p12 = scmp.lt.s32.totalorder %s2778_s10, %s2778_s10 }
  0x21   : > { %p2781_p10 = pnand %p2779_p9, %p2767_p13  ;;  %p2788_p0 = por %p2787_p12, %p2786_p2 }
  0x23   : > { %p2782_p1 = pneg %p2781_p10 }
  0x25   : > { %p2789_p6 = pnand %p2788_p0, %p2782_p1 }
  0x27   : > { %2792 = shalt.err (!%p2789_p6)
}
  0x28   : > { %s2957_s11 = smov 64   ;;  %s2958_s12 = smov 4  }
  0x29   : > { %2533 = dma.hbm_to_vmem [thread:$0]  (!%p3042_p11), %s3288_s1, 18432, %s3035_s25, [#allocation6], %s2957_s11, %s2957_s11, %s2958_s12  }
  0x2a   : > { %s2793_s27 = scalar_lea.hbm %s3289_s2, 16 }
  0x2b   : > { %p2794_p2 = scmp.ne.s32.totalorder %s3289_s2, %s2793_s27  ;;  %p2800_p10 = scmp.lt.u32.totalorder %s2793_s27, %s3289_s2 }
  0x2d   : > { %p2796_p1 = pnand %p2794_p2, %p2767_p13 }
  0x2f   : > { %p2797_p6 = pneg %p2796_p1 }
  0x31   : > { %p2802_p3 = pnand %p2800_p10, %p2797_p6 }
  0x33   : > { %2805 = shalt.err (!%p2802_p3)
}
  0x34   : > { %s2806_s25 = scalar_lea.vmem %s3046_s28, 16  ;;  %s2813_s7 = scalar_lea.vmem %s3046_s28, 32 }
  0x35   : > { %p2807_p5 = scmp.ne.s32.totalorder %s3046_s28, %s2806_s25  ;;  %p2814_p12 = scmp.lt.s32.totalorder %s3046_s28, %s3046_s28 }
  0x36   : > { %p2815_p0 = scmp.lt.s32.totalorder %s2813_s7, %s2806_s25 }
  0x37   : > { %p2809_p7 = pnand %p2807_p5, %p2767_p13 }
  0x38   : > { %p2816_p2 = por %p2815_p0, %p2814_p12 }
  0x39   : > { %p2810_p9 = pneg %p2809_p7 }
  0x3b   : > { %p2817_p1 = pnand %p2816_p2, %p2810_p9 }
  0x3d   : > { %2820 = shalt.err (!%p2817_p1)
}
  0x3e   : > { %2536 = dma.hbm_to_vmem [thread:$0]  (!%p3042_p11), %s3289_s2, 16, %s3046_s28, [#allocation6]  }
  0x3f   : > { %s3102_s10 = sadd.s32 1, %s2953_s18   ;;  %s32_s26 = sadd.s32 1, %s2949_s17 }
  0x40   : > { %s29_s11 = ssub.s32 %s2953_s18, %s3102_s10  ;;  %p39_p13 = scmp.ne.s32.totalorder %s2949_s17, %s2945_s16 }
  0x41   : > { %p30_p6 = scmp.eq.s32.totalorder %s29_s11, 0  ;;  %p40_p10 = scmp.eq.s32.totalorder %s2953_s18, 0 }
  0x42   : > { %p3299_p3 = scmp.eq.s32.totalorder %s3012_s19, 1  ;;  %p2550_p7 = scmp.lt.s32.totalorder %s2953_s18, 2 }
  0x43   : > { %s3118_s13 = scalar_select %p30_p6, %s2949_s17, %s32_s26  }
  0x44   : > { %p3112_p5 = por %p3299_p3, %p39_p13  ;;  %p41_p9 = por %p40_p10, %p39_p13 }
  0x45   : > { %s187_s14 = sand.u32 1, %s2949_s17   ;;  %s2514_s28 = smul.u32 2304, %s2953_s18 }
  0x46   : > { %s3300_s12 = scalar_select %p3112_p5, 1, 0 }
  0x47   : > { %s2513_s20 = smul.u32 144, %s187_s14  ;;  %p3122_p11 = pnand %p2550_p7, %p41_p9 }
  0x48   : > { %s3129_s30 = scalar_lea.hbm %s3287_s0, %s2514_s28  ;;  %s3133_s25 = scalar_lea.sflag [#allocation3], %s187_s14 }
  0x49   : > { %s191_s5 = scalar_lea.vmem [#allocation2], %s2513_s20  ;;  %s2821_s7 = scalar_lea.hbm %s3129_s30, 2304 }
  0x4a   : > { %s199_s6 = sshll.u32 %s191_s5, 4  ;;  %p2822_p12 = scmp.ne.s32.totalorder %s3129_s30, %s2821_s7  ;;  %s3131_s6 = int_to_ptr.vmem [resolvable:$true] %s199_s6 }
  0x4b   : > { %p2823_p0 = pneg %p3122_p11  ;;  %s2826_s26 = scalar_lea.hbm %s3287_s0, 4608 }
  0x4c   : > { %p2827_p13 = scmp.lt.u32.totalorder %s3129_s30, %s3287_s0  ;;  %p2828_p6 = scmp.lt.u32.totalorder %s2826_s26, %s2821_s7 }
  0x4d   : > { %p2824_p2 = pnand %p2823_p0, %p2822_p12  ;;  %p2830_p3 = scmp.lt.u32.totalorder %s2821_s7, %s3129_s30 }
  0x4e   : > { %p2829_p10 = por %p2828_p6, %p2827_p13 }
  0x4f   : > { %p2825_p1 = pneg %p2824_p2 }
  0x50   : > { %p2831_p7 = por %p2830_p3, %p2829_p10 }
  0x52   : > { %p2832_p9 = pnand %p2831_p7, %p2825_p1 }
  0x54   : > { %2835 = shalt.err (!%p2832_p9)
}
  0x55   : > { %s2836_s14 = scalar_lea.vmem %s3131_s6, 2304  ;;  %s2959_s20 = smov [#allocation2]  }
  0x56   : > { %p2837_p12 = scmp.ne.s32.totalorder %s3131_s6, %s2836_s14  ;;  %s2841_s27 = sshll.u32 %s2959_s20, 4  ;;  %s2842_s27 = int_to_ptr.vmem [resolvable:$false] %s2841_s27 }
  0x57   : > { %s2843_s29 = scalar_lea.vmem %s2842_s27, 4608  ;;  %p2844_p4 = scmp.lt.s32.totalorder %s3131_s6, %s2842_s27 }
  0x58   : > { %p2839_p2 = pnand %p2837_p12, %p2823_p0  ;;  %p2845_p13 = scmp.lt.s32.totalorder %s2843_s29, %s2836_s14 }
  0x5a   : > { %p2840_p5 = pneg %p2839_p2  ;;  %p2846_p6 = por %p2845_p13, %p2844_p4 }
  0x5c   : > { %p2847_p10 = pnand %p2846_p6, %p2840_p5 }
  0x5e   : > { %2850 = shalt.err (!%p2847_p10)
}
  0x5f   : > { %s2960_s5 = smov 1152   ;;  %s2961_s7 = smov 72  }
  0x60   : > { %2540 = dma.hbm_to_vmem [thread:$0]  (!%p3122_p11), %s3129_s30, 2304, %s3131_s6, %s3133_s25, %s2960_s5, %s2960_s5, %s2961_s7  }
  0x61   : > { %211 = sbr.rel (%p3031_p8) target bundleno = 586 (0x24a), region = 32  ;;  %s3164_s8 = sand.u32 (!%p3031_p8), 1, %s2945_s16  }
  0x62   : > { %s2515_s9 = smul.u32 (!%p3031_p8), 144, %s3164_s8  ;;  %s214_s26 = scalar_lea.sflag (!%p3031_p8), [#allocation3], %s3164_s8 }
  0x63   : > { %p3302_p4 = scmp.ne.s32.totalorder (!%p3031_p8), %s3295_s21, 0 }
  0x64   : > { %s3168_s11 = scalar_lea.vmem (!%p3031_p8), [#allocation2], %s2515_s9 }
  0x68   : > { %2924 = dma.done.wait (%p3302_p4), %s214_s26, 2304  }
  0x69   : > { %2926 = vsyncadd (%p3302_p4), %s214_s26, 4294964992  ;;  %p3303_p5 = scmp.eq.s32.totalorder %s3012_s19, 0 }
  0x6b   : > { %2928 = dma.done.wait (%p3303_p5), [#allocation6], 18448   ;;  %p3304_p8 = pmov %p3303_p5 }
  0x6c   : > { %s2131_s23 = sshll.u32 %s3164_s8, 1  ;;  %v2594_v0 = vld [vmem:[#allocation5 + $0x40] sm:$0xff]   ;;  %v2598_v4 = vld [vmem:[#allocation5 + $0x48] sm:$0xff]   ;;  %v2602_v8 = vld [vmem:[#allocation5 + $0x50] sm:$0xff]   ;;  %s2130_s21 = sshll.u32 %s3164_s8, 3 }
  0x6d   : > { %2930 = vsyncadd (%p3304_p8), [#allocation6], 4294948848  ;;  %v2595_v1 = vld [vmem:[#allocation5 + $0xc0] sm:$0xff]   ;;  %2315 = vmatprep.subr.bf16.mxu0 %v2594_v0  ;;  %v2599_v5 = vld [vmem:[#allocation5 + $0xc8] sm:$0xff]   ;;  %s3198_s24 = scalar_lea.vmem [#allocation8], %s2130_s21  ;;  %s3203_s30 = scalar_lea.vmem [#allocation9], %s2131_s23 }
  0x6e   : > { %v2596_v2 = vld [vmem:[#allocation5] sm:$0xff]   ;;  %2337 = vmatprep.subr.bf16.mxu1 %v2595_v1  ;;  %v2600_v6 = vld [vmem:[#allocation5 + $0x8] sm:$0xff]   ;;  %v2603_v9 = vld [vmem:[#allocation5 + $0xd0] sm:$0xff]   ;;  %p3305_p11 = scmp.eq.s32.totalorder %s3012_s19, 1 }
  0x6f   : > { %v2597_v3 = vld [vmem:[#allocation5 + $0x80] sm:$0xff]   ;;  %2316 = vmatpush3.bf16.msra.mxu0 %v2596_v2  ;;  %v2601_v7 = vld [vmem:[#allocation5 + $0x88] sm:$0xff]   ;;  %v2604_v10 = vld [vmem:[#allocation5 + $0x10] sm:$0xff]   ;;  %vm1926_vm0 = vcmask (!%p3305_p11), 1040384  }
  0x70   : > { %2338 = vmatpush3.bf16.msra.mxu1 %v2597_v3  ;;  %2317 = vmatprep.subr.bf16.mxu0 %v2598_v4  ;;  %v2605_v11 = vld [vmem:[#allocation5 + $0x90] sm:$0xff]   ;;  %v2606_v12 = vld [vmem:[#allocation5 + $0x58] sm:$0xff]   ;;  %v2610_v16 = vld [vmem:[#allocation5 + $0x60] sm:$0xff]  }
  0x71   : > { %2339 = vmatprep.subr.bf16.mxu1 %v2599_v5  ;;  %v2607_v13 = vld [vmem:[#allocation5 + $0xd8] sm:$0xff]   ;;  %v2611_v17 = vld [vmem:[#allocation5 + $0xe0] sm:$0xff]   ;;  %v2614_v20 = vld [vmem:[#allocation5 + $0x68] sm:$0xff]  }
  0x72   : > { %v2608_v14 = vld [vmem:[#allocation5 + $0x18] sm:$0xff]   ;;  %v2612_v18 = vld [vmem:[#allocation5 + $0x20] sm:$0xff]   ;;  %v2615_v21 = vld [vmem:[#allocation5 + $0xe8] sm:$0xff]  }
  0x73   : > { %2318 = vmatpush3.bf16.msra.mxu0 %v2600_v6  ;;  %v2609_v15 = vld [vmem:[#allocation5 + $0x98] sm:$0xff]   ;;  %v2613_v19 = vld [vmem:[#allocation5 + $0xa0] sm:$0xff]   ;;  %v2616_v22 = vld [vmem:[#allocation5 + $0x28] sm:$0xff]  }
  0x74   : > { %2340 = vmatpush3.bf16.msra.mxu1 %v2601_v7  ;;  %2319 = vmatprep.subr.bf16.mxu0 %v2602_v8  ;;  %v2617_v23 = vld [vmem:[#allocation5 + $0xa8] sm:$0xff]   ;;  %v2618_v24 = vld [vmem:[#allocation5 + $0x70] sm:$0xff]   ;;  %v2622_v28 = vld [vmem:[#allocation5 + $0x78] sm:$0xff]  }
  0x75   : > { %2341 = vmatprep.subr.bf16.mxu1 %v2603_v9  ;;  %v2619_v25 = vld [vmem:[#allocation5 + $0xf0] sm:$0xff]   ;;  %v2623_v29 = vld [vmem:[#allocation5 + $0xf8] sm:$0xff]   ;;  %v2632_v36 = vld [vmem:[#allocation5 + $0x140] sm:$0xff]  }
  0x76   : > { %v2620_v26 = vld [vmem:[#allocation5 + $0x30] sm:$0xff]   ;;  %v2624_v30 = vld [vmem:[#allocation5 + $0x38] sm:$0xff]   ;;  %v2633_v37 = vld [vmem:[#allocation5 + $0x100] sm:$0xff]  }
  0x77   : > { %2320 = vmatpush3.bf16.msra.mxu0 %v2604_v10  ;;  %v2621_v27 = vld [vmem:[#allocation5 + $0xb0] sm:$0xff]   ;;  %v2625_v31 = vld [vmem:[#allocation5 + $0xb8] sm:$0xff]   ;;  %v2634_v38 = vld [vmem:[#allocation5 + $0x1c0] sm:$0xff]  }
  0x78   : > { %2342 = vmatpush3.bf16.msra.mxu1 %v2605_v11  ;;  %2321 = vmatprep.subr.bf16.mxu0 %v2606_v12  ;;  %v2626_v32 = vld [vmem:[%s3168_s11] ss:$72 sps:$4 sm:$0xff]   ;;  %v2628_v33 = vld [vmem:[%s3168_s11 + $0x4] ss:$72 sps:$4 sm:$0xff]   ;;  %v2663_v3 = vld [vmem:[%s3168_s11 + $0x10] ss:$72 sps:$4 sm:$0xff]  }
  0x79   : > { %2343 = vmatprep.subr.bf16.mxu1 %v2607_v13  ;;  %v2629_v34 = vld [vmem:[%s3168_s11 + $0x8] ss:$72 sps:$4 sm:$0xff]   ;;  %v2631_v35 = vld [vmem:[%s3168_s11 + $0xc] ss:$72 sps:$4 sm:$0xff]   ;;  %1550 = vmatprep.mubr.bf16.mxu0 %v2628_v33  ;;  %v2668_v7 = vld [vmem:[%s3168_s11 + $0x18] ss:$72 sps:$4 sm:$0xff]  }
  0x7a   : > { %1591 = vmatprep.mubr.bf16.mxu1 %v2631_v35  ;;  %v2635_v39 = vld [vmem:[#allocation5 + $0x180] sm:$0xff]   ;;  %v2636_v40 = vld [vmem:[#allocation5 + $0x148] sm:$0xff]   ;;  %v2640_v44 = vld [vmem:[#allocation5 + $0x150] sm:$0xff]  }
  0x7b   : > { %2322 = vmatpush3.bf16.msra.mxu0 %v2608_v14  ;;  %v2637_v41 = vld [vmem:[#allocation5 + $0x108] sm:$0xff]   ;;  %v2641_v45 = vld [vmem:[#allocation5 + $0x110] sm:$0xff]   ;;  %v2644_v48 = vld [vmem:[#allocation5 + $0x158] sm:$0xff]  }
  0x7c   : > { %2344 = vmatpush3.bf16.msra.mxu1 %v2609_v15  ;;  %2323 = vmatprep.subr.bf16.mxu0 %v2610_v16  ;;  %v2638_v42 = vld [vmem:[#allocation5 + $0x1c8] sm:$0xff]   ;;  %v2642_v46 = vld [vmem:[#allocation5 + $0x1d0] sm:$0xff]   ;;  %v2645_v49 = vld [vmem:[#allocation5 + $0x118] sm:$0xff]  }
  0x7d   : > { %2345 = vmatprep.subr.bf16.mxu1 %v2611_v17  ;;  %v2639_v43 = vld [vmem:[#allocation5 + $0x188] sm:$0xff]   ;;  %v2643_v47 = vld [vmem:[#allocation5 + $0x190] sm:$0xff]   ;;  %v2646_v50 = vld [vmem:[#allocation5 + $0x1d8] sm:$0xff]  }
  0x7e   : > { %v2647_v51 = vld [vmem:[#allocation5 + $0x198] sm:$0xff]   ;;  %v2648_v52 = vld [vmem:[#allocation5 + $0x160] sm:$0xff]   ;;  %v2652_v56 = vld [vmem:[#allocation5 + $0x168] sm:$0xff]  }
  0x7f   : > { %2324 = vmatpush3.bf16.msra.mxu0 %v2612_v18  ;;  %v2649_v53 = vld [vmem:[#allocation5 + $0x120] sm:$0xff]   ;;  %v2653_v57 = vld [vmem:[#allocation5 + $0x128] sm:$0xff]   ;;  %v2656_v60 = vld [vmem:[#allocation5 + $0x170] sm:$0xff]  }
  0x80   : > { %2346 = vmatpush3.bf16.msra.mxu1 %v2613_v19  ;;  %2325 = vmatprep.subr.bf16.mxu0 %v2614_v20  ;;  %v2650_v54 = vld [vmem:[#allocation5 + $0x1e0] sm:$0xff]   ;;  %v2654_v58 = vld [vmem:[#allocation5 + $0x1e8] sm:$0xff]   ;;  %v2657_v61 = vld [vmem:[#allocation5 + $0x130] sm:$0xff]  }
  0x81   : > { %2347 = vmatprep.subr.bf16.mxu1 %v2615_v21  ;;  %v2651_v55 = vld [vmem:[#allocation5 + $0x1a0] sm:$0xff]   ;;  %v2655_v59 = vld [vmem:[#allocation5 + $0x1a8] sm:$0xff]   ;;  %v2658_v62 = vld [vmem:[#allocation5 + $0x1f0] sm:$0xff]  }
  0x82   : > { %v2659_v63 = vld [vmem:[#allocation5 + $0x1b0] sm:$0xff]   ;;  %v2660_v0 = vld [vmem:[#allocation5 + $0x178] sm:$0xff]   ;;  %v2667_v6 = vld [vmem:[#allocation5 + $0x240] sm:$0xff]  }
  0x83   : > { %2326 = vmatpush3.bf16.msra.mxu0 %v2616_v22  ;;  %v2661_v1 = vld [vmem:[#allocation5 + $0x138] sm:$0xff]   ;;  %v2671_v9 = vld [vmem:[#allocation5 + $0x200] sm:$0xff]   ;;  %v2674_v12 = vld [vmem:[#allocation5 + $0x248] sm:$0xff]  }
  0x84   : > { %2348 = vmatpush3.bf16.msra.mxu1 %v2617_v23  ;;  %2327 = vmatprep.subr.bf16.mxu0 %v2618_v24  ;;  %v2662_v2 = vld [vmem:[#allocation5 + $0x1f8] sm:$0xff]   ;;  %v2672_v10 = vld [vmem:[#allocation5 + $0x2c0] sm:$0xff]   ;;  %v2675_v13 = vld [vmem:[#allocation5 + $0x208] sm:$0xff]  }
  0x85   : > { %2349 = vmatprep.subr.bf16.mxu1 %v2619_v25  ;;  %v2665_v4 = vld [vmem:[%s3168_s11 + $0x14] ss:$72 sps:$4 sm:$0xff]  }
  0x86   : > { %v2666_v5 = vld [vmem:[#allocation5 + $0x1b8] sm:$0xff]   ;;  %v2673_v11 = vld [vmem:[#allocation5 + $0x280] sm:$0xff]   ;;  %v2676_v14 = vld [vmem:[#allocation5 + $0x2c8] sm:$0xff]  }
  0x87   : > { %2328 = vmatpush3.bf16.msra.mxu0 %v2620_v26  ;;  %v2670_v8 = vld [vmem:[%s3168_s11 + $0x1c] ss:$72 sps:$4 sm:$0xff]  }
  0x88   : > { %2350 = vmatpush3.bf16.msra.mxu1 %v2621_v27  ;;  %2329 = vmatprep.subr.bf16.mxu0 %v2622_v28  ;;  %v2677_v15 = vld [vmem:[#allocation5 + $0x288] sm:$0xff]   ;;  %v2678_v16 = vld [vmem:[#allocation5 + $0x250] sm:$0xff]   ;;  %v2682_v20 = vld [vmem:[#allocation5 + $0x258] sm:$0xff]  }
  0x89   : > { %2351 = vmatprep.subr.bf16.mxu1 %v2623_v29  ;;  %v2679_v17 = vld [vmem:[#allocation5 + $0x210] sm:$0xff]   ;;  %v2683_v21 = vld [vmem:[#allocation5 + $0x218] sm:$0xff]   ;;  %v2686_v24 = vld [vmem:[#allocation5 + $0x260] sm:$0xff]  }
  0x8a   : > { %v2680_v18 = vld [vmem:[#allocation5 + $0x2d0] sm:$0xff]   ;;  %v2684_v22 = vld [vmem:[#allocation5 + $0x2d8] sm:$0xff]   ;;  %v2687_v25 = vld [vmem:[#allocation5 + $0x220] sm:$0xff]  }
  0x8b   : > { %2330 = vmatpush3.bf16.msra.mxu0 %v2624_v30  ;;  %v2681_v19 = vld [vmem:[#allocation5 + $0x290] sm:$0xff]   ;;  %v2685_v23 = vld [vmem:[#allocation5 + $0x298] sm:$0xff]   ;;  %v2688_v26 = vld [vmem:[#allocation5 + $0x2e0] sm:$0xff]  }
  0x8c   : > { %2352 = vmatpush3.bf16.msra.mxu1 %v2625_v31  ;;  %2359 = vmatprep.subr.bf16.mxu0 %v2632_v36  ;;  %v2689_v27 = vld [vmem:[#allocation5 + $0x2a0] sm:$0xff]   ;;  %v2690_v28 = vld [vmem:[#allocation5 + $0x268] sm:$0xff]   ;;  %v2695_v33 = vld [vmem:[#allocation5 + $0x230] sm:$0xff]  }
  0x8d   : > { %2381 = vmatprep.subr.bf16.mxu1 %v2634_v38  ;;  %v2691_v29 = vld [vmem:[#allocation5 + $0x228] sm:$0xff]   ;;  %v2697_v35 = vld [vmem:[#allocation5 + $0x2b0] sm:$0xff]   ;;  %v2698_v36 = vld [vmem:[#allocation5 + $0x278] sm:$0xff]  }
  0x8e   : > { %1551 = vmatmul.mubr.bf16.vlgmr.msra.gmra.mrb[0].mxu0 %v2626_v32  ;;  %v2692_v30 = vld [vmem:[#allocation5 + $0x2e8] sm:$0xff]   ;;  %v2694_v32 = vld [vmem:[#allocation5 + $0x270] sm:$0xff]   ;;  %v2700_v38 = vld [vmem:[#allocation5 + $0x2f8] sm:$0xff]  }
  0x8f   : > { %1592 = vmatmul.mubr.bf16.vlgmr.msra.gmra.mrb[0].mxu1 %v2629_v34  ;;  %2360 = vmatpush3.bf16.msra.mxu0 %v2633_v37  ;;  %v2693_v31 = vld [vmem:[#allocation5 + $0x2a8] sm:$0xff]   ;;  %v2696_v34 = vld [vmem:[#allocation5 + $0x2f0] sm:$0xff]   ;;  %v2699_v37 = vld [vmem:[#allocation5 + $0x238] sm:$0xff]  }
  0x90   : > { %2382 = vmatpush3.bf16.msra.mxu1 %v2635_v39  ;;  %2361 = vmatprep.subr.bf16.mxu0 %v2636_v40  ;;  %v2701_v39 = vld [vmem:[%s3168_s11 + $0x20] ss:$72 sps:$4 sm:$0xff]   ;;  %v2703_v40 = vld [vmem:[%s3168_s11 + $0x24] ss:$72 sps:$4 sm:$0xff]  }
  0x91   : > { %2383 = vmatprep.subr.bf16.mxu1 %v2638_v42  ;;  %1632 = vmatprep.mubr.bf16.mxu0 %v2665_v4  ;;  %v2705_v42 = vld [vmem:[#allocation5 + $0x340] sm:$0xff]   ;;  %v2732_v4 = vld [vmem:[#allocation5 + $0x370] sm:$0xff]  }
  0x92   : > { %1673 = vmatprep.mubr.bf16.mxu1 %v2670_v8  ;;  %v2736_v8 = vld [vmem:[#allocation5 + $0x378] sm:$0xff]  }
  0x93   : > { %2362 = vmatpush3.bf16.msra.mxu0 %v2637_v41  ;;  %v2704_v41 = vld [vmem:[#allocation5 + $0x2b8] sm:$0xff]  }
  0x94   : > { %2384 = vmatpush3.bf16.msra.mxu1 %v2639_v43  ;;  %2363 = vmatprep.subr.bf16.mxu0 %v2640_v44  ;;  %v2706_v43 = vld [vmem:[%s3168_s11 + $0x28] ss:$72 sps:$4 sm:$0xff]   ;;  %v2708_v44 = vld [vmem:[%s3168_s11 + $0x2c] ss:$72 sps:$4 sm:$0xff]  }
  0x95   : > { %2385 = vmatprep.subr.bf16.mxu1 %v2642_v46  ;;  %v2710_v46 = vld [vmem:[#allocation5 + $0x3c0] sm:$0xff]  }
  0x97   : > { %2364 = vmatpush3.bf16.msra.mxu0 %v2641_v45  ;;  %v2709_v45 = vld [vmem:[#allocation5 + $0x300] sm:$0xff]  }
  0x98   : > { %2386 = vmatpush3.bf16.msra.mxu1 %v2643_v47  ;;  %2365 = vmatprep.subr.bf16.mxu0 %v2644_v48  ;;  %v2711_v47 = vld [vmem:[#allocation5 + $0x380] sm:$0xff]   ;;  %v2712_v48 = vld [vmem:[#allocation5 + $0x348] sm:$0xff]  }
  0x99   : > { %2387 = vmatprep.subr.bf16.mxu1 %v2646_v50  ;;  %v2714_v50 = vld [vmem:[#allocation5 + $0x3c8] sm:$0xff]  }
  0x9b   : > { %2366 = vmatpush3.bf16.msra.mxu0 %v2645_v49  ;;  %v2713_v49 = vld [vmem:[#allocation5 + $0x308] sm:$0xff]  }
  0x9c   : > { %2388 = vmatpush3.bf16.msra.mxu1 %v2647_v51  ;;  %2367 = vmatprep.subr.bf16.mxu0 %v2648_v52  ;;  %v2715_v51 = vld [vmem:[#allocation5 + $0x388] sm:$0xff]   ;;  %v2716_v52 = vld [vmem:[#allocation5 + $0x350] sm:$0xff]  }
  0x9d   : > { %2389 = vmatprep.subr.bf16.mxu1 %v2650_v54  ;;  %v2718_v54 = vld [vmem:[#allocation5 + $0x3d0] sm:$0xff]  }
  0x9f   : > { %2368 = vmatpush3.bf16.msra.mxu0 %v2649_v53  ;;  %v2717_v53 = vld [vmem:[#allocation5 + $0x310] sm:$0xff]  }
  0xa0   : > { %2390 = vmatpush3.bf16.msra.mxu1 %v2651_v55  ;;  %2369 = vmatprep.subr.bf16.mxu0 %v2652_v56  ;;  %v2719_v55 = vld [vmem:[#allocation5 + $0x390] sm:$0xff]   ;;  %v2720_v56 = vld [vmem:[#allocation5 + $0x358] sm:$0xff]  }
  0xa1   : > { %2391 = vmatprep.subr.bf16.mxu1 %v2654_v58  ;;  %v2722_v58 = vld [vmem:[#allocation5 + $0x3d8] sm:$0xff]  }
  0xa3   : > { %2370 = vmatpush3.bf16.msra.mxu0 %v2653_v57  ;;  %v2721_v57 = vld [vmem:[#allocation5 + $0x318] sm:$0xff]  }
  0xa4   : > { %2392 = vmatpush3.bf16.msra.mxu1 %v2655_v59  ;;  %2371 = vmatprep.subr.bf16.mxu0 %v2656_v60  ;;  %v2723_v59 = vld [vmem:[#allocation5 + $0x398] sm:$0xff]   ;;  %v2724_v60 = vld [vmem:[#allocation5 + $0x360] sm:$0xff]  }
  0xa5   : > { %2393 = vmatprep.subr.bf16.mxu1 %v2658_v62  ;;  %v2726_v62 = vld [vmem:[#allocation5 + $0x3e0] sm:$0xff]  }
  0xa7   : > { %2372 = vmatpush3.bf16.msra.mxu0 %v2657_v61  ;;  %v2725_v61 = vld [vmem:[#allocation5 + $0x320] sm:$0xff]  }
  0xa8   : > { %2394 = vmatpush3.bf16.msra.mxu1 %v2659_v63  ;;  %2373 = vmatprep.subr.bf16.mxu0 %v2660_v0  ;;  %v2727_v63 = vld [vmem:[#allocation5 + $0x3a0] sm:$0xff]   ;;  %v2728_v0 = vld [vmem:[#allocation5 + $0x368] sm:$0xff]  }
  0xa9   : > { %2395 = vmatprep.subr.bf16.mxu1 %v2662_v2  ;;  %v2730_v2 = vld [vmem:[#allocation5 + $0x3e8] sm:$0xff]  }
  0xab   : > { %2374 = vmatpush3.bf16.msra.mxu0 %v2661_v1  ;;  %v2729_v1 = vld [vmem:[#allocation5 + $0x328] sm:$0xff]  }
  0xac   : > { %2396 = vmatpush3.bf16.msra.mxu1 %v2666_v5  ;;  %2403 = vmatprep.subr.bf16.mxu0 %v2667_v6  ;;  %v2733_v5 = vld [vmem:[#allocation5 + $0x330] sm:$0xff]  }
  0xad   : > { %2425 = vmatprep.subr.bf16.mxu1 %v2672_v10  ;;  %v2734_v6 = vld [vmem:[#allocation5 + $0x3f0] sm:$0xff]   ;;  %v2738_v10 = vld [vmem:[#allocation5 + $0x3f8] sm:$0xff]  }
  0xae   : > { %1633 = vmatmul.mubr.bf16.vlgmr.msra.gmra.mrb[4].mxu0 %v2663_v3  ;;  %v2731_v3 = vld [vmem:[#allocation5 + $0x3a8] sm:$0xff]  }
  0xaf   : > { %2404 = vmatpush3.bf16.msra.mxu0 %v2671_v9  ;;  %1674 = vmatmul.mubr.bf16.vlgmr.msra.gmra.mrb[4].mxu1 %v2668_v7  ;;  %v2735_v7 = vld [vmem:[#allocation5 + $0x3b0] sm:$0xff]   ;;  %v2737_v9 = vld [vmem:[#allocation5 + $0x338] sm:$0xff]  }
  0xb0   : > { %2426 = vmatpush3.bf16.msra.mxu1 %v2673_v11  ;;  %2405 = vmatprep.subr.bf16.mxu0 %v2674_v12  ;;  %v2739_v11 = vld [vmem:[%s3168_s11 + $0x30] ss:$72 sps:$4 sm:$0xff]   ;;  %v2741_v12 = vld [vmem:[%s3168_s11 + $0x34] ss:$72 sps:$4 sm:$0xff]  }
  0xb1   : > { %2427 = vmatprep.subr.bf16.mxu1 %v2676_v14  ;;  %1714 = vmatprep.mubr.bf16.mxu0 %v2703_v40  ;;  %v2743_v14 = vld [vmem:[#allocation5 + $0x440] sm:$0xff]  }
  0xb2   : > { %1755 = vmatprep.mubr.bf16.mxu1 %v2708_v44 }
  0xb3   : > { %2406 = vmatpush3.bf16.msra.mxu0 %v2675_v13  ;;  %v2742_v13 = vld [vmem:[#allocation5 + $0x3b8] sm:$0xff]  }
  0xb4   : > { %2428 = vmatpush3.bf16.msra.mxu1 %v2677_v15  ;;  %2407 = vmatprep.subr.bf16.mxu0 %v2678_v16  ;;  %v2744_v15 = vld [vmem:[%s3168_s11 + $0x38] ss:$72 sps:$4 sm:$0xff]   ;;  %v2746_v16 = vld [vmem:[%s3168_s11 + $0x3c] ss:$72 sps:$4 sm:$0xff]  }
  0xb5   : > { %2429 = vmatprep.subr.bf16.mxu1 %v2680_v18  ;;  %v2748_v18 = vld [vmem:[#allocation5 + $0x448] sm:$0xff]  }
  0xb7   : > { %2408 = vmatpush3.bf16.msra.mxu0 %v2679_v17  ;;  %v2747_v17 = vld [vmem:[#allocation5 + $0x400] sm:$0xff]  }
  0xb8   : > { %2430 = vmatpush3.bf16.msra.mxu1 %v2681_v19  ;;  %2409 = vmatprep.subr.bf16.mxu0 %v2682_v20  ;;  %v2749_v19 = vld [vmem:[#allocation5 + $0x408] sm:$0xff]   ;;  %v2750_v20 = vld [vmem:[#allocation5 + $0x450] sm:$0xff]  }
  0xb9   : > { %2431 = vmatprep.subr.bf16.mxu1 %v2684_v22  ;;  %v2752_v22 = vld [vmem:[#allocation5 + $0x458] sm:$0xff]  }
  0xbb   : > { %2410 = vmatpush3.bf16.msra.mxu0 %v2683_v21  ;;  %v2751_v21 = vld [vmem:[#allocation5 + $0x410] sm:$0xff]  }
  0xbc   : > { %2432 = vmatpush3.bf16.msra.mxu1 %v2685_v23  ;;  %2411 = vmatprep.subr.bf16.mxu0 %v2686_v24  ;;  %v2753_v23 = vld [vmem:[#allocation5 + $0x418] sm:$0xff]   ;;  %v2754_v24 = vld [vmem:[#allocation5 + $0x460] sm:$0xff]  }
  0xbd   : > { %2433 = vmatprep.subr.bf16.mxu1 %v2688_v26  ;;  %v2756_v26 = vld [vmem:[#allocation5 + $0x468] sm:$0xff]  }
  0xbf   : > { %2412 = vmatpush3.bf16.msra.mxu0 %v2687_v25  ;;  %v2755_v25 = vld [vmem:[#allocation5 + $0x420] sm:$0xff]  }
  0xc0   : > { %2434 = vmatpush3.bf16.msra.mxu1 %v2689_v27  ;;  %2413 = vmatprep.subr.bf16.mxu0 %v2690_v28  ;;  %v2764_v27 = vld [vmem:[%s3168_s11 + $0x44] ss:$72 sps:$4 sm:$0xff]  }
  0xc1   : > { %2435 = vmatprep.subr.bf16.mxu1 %v2692_v30  ;;  %v2757_v28 = vld [vmem:[#allocation5 + $0x428] sm:$0xff]   ;;  %v2759_v30 = vld [vmem:[#allocation5 + $0x430] sm:$0xff]  }
  0xc3   : > { %2414 = vmatpush3.bf16.msra.mxu0 %v2691_v29  ;;  %v2758_v29 = vld [vmem:[#allocation5 + $0x470] sm:$0xff]  }
  0xc4   : > { %2436 = vmatpush3.bf16.msra.mxu1 %v2693_v31  ;;  %2415 = vmatprep.subr.bf16.mxu0 %v2694_v32  ;;  %v2760_v31 = vld [vmem:[#allocation5 + $0x478] sm:$0xff]  }
  0xc5   : > { %2437 = vmatprep.subr.bf16.mxu1 %v2696_v34  ;;  %v2761_v32 = vld [vmem:[#allocation5 + $0x438] sm:$0xff]  }
  0xc7   : > { %2416 = vmatpush3.bf16.msra.mxu0 %v2695_v33  ;;  %v2762_v33 = vld [vmem:[%s3168_s11 + $0x40] ss:$72 sps:$4 sm:$0xff]  }
  0xc8   : > { %2438 = vmatpush3.bf16.msra.mxu1 %v2697_v35  ;;  %2417 = vmatprep.subr.bf16.mxu0 %v2698_v36 }
  0xc9   : > { %2439 = vmatprep.subr.bf16.mxu1 %v2700_v38 }
  0xcb   : > { %2418 = vmatpush3.bf16.msra.mxu0 %v2699_v37 }
  0xcc   : > { %2440 = vmatpush3.bf16.msra.mxu1 %v2704_v41  ;;  %2447 = vmatprep.subr.bf16.mxu0 %v2705_v42 }
  0xcd   : > { %2469 = vmatprep.subr.bf16.mxu1 %v2710_v46 }
  0xce   : > { %1715 = vmatmul.mubr.bf16.vlgmr.msra.gmra.mrb[8].mxu0 %v2701_v39 }
  0xcf   : > { %2448 = vmatpush3.bf16.msra.mxu0 %v2709_v45  ;;  %1756 = vmatmul.mubr.bf16.vlgmr.msra.gmra.mrb[8].mxu1 %v2706_v43 }
  0xd0   : > { %2470 = vmatpush3.bf16.msra.mxu1 %v2711_v47  ;;  %2449 = vmatprep.subr.bf16.mxu0 %v2712_v48 }
  0xd1   : > { %2471 = vmatprep.subr.bf16.mxu1 %v2714_v50  ;;  %1796 = vmatprep.mubr.bf16.mxu0 %v2741_v12 }
  0xd2   : > { %1837 = vmatprep.mubr.bf16.mxu1 %v2746_v16 }
  0xd3   : > { %2450 = vmatpush3.bf16.msra.mxu0 %v2713_v49 }
  0xd4   : > { %2472 = vmatpush3.bf16.msra.mxu1 %v2715_v51  ;;  %2451 = vmatprep.subr.bf16.mxu0 %v2716_v52 }
  0xd5   : > { %2473 = vmatprep.subr.bf16.mxu1 %v2718_v54 }
  0xd7   : > { %2452 = vmatpush3.bf16.msra.mxu0 %v2717_v53 }
  0xd8   : > { %2474 = vmatpush3.bf16.msra.mxu1 %v2719_v55  ;;  %2453 = vmatprep.subr.bf16.mxu0 %v2720_v56 }
  0xd9   : > { %2475 = vmatprep.subr.bf16.mxu1 %v2722_v58 }
  0xdb   : > { %2454 = vmatpush3.bf16.msra.mxu0 %v2721_v57 }
  0xdc   : > { %2476 = vmatpush3.bf16.msra.mxu1 %v2723_v59  ;;  %2455 = vmatprep.subr.bf16.mxu0 %v2724_v60 }
  0xdd   : > { %2477 = vmatprep.subr.bf16.mxu1 %v2726_v62 }
  0xdf   : > { %2456 = vmatpush3.bf16.msra.mxu0 %v2725_v61 }
  0xe0   : > { %2478 = vmatpush3.bf16.msra.mxu1 %v2727_v63  ;;  %2457 = vmatprep.subr.bf16.mxu0 %v2728_v0 }
  0xe1   : > { %2479 = vmatprep.subr.bf16.mxu1 %v2730_v2 }
  0xe3   : > { %2458 = vmatpush3.bf16.msra.mxu0 %v2729_v1 }
  0xe4   : > { %2480 = vmatpush3.bf16.msra.mxu1 %v2731_v3  ;;  %2459 = vmatprep.subr.bf16.mxu0 %v2732_v4 }
  0xe5   : > { %2481 = vmatprep.subr.bf16.mxu1 %v2734_v6 }
  0xe7   : > { %2460 = vmatpush3.bf16.msra.mxu0 %v2733_v5 }
  0xe8   : > { %2482 = vmatpush3.bf16.msra.mxu1 %v2735_v7  ;;  %2461 = vmatprep.subr.bf16.mxu0 %v2736_v8 }
  0xe9   : > { %2483 = vmatprep.subr.bf16.mxu1 %v2738_v10 }
  0xeb   : > { %2462 = vmatpush3.bf16.msra.mxu0 %v2737_v9 }
  0xec   : > { %2484 = vmatpush3.bf16.msra.mxu1 %v2742_v13  ;;  %2491 = vmatprep.subr.bf16.mxu0 %v2743_v14 }
  0xee   : > { %1797 = vmatmul.mubr.bf16.vlgmr.msra.gmra.mrb[12].mxu0 %v2739_v11 }
  0xef   : > { %2492 = vmatpush3.bf16.msra.mxu0 %v2747_v17  ;;  %1838 = vmatmul.mubr.bf16.vlgmr.msra.gmra.mrb[12].mxu1 %v2744_v15 }
  0xf0   : > { %2493 = vmatprep.subr.bf16.mxu0 %v2748_v18  ;;  %1878 = vmatprep.mubr.bf16.mxu0 %v2764_v27 }
  0xf3   : > { %2494 = vmatpush3.bf16.msra.mxu0 %v2749_v19 }
  0xf4   : > { %2495 = vmatprep.subr.bf16.mxu0 %v2750_v20 }
  0xf7   : > { %2496 = vmatpush3.bf16.msra.mxu0 %v2751_v21 }
  0xf8   : > { %2497 = vmatprep.subr.bf16.mxu0 %v2752_v22 }
  0xfb   : > { %2498 = vmatpush3.bf16.msra.mxu0 %v2753_v23 }
  0xfc   : > { %2499 = vmatprep.subr.bf16.mxu0 %v2754_v24 }
  0xff   : > { %2500 = vmatpush3.bf16.msra.mxu0 %v2755_v25 }
 0x100   : > { %2501 = vmatprep.subr.bf16.mxu0 %v2756_v26 }
 0x103   : > { %2502 = vmatpush3.bf16.msra.mxu0 %v2757_v28 }
 0x104   : > { %2503 = vmatprep.subr.bf16.mxu0 %v2758_v29 }
 0x107   : > { %2504 = vmatpush3.bf16.msra.mxu0 %v2759_v30 }
 0x108   : > { %2505 = vmatprep.subr.bf16.mxu0 %v2760_v31 }
 0x10b   : > { %2506 = vmatpush3.bf16.msra.mxu0 %v2761_v32 }
 0x10e   : > { %1879 = vmatmul.mubr.bf16.vlgmr.msra.gmra.mrb[16].mxu0 %v2762_v33 }
 0x161   : > { %v2331_v34 = vpop.f32.mrb[0].mxu0 }
 0x162   : > { %v2353_v35 = vpop.f32.mrb[0].mxu1  ;;  %v2332_v36 = vpop.f32.mrb[1].mxu0 }
 0x163   : > { %v2333_v37 = vadd.f32 %v2332_v36, %v2331_v34  ;;  %v2354_v38 = vpop.f32.mrb[1].mxu1  ;;  %v2334_v39 = vpop.f32.mrb[2].mxu0 }
 0x164   : > { %v2355_v40 = vadd.f32 %v2354_v38, %v2353_v35  ;;  %v2356_v41 = vpop.f32.mrb[2].mxu1  ;;  %v2335_v42 = vpop.f32.mrb[3].mxu0 }
 0x165   : > { %v2336_v43 = vadd.f32 %v2335_v42, %v2334_v39  ;;  %v2357_v44 = vpop.f32.mrb[3].mxu1  ;;  %v2294_v39 = vld [vmem:[#allocation7] ss:$0 sm:$0xff] }
 0x166   : > { %v1594_v45 = vadd.f32 %v2355_v40, %v2333_v37  ;;  %v2358_v46 = vadd.f32 %v2357_v44, %v2356_v41 }
 0x168   : > { %v1597_v47 = vadd.f32 %v2358_v46, %v2336_v43 }
 0x181   : > { %v2375_v48 = vpop.f32.mrb[4].mxu0 }
 0x182   : > { %v2376_v49 = vpop.f32.mrb[5].mxu0  ;;  %v2397_v54 = vpop.f32.mrb[4].mxu1 }
 0x183   : > { %v2377_v50 = vadd.f32 %v2376_v49, %v2375_v48  ;;  %v2378_v51 = vpop.f32.mrb[6].mxu0  ;;  %v2398_v56 = vpop.f32.mrb[5].mxu1 }
 0x184   : > { %v2379_v52 = vpop.f32.mrb[7].mxu0  ;;  %v2399_v58 = vadd.f32 %v2398_v56, %v2397_v54  ;;  %v2400_v59 = vpop.f32.mrb[6].mxu1 }
 0x185   : > { %v1635_v53 = vadd.f32 %v2377_v50, %v1594_v45  ;;  %v2380_v55 = vadd.f32 %v2379_v52, %v2378_v51  ;;  %v2401_v60 = vpop.f32.mrb[7].mxu1 }
 0x186   : > { %v2402_v62 = vadd.f32 %v2401_v60, %v2400_v59 }
 0x187   : > { %v1638_v57 = vadd.f32 %v2380_v55, %v1597_v47  ;;  %v1676_v61 = vadd.f32 %v2399_v58, %v1635_v53 }
 0x189   : > { %v1679_v63 = vadd.f32 %v2402_v62, %v1638_v57 }
 0x1a1   : > { %v2419_v0 = vpop.f32.mrb[8].mxu0 }
 0x1a2   : > { %v2420_v1 = vpop.f32.mrb[9].mxu0  ;;  %v2441_v4 = vpop.f32.mrb[8].mxu1 }
 0x1a3   : > { %v2421_v2 = vadd.f32 %v2420_v1, %v2419_v0  ;;  %v2422_v3 = vpop.f32.mrb[10].mxu0  ;;  %v2442_v8 = vpop.f32.mrb[9].mxu1 }
 0x1a4   : > { %v2423_v5 = vpop.f32.mrb[11].mxu0  ;;  %v2443_v9 = vadd.f32 %v2442_v8, %v2441_v4  ;;  %v2444_v10 = vpop.f32.mrb[10].mxu1 }
 0x1a5   : > { %v1717_v6 = vadd.f32 %v2421_v2, %v1676_v61  ;;  %v2424_v7 = vadd.f32 %v2423_v5, %v2422_v3  ;;  %v2445_v12 = vpop.f32.mrb[11].mxu1 }
 0x1a6   : > { %v2446_v14 = vadd.f32 %v2445_v12, %v2444_v10 }
 0x1a7   : > { %v1720_v11 = vadd.f32 %v2424_v7, %v1679_v63  ;;  %v1758_v13 = vadd.f32 %v2443_v9, %v1717_v6 }
 0x1a9   : > { %v1761_v15 = vadd.f32 %v2446_v14, %v1720_v11 }
 0x1c1   : > { %v2463_v16 = vpop.f32.mrb[12].mxu0 }
 0x1c2   : > { %v2464_v17 = vpop.f32.mrb[13].mxu0  ;;  %v2485_v20 = vpop.f32.mrb[12].mxu1 }
 0x1c3   : > { %v2465_v18 = vadd.f32 %v2464_v17, %v2463_v16  ;;  %v2466_v19 = vpop.f32.mrb[14].mxu0  ;;  %v2486_v24 = vpop.f32.mrb[13].mxu1 }
 0x1c4   : > { %v2467_v21 = vpop.f32.mrb[15].mxu0  ;;  %v2487_v25 = vadd.f32 %v2486_v24, %v2485_v20  ;;  %v2488_v26 = vpop.f32.mrb[14].mxu1 }
 0x1c5   : > { %v1799_v22 = vadd.f32 %v2465_v18, %v1758_v13  ;;  %v2468_v23 = vadd.f32 %v2467_v21, %v2466_v19  ;;  %v2489_v28 = vpop.f32.mrb[15].mxu1 }
 0x1c6   : > { %v2490_v30 = vadd.f32 %v2489_v28, %v2488_v26 }
 0x1c7   : > { %v1802_v27 = vadd.f32 %v2468_v23, %v1761_v15  ;;  %v1840_v29 = vadd.f32 %v2487_v25, %v1799_v22 }
 0x1c9   : > { %v1843_v31 = vadd.f32 %v2490_v30, %v1802_v27 }
 0x1e1   : > { %v2507_v32 = vpop.f32.mrb[16].mxu0 }
 0x1e2   : > { %v2508_v33 = vpop.f32.mrb[17].mxu0 }
 0x1e3   : > { %v2509_v34 = vadd.f32 %v2508_v33, %v2507_v32  ;;  %v2510_v35 = vpop.f32.mrb[18].mxu0 }
 0x1e4   : > { %v2511_v36 = vpop.f32.mrb[19].mxu0 }
 0x1e5   : > { %v1881_v37 = vadd.f32 %v2509_v34, %v1840_v29  ;;  %v2512_v38 = vadd.f32 %v2511_v36, %v2510_v35 }
 0x1e7   : > { %v1884_v40 = vadd.f32 %v2512_v38, %v1843_v31  ;;  %v1894_v41 = vadd.f32 %v2294_v39, %v1881_v37  ;;  %1909 = sbr.rel (%p3305_p11) target bundleno = 507 (0x1fb), region = 48  ;;  %v1917_v45 = vmul.f32 (!%p3305_p11), %v1881_v37, %v1881_v37 }
 0x1e9   : > { %v1895_v42 = vadd.f32 %v2294_v39, %v1884_v40  ;;  %v1910_v44 = vadd.f32 (!%p3305_p11), %v1884_v40, %v1881_v37  ;;  %v1918_v46 = vmul.f32 (!%p3305_p11), %v1884_v40, %v1884_v40 }
 0x1eb   : > { %v2313_v43 = vpack.c.bf16 %v1895_v42, %v1894_v41  ;;  %v1911_v47 = vrot.slane (!%p3305_p11), %v1910_v44, 4  ;;  %v1919_v48 = vadd.f32 (!%p3305_p11), %v1918_v46, %v1917_v45 }
 0x1ed   : > { %2314 = vst [vmem:[%s3198_s24] sm:$0xff] %v2313_v43   ;;  %v1912_v49 = vadd.f32 (!%p3305_p11), %v1911_v47, %v1910_v44  ;;  %v1920_v50 = vrot.slane (!%p3305_p11), %v1919_v48, 4 }
 0x1ef   : > { %v1913_v51 = vrot.slane %v1912_v49, 2  ;;  %v1921_v52 = vadd.f32 %v1920_v50, %v1919_v48 }
 0x1f1   : > { %v1914_v53 = vadd.f32 %v1913_v51, %v1912_v49  ;;  %v1922_v54 = vrot.slane %v1921_v52, 2 }
 0x1f3   : > { %v1915_v55 = vrot.slane %v1914_v53, 1  ;;  %v1923_v56 = vadd.f32 %v1922_v54, %v1921_v52 }
 0x1f5   : > { %v1916_v57 = vadd.f32 %v1915_v55, %v1914_v53  ;;  %v1924_v58 = vrot.slane %v1923_v56, 1 }
 0x1f7   : > { %v1925_v59 = vadd.f32 %v1924_v58, %v1923_v56 }
 0x1f9   : > { %v1927_v60 = vsel %vm1926_vm0, %v1916_v57, %v1925_v59 }
 0x1fa   : > { %1928 = vst [vmem:[%s3203_s30] sm:$0x3] %v1927_v60 }
 0x1fb PF: > { %p2298_p0 = scmp.ne.s32.totalorder %s3012_s19, 1 }
 0x1fc   : > { %v1933_v61 = vlaneseq (!%p2298_p0)  ;;  %s2299_s6 = sshll.u32 (!%p2298_p0), %s3012_s19, 4  ;;  %vm1960_vm3 = vcmask (!%p2298_p0), 1040384  }
 0x1fd   : > { %1932 = sbr.rel (%p2298_p0) target bundleno = 536 (0x218), region = 52  ;;  %v1937_v62 = vstv (!%p2298_p0), %s2299_s6 }
 0x1fe   : > { %v1934_v63 = vshrl.u32 (!%p2298_p0), %v1933_v61, 7 }
 0x200   : > { %v1935_v0 = vadd.s32 (!%p2298_p0), 8, %v1934_v63  ;;  %v1938_v1 = vadd.s32 (!%p2298_p0), %v1937_v62, %v1934_v63 }
 0x202   : > { %v1939_v2 = vadd.s32 (!%p2298_p0), %v1937_v62, %v1935_v0  ;;  %vm1940_vm1 = vcmp.lt.s32.totalorder (!%p2298_p0), %v1938_v1, 18 }
 0x203   : > { %v1942_v3 = vsel (!%p2298_p0), %vm1940_vm1, %v1881_v37, 0.0 }
 0x204   : > { %vm1941_vm2 = vcmp.lt.s32.totalorder %v1939_v2, 18  ;;  %v1951_v4 = vmul.f32 %v1942_v3, %v1942_v3 }
 0x205   : > { %v1943_v5 = vsel %vm1941_vm2, %v1884_v40, 0.0 }
 0x206   : > { %v1944_v6 = vadd.f32 %v1943_v5, %v1942_v3  ;;  %v1952_v7 = vmul.f32 %v1943_v5, %v1943_v5 }
 0x208   : > { %v1945_v8 = vrot.slane %v1944_v6, 4  ;;  %v1953_v9 = vadd.f32 %v1952_v7, %v1951_v4 }
 0x20a   : > { %v1946_v10 = vadd.f32 %v1945_v8, %v1944_v6  ;;  %v1954_v11 = vrot.slane %v1953_v9, 4 }
 0x20c   : > { %v1947_v12 = vrot.slane %v1946_v10, 2  ;;  %v1955_v13 = vadd.f32 %v1954_v11, %v1953_v9 }
 0x20e   : > { %v1948_v14 = vadd.f32 %v1947_v12, %v1946_v10  ;;  %v1956_v15 = vrot.slane %v1955_v13, 2 }
 0x210   : > { %v1949_v16 = vrot.slane %v1948_v14, 1  ;;  %v1957_v17 = vadd.f32 %v1956_v15, %v1955_v13 }
 0x212   : > { %v1950_v18 = vadd.f32 %v1949_v16, %v1948_v14  ;;  %v1958_v19 = vrot.slane %v1957_v17, 1 }
 0x214   : > { %v1959_v20 = vadd.f32 %v1958_v19, %v1957_v17 }
 0x216   : > { %v1961_v21 = vsel %vm1960_vm3, %v1950_v18, %v1959_v20 }
 0x217   : > { %1962 = vst [vmem:[%s3203_s30] sm:$0x3] %v1961_v21 }
 0x218 PF: > { %s2309_s25 = sshll.u32 %s3012_s19, 7  ;;  %s1982_s27 = sshll.u32 %s3198_s24, 4  ;;  %s3218_s27 = int_to_ptr.vmem [resolvable:$true] %s1982_s27 }
 0x219   : > { %s3215_s20 = scalar_lea.hbm %s3290_s3, %s2309_s25  ;;  %s1964_s29 = scalar_lea.sflag [#allocation4], %s3164_s8 }
 0x21a   : > { %s2851_s5 = scalar_lea.vmem %s3218_s27, 128  ;;  %p3306_p3 = scmp.ne.s32.totalorder %s3300_s12, 0 }
 0x21b   : > { %p2852_p1 = scmp.ne.s32.totalorder %s3218_s27, %s2851_s5  ;;  %s2962_s7 = smov [#allocation8]  }
 0x21c   : > { %s2855_s9 = sshll.u32 %s2962_s7, 4  ;;  %s2856_s9 = int_to_ptr.vmem [resolvable:$false] %s2855_s9 }
 0x21d   : > { %p2853_p7 = pnand %p2852_p1, %p3306_p3  ;;  %s2857_s26 = scalar_lea.vmem %s2856_s9, 256 }
 0x21e   : > { %p2858_p12 = scmp.lt.s32.totalorder %s3218_s27, %s2856_s9  ;;  %p2859_p2 = scmp.lt.s32.totalorder %s2857_s26, %s2851_s5 }
 0x21f   : > { %p2854_p9 = pneg %p2853_p7 }
 0x220   : > { %p2860_p13 = por %p2859_p2, %p2858_p12 }
 0x222   : > { %p2861_p6 = pnand %p2860_p13, %p2854_p9 }
 0x224   : > { %2864 = shalt.err (!%p2861_p6)
}
 0x225   : > { %s2865_s11 = scalar_lea.hbm %s3215_s20, 128  ;;  %s2869_s24 = scalar_lea.hbm %s3290_s3, 256 }
 0x226   : > { %p2866_p10 = scmp.ne.s32.totalorder %s3215_s20, %s2865_s11  ;;  %p2870_p8 = scmp.lt.u32.totalorder %s3215_s20, %s3290_s3 }
 0x227   : > { %p2871_p11 = scmp.lt.u32.totalorder %s2869_s24, %s2865_s11  ;;  %p2873_p1 = scmp.lt.u32.totalorder %s2865_s11, %s3215_s20 }
 0x228   : > { %p2867_p4 = pnand %p2866_p10, %p3306_p3 }
 0x229   : > { %p2872_p0 = por %p2871_p11, %p2870_p8 }
 0x22a   : > { %p2868_p5 = pneg %p2867_p4 }
 0x22b   : > { %p2874_p7 = por %p2873_p1, %p2872_p0 }
 0x22d   : > { %p2875_p9 = pnand %p2874_p7, %p2868_p5 }
 0x22f   : > { %2878 = shalt.err (!%p2875_p9)
}
 0x230   : > { %s2963_s28 = smov 64   ;;  %s2964_s14 = smov 4  }
 0x231   : > { %2526 = dma.vmem_to_hbm [thread:$0]  (%p3306_p3), %s3218_s27, 128, %s3215_s20, %s1964_s29, %s2963_s28, %s2963_s28, %s2964_s14  }
 0x232   : > { %s2304_s5 = sshll.u32 %s3012_s19, 5  ;;  %s1998_s7 = sshll.u32 %s3203_s30, 4  ;;  %s1999_s7 = int_to_ptr.vmem [resolvable:$true] %s1998_s7 }
 0x233   : > { %s3249_s11 = scalar_lea.hbm %s3291_s4, %s2304_s5  ;;  %s1969_s23 = scalar_lea.sflag [#allocation10], %s3164_s8 }
 0x234   : > { %s2879_s21 = scalar_lea.vmem %s1999_s7, 32  ;;  %s2965_s24 = smov [#allocation9]  }
 0x235   : > { %p2880_p12 = scmp.ne.s32.totalorder %s1999_s7, %s2879_s21  ;;  %s2883_s6 = sshll.u32 %s2965_s24, 4  ;;  %s2884_s6 = int_to_ptr.vmem [resolvable:$false] %s2883_s6 }
 0x236   : > { %s2885_s25 = scalar_lea.vmem %s2884_s6, 64  ;;  %p2886_p6 = scmp.lt.s32.totalorder %s1999_s7, %s2884_s6 }
 0x237   : > { %p2881_p2 = pnand %p2880_p12, %p3306_p3  ;;  %p2887_p10 = scmp.lt.s32.totalorder %s2885_s25, %s2879_s21 }
 0x239   : > { %p2882_p13 = pneg %p2881_p2  ;;  %p2888_p4 = por %p2887_p10, %p2886_p6 }
 0x23b   : > { %p2889_p5 = pnand %p2888_p4, %p2882_p13 }
 0x23d   : > { %2892 = shalt.err (!%p2889_p5)
}
 0x23e   : > { %s2893_s19 = scalar_lea.hbm %s3249_s11, 32  ;;  %s2897_s20 = scalar_lea.hbm %s3291_s4, 64 }
 0x23f   : > { %p2894_p8 = scmp.ne.s32.totalorder %s3249_s11, %s2893_s19  ;;  %p2898_p1 = scmp.lt.u32.totalorder %s3249_s11, %s3291_s4 }
 0x240   : > { %p2899_p7 = scmp.lt.u32.totalorder %s2897_s20, %s2893_s19  ;;  %p2901_p12 = scmp.lt.u32.totalorder %s2893_s19, %s3249_s11 }
 0x241   : > { %p2895_p11 = pnand %p2894_p8, %p3306_p3 }
 0x242   : > { %p2900_p9 = por %p2899_p7, %p2898_p1 }
 0x243   : > { %p2896_p0 = pneg %p2895_p11 }
 0x244   : > { %p2902_p2 = por %p2901_p12, %p2900_p9 }
 0x246   : > { %p2903_p13 = pnand %p2902_p2, %p2896_p0 }
 0x248   : > { %2906 = shalt.err (!%p2903_p13)
}
 0x249   : > { %2527 = dma.vmem_to_hbm [thread:$0]  (%p3306_p3), %s1999_s7, 32, %s3249_s11, %s1969_s23  }
 0x24a PF: > { %s2010_s28 = sand.u32 1, %s2941_s15   ;;  %p3307_p6 = scmp.ne.s32.totalorder %s3296_s22, 0 }
 0x24b   : > { %p3308_p10 = scmp.ge.s32.totalorder %s2953_s18, 2  ;;  %s2011_s14 = scalar_lea.sflag [#allocation4], %s2010_s28 }
 0x24d   : > { %p2542_p4 = pnand %p3308_p10, %p3307_p6 }
 0x24f   : > { %2932 = dma.done.wait (!%p2542_p4), %s2011_s14, 128  }
 0x250   : > { %2934 = vsyncadd (!%p2542_p4), %s2011_s14, 4294967168  ;;  %s2020_s5 = scalar_lea.sflag [#allocation10], %s2010_s28 }
 0x251   : > { %2936 = dma.done.wait (!%p2542_p4), %s2020_s5, 32  }
 0x252   : > { %2938 = vsyncadd (!%p2542_p4), %s2020_s5, 4294967264  ;;  %p22_p3 = scmp.ge.s32.totalorder %s3102_s10, 4   ;;  %s3309_s15 = smov %s2945_s16 }
 0x253   : > { %s3310_s16 = smov %s2949_s17  ;;  %s3311_s17 = smov %s3118_s13 }
 0x254   : > { %s3312_s18 = smov %s3102_s10  ;;  %24 = sbr.rel (!%p22_p3) target bundleno = 8 (0x8), region = 110 }
 0x25b   :  { %2025 = vsyncpa [#allocation3], 1 }
 0x25c   :  { %2027 = vsyncpa [#allocation3 + $0x1], 1 }
 0x25d   :  { %2028 = vsyncpa [#allocation6], 1 }
 0x25e   :  { %2029 = vsyncpa [#allocation4], 1 }
 0x25f   :  { %2031 = vsyncpa [#allocation4 + $0x1], 1 }
 0x260   :  { %2032 = vsyncpa [#allocation10], 1 }
 0x261   :  { %2034 = vsyncpa [#allocation10 + $0x1], 1 }

</bundles_post_ra>
